<compile_context>
chip_gen: v7x
topology: tpu7x:2x2x1
jax: 0.10.0
libtpu: 0.0.40
codegen_flags: <defaults>
</compile_context>

<pallas_src>
import functools

import jax
import jax.numpy as jnp
from jax.experimental import pallas as pl
from jax.experimental.pallas import tpu as pltpu

# The original .bkp file left aa,a,b,c,d,e,f undefined.  These values satisfy
# the channel-flow constraints implied by the forward pass (c=2b, d=2c, e=2d).
AA, A, B, C, D, E = 4, 8, 16, 32, 64, 128
RGB = 3
IN_CH = 32            # fire1 = Fire(32, ...) -> camera input has 32 channels
F_PAD = 8             # final output channels padded 3 -> 8 inside the kernel

COMPUTE_DTYPE = jnp.bfloat16   # activations / weights; accumulation in f32


# ----------------------------------------------------------------------------
# Fused Fire / Smoke block kernel
# ----------------------------------------------------------------------------
def _fused_fire_kernel(*refs, H, W, sq, e1, e3, base, two_inputs, fuse_final):
    """squeeze(1x1)+ReLU -> {expand1x1+ReLU, expand3x3+ReLU} -> concat.
    Optionally the squeeze consumes two inputs (split weight == fused skip
    concat) and/or a final 1x1 conv + ReLU is fused on the concat output.
    All intermediates stay on-chip; the 3x3 runs as ONE K=9*sq matmul."""
    it = iter(refs)
    x_ref = next(it)
    x2_ref = next(it) if two_inputs else None
    sqw_ref = next(it)
    sq2w_ref = next(it) if two_inputs else None
    sqb_ref = next(it)
    e1w_ref = next(it)
    e1b_ref = next(it)
    e3w_ref = next(it)
    e3b_ref = next(it)
    if fuse_final:
        fw1_ref = next(it)
        fw3_ref = next(it)
        fb_ref = next(it)
    o_ref = next(it)
    col_ref = next(it)                                    # (base+W+1+HW, 9*sq) f32

    HW = H * W
    x = x_ref[...]                                        # (HW, Cin) bf16

    # ---- squeeze 1x1 + bias + ReLU (f32 accumulate, stays on-chip) ----
    s = jnp.dot(x, sqw_ref[...], preferred_element_type=jnp.float32)
    if two_inputs:
        s = s + jnp.dot(x2_ref[...], sq2w_ref[...],
                        preferred_element_type=jnp.float32)
    s = jnp.maximum(s + sqb_ref[...], 0.0)                # (HW, sq) f32
    s_c = s.astype(x.dtype)

    # ---- expand 1x1 + bias + ReLU ----
    y1 = jnp.dot(s_c, e1w_ref[...], preferred_element_type=jnp.float32)
    y1 = jnp.maximum(y1 + e1b_ref[...], 0.0)

    # ---- expand 3x3 (stride 1, padding 1) as one im2col matmul ----
    # Column-edge pre-masked copies of the squeeze map: only 2 selects total.
    j = jax.lax.broadcasted_iota(jnp.int32, (HW, 1), 0) % W
    s_l = jnp.where(j == (W - 1), 0.0, s)   # usable as a "left neighbour" value
    s_r = jnp.where(j == 0, 0.0, s)         # usable as a "right neighbour" value

    # Zero only the two row-margin bands that stay visible after the stores.
    zeros_band = jnp.zeros((W + 1, 9 * sq), jnp.float32)
    col_ref[pl.ds(base, W + 1), :] = zeros_band
    col_ref[pl.ds(base + HW - (W + 1), W + 1), :] = zeros_band

    # Nine lane-offset stores build the (HW, 9*sq) im2col tile; the row offset
    # of each store absorbs the spatial shift (di-1)*W + (dj-1), so reading
    # rows [base, base+HW) afterwards yields exactly the 3x3 patches.
    taps = (s_l, s, s_r)                    # indexed by dj
    for di in range(3):
        for dj in range(3):
            off = (di - 1) * W + (dj - 1)
            t = di * 3 + dj
            col_ref[pl.ds(base - off, HW), pl.ds(t * sq, sq)] = taps[dj]

    patches = col_ref[pl.ds(base, HW), :].astype(x.dtype)   # (HW, 9*sq) bf16
    y3 = jnp.dot(patches, e3w_ref[...], preferred_element_type=jnp.float32)
    y3 = jnp.maximum(y3 + e3b_ref[...], 0.0)

    if fuse_final:
        # final 1x1 deconv on concat([y1, y3]) == sum of split-weight matmuls
        yf = (jnp.dot(y1.astype(x.dtype), fw1_ref[...],
                      preferred_element_type=jnp.float32)
              + jnp.dot(y3.astype(x.dtype), fw3_ref[...],
                        preferred_element_type=jnp.float32)
              + fb_ref[...])
        o_ref[...] = jnp.maximum(yf, 0.0).astype(o_ref.dtype)
    else:
        # channel concat realized as two stores into one output block
        o_ref[:, pl.ds(0, e1)] = y1.astype(o_ref.dtype)
        o_ref[:, pl.ds(e1, e3)] = y3.astype(o_ref.dtype)


def fused_fire(x, p, *, H, W, x2=None, final=None, out_dtype=None):
    """x: (N, H*W, Cin) activations.  p: block params (e3_w pre-reshaped to
    (9*sq, e3)).  x2: optional second input (fused skip concat; uses p["sq_w2"]).
    final: optional (fw1, fw3, fb) for fusing the trailing 1x1 deconv + ReLU."""
    N, HW, Cin = x.shape
    assert HW == H * W, (HW, H, W)
    sq = p["sq_w"].shape[1]
    e1 = p["e1_w"].shape[1]
    e3 = p["e3_w"].shape[1]
    two_inputs = x2 is not None
    fuse_final = final is not None
    Cout = final[0].shape[1] if fuse_final else e1 + e3
    out_dtype = x.dtype if out_dtype is None else out_dtype
    base = ((W + 1 + 7) // 8) * 8          # 8-sublane aligned im2col read

    kernel = functools.partial(_fused_fire_kernel, H=H, W=W, sq=sq, e1=e1,
                               e3=e3, base=base, two_inputs=two_inputs,
                               fuse_final=fuse_final)

    args = [x]
    in_specs = [pl.BlockSpec((None, HW, Cin), lambda n: (n, 0, 0))]
    if two_inputs:
        C2 = x2.shape[2]
        args.append(x2)
        in_specs.append(pl.BlockSpec((None, HW, C2), lambda n: (n, 0, 0)))
    args.append(p["sq_w"])
    in_specs.append(pl.BlockSpec((Cin, sq), lambda n: (0, 0)))
    if two_inputs:
        args.append(p["sq_w2"])
        in_specs.append(pl.BlockSpec((x2.shape[2], sq), lambda n: (0, 0)))
    args += [p["sq_b"], p["e1_w"], p["e1_b"], p["e3_w"], p["e3_b"]]
    in_specs += [
        pl.BlockSpec((1, sq), lambda n: (0, 0)),
        pl.BlockSpec((sq, e1), lambda n: (0, 0)),
        pl.BlockSpec((1, e1), lambda n: (0, 0)),
        pl.BlockSpec((9 * sq, e3), lambda n: (0, 0)),
        pl.BlockSpec((1, e3), lambda n: (0, 0)),
    ]
    if fuse_final:
        fw1, fw3, fb = final
        args += [fw1, fw3, fb]
        in_specs += [
            pl.BlockSpec((e1, Cout), lambda n: (0, 0)),
            pl.BlockSpec((e3, Cout), lambda n: (0, 0)),
            pl.BlockSpec((1, Cout), lambda n: (0, 0)),
        ]

    return pl.pallas_call(
        kernel,
        out_shape=jax.ShapeDtypeStruct((N, HW, Cout), out_dtype),
        grid_spec=pltpu.PrefetchScalarGridSpec(
            num_scalar_prefetch=0,
            grid=(N,),
            in_specs=in_specs,
            out_specs=pl.BlockSpec((None, HW, Cout), lambda n: (n, 0, 0)),
            scratch_shapes=[
                pltpu.VMEM((base + W + 1 + HW, 9 * sq), jnp.float32)],
        ),
        compiler_params=pltpu.CompilerParams(
            dimension_semantics=("parallel",)),
    )(*args)


# ----------------------------------------------------------------------------
# MaxPool2d(k=3, s=2, return_indices=True) / MaxUnpool2d
# TODO(synk): pool index bookkeeping kept as (vectorized) plain-JAX glue;
# the unpool is now an O(P*C) scatter-max instead of a broadcast compare.
# ----------------------------------------------------------------------------
def maxpool3_s2_with_indices(x, H, W):
    """x: (N, H*W, C).  Returns pooled values and PyTorch-style flat H*W
    indices in the same flattened layout, plus the pooled spatial dims."""
    N, HW, Cch = x.shape
    xi = x.reshape(N, H, W, Cch)
    OH = (H - 3) // 2 + 1
    OW = (W - 3) // 2 + 1
    windows = [xi[:, di:di + 2 * OH - 1:2, dj:dj + 2 * OW - 1:2, :]
               for di in range(3) for dj in range(3)]
    p = jnp.stack(windows, axis=-1)                      # (N, OH, OW, C, 9)
    val = jnp.max(p, axis=-1)
    arg = jnp.argmax(p, axis=-1).astype(jnp.int32)
    di, dj = arg // 3, arg % 3
    row = jnp.arange(OH, dtype=jnp.int32)[None, :, None, None] * 2 + di
    col = jnp.arange(OW, dtype=jnp.int32)[None, None, :, None] * 2 + dj
    flat_idx = row * W + col                             # (N, OH, OW, C)
    return (val.reshape(N, OH * OW, Cch),
            flat_idx.reshape(N, OH * OW, Cch), OH, OW)


def maxunpool(val, idx, H, W):
    """Place each pooled value at its recorded flat index of an (H*W) map
    (output_size == original map size, as the reference passes size_fireN).
    Scatter-max: values are post-ReLU (>= 0) and colliding windows carry the
    same value, so max reproduces assignment semantics."""
    N, P, Cch = val.shape
    HW = H * W
    n_off = jnp.arange(N, dtype=jnp.int32)[:, None, None] * (HW * Cch)
    c_off = jnp.arange(Cch, dtype=jnp.int32)[None, None, :]
    flat_idx = (n_off + idx * Cch + c_off).reshape(-1)
    flat = jnp.zeros((N * HW * Cch,), jnp.float32)
    flat = flat.at[flat_idx].max(val.astype(jnp.float32).reshape(-1))
    return flat.reshape(N, HW, Cch).astype(val.dtype)


# ----------------------------------------------------------------------------
# Parameter construction (deterministic, synthetic weights)
# ----------------------------------------------------------------------------
def _conv_w_1x1_to_mm(w):
    # Conv2d weight (Cout, Cin, 1, 1) -> (Cin, Cout)
    return jnp.transpose(w[:, :, 0, 0], (1, 0))


def _conv_w_3x3_to_mat(w):
    # Conv2d weight (Cout, Cin, 3, 3) -> (9*Cin, Cout), row order (kh, kw, cin)
    cout, cin = w.shape[0], w.shape[1]
    return jnp.transpose(w, (2, 3, 1, 0)).reshape(9 * cin, cout)


def _convT_to_conv(w):
    # ConvTranspose2d weight (Cin, Cout, k, k), stride=1, padding p:
    # equivalent Conv2d weight = swap in/out channels + spatial flip, applied
    # with padding k-1-p (== 1 for the 3x3/padding=1 layers of this module).
    return jnp.flip(jnp.transpose(w, (1, 0, 2, 3)), axis=(2, 3))


def _kaiming_uniform(key, cout, cin, k):
    bound = (6.0 / (cin * k * k)) ** 0.5
    return jax.random.uniform(key, (cout, cin, k, k), jnp.float32, -bound, bound)


def _make_fire(key, inpl, sqp, e1p, e3p, dtype):
    # nn.Conv2d path: kaiming_uniform weights, zero biases (module __init__).
    k0, k1, k2 = jax.random.split(key, 3)
    return dict(
        sq_w=_conv_w_1x1_to_mm(_kaiming_uniform(k0, sqp, inpl, 1)).astype(dtype),
        sq_b=jnp.zeros((1, sqp), jnp.float32),
        e1_w=_conv_w_1x1_to_mm(_kaiming_uniform(k1, e1p, sqp, 1)).astype(dtype),
        e1_b=jnp.zeros((1, e1p), jnp.float32),
        e3_w=_conv_w_3x3_to_mat(_kaiming_uniform(k2, e3p, sqp, 3)).astype(dtype),
        e3_b=jnp.zeros((1, e3p), jnp.float32),
    )


def _convT_wb(key, cin, cout, k):
    # nn.ConvTranspose2d keeps PyTorch default init: U(-b, b), b ~ 1/sqrt(fan_in)
    kw, kb = jax.random.split(key)
    bound = (1.0 / (cin * k * k)) ** 0.5
    w = jax.random.uniform(kw, (cin, cout, k, k), jnp.float32, -bound, bound)
    b = jax.random.uniform(kb, (cout,), jnp.float32, -bound, bound)
    return _convT_to_conv(w), b


def _make_smoke(key, inpl, sqp, e1p, e3p, dtype):
    k0, k1, k2 = jax.random.split(key, 3)
    sqw, sqb = _convT_wb(k0, inpl, sqp, 1)
    e1w, e1b = _convT_wb(k1, sqp, e1p, 1)
    e3w, e3b = _convT_wb(k2, sqp, e3p, 3)
    return dict(
        sq_w=_conv_w_1x1_to_mm(sqw).astype(dtype), sq_b=sqb.reshape(1, -1),
        e1_w=_conv_w_1x1_to_mm(e1w).astype(dtype), e1_b=e1b.reshape(1, -1),
        e3_w=_conv_w_3x3_to_mat(e3w).astype(dtype), e3_b=e3b.reshape(1, -1),
    )


def make_params(key, dtype=COMPUTE_DTYPE):
    ks = jax.random.split(key, 7)
    # smoke2's squeeze weight is split in two halves so the kernel can consume
    # the skip connection (fire2 output, unpooled tensor) without an HBM concat.
    smoke2 = _make_smoke(ks[4], D + D, A, B, B, dtype)
    smoke2["sq_w"], smoke2["sq_w2"] = smoke2["sq_w"][:D], smoke2["sq_w"][D:]
    params = {
        "fire1": _make_fire(ks[0], IN_CH, AA, B, B, dtype),
        "fire2": _make_fire(ks[1], C, A, C, C, dtype),
        "fire3": _make_fire(ks[2], D, B, D, D, dtype),
        "smoke3": _make_smoke(ks[3], E, B, C, C, dtype),
        "smoke2": smoke2,
        "smoke1": _make_smoke(ks[5], C, AA, A, A, dtype),
    }
    # final_deconv = ConvTranspose2d(2A, RGB, 1); fused into the smoke1 kernel.
    fw, fb = _convT_wb(ks[6], 2 * A, RGB, 1)
    fwm = _conv_w_1x1_to_mm(fw)                              # (2A, RGB)
    fwm = jnp.pad(fwm, ((0, 0), (0, F_PAD - RGB)))           # lane-pad 3 -> 8
    fbp = jnp.pad(fb, (0, F_PAD - RGB)).reshape(1, F_PAD)
    params["final_w1"] = fwm[:A].astype(dtype)               # expand1x1 half
    params["final_w3"] = fwm[A:].astype(dtype)               # expand3x3 half
    params["final_b"] = fbp
    return params


# ----------------------------------------------------------------------------
# ConDecon_FS forward
# ----------------------------------------------------------------------------
def condecon_fs_forward(x_nchw, params):
    N, Cin, H, W = x_nchw.shape
    x = jnp.transpose(x_nchw, (0, 2, 3, 1)).reshape(N, H * W, Cin)
    x = x.astype(COMPUTE_DTYPE)

    x = fused_fire(x, params["fire1"], H=H, W=W)             # (N, HW, 2B)
    x, ind1, H1, W1 = maxpool3_s2_with_indices(x, H, W)

    x = fused_fire(x, params["fire2"], H=H1, W=W1)           # (N, H1W1, 2C)
    fire2_out = x
    x, ind2, H2, W2 = maxpool3_s2_with_indices(x, H1, W1)

    x = fused_fire(x, params["fire3"], H=H2, W=W2)           # (N, H2W2, 2D)

    x = fused_fire(x, params["smoke3"], H=H2, W=W2)          # -> 2C channels
    x = maxunpool(x, ind2, H1, W1)

    # skip connection: torch.cat((fire2, x), 1) is fused into smoke2 via the
    # split squeeze weight -> no concatenated tensor ever hits HBM.
    x = fused_fire(fire2_out, params["smoke2"], H=H1, W=W1, x2=x)   # -> 2B ch
    x = maxunpool(x, ind1, H, W)

    # smoke1 + final 1x1 deconv + ReLU ("swish6" == nn.ReLU) in one pallas_call
    x = fused_fire(x, params["smoke1"], H=H, W=W,
                   final=(params["final_w1"], params["final_w3"],
                          params["final_b"]))                # (N, HW, F_PAD) bf16
    x = x[:, :, :RGB].astype(jnp.float32)                    # drop channel pad
    return jnp.transpose(x.reshape(N, H, W, RGB), (0, 3, 1, 2))   # -> NCHW


if __name__ == "__main__":
    key = jax.random.PRNGKey(0)
    k_param, k_input = jax.random.split(key)
    params = make_params(k_param)

    N, H, W = 2, 16, 16
    x = jax.random.normal(k_input, (N, IN_CH, H, W), jnp.float32)

    fwd = jax.jit(condecon_fs_forward)
    out = fwd(x, params)
    jax.block_until_ready(out)

    assert out.shape == (N, RGB, H, W), out.shape
    assert bool(jnp.all(out >= 0.0))       # final ReLU
    print("KERNEL_OK")
</pallas_src>

<mosaic_0001>
module attributes {stable_mosaic.version = 11 : i64} {
  func.func private @main(%arg0: i32) attributes {dimension_semantics = [#tpu.dimension_semantics<core_parallel>], iteration_bounds = array<i64: 2>, tpu.core_type = #tpu.core_type<sc_scalar_subcore>, window_params = []} {
    return
  }
}

module attributes {stable_mosaic.version = 11 : i64} {
  func.func private @main(%arg0: i32) attributes {dimension_semantics = [#tpu.dimension_semantics<core_parallel>], iteration_bounds = array<i64: 2>, tpu.core_type = #tpu.core_type<sc_scalar_subcore>, window_params = []} {
    return
  }
}

module attributes {stable_mosaic.version = 11 : i64} {
  func.func @_fused_fire_kernel(%arg0: i32, %arg1: memref<1x256x32xbf16, #tpu.memory_space<vmem>>, %arg2: memref<32x4xbf16, #tpu.memory_space<vmem>>, %arg3: memref<1x4xf32, #tpu.memory_space<vmem>>, %arg4: memref<4x16xbf16, #tpu.memory_space<vmem>>, %arg5: memref<1x16xf32, #tpu.memory_space<vmem>>, %arg6: memref<36x16xbf16, #tpu.memory_space<vmem>>, %arg7: memref<1x16xf32, #tpu.memory_space<vmem>>, %arg8: memref<1x256x32xbf16, #tpu.memory_space<vmem>>, %arg9: memref<297x36xf32, #tpu.memory_space<vmem>>) attributes {dimension_semantics = [#tpu.dimension_semantics<parallel>], iteration_bounds = array<i64: 2>, scalar_prefetch = 0 : i64, scratch_operands = 1 : i64, tpu.core_type = #tpu.core_type<tc>, window_params = [{transform_indices = @transform_0, window_bounds = array<i64: 1, 256, 32>}, {pipeline_mode = #tpu.pipeline_mode<synchronous>, transform_indices = @transform_1, window_bounds = array<i64: 32, 4>}, {pipeline_mode = #tpu.pipeline_mode<synchronous>, transform_indices = @transform_2, window_bounds = array<i64: 1, 4>}, {pipeline_mode = #tpu.pipeline_mode<synchronous>, transform_indices = @transform_3, window_bounds = array<i64: 4, 16>}, {pipeline_mode = #tpu.pipeline_mode<synchronous>, transform_indices = @transform_4, window_bounds = array<i64: 1, 16>}, {pipeline_mode = #tpu.pipeline_mode<synchronous>, transform_indices = @transform_5, window_bounds = array<i64: 36, 16>}, {pipeline_mode = #tpu.pipeline_mode<synchronous>, transform_indices = @transform_6, window_bounds = array<i64: 1, 16>}, {transform_indices = @transform_7, window_bounds = array<i64: 1, 256, 32>}]} {
    %c0 = arith.constant 0 : index
    %c0_0 = arith.constant 0 : index
    %c0_1 = arith.constant 0 : index
    %0 = vector.load %arg1[%c0, %c0_0, %c0_1] : memref<1x256x32xbf16, #tpu.memory_space<vmem>>, vector<1x256x32xbf16>
    %1 = vector.shape_cast %0 : vector<1x256x32xbf16> to vector<256x32xbf16>
    %c0_2 = arith.constant 0 : index
    %c0_3 = arith.constant 0 : index
    %2 = vector.load %arg2[%c0_2, %c0_3] : memref<32x4xbf16, #tpu.memory_space<vmem>>, vector<32x4xbf16>
    %cst = arith.constant dense<0.000000e+00> : vector<256x4xf32>
    %3 = tpu.matmul %1, %2, %cst {dimension_numbers = #tpu.dot_dimension_numbers<[1], [0], [0], [1], [0, 0, 1, 1], [], []>} : vector<256x32xbf16>, vector<32x4xbf16>, vector<256x4xf32> -> vector<256x4xf32>
    %c0_4 = arith.constant 0 : index
    %c0_5 = arith.constant 0 : index
    %4 = vector.load %arg3[%c0_4, %c0_5] : memref<1x4xf32, #tpu.memory_space<vmem>>, vector<1x4xf32>
    %5 = vector.broadcast %4 : vector<1x4xf32> to vector<256x4xf32>
    %6 = arith.addf %3, %5 : vector<256x4xf32>
    %cst_6 = arith.constant 0.000000e+00 : f32
    %7 = vector.broadcast %cst_6 : f32 to vector<256x4xf32>
    %8 = arith.maximumf %6, %7 : vector<256x4xf32>
    %9 = arith.truncf %8 : vector<256x4xf32> to vector<256x4xbf16>
    %c0_7 = arith.constant 0 : index
    %c0_8 = arith.constant 0 : index
    %10 = vector.load %arg4[%c0_7, %c0_8] : memref<4x16xbf16, #tpu.memory_space<vmem>>, vector<4x16xbf16>
    %cst_9 = arith.constant dense<0.000000e+00> : vector<256x16xf32>
    %11 = tpu.matmul %9, %10, %cst_9 {dimension_numbers = #tpu.dot_dimension_numbers<[1], [0], [0], [1], [0, 0, 1, 1], [], []>} : vector<256x4xbf16>, vector<4x16xbf16>, vector<256x16xf32> -> vector<256x16xf32>
    %c0_10 = arith.constant 0 : index
    %c0_11 = arith.constant 0 : index
    %12 = vector.load %arg5[%c0_10, %c0_11] : memref<1x16xf32, #tpu.memory_space<vmem>>, vector<1x16xf32>
    %13 = vector.broadcast %12 : vector<1x16xf32> to vector<256x16xf32>
    %14 = arith.addf %11, %13 : vector<256x16xf32>
    %cst_12 = arith.constant 0.000000e+00 : f32
    %15 = vector.broadcast %cst_12 : f32 to vector<256x16xf32>
    %16 = arith.maximumf %14, %15 : vector<256x16xf32>
    %17 = tpu.iota {dimensions = array<i32: 0>} : vector<256x1xi32>
    %c16_i32 = arith.constant 16 : i32
    %c0_i32 = arith.constant 0 : i32
    %18 = arith.cmpi eq, %c16_i32, %c0_i32 : i32
    %c1_i32 = arith.constant 1 : i32
    %19 = arith.select %18, %c1_i32, %c16_i32 : i32
    %20 = vector.broadcast %19 : i32 to vector<256x1xi32>
    %21 = arith.remsi %17, %20 : vector<256x1xi32>
    %c0_i32_13 = arith.constant 0 : i32
    %22 = vector.broadcast %c0_i32_13 : i32 to vector<256x1xi32>
    %23 = arith.cmpi ne, %21, %22 : vector<256x1xi32>
    %c0_i32_14 = arith.constant 0 : i32
    %24 = vector.broadcast %c0_i32_14 : i32 to vector<256x1xi32>
    %25 = arith.cmpi slt, %21, %24 : vector<256x1xi32>
    %c0_i32_15 = arith.constant 0 : i32
    %26 = arith.cmpi slt, %19, %c0_i32_15 : i32
    %27 = vector.broadcast %26 : i1 to vector<256x1xi1>
    %28 = vector.broadcast %27 : vector<256x1xi1> to vector<256x1xi1>
    %29 = arith.xori %25, %28 : vector<256x1xi1>
    %30 = arith.andi %29, %23 : vector<256x1xi1>
    %31 = vector.broadcast %19 : i32 to vector<256x1xi32>
    %32 = arith.addi %21, %31 : vector<256x1xi32>
    %33 = arith.select %30, %32, %21 : vector<256x1xi1>, vector<256x1xi32>
    %c15_i32 = arith.constant 15 : i32
    %34 = vector.broadcast %c15_i32 : i32 to vector<256x1xi32>
    %35 = arith.cmpi eq, %33, %34 : vector<256x1xi32>
    %cst_16 = arith.constant 0.000000e+00 : f32
    %36 = vector.shape_cast %35 : vector<256x1xi1> to vector<256x1xi1>
    %37 = vector.broadcast %36 : vector<256x1xi1> to vector<256x4xi1>
    %38 = vector.broadcast %cst_16 : f32 to vector<256x4xf32>
    %39 = arith.select %37, %38, %8 : vector<256x4xi1>, vector<256x4xf32>
    %c0_i32_17 = arith.constant 0 : i32
    %40 = vector.broadcast %c0_i32_17 : i32 to vector<256x1xi32>
    %41 = arith.cmpi eq, %33, %40 : vector<256x1xi32>
    %cst_18 = arith.constant 0.000000e+00 : f32
    %42 = vector.shape_cast %41 : vector<256x1xi1> to vector<256x1xi1>
    %43 = vector.broadcast %42 : vector<256x1xi1> to vector<256x4xi1>
    %44 = vector.broadcast %cst_18 : f32 to vector<256x4xf32>
    %45 = arith.select %43, %44, %8 : vector<256x4xi1>, vector<256x4xf32>
    %cst_19 = arith.constant 0.000000e+00 : f32
    %46 = vector.broadcast %cst_19 : f32 to vector<17x36xf32>
    %c24 = arith.constant 24 : index
    %c0_20 = arith.constant 0 : index
    %47 = vector.load %arg9[%c24, %c0_20] : memref<297x36xf32, #tpu.memory_space<vmem>>, vector<17x36xf32>
    tpu.vector_store %arg9[%c24, %c0_20], %46 {strides = array<i32>} : memref<297x36xf32, #tpu.memory_space<vmem>>, vector<17x36xf32>,
    %c263 = arith.constant 263 : index
    %c0_21 = arith.constant 0 : index
    %48 = vector.load %arg9[%c263, %c0_21] : memref<297x36xf32, #tpu.memory_space<vmem>>, vector<17x36xf32>
    tpu.vector_store %arg9[%c263, %c0_21], %46 {strides = array<i32>} : memref<297x36xf32, #tpu.memory_space<vmem>>, vector<17x36xf32>,
    %c41 = arith.constant 41 : index
    %c0_22 = arith.constant 0 : index
    %49 = vector.load %arg9[%c41, %c0_22] : memref<297x36xf32, #tpu.memory_space<vmem>>, vector<256x4xf32>
    tpu.vector_store %arg9[%c41, %c0_22], %39 {strides = array<i32>} : memref<297x36xf32, #tpu.memory_space<vmem>>, vector<256x4xf32>,
    %c40 = arith.constant 40 : index
    %c4 = arith.constant 4 : index
    %50 = vector.load %arg9[%c40, %c4] : memref<297x36xf32, #tpu.memory_space<vmem>>, vector<256x4xf32>
    tpu.vector_store %arg9[%c40, %c4], %8 {strides = array<i32>} : memref<297x36xf32, #tpu.memory_space<vmem>>, vector<256x4xf32>,
    %c39 = arith.constant 39 : index
    %c8 = arith.constant 8 : index
    %51 = vector.load %arg9[%c39, %c8] : memref<297x36xf32, #tpu.memory_space<vmem>>, vector<256x4xf32>
    tpu.vector_store %arg9[%c39, %c8], %45 {strides = array<i32>} : memref<297x36xf32, #tpu.memory_space<vmem>>, vector<256x4xf32>,
    %c25 = arith.constant 25 : index
    %c12 = arith.constant 12 : index
    %52 = vector.load %arg9[%c25, %c12] : memref<297x36xf32, #tpu.memory_space<vmem>>, vector<256x4xf32>
    tpu.vector_store %arg9[%c25, %c12], %39 {strides = array<i32>} : memref<297x36xf32, #tpu.memory_space<vmem>>, vector<256x4xf32>,
    %c24_23 = arith.constant 24 : index
    %c16 = arith.constant 16 : index
    %53 = vector.load %arg9[%c24_23, %c16] : memref<297x36xf32, #tpu.memory_space<vmem>>, vector<256x4xf32>
    tpu.vector_store %arg9[%c24_23, %c16], %8 {strides = array<i32>} : memref<297x36xf32, #tpu.memory_space<vmem>>, vector<256x4xf32>,
    %c23 = arith.constant 23 : index
    %c20 = arith.constant 20 : index
    %54 = vector.load %arg9[%c23, %c20] : memref<297x36xf32, #tpu.memory_space<vmem>>, vector<256x4xf32>
    tpu.vector_store %arg9[%c23, %c20], %45 {strides = array<i32>} : memref<297x36xf32, #tpu.memory_space<vmem>>, vector<256x4xf32>,
    %c9 = arith.constant 9 : index
    %c24_24 = arith.constant 24 : index
    %55 = vector.load %arg9[%c9, %c24_24] : memref<297x36xf32, #tpu.memory_space<vmem>>, vector<256x4xf32>
    tpu.vector_store %arg9[%c9, %c24_24], %39 {strides = array<i32>} : memref<297x36xf32, #tpu.memory_space<vmem>>, vector<256x4xf32>,
    %c8_25 = arith.constant 8 : index
    %c28 = arith.constant 28 : index
    %56 = vector.load %arg9[%c8_25, %c28] : memref<297x36xf32, #tpu.memory_space<vmem>>, vector<256x4xf32>
    tpu.vector_store %arg9[%c8_25, %c28], %8 {strides = array<i32>} : memref<297x36xf32, #tpu.memory_space<vmem>>, vector<256x4xf32>,
    %c7 = arith.constant 7 : index
    %c32 = arith.constant 32 : index
    %57 = vector.load %arg9[%c7, %c32] : memref<297x36xf32, #tpu.memory_space<vmem>>, vector<256x4xf32>
    tpu.vector_store %arg9[%c7, %c32], %45 {strides = array<i32>} : memref<297x36xf32, #tpu.memory_space<vmem>>, vector<256x4xf32>,
    %c24_26 = arith.constant 24 : index
    %c0_27 = arith.constant 0 : index
    %58 = vector.load %arg9[%c24_26, %c0_27] : memref<297x36xf32, #tpu.memory_space<vmem>>, vector<256x36xf32>
    %59 = arith.truncf %58 : vector<256x36xf32> to vector<256x36xbf16>
    %c0_28 = arith.constant 0 : index
    %c0_29 = arith.constant 0 : index
    %60 = vector.load %arg6[%c0_28, %c0_29] : memref<36x16xbf16, #tpu.memory_space<vmem>>, vector<36x16xbf16>
    %cst_30 = arith.constant dense<0.000000e+00> : vector<256x16xf32>
    %61 = tpu.matmul %59, %60, %cst_30 {dimension_numbers = #tpu.dot_dimension_numbers<[1], [0], [0], [1], [0, 0, 1, 1], [], []>} : vector<256x36xbf16>, vector<36x16xbf16>, vector<256x16xf32> -> vector<256x16xf32>
    %c0_31 = arith.constant 0 : index
    %c0_32 = arith.constant 0 : index
    %62 = vector.load %arg7[%c0_31, %c0_32] : memref<1x16xf32, #tpu.memory_space<vmem>>, vector<1x16xf32>
    %63 = vector.broadcast %62 : vector<1x16xf32> to vector<256x16xf32>
    %64 = arith.addf %61, %63 : vector<256x16xf32>
    %cst_33 = arith.constant 0.000000e+00 : f32
    %65 = vector.broadcast %cst_33 : f32 to vector<256x16xf32>
    %66 = arith.maximumf %64, %65 : vector<256x16xf32>
    %67 = arith.truncf %16 : vector<256x16xf32> to vector<256x16xbf16>
    %c0_34 = arith.constant 0 : index
    %c0_35 = arith.constant 0 : index
    %c0_36 = arith.constant 0 : index
    %68 = vector.load %arg8[%c0_34, %c0_35, %c0_36] : memref<1x256x32xbf16, #tpu.memory_space<vmem>>, vector<1x256x16xbf16>
    %69 = vector.shape_cast %68 : vector<1x256x16xbf16> to vector<256x16xbf16>
    %70 = vector.shape_cast %67 : vector<256x16xbf16> to vector<1x256x16xbf16>
    tpu.vector_store %arg8[%c0_34, %c0_35, %c0_36], %70 {strides = array<i32>} : memref<1x256x32xbf16, #tpu.memory_space<vmem>>, vector<1x256x16xbf16>,
    %71 = arith.truncf %66 : vector<256x16xf32> to vector<256x16xbf16>
    %c0_37 = arith.constant 0 : index
    %c0_38 = arith.constant 0 : index
    %c16_39 = arith.constant 16 : index
    %72 = vector.load %arg8[%c0_37, %c0_38, %c16_39] : memref<1x256x32xbf16, #tpu.memory_space<vmem>>, vector<1x256x16xbf16>
    %73 = vector.shape_cast %72 : vector<1x256x16xbf16> to vector<256x16xbf16>
    %74 = vector.shape_cast %71 : vector<256x16xbf16> to vector<1x256x16xbf16>
    tpu.vector_store %arg8[%c0_37, %c0_38, %c16_39], %74 {strides = array<i32>} : memref<1x256x32xbf16, #tpu.memory_space<vmem>>, vector<1x256x16xbf16>,
    return
  }
  func.func @transform_0(%arg0: i32) -> (i32, i32, i32) {
    %c0_i32 = arith.constant 0 : i32
    %c0_i32_0 = arith.constant 0 : i32
    %c0_i32_1 = arith.constant 0 : i32
    return %arg0, %c0_i32, %c0_i32_0 : i32, i32, i32
  }
  func.func @transform_1(%arg0: i32) -> (i32, i32) {
    %c0_i32 = arith.constant 0 : i32
    %c0_i32_0 = arith.constant 0 : i32
    %c0_i32_1 = arith.constant 0 : i32
    return %c0_i32, %c0_i32_0 : i32, i32
  }
  func.func @transform_2(%arg0: i32) -> (i32, i32) {
    %c0_i32 = arith.constant 0 : i32
    %c0_i32_0 = arith.constant 0 : i32
    %c0_i32_1 = arith.constant 0 : i32
    return %c0_i32, %c0_i32_0 : i32, i32
  }
  func.func @transform_3(%arg0: i32) -> (i32, i32) {
    %c0_i32 = arith.constant 0 : i32
    %c0_i32_0 = arith.constant 0 : i32
    %c0_i32_1 = arith.constant 0 : i32
    return %c0_i32, %c0_i32_0 : i32, i32
  }
  func.func @transform_4(%arg0: i32) -> (i32, i32) {
    %c0_i32 = arith.constant 0 : i32
    %c0_i32_0 = arith.constant 0 : i32
    %c0_i32_1 = arith.constant 0 : i32
    return %c0_i32, %c0_i32_0 : i32, i32
  }
  func.func @transform_5(%arg0: i32) -> (i32, i32) {
    %c0_i32 = arith.constant 0 : i32
    %c0_i32_0 = arith.constant 0 : i32
    %c0_i32_1 = arith.constant 0 : i32
    return %c0_i32, %c0_i32_0 : i32, i32
  }
  func.func @transform_6(%arg0: i32) -> (i32, i32) {
    %c0_i32 = arith.constant 0 : i32
    %c0_i32_0 = arith.constant 0 : i32
    %c0_i32_1 = arith.constant 0 : i32
    return %c0_i32, %c0_i32_0 : i32, i32
  }
  func.func @transform_7(%arg0: i32) -> (i32, i32, i32) {
    %c0_i32 = arith.constant 0 : i32
    %c0_i32_0 = arith.constant 0 : i32
    %c0_i32_1 = arith.constant 0 : i32
    return %arg0, %c0_i32, %c0_i32_0 : i32, i32, i32
  }
}

module attributes {stable_mosaic.version = 11 : i64} {
  func.func @_fused_fire_kernel(%arg0: i32, %arg1: memref<1x49x32xbf16, #tpu.memory_space<vmem>>, %arg2: memref<32x8xbf16, #tpu.memory_space<vmem>>, %arg3: memref<1x8xf32, #tpu.memory_space<vmem>>, %arg4: memref<8x32xbf16, #tpu.memory_space<vmem>>, %arg5: memref<1x32xf32, #tpu.memory_space<vmem>>, %arg6: memref<72x32xbf16, #tpu.memory_space<vmem>>, %arg7: memref<1x32xf32, #tpu.memory_space<vmem>>, %arg8: memref<1x49x64xbf16, #tpu.memory_space<vmem>>, %arg9: memref<65x72xf32, #tpu.memory_space<vmem>>) attributes {dimension_semantics = [#tpu.dimension_semantics<parallel>], iteration_bounds = array<i64: 2>, scalar_prefetch = 0 : i64, scratch_operands = 1 : i64, tpu.core_type = #tpu.core_type<tc>, window_params = [{transform_indices = @transform_0, window_bounds = array<i64: 1, 49, 32>}, {pipeline_mode = #tpu.pipeline_mode<synchronous>, transform_indices = @transform_1, window_bounds = array<i64: 32, 8>}, {pipeline_mode = #tpu.pipeline_mode<synchronous>, transform_indices = @transform_2, window_bounds = array<i64: 1, 8>}, {pipeline_mode = #tpu.pipeline_mode<synchronous>, transform_indices = @transform_3, window_bounds = array<i64: 8, 32>}, {pipeline_mode = #tpu.pipeline_mode<synchronous>, transform_indices = @transform_4, window_bounds = array<i64: 1, 32>}, {pipeline_mode = #tpu.pipeline_mode<synchronous>, transform_indices = @transform_5, window_bounds = array<i64: 72, 32>}, {pipeline_mode = #tpu.pipeline_mode<synchronous>, transform_indices = @transform_6, window_bounds = array<i64: 1, 32>}, {transform_indices = @transform_7, window_bounds = array<i64: 1, 49, 64>}]} {
    %c0 = arith.constant 0 : index
    %c0_0 = arith.constant 0 : index
    %c0_1 = arith.constant 0 : index
    %0 = vector.load %arg1[%c0, %c0_0, %c0_1] : memref<1x49x32xbf16, #tpu.memory_space<vmem>>, vector<1x49x32xbf16>
    %1 = vector.shape_cast %0 : vector<1x49x32xbf16> to vector<49x32xbf16>
    %c0_2 = arith.constant 0 : index
    %c0_3 = arith.constant 0 : index
    %2 = vector.load %arg2[%c0_2, %c0_3] : memref<32x8xbf16, #tpu.memory_space<vmem>>, vector<32x8xbf16>
    %cst = arith.constant dense<0.000000e+00> : vector<49x8xf32>
    %3 = tpu.matmul %1, %2, %cst {dimension_numbers = #tpu.dot_dimension_numbers<[1], [0], [0], [1], [0, 0, 1, 1], [], []>} : vector<49x32xbf16>, vector<32x8xbf16>, vector<49x8xf32> -> vector<49x8xf32>
    %c0_4 = arith.constant 0 : index
    %c0_5 = arith.constant 0 : index
    %4 = vector.load %arg3[%c0_4, %c0_5] : memref<1x8xf32, #tpu.memory_space<vmem>>, vector<1x8xf32>
    %5 = vector.broadcast %4 : vector<1x8xf32> to vector<49x8xf32>
    %6 = arith.addf %3, %5 : vector<49x8xf32>
    %cst_6 = arith.constant 0.000000e+00 : f32
    %7 = vector.broadcast %cst_6 : f32 to vector<49x8xf32>
    %8 = arith.maximumf %6, %7 : vector<49x8xf32>
    %9 = arith.truncf %8 : vector<49x8xf32> to vector<49x8xbf16>
    %c0_7 = arith.constant 0 : index
    %c0_8 = arith.constant 0 : index
    %10 = vector.load %arg4[%c0_7, %c0_8] : memref<8x32xbf16, #tpu.memory_space<vmem>>, vector<8x32xbf16>
    %cst_9 = arith.constant dense<0.000000e+00> : vector<49x32xf32>
    %11 = tpu.matmul %9, %10, %cst_9 {dimension_numbers = #tpu.dot_dimension_numbers<[1], [0], [0], [1], [0, 0, 1, 1], [], []>} : vector<49x8xbf16>, vector<8x32xbf16>, vector<49x32xf32> -> vector<49x32xf32>
    %c0_10 = arith.constant 0 : index
    %c0_11 = arith.constant 0 : index
    %12 = vector.load %arg5[%c0_10, %c0_11] : memref<1x32xf32, #tpu.memory_space<vmem>>, vector<1x32xf32>
    %13 = vector.broadcast %12 : vector<1x32xf32> to vector<49x32xf32>
    %14 = arith.addf %11, %13 : vector<49x32xf32>
    %cst_12 = arith.constant 0.000000e+00 : f32
    %15 = vector.broadcast %cst_12 : f32 to vector<49x32xf32>
    %16 = arith.maximumf %14, %15 : vector<49x32xf32>
    %17 = tpu.iota {dimensions = array<i32: 0>} : vector<49x1xi32>
    %c7_i32 = arith.constant 7 : i32
    %c0_i32 = arith.constant 0 : i32
    %18 = arith.cmpi eq, %c7_i32, %c0_i32 : i32
    %c1_i32 = arith.constant 1 : i32
    %19 = arith.select %18, %c1_i32, %c7_i32 : i32
    %20 = vector.broadcast %19 : i32 to vector<49x1xi32>
    %21 = arith.remsi %17, %20 : vector<49x1xi32>
    %c0_i32_13 = arith.constant 0 : i32
    %22 = vector.broadcast %c0_i32_13 : i32 to vector<49x1xi32>
    %23 = arith.cmpi ne, %21, %22 : vector<49x1xi32>
    %c0_i32_14 = arith.constant 0 : i32
    %24 = vector.broadcast %c0_i32_14 : i32 to vector<49x1xi32>
    %25 = arith.cmpi slt, %21, %24 : vector<49x1xi32>
    %c0_i32_15 = arith.constant 0 : i32
    %26 = arith.cmpi slt, %19, %c0_i32_15 : i32
    %27 = vector.broadcast %26 : i1 to vector<49x1xi1>
    %28 = vector.broadcast %27 : vector<49x1xi1> to vector<49x1xi1>
    %29 = arith.xori %25, %28 : vector<49x1xi1>
    %30 = arith.andi %29, %23 : vector<49x1xi1>
    %31 = vector.broadcast %19 : i32 to vector<49x1xi32>
    %32 = arith.addi %21, %31 : vector<49x1xi32>
    %33 = arith.select %30, %32, %21 : vector<49x1xi1>, vector<49x1xi32>
    %c6_i32 = arith.constant 6 : i32
    %34 = vector.broadcast %c6_i32 : i32 to vector<49x1xi32>
    %35 = arith.cmpi eq, %33, %34 : vector<49x1xi32>
    %cst_16 = arith.constant 0.000000e+00 : f32
    %36 = vector.shape_cast %35 : vector<49x1xi1> to vector<49x1xi1>
    %37 = vector.broadcast %36 : vector<49x1xi1> to vector<49x8xi1>
    %38 = vector.broadcast %cst_16 : f32 to vector<49x8xf32>
    %39 = arith.select %37, %38, %8 : vector<49x8xi1>, vector<49x8xf32>
    %c0_i32_17 = arith.constant 0 : i32
    %40 = vector.broadcast %c0_i32_17 : i32 to vector<49x1xi32>
    %41 = arith.cmpi eq, %33, %40 : vector<49x1xi32>
    %cst_18 = arith.constant 0.000000e+00 : f32
    %42 = vector.shape_cast %41 : vector<49x1xi1> to vector<49x1xi1>
    %43 = vector.broadcast %42 : vector<49x1xi1> to vector<49x8xi1>
    %44 = vector.broadcast %cst_18 : f32 to vector<49x8xf32>
    %45 = arith.select %43, %44, %8 : vector<49x8xi1>, vector<49x8xf32>
    %cst_19 = arith.constant 0.000000e+00 : f32
    %46 = vector.broadcast %cst_19 : f32 to vector<8x72xf32>
    %c8 = arith.constant 8 : index
    %c0_20 = arith.constant 0 : index
    %47 = vector.load %arg9[%c8, %c0_20] : memref<65x72xf32, #tpu.memory_space<vmem>>, vector<8x72xf32>
    tpu.vector_store %arg9[%c8, %c0_20], %46 {strides = array<i32>} : memref<65x72xf32, #tpu.memory_space<vmem>>, vector<8x72xf32>,
    %c49 = arith.constant 49 : index
    %c0_21 = arith.constant 0 : index
    %48 = vector.load %arg9[%c49, %c0_21] : memref<65x72xf32, #tpu.memory_space<vmem>>, vector<8x72xf32>
    tpu.vector_store %arg9[%c49, %c0_21], %46 {strides = array<i32>} : memref<65x72xf32, #tpu.memory_space<vmem>>, vector<8x72xf32>,
    %c16 = arith.constant 16 : index
    %c0_22 = arith.constant 0 : index
    %49 = vector.load %arg9[%c16, %c0_22] : memref<65x72xf32, #tpu.memory_space<vmem>>, vector<49x8xf32>
    tpu.vector_store %arg9[%c16, %c0_22], %39 {strides = array<i32>} : memref<65x72xf32, #tpu.memory_space<vmem>>, vector<49x8xf32>,
    %c15 = arith.constant 15 : index
    %c8_23 = arith.constant 8 : index
    %50 = vector.load %arg9[%c15, %c8_23] : memref<65x72xf32, #tpu.memory_space<vmem>>, vector<49x8xf32>
    tpu.vector_store %arg9[%c15, %c8_23], %8 {strides = array<i32>} : memref<65x72xf32, #tpu.memory_space<vmem>>, vector<49x8xf32>,
    %c14 = arith.constant 14 : index
    %c16_24 = arith.constant 16 : index
    %51 = vector.load %arg9[%c14, %c16_24] : memref<65x72xf32, #tpu.memory_space<vmem>>, vector<49x8xf32>
    tpu.vector_store %arg9[%c14, %c16_24], %45 {strides = array<i32>} : memref<65x72xf32, #tpu.memory_space<vmem>>, vector<49x8xf32>,
    %c9 = arith.constant 9 : index
    %c24 = arith.constant 24 : index
    %52 = vector.load %arg9[%c9, %c24] : memref<65x72xf32, #tpu.memory_space<vmem>>, vector<49x8xf32>
    tpu.vector_store %arg9[%c9, %c24], %39 {strides = array<i32>} : memref<65x72xf32, #tpu.memory_space<vmem>>, vector<49x8xf32>,
    %c8_25 = arith.constant 8 : index
    %c32 = arith.constant 32 : index
    %53 = vector.load %arg9[%c8_25, %c32] : memref<65x72xf32, #tpu.memory_space<vmem>>, vector<49x8xf32>
    tpu.vector_store %arg9[%c8_25, %c32], %8 {strides = array<i32>} : memref<65x72xf32, #tpu.memory_space<vmem>>, vector<49x8xf32>,
    %c7 = arith.constant 7 : index
    %c40 = arith.constant 40 : index
    %54 = vector.load %arg9[%c7, %c40] : memref<65x72xf32, #tpu.memory_space<vmem>>, vector<49x8xf32>
    tpu.vector_store %arg9[%c7, %c40], %45 {strides = array<i32>} : memref<65x72xf32, #tpu.memory_space<vmem>>, vector<49x8xf32>,
    %c2 = arith.constant 2 : index
    %c48 = arith.constant 48 : index
    %55 = vector.load %arg9[%c2, %c48] : memref<65x72xf32, #tpu.memory_space<vmem>>, vector<49x8xf32>
    tpu.vector_store %arg9[%c2, %c48], %39 {strides = array<i32>} : memref<65x72xf32, #tpu.memory_space<vmem>>, vector<49x8xf32>,
    %c1 = arith.constant 1 : index
    %c56 = arith.constant 56 : index
    %56 = vector.load %arg9[%c1, %c56] : memref<65x72xf32, #tpu.memory_space<vmem>>, vector<49x8xf32>
    tpu.vector_store %arg9[%c1, %c56], %8 {strides = array<i32>} : memref<65x72xf32, #tpu.memory_space<vmem>>, vector<49x8xf32>,
    %c0_26 = arith.constant 0 : index
    %c64 = arith.constant 64 : index
    %57 = vector.load %arg9[%c0_26, %c64] : memref<65x72xf32, #tpu.memory_space<vmem>>, vector<49x8xf32>
    tpu.vector_store %arg9[%c0_26, %c64], %45 {strides = array<i32>} : memref<65x72xf32, #tpu.memory_space<vmem>>, vector<49x8xf32>,
    %c8_27 = arith.constant 8 : index
    %c0_28 = arith.constant 0 : index
    %58 = vector.load %arg9[%c8_27, %c0_28] : memref<65x72xf32, #tpu.memory_space<vmem>>, vector<49x72xf32>
    %59 = arith.truncf %58 : vector<49x72xf32> to vector<49x72xbf16>
    %c0_29 = arith.constant 0 : index
    %c0_30 = arith.constant 0 : index
    %60 = vector.load %arg6[%c0_29, %c0_30] : memref<72x32xbf16, #tpu.memory_space<vmem>>, vector<72x32xbf16>
    %cst_31 = arith.constant dense<0.000000e+00> : vector<49x32xf32>
    %61 = tpu.matmul %59, %60, %cst_31 {dimension_numbers = #tpu.dot_dimension_numbers<[1], [0], [0], [1], [0, 0, 1, 1], [], []>} : vector<49x72xbf16>, vector<72x32xbf16>, vector<49x32xf32> -> vector<49x32xf32>
    %c0_32 = arith.constant 0 : index
    %c0_33 = arith.constant 0 : index
    %62 = vector.load %arg7[%c0_32, %c0_33] : memref<1x32xf32, #tpu.memory_space<vmem>>, vector<1x32xf32>
    %63 = vector.broadcast %62 : vector<1x32xf32> to vector<49x32xf32>
    %64 = arith.addf %61, %63 : vector<49x32xf32>
    %cst_34 = arith.constant 0.000000e+00 : f32
    %65 = vector.broadcast %cst_34 : f32 to vector<49x32xf32>
    %66 = arith.maximumf %64, %65 : vector<49x32xf32>
    %67 = arith.truncf %16 : vector<49x32xf32> to vector<49x32xbf16>
    %c0_35 = arith.constant 0 : index
    %c0_36 = arith.constant 0 : index
    %c0_37 = arith.constant 0 : index
    %68 = vector.load %arg8[%c0_35, %c0_36, %c0_37] : memref<1x49x64xbf16, #tpu.memory_space<vmem>>, vector<1x49x32xbf16>
    %69 = vector.shape_cast %68 : vector<1x49x32xbf16> to vector<49x32xbf16>
    %70 = vector.shape_cast %67 : vector<49x32xbf16> to vector<1x49x32xbf16>
    tpu.vector_store %arg8[%c0_35, %c0_36, %c0_37], %70 {strides = array<i32>} : memref<1x49x64xbf16, #tpu.memory_space<vmem>>, vector<1x49x32xbf16>,
    %71 = arith.truncf %66 : vector<49x32xf32> to vector<49x32xbf16>
    %c0_38 = arith.constant 0 : index
    %c0_39 = arith.constant 0 : index
    %c32_40 = arith.constant 32 : index
    %72 = vector.load %arg8[%c0_38, %c0_39, %c32_40] : memref<1x49x64xbf16, #tpu.memory_space<vmem>>, vector<1x49x32xbf16>
    %73 = vector.shape_cast %72 : vector<1x49x32xbf16> to vector<49x32xbf16>
    %74 = vector.shape_cast %71 : vector<49x32xbf16> to vector<1x49x32xbf16>
    tpu.vector_store %arg8[%c0_38, %c0_39, %c32_40], %74 {strides = array<i32>} : memref<1x49x64xbf16, #tpu.memory_space<vmem>>, vector<1x49x32xbf16>,
    return
  }
  func.func @transform_0(%arg0: i32) -> (i32, i32, i32) {
    %c0_i32 = arith.constant 0 : i32
    %c0_i32_0 = arith.constant 0 : i32
    %c0_i32_1 = arith.constant 0 : i32
    return %arg0, %c0_i32, %c0_i32_0 : i32, i32, i32
  }
  func.func @transform_1(%arg0: i32) -> (i32, i32) {
    %c0_i32 = arith.constant 0 : i32
    %c0_i32_0 = arith.constant 0 : i32
    %c0_i32_1 = arith.constant 0 : i32
    return %c0_i32, %c0_i32_0 : i32, i32
  }
  func.func @transform_2(%arg0: i32) -> (i32, i32) {
    %c0_i32 = arith.constant 0 : i32
    %c0_i32_0 = arith.constant 0 : i32
    %c0_i32_1 = arith.constant 0 : i32
    return %c0_i32, %c0_i32_0 : i32, i32
  }
  func.func @transform_3(%arg0: i32) -> (i32, i32) {
    %c0_i32 = arith.constant 0 : i32
    %c0_i32_0 = arith.constant 0 : i32
    %c0_i32_1 = arith.constant 0 : i32
    return %c0_i32, %c0_i32_0 : i32, i32
  }
  func.func @transform_4(%arg0: i32) -> (i32, i32) {
    %c0_i32 = arith.constant 0 : i32
    %c0_i32_0 = arith.constant 0 : i32
    %c0_i32_1 = arith.constant 0 : i32
    return %c0_i32, %c0_i32_0 : i32, i32
  }
  func.func @transform_5(%arg0: i32) -> (i32, i32) {
    %c0_i32 = arith.constant 0 : i32
    %c0_i32_0 = arith.constant 0 : i32
    %c0_i32_1 = arith.constant 0 : i32
    return %c0_i32, %c0_i32_0 : i32, i32
  }
  func.func @transform_6(%arg0: i32) -> (i32, i32) {
    %c0_i32 = arith.constant 0 : i32
    %c0_i32_0 = arith.constant 0 : i32
    %c0_i32_1 = arith.constant 0 : i32
    return %c0_i32, %c0_i32_0 : i32, i32
  }
  func.func @transform_7(%arg0: i32) -> (i32, i32, i32) {
    %c0_i32 = arith.constant 0 : i32
    %c0_i32_0 = arith.constant 0 : i32
    %c0_i32_1 = arith.constant 0 : i32
    return %arg0, %c0_i32, %c0_i32_0 : i32, i32, i32
  }
}

module attributes {stable_mosaic.version = 11 : i64} {
  func.func @_fused_fire_kernel(%arg0: i32, %arg1: memref<1x9x128xbf16, #tpu.memory_space<vmem>>, %arg2: memref<128x16xbf16, #tpu.memory_space<vmem>>, %arg3: memref<1x16xf32, #tpu.memory_space<vmem>>, %arg4: memref<16x32xbf16, #tpu.memory_space<vmem>>, %arg5: memref<1x32xf32, #tpu.memory_space<vmem>>, %arg6: memref<144x32xbf16, #tpu.memory_space<vmem>>, %arg7: memref<1x32xf32, #tpu.memory_space<vmem>>, %arg8: memref<1x9x64xbf16, #tpu.memory_space<vmem>>, %arg9: memref<21x144xf32, #tpu.memory_space<vmem>>) attributes {dimension_semantics = [#tpu.dimension_semantics<parallel>], iteration_bounds = array<i64: 2>, scalar_prefetch = 0 : i64, scratch_operands = 1 : i64, tpu.core_type = #tpu.core_type<tc>, window_params = [{transform_indices = @transform_0, window_bounds = array<i64: 1, 9, 128>}, {pipeline_mode = #tpu.pipeline_mode<synchronous>, transform_indices = @transform_1, window_bounds = array<i64: 128, 16>}, {pipeline_mode = #tpu.pipeline_mode<synchronous>, transform_indices = @transform_2, window_bounds = array<i64: 1, 16>}, {pipeline_mode = #tpu.pipeline_mode<synchronous>, transform_indices = @transform_3, window_bounds = array<i64: 16, 32>}, {pipeline_mode = #tpu.pipeline_mode<synchronous>, transform_indices = @transform_4, window_bounds = array<i64: 1, 32>}, {pipeline_mode = #tpu.pipeline_mode<synchronous>, transform_indices = @transform_5, window_bounds = array<i64: 144, 32>}, {pipeline_mode = #tpu.pipeline_mode<synchronous>, transform_indices = @transform_6, window_bounds = array<i64: 1, 32>}, {transform_indices = @transform_7, window_bounds = array<i64: 1, 9, 64>}]} {
    %c0 = arith.constant 0 : index
    %c0_0 = arith.constant 0 : index
    %c0_1 = arith.constant 0 : index
    %0 = vector.load %arg1[%c0, %c0_0, %c0_1] : memref<1x9x128xbf16, #tpu.memory_space<vmem>>, vector<1x9x128xbf16>
    %1 = vector.shape_cast %0 : vector<1x9x128xbf16> to vector<9x128xbf16>
    %c0_2 = arith.constant 0 : index
    %c0_3 = arith.constant 0 : index
    %2 = vector.load %arg2[%c0_2, %c0_3] : memref<128x16xbf16, #tpu.memory_space<vmem>>, vector<128x16xbf16>
    %cst = arith.constant dense<0.000000e+00> : vector<9x16xf32>
    %3 = tpu.matmul %1, %2, %cst {dimension_numbers = #tpu.dot_dimension_numbers<[1], [0], [0], [1], [0, 0, 1, 1], [], []>} : vector<9x128xbf16>, vector<128x16xbf16>, vector<9x16xf32> -> vector<9x16xf32>
    %c0_4 = arith.constant 0 : index
    %c0_5 = arith.constant 0 : index
    %4 = vector.load %arg3[%c0_4, %c0_5] : memref<1x16xf32, #tpu.memory_space<vmem>>, vector<1x16xf32>
    %5 = vector.broadcast %4 : vector<1x16xf32> to vector<9x16xf32>
    %6 = arith.addf %3, %5 : vector<9x16xf32>
    %cst_6 = arith.constant 0.000000e+00 : f32
    %7 = vector.broadcast %cst_6 : f32 to vector<9x16xf32>
    %8 = arith.maximumf %6, %7 : vector<9x16xf32>
    %9 = arith.truncf %8 : vector<9x16xf32> to vector<9x16xbf16>
    %c0_7 = arith.constant 0 : index
    %c0_8 = arith.constant 0 : index
    %10 = vector.load %arg4[%c0_7, %c0_8] : memref<16x32xbf16, #tpu.memory_space<vmem>>, vector<16x32xbf16>
    %cst_9 = arith.constant dense<0.000000e+00> : vector<9x32xf32>
    %11 = tpu.matmul %9, %10, %cst_9 {dimension_numbers = #tpu.dot_dimension_numbers<[1], [0], [0], [1], [0, 0, 1, 1], [], []>} : vector<9x16xbf16>, vector<16x32xbf16>, vector<9x32xf32> -> vector<9x32xf32>
    %c0_10 = arith.constant 0 : index
    %c0_11 = arith.constant 0 : index
    %12 = vector.load %arg5[%c0_10, %c0_11] : memref<1x32xf32, #tpu.memory_space<vmem>>, vector<1x32xf32>
    %13 = vector.broadcast %12 : vector<1x32xf32> to vector<9x32xf32>
    %14 = arith.addf %11, %13 : vector<9x32xf32>
    %cst_12 = arith.constant 0.000000e+00 : f32
    %15 = vector.broadcast %cst_12 : f32 to vector<9x32xf32>
    %16 = arith.maximumf %14, %15 : vector<9x32xf32>
    %17 = tpu.iota {dimensions = array<i32: 0>} : vector<9x1xi32>
    %c3_i32 = arith.constant 3 : i32
    %c0_i32 = arith.constant 0 : i32
    %18 = arith.cmpi eq, %c3_i32, %c0_i32 : i32
    %c1_i32 = arith.constant 1 : i32
    %19 = arith.select %18, %c1_i32, %c3_i32 : i32
    %20 = vector.broadcast %19 : i32 to vector<9x1xi32>
    %21 = arith.remsi %17, %20 : vector<9x1xi32>
    %c0_i32_13 = arith.constant 0 : i32
    %22 = vector.broadcast %c0_i32_13 : i32 to vector<9x1xi32>
    %23 = arith.cmpi ne, %21, %22 : vector<9x1xi32>
    %c0_i32_14 = arith.constant 0 : i32
    %24 = vector.broadcast %c0_i32_14 : i32 to vector<9x1xi32>
    %25 = arith.cmpi slt, %21, %24 : vector<9x1xi32>
    %c0_i32_15 = arith.constant 0 : i32
    %26 = arith.cmpi slt, %19, %c0_i32_15 : i32
    %27 = vector.broadcast %26 : i1 to vector<9x1xi1>
    %28 = vector.broadcast %27 : vector<9x1xi1> to vector<9x1xi1>
    %29 = arith.xori %25, %28 : vector<9x1xi1>
    %30 = arith.andi %29, %23 : vector<9x1xi1>
    %31 = vector.broadcast %19 : i32 to vector<9x1xi32>
    %32 = arith.addi %21, %31 : vector<9x1xi32>
    %33 = arith.select %30, %32, %21 : vector<9x1xi1>, vector<9x1xi32>
    %c2_i32 = arith.constant 2 : i32
    %34 = vector.broadcast %c2_i32 : i32 to vector<9x1xi32>
    %35 = arith.cmpi eq, %33, %34 : vector<9x1xi32>
    %cst_16 = arith.constant 0.000000e+00 : f32
    %36 = vector.shape_cast %35 : vector<9x1xi1> to vector<9x1xi1>
    %37 = vector.broadcast %36 : vector<9x1xi1> to vector<9x16xi1>
    %38 = vector.broadcast %cst_16 : f32 to vector<9x16xf32>
    %39 = arith.select %37, %38, %8 : vector<9x16xi1>, vector<9x16xf32>
    %c0_i32_17 = arith.constant 0 : i32
    %40 = vector.broadcast %c0_i32_17 : i32 to vector<9x1xi32>
    %41 = arith.cmpi eq, %33, %40 : vector<9x1xi32>
    %cst_18 = arith.constant 0.000000e+00 : f32
    %42 = vector.shape_cast %41 : vector<9x1xi1> to vector<9x1xi1>
    %43 = vector.broadcast %42 : vector<9x1xi1> to vector<9x16xi1>
    %44 = vector.broadcast %cst_18 : f32 to vector<9x16xf32>
    %45 = arith.select %43, %44, %8 : vector<9x16xi1>, vector<9x16xf32>
    %cst_19 = arith.constant 0.000000e+00 : f32
    %46 = vector.broadcast %cst_19 : f32 to vector<4x144xf32>
    %c8 = arith.constant 8 : index
    %c0_20 = arith.constant 0 : index
    %47 = vector.load %arg9[%c8, %c0_20] : memref<21x144xf32, #tpu.memory_space<vmem>>, vector<4x144xf32>
    tpu.vector_store %arg9[%c8, %c0_20], %46 {strides = array<i32>} : memref<21x144xf32, #tpu.memory_space<vmem>>, vector<4x144xf32>,
    %c13 = arith.constant 13 : index
    %c0_21 = arith.constant 0 : index
    %48 = vector.load %arg9[%c13, %c0_21] : memref<21x144xf32, #tpu.memory_space<vmem>>, vector<4x144xf32>
    tpu.vector_store %arg9[%c13, %c0_21], %46 {strides = array<i32>} : memref<21x144xf32, #tpu.memory_space<vmem>>, vector<4x144xf32>,
    %c12 = arith.constant 12 : index
    %c0_22 = arith.constant 0 : index
    %49 = vector.load %arg9[%c12, %c0_22] : memref<21x144xf32, #tpu.memory_space<vmem>>, vector<9x16xf32>
    tpu.vector_store %arg9[%c12, %c0_22], %39 {strides = array<i32>} : memref<21x144xf32, #tpu.memory_space<vmem>>, vector<9x16xf32>,
    %c11 = arith.constant 11 : index
    %c16 = arith.constant 16 : index
    %50 = vector.load %arg9[%c11, %c16] : memref<21x144xf32, #tpu.memory_space<vmem>>, vector<9x16xf32>
    tpu.vector_store %arg9[%c11, %c16], %8 {strides = array<i32>} : memref<21x144xf32, #tpu.memory_space<vmem>>, vector<9x16xf32>,
    %c10 = arith.constant 10 : index
    %c32 = arith.constant 32 : index
    %51 = vector.load %arg9[%c10, %c32] : memref<21x144xf32, #tpu.memory_space<vmem>>, vector<9x16xf32>
    tpu.vector_store %arg9[%c10, %c32], %45 {strides = array<i32>} : memref<21x144xf32, #tpu.memory_space<vmem>>, vector<9x16xf32>,
    %c9 = arith.constant 9 : index
    %c48 = arith.constant 48 : index
    %52 = vector.load %arg9[%c9, %c48] : memref<21x144xf32, #tpu.memory_space<vmem>>, vector<9x16xf32>
    tpu.vector_store %arg9[%c9, %c48], %39 {strides = array<i32>} : memref<21x144xf32, #tpu.memory_space<vmem>>, vector<9x16xf32>,
    %c8_23 = arith.constant 8 : index
    %c64 = arith.constant 64 : index
    %53 = vector.load %arg9[%c8_23, %c64] : memref<21x144xf32, #tpu.memory_space<vmem>>, vector<9x16xf32>
    tpu.vector_store %arg9[%c8_23, %c64], %8 {strides = array<i32>} : memref<21x144xf32, #tpu.memory_space<vmem>>, vector<9x16xf32>,
    %c7 = arith.constant 7 : index
    %c80 = arith.constant 80 : index
    %54 = vector.load %arg9[%c7, %c80] : memref<21x144xf32, #tpu.memory_space<vmem>>, vector<9x16xf32>
    tpu.vector_store %arg9[%c7, %c80], %45 {strides = array<i32>} : memref<21x144xf32, #tpu.memory_space<vmem>>, vector<9x16xf32>,
    %c6 = arith.constant 6 : index
    %c96 = arith.constant 96 : index
    %55 = vector.load %arg9[%c6, %c96] : memref<21x144xf32, #tpu.memory_space<vmem>>, vector<9x16xf32>
    tpu.vector_store %arg9[%c6, %c96], %39 {strides = array<i32>} : memref<21x144xf32, #tpu.memory_space<vmem>>, vector<9x16xf32>,
    %c5 = arith.constant 5 : index
    %c112 = arith.constant 112 : index
    %56 = vector.load %arg9[%c5, %c112] : memref<21x144xf32, #tpu.memory_space<vmem>>, vector<9x16xf32>
    tpu.vector_store %arg9[%c5, %c112], %8 {strides = array<i32>} : memref<21x144xf32, #tpu.memory_space<vmem>>, vector<9x16xf32>,
    %c4 = arith.constant 4 : index
    %c128 = arith.constant 128 : index
    %57 = vector.load %arg9[%c4, %c128] : memref<21x144xf32, #tpu.memory_space<vmem>>, vector<9x16xf32>
    tpu.vector_store %arg9[%c4, %c128], %45 {strides = array<i32>} : memref<21x144xf32, #tpu.memory_space<vmem>>, vector<9x16xf32>,
    %c8_24 = arith.constant 8 : index
    %c0_25 = arith.constant 0 : index
    %58 = vector.load %arg9[%c8_24, %c0_25] : memref<21x144xf32, #tpu.memory_space<vmem>>, vector<9x144xf32>
    %59 = arith.truncf %58 : vector<9x144xf32> to vector<9x144xbf16>
    %c0_26 = arith.constant 0 : index
    %c0_27 = arith.constant 0 : index
    %60 = vector.load %arg6[%c0_26, %c0_27] : memref<144x32xbf16, #tpu.memory_space<vmem>>, vector<144x32xbf16>
    %cst_28 = arith.constant dense<0.000000e+00> : vector<9x32xf32>
    %61 = tpu.matmul %59, %60, %cst_28 {dimension_numbers = #tpu.dot_dimension_numbers<[1], [0], [0], [1], [0, 0, 1, 1], [], []>} : vector<9x144xbf16>, vector<144x32xbf16>, vector<9x32xf32> -> vector<9x32xf32>
    %c0_29 = arith.constant 0 : index
    %c0_30 = arith.constant 0 : index
    %62 = vector.load %arg7[%c0_29, %c0_30] : memref<1x32xf32, #tpu.memory_space<vmem>>, vector<1x32xf32>
    %63 = vector.broadcast %62 : vector<1x32xf32> to vector<9x32xf32>
    %64 = arith.addf %61, %63 : vector<9x32xf32>
    %cst_31 = arith.constant 0.000000e+00 : f32
    %65 = vector.broadcast %cst_31 : f32 to vector<9x32xf32>
    %66 = arith.maximumf %64, %65 : vector<9x32xf32>
    %67 = arith.truncf %16 : vector<9x32xf32> to vector<9x32xbf16>
    %c0_32 = arith.constant 0 : index
    %c0_33 = arith.constant 0 : index
    %c0_34 = arith.constant 0 : index
    %68 = vector.load %arg8[%c0_32, %c0_33, %c0_34] : memref<1x9x64xbf16, #tpu.memory_space<vmem>>, vector<1x9x32xbf16>
    %69 = vector.shape_cast %68 : vector<1x9x32xbf16> to vector<9x32xbf16>
    %70 = vector.shape_cast %67 : vector<9x32xbf16> to vector<1x9x32xbf16>
    tpu.vector_store %arg8[%c0_32, %c0_33, %c0_34], %70 {strides = array<i32>} : memref<1x9x64xbf16, #tpu.memory_space<vmem>>, vector<1x9x32xbf16>,
    %71 = arith.truncf %66 : vector<9x32xf32> to vector<9x32xbf16>
    %c0_35 = arith.constant 0 : index
    %c0_36 = arith.constant 0 : index
    %c32_37 = arith.constant 32 : index
    %72 = vector.load %arg8[%c0_35, %c0_36, %c32_37] : memref<1x9x64xbf16, #tpu.memory_space<vmem>>, vector<1x9x32xbf16>
    %73 = vector.shape_cast %72 : vector<1x9x32xbf16> to vector<9x32xbf16>
    %74 = vector.shape_cast %71 : vector<9x32xbf16> to vector<1x9x32xbf16>
    tpu.vector_store %arg8[%c0_35, %c0_36, %c32_37], %74 {strides = array<i32>} : memref<1x9x64xbf16, #tpu.memory_space<vmem>>, vector<1x9x32xbf16>,
    return
  }
  func.func @transform_0(%arg0: i32) -> (i32, i32, i32) {
    %c0_i32 = arith.constant 0 : i32
    %c0_i32_0 = arith.constant 0 : i32
    %c0_i32_1 = arith.constant 0 : i32
    return %arg0, %c0_i32, %c0_i32_0 : i32, i32, i32
  }
  func.func @transform_1(%arg0: i32) -> (i32, i32) {
    %c0_i32 = arith.constant 0 : i32
    %c0_i32_0 = arith.constant 0 : i32
    %c0_i32_1 = arith.constant 0 : i32
    return %c0_i32, %c0_i32_0 : i32, i32
  }
  func.func @transform_2(%arg0: i32) -> (i32, i32) {
    %c0_i32 = arith.constant 0 : i32
    %c0_i32_0 = arith.constant 0 : i32
    %c0_i32_1 = arith.constant 0 : i32
    return %c0_i32, %c0_i32_0 : i32, i32
  }
  func.func @transform_3(%arg0: i32) -> (i32, i32) {
    %c0_i32 = arith.constant 0 : i32
    %c0_i32_0 = arith.constant 0 : i32
    %c0_i32_1 = arith.constant 0 : i32
    return %c0_i32, %c0_i32_0 : i32, i32
  }
  func.func @transform_4(%arg0: i32) -> (i32, i32) {
    %c0_i32 = arith.constant 0 : i32
    %c0_i32_0 = arith.constant 0 : i32
    %c0_i32_1 = arith.constant 0 : i32
    return %c0_i32, %c0_i32_0 : i32, i32
  }
  func.func @transform_5(%arg0: i32) -> (i32, i32) {
    %c0_i32 = arith.constant 0 : i32
    %c0_i32_0 = arith.constant 0 : i32
    %c0_i32_1 = arith.constant 0 : i32
    return %c0_i32, %c0_i32_0 : i32, i32
  }
  func.func @transform_6(%arg0: i32) -> (i32, i32) {
    %c0_i32 = arith.constant 0 : i32
    %c0_i32_0 = arith.constant 0 : i32
    %c0_i32_1 = arith.constant 0 : i32
    return %c0_i32, %c0_i32_0 : i32, i32
  }
  func.func @transform_7(%arg0: i32) -> (i32, i32, i32) {
    %c0_i32 = arith.constant 0 : i32
    %c0_i32_0 = arith.constant 0 : i32
    %c0_i32_1 = arith.constant 0 : i32
    return %arg0, %c0_i32, %c0_i32_0 : i32, i32, i32
  }
}

module attributes {stable_mosaic.version = 11 : i64} {
  func.func @_fused_fire_kernel(%arg0: i32, %arg1: memref<1x9x64xbf16, #tpu.memory_space<vmem>>, %arg2: memref<64x16xbf16, #tpu.memory_space<vmem>>, %arg3: memref<1x16xf32, #tpu.memory_space<vmem>>, %arg4: memref<16x64xbf16, #tpu.memory_space<vmem>>, %arg5: memref<1x64xf32, #tpu.memory_space<vmem>>, %arg6: memref<144x64xbf16, #tpu.memory_space<vmem>>, %arg7: memref<1x64xf32, #tpu.memory_space<vmem>>, %arg8: memref<1x9x128xbf16, #tpu.memory_space<vmem>>, %arg9: memref<21x144xf32, #tpu.memory_space<vmem>>) attributes {dimension_semantics = [#tpu.dimension_semantics<parallel>], iteration_bounds = array<i64: 2>, scalar_prefetch = 0 : i64, scratch_operands = 1 : i64, tpu.core_type = #tpu.core_type<tc>, window_params = [{transform_indices = @transform_0, window_bounds = array<i64: 1, 9, 64>}, {pipeline_mode = #tpu.pipeline_mode<synchronous>, transform_indices = @transform_1, window_bounds = array<i64: 64, 16>}, {pipeline_mode = #tpu.pipeline_mode<synchronous>, transform_indices = @transform_2, window_bounds = array<i64: 1, 16>}, {pipeline_mode = #tpu.pipeline_mode<synchronous>, transform_indices = @transform_3, window_bounds = array<i64: 16, 64>}, {pipeline_mode = #tpu.pipeline_mode<synchronous>, transform_indices = @transform_4, window_bounds = array<i64: 1, 64>}, {pipeline_mode = #tpu.pipeline_mode<synchronous>, transform_indices = @transform_5, window_bounds = array<i64: 144, 64>}, {pipeline_mode = #tpu.pipeline_mode<synchronous>, transform_indices = @transform_6, window_bounds = array<i64: 1, 64>}, {transform_indices = @transform_7, window_bounds = array<i64: 1, 9, 128>}]} {
    %c0 = arith.constant 0 : index
    %c0_0 = arith.constant 0 : index
    %c0_1 = arith.constant 0 : index
    %0 = vector.load %arg1[%c0, %c0_0, %c0_1] : memref<1x9x64xbf16, #tpu.memory_space<vmem>>, vector<1x9x64xbf16>
    %1 = vector.shape_cast %0 : vector<1x9x64xbf16> to vector<9x64xbf16>
    %c0_2 = arith.constant 0 : index
    %c0_3 = arith.constant 0 : index
    %2 = vector.load %arg2[%c0_2, %c0_3] : memref<64x16xbf16, #tpu.memory_space<vmem>>, vector<64x16xbf16>
    %cst = arith.constant dense<0.000000e+00> : vector<9x16xf32>
    %3 = tpu.matmul %1, %2, %cst {dimension_numbers = #tpu.dot_dimension_numbers<[1], [0], [0], [1], [0, 0, 1, 1], [], []>} : vector<9x64xbf16>, vector<64x16xbf16>, vector<9x16xf32> -> vector<9x16xf32>
    %c0_4 = arith.constant 0 : index
    %c0_5 = arith.constant 0 : index
    %4 = vector.load %arg3[%c0_4, %c0_5] : memref<1x16xf32, #tpu.memory_space<vmem>>, vector<1x16xf32>
    %5 = vector.broadcast %4 : vector<1x16xf32> to vector<9x16xf32>
    %6 = arith.addf %3, %5 : vector<9x16xf32>
    %cst_6 = arith.constant 0.000000e+00 : f32
    %7 = vector.broadcast %cst_6 : f32 to vector<9x16xf32>
    %8 = arith.maximumf %6, %7 : vector<9x16xf32>
    %9 = arith.truncf %8 : vector<9x16xf32> to vector<9x16xbf16>
    %c0_7 = arith.constant 0 : index
    %c0_8 = arith.constant 0 : index
    %10 = vector.load %arg4[%c0_7, %c0_8] : memref<16x64xbf16, #tpu.memory_space<vmem>>, vector<16x64xbf16>
    %cst_9 = arith.constant dense<0.000000e+00> : vector<9x64xf32>
    %11 = tpu.matmul %9, %10, %cst_9 {dimension_numbers = #tpu.dot_dimension_numbers<[1], [0], [0], [1], [0, 0, 1, 1], [], []>} : vector<9x16xbf16>, vector<16x64xbf16>, vector<9x64xf32> -> vector<9x64xf32>
    %c0_10 = arith.constant 0 : index
    %c0_11 = arith.constant 0 : index
    %12 = vector.load %arg5[%c0_10, %c0_11] : memref<1x64xf32, #tpu.memory_space<vmem>>, vector<1x64xf32>
    %13 = vector.broadcast %12 : vector<1x64xf32> to vector<9x64xf32>
    %14 = arith.addf %11, %13 : vector<9x64xf32>
    %cst_12 = arith.constant 0.000000e+00 : f32
    %15 = vector.broadcast %cst_12 : f32 to vector<9x64xf32>
    %16 = arith.maximumf %14, %15 : vector<9x64xf32>
    %17 = tpu.iota {dimensions = array<i32: 0>} : vector<9x1xi32>
    %c3_i32 = arith.constant 3 : i32
    %c0_i32 = arith.constant 0 : i32
    %18 = arith.cmpi eq, %c3_i32, %c0_i32 : i32
    %c1_i32 = arith.constant 1 : i32
    %19 = arith.select %18, %c1_i32, %c3_i32 : i32
    %20 = vector.broadcast %19 : i32 to vector<9x1xi32>
    %21 = arith.remsi %17, %20 : vector<9x1xi32>
    %c0_i32_13 = arith.constant 0 : i32
    %22 = vector.broadcast %c0_i32_13 : i32 to vector<9x1xi32>
    %23 = arith.cmpi ne, %21, %22 : vector<9x1xi32>
    %c0_i32_14 = arith.constant 0 : i32
    %24 = vector.broadcast %c0_i32_14 : i32 to vector<9x1xi32>
    %25 = arith.cmpi slt, %21, %24 : vector<9x1xi32>
    %c0_i32_15 = arith.constant 0 : i32
    %26 = arith.cmpi slt, %19, %c0_i32_15 : i32
    %27 = vector.broadcast %26 : i1 to vector<9x1xi1>
    %28 = vector.broadcast %27 : vector<9x1xi1> to vector<9x1xi1>
    %29 = arith.xori %25, %28 : vector<9x1xi1>
    %30 = arith.andi %29, %23 : vector<9x1xi1>
    %31 = vector.broadcast %19 : i32 to vector<9x1xi32>
    %32 = arith.addi %21, %31 : vector<9x1xi32>
    %33 = arith.select %30, %32, %21 : vector<9x1xi1>, vector<9x1xi32>
    %c2_i32 = arith.constant 2 : i32
    %34 = vector.broadcast %c2_i32 : i32 to vector<9x1xi32>
    %35 = arith.cmpi eq, %33, %34 : vector<9x1xi32>
    %cst_16 = arith.constant 0.000000e+00 : f32
    %36 = vector.shape_cast %35 : vector<9x1xi1> to vector<9x1xi1>
    %37 = vector.broadcast %36 : vector<9x1xi1> to vector<9x16xi1>
    %38 = vector.broadcast %cst_16 : f32 to vector<9x16xf32>
    %39 = arith.select %37, %38, %8 : vector<9x16xi1>, vector<9x16xf32>
    %c0_i32_17 = arith.constant 0 : i32
    %40 = vector.broadcast %c0_i32_17 : i32 to vector<9x1xi32>
    %41 = arith.cmpi eq, %33, %40 : vector<9x1xi32>
    %cst_18 = arith.constant 0.000000e+00 : f32
    %42 = vector.shape_cast %41 : vector<9x1xi1> to vector<9x1xi1>
    %43 = vector.broadcast %42 : vector<9x1xi1> to vector<9x16xi1>
    %44 = vector.broadcast %cst_18 : f32 to vector<9x16xf32>
    %45 = arith.select %43, %44, %8 : vector<9x16xi1>, vector<9x16xf32>
    %cst_19 = arith.constant 0.000000e+00 : f32
    %46 = vector.broadcast %cst_19 : f32 to vector<4x144xf32>
    %c8 = arith.constant 8 : index
    %c0_20 = arith.constant 0 : index
    %47 = vector.load %arg9[%c8, %c0_20] : memref<21x144xf32, #tpu.memory_space<vmem>>, vector<4x144xf32>
    tpu.vector_store %arg9[%c8, %c0_20], %46 {strides = array<i32>} : memref<21x144xf32, #tpu.memory_space<vmem>>, vector<4x144xf32>,
    %c13 = arith.constant 13 : index
    %c0_21 = arith.constant 0 : index
    %48 = vector.load %arg9[%c13, %c0_21] : memref<21x144xf32, #tpu.memory_space<vmem>>, vector<4x144xf32>
    tpu.vector_store %arg9[%c13, %c0_21], %46 {strides = array<i32>} : memref<21x144xf32, #tpu.memory_space<vmem>>, vector<4x144xf32>,
    %c12 = arith.constant 12 : index
    %c0_22 = arith.constant 0 : index
    %49 = vector.load %arg9[%c12, %c0_22] : memref<21x144xf32, #tpu.memory_space<vmem>>, vector<9x16xf32>
    tpu.vector_store %arg9[%c12, %c0_22], %39 {strides = array<i32>} : memref<21x144xf32, #tpu.memory_space<vmem>>, vector<9x16xf32>,
    %c11 = arith.constant 11 : index
    %c16 = arith.constant 16 : index
    %50 = vector.load %arg9[%c11, %c16] : memref<21x144xf32, #tpu.memory_space<vmem>>, vector<9x16xf32>
    tpu.vector_store %arg9[%c11, %c16], %8 {strides = array<i32>} : memref<21x144xf32, #tpu.memory_space<vmem>>, vector<9x16xf32>,
    %c10 = arith.constant 10 : index
    %c32 = arith.constant 32 : index
    %51 = vector.load %arg9[%c10, %c32] : memref<21x144xf32, #tpu.memory_space<vmem>>, vector<9x16xf32>
    tpu.vector_store %arg9[%c10, %c32], %45 {strides = array<i32>} : memref<21x144xf32, #tpu.memory_space<vmem>>, vector<9x16xf32>,
    %c9 = arith.constant 9 : index
    %c48 = arith.constant 48 : index
    %52 = vector.load %arg9[%c9, %c48] : memref<21x144xf32, #tpu.memory_space<vmem>>, vector<9x16xf32>
    tpu.vector_store %arg9[%c9, %c48], %39 {strides = array<i32>} : memref<21x144xf32, #tpu.memory_space<vmem>>, vector<9x16xf32>,
    %c8_23 = arith.constant 8 : index
    %c64 = arith.constant 64 : index
    %53 = vector.load %arg9[%c8_23, %c64] : memref<21x144xf32, #tpu.memory_space<vmem>>, vector<9x16xf32>
    tpu.vector_store %arg9[%c8_23, %c64], %8 {strides = array<i32>} : memref<21x144xf32, #tpu.memory_space<vmem>>, vector<9x16xf32>,
    %c7 = arith.constant 7 : index
    %c80 = arith.constant 80 : index
    %54 = vector.load %arg9[%c7, %c80] : memref<21x144xf32, #tpu.memory_space<vmem>>, vector<9x16xf32>
    tpu.vector_store %arg9[%c7, %c80], %45 {strides = array<i32>} : memref<21x144xf32, #tpu.memory_space<vmem>>, vector<9x16xf32>,
    %c6 = arith.constant 6 : index
    %c96 = arith.constant 96 : index
    %55 = vector.load %arg9[%c6, %c96] : memref<21x144xf32, #tpu.memory_space<vmem>>, vector<9x16xf32>
    tpu.vector_store %arg9[%c6, %c96], %39 {strides = array<i32>} : memref<21x144xf32, #tpu.memory_space<vmem>>, vector<9x16xf32>,
    %c5 = arith.constant 5 : index
    %c112 = arith.constant 112 : index
    %56 = vector.load %arg9[%c5, %c112] : memref<21x144xf32, #tpu.memory_space<vmem>>, vector<9x16xf32>
    tpu.vector_store %arg9[%c5, %c112], %8 {strides = array<i32>} : memref<21x144xf32, #tpu.memory_space<vmem>>, vector<9x16xf32>,
    %c4 = arith.constant 4 : index
    %c128 = arith.constant 128 : index
    %57 = vector.load %arg9[%c4, %c128] : memref<21x144xf32, #tpu.memory_space<vmem>>, vector<9x16xf32>
    tpu.vector_store %arg9[%c4, %c128], %45 {strides = array<i32>} : memref<21x144xf32, #tpu.memory_space<vmem>>, vector<9x16xf32>,
    %c8_24 = arith.constant 8 : index
    %c0_25 = arith.constant 0 : index
    %58 = vector.load %arg9[%c8_24, %c0_25] : memref<21x144xf32, #tpu.memory_space<vmem>>, vector<9x144xf32>
    %59 = arith.truncf %58 : vector<9x144xf32> to vector<9x144xbf16>
    %c0_26 = arith.constant 0 : index
    %c0_27 = arith.constant 0 : index
    %60 = vector.load %arg6[%c0_26, %c0_27] : memref<144x64xbf16, #tpu.memory_space<vmem>>, vector<144x64xbf16>
    %cst_28 = arith.constant dense<0.000000e+00> : vector<9x64xf32>
    %61 = tpu.matmul %59, %60, %cst_28 {dimension_numbers = #tpu.dot_dimension_numbers<[1], [0], [0], [1], [0, 0, 1, 1], [], []>} : vector<9x144xbf16>, vector<144x64xbf16>, vector<9x64xf32> -> vector<9x64xf32>
    %c0_29 = arith.constant 0 : index
    %c0_30 = arith.constant 0 : index
    %62 = vector.load %arg7[%c0_29, %c0_30] : memref<1x64xf32, #tpu.memory_space<vmem>>, vector<1x64xf32>
    %63 = vector.broadcast %62 : vector<1x64xf32> to vector<9x64xf32>
    %64 = arith.addf %61, %63 : vector<9x64xf32>
    %cst_31 = arith.constant 0.000000e+00 : f32
    %65 = vector.broadcast %cst_31 : f32 to vector<9x64xf32>
    %66 = arith.maximumf %64, %65 : vector<9x64xf32>
    %67 = arith.truncf %16 : vector<9x64xf32> to vector<9x64xbf16>
    %c0_32 = arith.constant 0 : index
    %c0_33 = arith.constant 0 : index
    %c0_34 = arith.constant 0 : index
    %68 = vector.load %arg8[%c0_32, %c0_33, %c0_34] : memref<1x9x128xbf16, #tpu.memory_space<vmem>>, vector<1x9x64xbf16>
    %69 = vector.shape_cast %68 : vector<1x9x64xbf16> to vector<9x64xbf16>
    %70 = vector.shape_cast %67 : vector<9x64xbf16> to vector<1x9x64xbf16>
    tpu.vector_store %arg8[%c0_32, %c0_33, %c0_34], %70 {strides = array<i32>} : memref<1x9x128xbf16, #tpu.memory_space<vmem>>, vector<1x9x64xbf16>,
    %71 = arith.truncf %66 : vector<9x64xf32> to vector<9x64xbf16>
    %c0_35 = arith.constant 0 : index
    %c0_36 = arith.constant 0 : index
    %c64_37 = arith.constant 64 : index
    %72 = vector.load %arg8[%c0_35, %c0_36, %c64_37] : memref<1x9x128xbf16, #tpu.memory_space<vmem>>, vector<1x9x64xbf16>
    %73 = vector.shape_cast %72 : vector<1x9x64xbf16> to vector<9x64xbf16>
    %74 = vector.shape_cast %71 : vector<9x64xbf16> to vector<1x9x64xbf16>
    tpu.vector_store %arg8[%c0_35, %c0_36, %c64_37], %74 {strides = array<i32>} : memref<1x9x128xbf16, #tpu.memory_space<vmem>>, vector<1x9x64xbf16>,
    return
  }
  func.func @transform_0(%arg0: i32) -> (i32, i32, i32) {
    %c0_i32 = arith.constant 0 : i32
    %c0_i32_0 = arith.constant 0 : i32
    %c0_i32_1 = arith.constant 0 : i32
    return %arg0, %c0_i32, %c0_i32_0 : i32, i32, i32
  }
  func.func @transform_1(%arg0: i32) -> (i32, i32) {
    %c0_i32 = arith.constant 0 : i32
    %c0_i32_0 = arith.constant 0 : i32
    %c0_i32_1 = arith.constant 0 : i32
    return %c0_i32, %c0_i32_0 : i32, i32
  }
  func.func @transform_2(%arg0: i32) -> (i32, i32) {
    %c0_i32 = arith.constant 0 : i32
    %c0_i32_0 = arith.constant 0 : i32
    %c0_i32_1 = arith.constant 0 : i32
    return %c0_i32, %c0_i32_0 : i32, i32
  }
  func.func @transform_3(%arg0: i32) -> (i32, i32) {
    %c0_i32 = arith.constant 0 : i32
    %c0_i32_0 = arith.constant 0 : i32
    %c0_i32_1 = arith.constant 0 : i32
    return %c0_i32, %c0_i32_0 : i32, i32
  }
  func.func @transform_4(%arg0: i32) -> (i32, i32) {
    %c0_i32 = arith.constant 0 : i32
    %c0_i32_0 = arith.constant 0 : i32
    %c0_i32_1 = arith.constant 0 : i32
    return %c0_i32, %c0_i32_0 : i32, i32
  }
  func.func @transform_5(%arg0: i32) -> (i32, i32) {
    %c0_i32 = arith.constant 0 : i32
    %c0_i32_0 = arith.constant 0 : i32
    %c0_i32_1 = arith.constant 0 : i32
    return %c0_i32, %c0_i32_0 : i32, i32
  }
  func.func @transform_6(%arg0: i32) -> (i32, i32) {
    %c0_i32 = arith.constant 0 : i32
    %c0_i32_0 = arith.constant 0 : i32
    %c0_i32_1 = arith.constant 0 : i32
    return %c0_i32, %c0_i32_0 : i32, i32
  }
  func.func @transform_7(%arg0: i32) -> (i32, i32, i32) {
    %c0_i32 = arith.constant 0 : i32
    %c0_i32_0 = arith.constant 0 : i32
    %c0_i32_1 = arith.constant 0 : i32
    return %arg0, %c0_i32, %c0_i32_0 : i32, i32, i32
  }
}

module attributes {stable_mosaic.version = 11 : i64} {
  func.func @_fused_fire_kernel(%arg0: i32, %arg1: memref<1x49x64xbf16, #tpu.memory_space<vmem>>, %arg2: memref<1x49x64xbf16, #tpu.memory_space<vmem>>, %arg3: memref<64x8xbf16, #tpu.memory_space<vmem>>, %arg4: memref<64x8xbf16, #tpu.memory_space<vmem>>, %arg5: memref<1x8xf32, #tpu.memory_space<vmem>>, %arg6: memref<8x16xbf16, #tpu.memory_space<vmem>>, %arg7: memref<1x16xf32, #tpu.memory_space<vmem>>, %arg8: memref<72x16xbf16, #tpu.memory_space<vmem>>, %arg9: memref<1x16xf32, #tpu.memory_space<vmem>>, %arg10: memref<1x49x32xbf16, #tpu.memory_space<vmem>>, %arg11: memref<65x72xf32, #tpu.memory_space<vmem>>) attributes {dimension_semantics = [#tpu.dimension_semantics<parallel>], iteration_bounds = array<i64: 2>, scalar_prefetch = 0 : i64, scratch_operands = 1 : i64, tpu.core_type = #tpu.core_type<tc>, window_params = [{transform_indices = @transform_0, window_bounds = array<i64: 1, 49, 64>}, {transform_indices = @transform_1, window_bounds = array<i64: 1, 49, 64>}, {pipeline_mode = #tpu.pipeline_mode<synchronous>, transform_indices = @transform_2, window_bounds = array<i64: 64, 8>}, {pipeline_mode = #tpu.pipeline_mode<synchronous>, transform_indices = @transform_3, window_bounds = array<i64: 64, 8>}, {pipeline_mode = #tpu.pipeline_mode<synchronous>, transform_indices = @transform_4, window_bounds = array<i64: 1, 8>}, {pipeline_mode = #tpu.pipeline_mode<synchronous>, transform_indices = @transform_5, window_bounds = array<i64: 8, 16>}, {pipeline_mode = #tpu.pipeline_mode<synchronous>, transform_indices = @transform_6, window_bounds = array<i64: 1, 16>}, {pipeline_mode = #tpu.pipeline_mode<synchronous>, transform_indices = @transform_7, window_bounds = array<i64: 72, 16>}, {pipeline_mode = #tpu.pipeline_mode<synchronous>, transform_indices = @transform_8, window_bounds = array<i64: 1, 16>}, {transform_indices = @transform_9, window_bounds = array<i64: 1, 49, 32>}]} {
    %c0 = arith.constant 0 : index
    %c0_0 = arith.constant 0 : index
    %c0_1 = arith.constant 0 : index
    %0 = vector.load %arg1[%c0, %c0_0, %c0_1] : memref<1x49x64xbf16, #tpu.memory_space<vmem>>, vector<1x49x64xbf16>
    %1 = vector.shape_cast %0 : vector<1x49x64xbf16> to vector<49x64xbf16>
    %c0_2 = arith.constant 0 : index
    %c0_3 = arith.constant 0 : index
    %2 = vector.load %arg3[%c0_2, %c0_3] : memref<64x8xbf16, #tpu.memory_space<vmem>>, vector<64x8xbf16>
    %cst = arith.constant dense<0.000000e+00> : vector<49x8xf32>
    %3 = tpu.matmul %1, %2, %cst {dimension_numbers = #tpu.dot_dimension_numbers<[1], [0], [0], [1], [0, 0, 1, 1], [], []>} : vector<49x64xbf16>, vector<64x8xbf16>, vector<49x8xf32> -> vector<49x8xf32>
    %c0_4 = arith.constant 0 : index
    %c0_5 = arith.constant 0 : index
    %c0_6 = arith.constant 0 : index
    %4 = vector.load %arg2[%c0_4, %c0_5, %c0_6] : memref<1x49x64xbf16, #tpu.memory_space<vmem>>, vector<1x49x64xbf16>
    %5 = vector.shape_cast %4 : vector<1x49x64xbf16> to vector<49x64xbf16>
    %c0_7 = arith.constant 0 : index
    %c0_8 = arith.constant 0 : index
    %6 = vector.load %arg4[%c0_7, %c0_8] : memref<64x8xbf16, #tpu.memory_space<vmem>>, vector<64x8xbf16>
    %cst_9 = arith.constant dense<0.000000e+00> : vector<49x8xf32>
    %7 = tpu.matmul %5, %6, %cst_9 {dimension_numbers = #tpu.dot_dimension_numbers<[1], [0], [0], [1], [0, 0, 1, 1], [], []>} : vector<49x64xbf16>, vector<64x8xbf16>, vector<49x8xf32> -> vector<49x8xf32>
    %8 = arith.addf %3, %7 : vector<49x8xf32>
    %c0_10 = arith.constant 0 : index
    %c0_11 = arith.constant 0 : index
    %9 = vector.load %arg5[%c0_10, %c0_11] : memref<1x8xf32, #tpu.memory_space<vmem>>, vector<1x8xf32>
    %10 = vector.broadcast %9 : vector<1x8xf32> to vector<49x8xf32>
    %11 = arith.addf %8, %10 : vector<49x8xf32>
    %cst_12 = arith.constant 0.000000e+00 : f32
    %12 = vector.broadcast %cst_12 : f32 to vector<49x8xf32>
    %13 = arith.maximumf %11, %12 : vector<49x8xf32>
    %14 = arith.truncf %13 : vector<49x8xf32> to vector<49x8xbf16>
    %c0_13 = arith.constant 0 : index
    %c0_14 = arith.constant 0 : index
    %15 = vector.load %arg6[%c0_13, %c0_14] : memref<8x16xbf16, #tpu.memory_space<vmem>>, vector<8x16xbf16>
    %cst_15 = arith.constant dense<0.000000e+00> : vector<49x16xf32>
    %16 = tpu.matmul %14, %15, %cst_15 {dimension_numbers = #tpu.dot_dimension_numbers<[1], [0], [0], [1], [0, 0, 1, 1], [], []>} : vector<49x8xbf16>, vector<8x16xbf16>, vector<49x16xf32> -> vector<49x16xf32>
    %c0_16 = arith.constant 0 : index
    %c0_17 = arith.constant 0 : index
    %17 = vector.load %arg7[%c0_16, %c0_17] : memref<1x16xf32, #tpu.memory_space<vmem>>, vector<1x16xf32>
    %18 = vector.broadcast %17 : vector<1x16xf32> to vector<49x16xf32>
    %19 = arith.addf %16, %18 : vector<49x16xf32>
    %cst_18 = arith.constant 0.000000e+00 : f32
    %20 = vector.broadcast %cst_18 : f32 to vector<49x16xf32>
    %21 = arith.maximumf %19, %20 : vector<49x16xf32>
    %22 = tpu.iota {dimensions = array<i32: 0>} : vector<49x1xi32>
    %c7_i32 = arith.constant 7 : i32
    %c0_i32 = arith.constant 0 : i32
    %23 = arith.cmpi eq, %c7_i32, %c0_i32 : i32
    %c1_i32 = arith.constant 1 : i32
    %24 = arith.select %23, %c1_i32, %c7_i32 : i32
    %25 = vector.broadcast %24 : i32 to vector<49x1xi32>
    %26 = arith.remsi %22, %25 : vector<49x1xi32>
    %c0_i32_19 = arith.constant 0 : i32
    %27 = vector.broadcast %c0_i32_19 : i32 to vector<49x1xi32>
    %28 = arith.cmpi ne, %26, %27 : vector<49x1xi32>
    %c0_i32_20 = arith.constant 0 : i32
    %29 = vector.broadcast %c0_i32_20 : i32 to vector<49x1xi32>
    %30 = arith.cmpi slt, %26, %29 : vector<49x1xi32>
    %c0_i32_21 = arith.constant 0 : i32
    %31 = arith.cmpi slt, %24, %c0_i32_21 : i32
    %32 = vector.broadcast %31 : i1 to vector<49x1xi1>
    %33 = vector.broadcast %32 : vector<49x1xi1> to vector<49x1xi1>
    %34 = arith.xori %30, %33 : vector<49x1xi1>
    %35 = arith.andi %34, %28 : vector<49x1xi1>
    %36 = vector.broadcast %24 : i32 to vector<49x1xi32>
    %37 = arith.addi %26, %36 : vector<49x1xi32>
    %38 = arith.select %35, %37, %26 : vector<49x1xi1>, vector<49x1xi32>
    %c6_i32 = arith.constant 6 : i32
    %39 = vector.broadcast %c6_i32 : i32 to vector<49x1xi32>
    %40 = arith.cmpi eq, %38, %39 : vector<49x1xi32>
    %cst_22 = arith.constant 0.000000e+00 : f32
    %41 = vector.shape_cast %40 : vector<49x1xi1> to vector<49x1xi1>
    %42 = vector.broadcast %41 : vector<49x1xi1> to vector<49x8xi1>
    %43 = vector.broadcast %cst_22 : f32 to vector<49x8xf32>
    %44 = arith.select %42, %43, %13 : vector<49x8xi1>, vector<49x8xf32>
    %c0_i32_23 = arith.constant 0 : i32
    %45 = vector.broadcast %c0_i32_23 : i32 to vector<49x1xi32>
    %46 = arith.cmpi eq, %38, %45 : vector<49x1xi32>
    %cst_24 = arith.constant 0.000000e+00 : f32
    %47 = vector.shape_cast %46 : vector<49x1xi1> to vector<49x1xi1>
    %48 = vector.broadcast %47 : vector<49x1xi1> to vector<49x8xi1>
    %49 = vector.broadcast %cst_24 : f32 to vector<49x8xf32>
    %50 = arith.select %48, %49, %13 : vector<49x8xi1>, vector<49x8xf32>
    %cst_25 = arith.constant 0.000000e+00 : f32
    %51 = vector.broadcast %cst_25 : f32 to vector<8x72xf32>
    %c8 = arith.constant 8 : index
    %c0_26 = arith.constant 0 : index
    %52 = vector.load %arg11[%c8, %c0_26] : memref<65x72xf32, #tpu.memory_space<vmem>>, vector<8x72xf32>
    tpu.vector_store %arg11[%c8, %c0_26], %51 {strides = array<i32>} : memref<65x72xf32, #tpu.memory_space<vmem>>, vector<8x72xf32>,
    %c49 = arith.constant 49 : index
    %c0_27 = arith.constant 0 : index
    %53 = vector.load %arg11[%c49, %c0_27] : memref<65x72xf32, #tpu.memory_space<vmem>>, vector<8x72xf32>
    tpu.vector_store %arg11[%c49, %c0_27], %51 {strides = array<i32>} : memref<65x72xf32, #tpu.memory_space<vmem>>, vector<8x72xf32>,
    %c16 = arith.constant 16 : index
    %c0_28 = arith.constant 0 : index
    %54 = vector.load %arg11[%c16, %c0_28] : memref<65x72xf32, #tpu.memory_space<vmem>>, vector<49x8xf32>
    tpu.vector_store %arg11[%c16, %c0_28], %44 {strides = array<i32>} : memref<65x72xf32, #tpu.memory_space<vmem>>, vector<49x8xf32>,
    %c15 = arith.constant 15 : index
    %c8_29 = arith.constant 8 : index
    %55 = vector.load %arg11[%c15, %c8_29] : memref<65x72xf32, #tpu.memory_space<vmem>>, vector<49x8xf32>
    tpu.vector_store %arg11[%c15, %c8_29], %13 {strides = array<i32>} : memref<65x72xf32, #tpu.memory_space<vmem>>, vector<49x8xf32>,
    %c14 = arith.constant 14 : index
    %c16_30 = arith.constant 16 : index
    %56 = vector.load %arg11[%c14, %c16_30] : memref<65x72xf32, #tpu.memory_space<vmem>>, vector<49x8xf32>
    tpu.vector_store %arg11[%c14, %c16_30], %50 {strides = array<i32>} : memref<65x72xf32, #tpu.memory_space<vmem>>, vector<49x8xf32>,
    %c9 = arith.constant 9 : index
    %c24 = arith.constant 24 : index
    %57 = vector.load %arg11[%c9, %c24] : memref<65x72xf32, #tpu.memory_space<vmem>>, vector<49x8xf32>
    tpu.vector_store %arg11[%c9, %c24], %44 {strides = array<i32>} : memref<65x72xf32, #tpu.memory_space<vmem>>, vector<49x8xf32>,
    %c8_31 = arith.constant 8 : index
    %c32 = arith.constant 32 : index
    %58 = vector.load %arg11[%c8_31, %c32] : memref<65x72xf32, #tpu.memory_space<vmem>>, vector<49x8xf32>
    tpu.vector_store %arg11[%c8_31, %c32], %13 {strides = array<i32>} : memref<65x72xf32, #tpu.memory_space<vmem>>, vector<49x8xf32>,
    %c7 = arith.constant 7 : index
    %c40 = arith.constant 40 : index
    %59 = vector.load %arg11[%c7, %c40] : memref<65x72xf32, #tpu.memory_space<vmem>>, vector<49x8xf32>
    tpu.vector_store %arg11[%c7, %c40], %50 {strides = array<i32>} : memref<65x72xf32, #tpu.memory_space<vmem>>, vector<49x8xf32>,
    %c2 = arith.constant 2 : index
    %c48 = arith.constant 48 : index
    %60 = vector.load %arg11[%c2, %c48] : memref<65x72xf32, #tpu.memory_space<vmem>>, vector<49x8xf32>
    tpu.vector_store %arg11[%c2, %c48], %44 {strides = array<i32>} : memref<65x72xf32, #tpu.memory_space<vmem>>, vector<49x8xf32>,
    %c1 = arith.constant 1 : index
    %c56 = arith.constant 56 : index
    %61 = vector.load %arg11[%c1, %c56] : memref<65x72xf32, #tpu.memory_space<vmem>>, vector<49x8xf32>
    tpu.vector_store %arg11[%c1, %c56], %13 {strides = array<i32>} : memref<65x72xf32, #tpu.memory_space<vmem>>, vector<49x8xf32>,
    %c0_32 = arith.constant 0 : index
    %c64 = arith.constant 64 : index
    %62 = vector.load %arg11[%c0_32, %c64] : memref<65x72xf32, #tpu.memory_space<vmem>>, vector<49x8xf32>
    tpu.vector_store %arg11[%c0_32, %c64], %50 {strides = array<i32>} : memref<65x72xf32, #tpu.memory_space<vmem>>, vector<49x8xf32>,
    %c8_33 = arith.constant 8 : index
    %c0_34 = arith.constant 0 : index
    %63 = vector.load %arg11[%c8_33, %c0_34] : memref<65x72xf32, #tpu.memory_space<vmem>>, vector<49x72xf32>
    %64 = arith.truncf %63 : vector<49x72xf32> to vector<49x72xbf16>
    %c0_35 = arith.constant 0 : index
    %c0_36 = arith.constant 0 : index
    %65 = vector.load %arg8[%c0_35, %c0_36] : memref<72x16xbf16, #tpu.memory_space<vmem>>, vector<72x16xbf16>
    %cst_37 = arith.constant dense<0.000000e+00> : vector<49x16xf32>
    %66 = tpu.matmul %64, %65, %cst_37 {dimension_numbers = #tpu.dot_dimension_numbers<[1], [0], [0], [1], [0, 0, 1, 1], [], []>} : vector<49x72xbf16>, vector<72x16xbf16>, vector<49x16xf32> -> vector<49x16xf32>
    %c0_38 = arith.constant 0 : index
    %c0_39 = arith.constant 0 : index
    %67 = vector.load %arg9[%c0_38, %c0_39] : memref<1x16xf32, #tpu.memory_space<vmem>>, vector<1x16xf32>
    %68 = vector.broadcast %67 : vector<1x16xf32> to vector<49x16xf32>
    %69 = arith.addf %66, %68 : vector<49x16xf32>
    %cst_40 = arith.constant 0.000000e+00 : f32
    %70 = vector.broadcast %cst_40 : f32 to vector<49x16xf32>
    %71 = arith.maximumf %69, %70 : vector<49x16xf32>
    %72 = arith.truncf %21 : vector<49x16xf32> to vector<49x16xbf16>
    %c0_41 = arith.constant 0 : index
    %c0_42 = arith.constant 0 : index
    %c0_43 = arith.constant 0 : index
    %73 = vector.load %arg10[%c0_41, %c0_42, %c0_43] : memref<1x49x32xbf16, #tpu.memory_space<vmem>>, vector<1x49x16xbf16>
    %74 = vector.shape_cast %73 : vector<1x49x16xbf16> to vector<49x16xbf16>
    %75 = vector.shape_cast %72 : vector<49x16xbf16> to vector<1x49x16xbf16>
    tpu.vector_store %arg10[%c0_41, %c0_42, %c0_43], %75 {strides = array<i32>} : memref<1x49x32xbf16, #tpu.memory_space<vmem>>, vector<1x49x16xbf16>,
    %76 = arith.truncf %71 : vector<49x16xf32> to vector<49x16xbf16>
    %c0_44 = arith.constant 0 : index
    %c0_45 = arith.constant 0 : index
    %c16_46 = arith.constant 16 : index
    %77 = vector.load %arg10[%c0_44, %c0_45, %c16_46] : memref<1x49x32xbf16, #tpu.memory_space<vmem>>, vector<1x49x16xbf16>
    %78 = vector.shape_cast %77 : vector<1x49x16xbf16> to vector<49x16xbf16>
    %79 = vector.shape_cast %76 : vector<49x16xbf16> to vector<1x49x16xbf16>
    tpu.vector_store %arg10[%c0_44, %c0_45, %c16_46], %79 {strides = array<i32>} : memref<1x49x32xbf16, #tpu.memory_space<vmem>>, vector<1x49x16xbf16>,
    return
  }
  func.func @transform_0(%arg0: i32) -> (i32, i32, i32) {
    %c0_i32 = arith.constant 0 : i32
    %c0_i32_0 = arith.constant 0 : i32
    %c0_i32_1 = arith.constant 0 : i32
    return %arg0, %c0_i32, %c0_i32_0 : i32, i32, i32
  }
  func.func @transform_1(%arg0: i32) -> (i32, i32, i32) {
    %c0_i32 = arith.constant 0 : i32
    %c0_i32_0 = arith.constant 0 : i32
    %c0_i32_1 = arith.constant 0 : i32
    return %arg0, %c0_i32, %c0_i32_0 : i32, i32, i32
  }
  func.func @transform_2(%arg0: i32) -> (i32, i32) {
    %c0_i32 = arith.constant 0 : i32
    %c0_i32_0 = arith.constant 0 : i32
    %c0_i32_1 = arith.constant 0 : i32
    return %c0_i32, %c0_i32_0 : i32, i32
  }
  func.func @transform_3(%arg0: i32) -> (i32, i32) {
    %c0_i32 = arith.constant 0 : i32
    %c0_i32_0 = arith.constant 0 : i32
    %c0_i32_1 = arith.constant 0 : i32
    return %c0_i32, %c0_i32_0 : i32, i32
  }
  func.func @transform_4(%arg0: i32) -> (i32, i32) {
    %c0_i32 = arith.constant 0 : i32
    %c0_i32_0 = arith.constant 0 : i32
    %c0_i32_1 = arith.constant 0 : i32
    return %c0_i32, %c0_i32_0 : i32, i32
  }
  func.func @transform_5(%arg0: i32) -> (i32, i32) {
    %c0_i32 = arith.constant 0 : i32
    %c0_i32_0 = arith.constant 0 : i32
    %c0_i32_1 = arith.constant 0 : i32
    return %c0_i32, %c0_i32_0 : i32, i32
  }
  func.func @transform_6(%arg0: i32) -> (i32, i32) {
    %c0_i32 = arith.constant 0 : i32
    %c0_i32_0 = arith.constant 0 : i32
    %c0_i32_1 = arith.constant 0 : i32
    return %c0_i32, %c0_i32_0 : i32, i32
  }
  func.func @transform_7(%arg0: i32) -> (i32, i32) {
    %c0_i32 = arith.constant 0 : i32
    %c0_i32_0 = arith.constant 0 : i32
    %c0_i32_1 = arith.constant 0 : i32
    return %c0_i32, %c0_i32_0 : i32, i32
  }
  func.func @transform_8(%arg0: i32) -> (i32, i32) {
    %c0_i32 = arith.constant 0 : i32
    %c0_i32_0 = arith.constant 0 : i32
    %c0_i32_1 = arith.constant 0 : i32
    return %c0_i32, %c0_i32_0 : i32, i32
  }
  func.func @transform_9(%arg0: i32) -> (i32, i32, i32) {
    %c0_i32 = arith.constant 0 : i32
    %c0_i32_0 = arith.constant 0 : i32
    %c0_i32_1 = arith.constant 0 : i32
    return %arg0, %c0_i32, %c0_i32_0 : i32, i32, i32
  }
}

module attributes {stable_mosaic.version = 11 : i64} {
  func.func @_fused_fire_kernel(%arg0: i32, %arg1: memref<1x256x32xbf16, #tpu.memory_space<vmem>>, %arg2: memref<32x4xbf16, #tpu.memory_space<vmem>>, %arg3: memref<1x4xf32, #tpu.memory_space<vmem>>, %arg4: memref<4x8xbf16, #tpu.memory_space<vmem>>, %arg5: memref<1x8xf32, #tpu.memory_space<vmem>>, %arg6: memref<36x8xbf16, #tpu.memory_space<vmem>>, %arg7: memref<1x8xf32, #tpu.memory_space<vmem>>, %arg8: memref<8x8xbf16, #tpu.memory_space<vmem>>, %arg9: memref<8x8xbf16, #tpu.memory_space<vmem>>, %arg10: memref<1x8xf32, #tpu.memory_space<vmem>>, %arg11: memref<1x256x8xbf16, #tpu.memory_space<vmem>>, %arg12: memref<297x36xf32, #tpu.memory_space<vmem>>) attributes {dimension_semantics = [#tpu.dimension_semantics<parallel>], iteration_bounds = array<i64: 2>, scalar_prefetch = 0 : i64, scratch_operands = 1 : i64, tpu.core_type = #tpu.core_type<tc>, window_params = [{transform_indices = @transform_0, window_bounds = array<i64: 1, 256, 32>}, {pipeline_mode = #tpu.pipeline_mode<synchronous>, transform_indices = @transform_1, window_bounds = array<i64: 32, 4>}, {pipeline_mode = #tpu.pipeline_mode<synchronous>, transform_indices = @transform_2, window_bounds = array<i64: 1, 4>}, {pipeline_mode = #tpu.pipeline_mode<synchronous>, transform_indices = @transform_3, window_bounds = array<i64: 4, 8>}, {pipeline_mode = #tpu.pipeline_mode<synchronous>, transform_indices = @transform_4, window_bounds = array<i64: 1, 8>}, {pipeline_mode = #tpu.pipeline_mode<synchronous>, transform_indices = @transform_5, window_bounds = array<i64: 36, 8>}, {pipeline_mode = #tpu.pipeline_mode<synchronous>, transform_indices = @transform_6, window_bounds = array<i64: 1, 8>}, {pipeline_mode = #tpu.pipeline_mode<synchronous>, transform_indices = @transform_7, window_bounds = array<i64: 8, 8>}, {pipeline_mode = #tpu.pipeline_mode<synchronous>, transform_indices = @transform_8, window_bounds = array<i64: 8, 8>}, {pipeline_mode = #tpu.pipeline_mode<synchronous>, transform_indices = @transform_9, window_bounds = array<i64: 1, 8>}, {transform_indices = @transform_10, window_bounds = array<i64: 1, 256, 8>}]} {
    %c0 = arith.constant 0 : index
    %c0_0 = arith.constant 0 : index
    %c0_1 = arith.constant 0 : index
    %0 = vector.load %arg1[%c0, %c0_0, %c0_1] : memref<1x256x32xbf16, #tpu.memory_space<vmem>>, vector<1x256x32xbf16>
    %1 = vector.shape_cast %0 : vector<1x256x32xbf16> to vector<256x32xbf16>
    %c0_2 = arith.constant 0 : index
    %c0_3 = arith.constant 0 : index
    %2 = vector.load %arg2[%c0_2, %c0_3] : memref<32x4xbf16, #tpu.memory_space<vmem>>, vector<32x4xbf16>
    %cst = arith.constant dense<0.000000e+00> : vector<256x4xf32>
    %3 = tpu.matmul %1, %2, %cst {dimension_numbers = #tpu.dot_dimension_numbers<[1], [0], [0], [1], [0, 0, 1, 1], [], []>} : vector<256x32xbf16>, vector<32x4xbf16>, vector<256x4xf32> -> vector<256x4xf32>
    %c0_4 = arith.constant 0 : index
    %c0_5 = arith.constant 0 : index
    %4 = vector.load %arg3[%c0_4, %c0_5] : memref<1x4xf32, #tpu.memory_space<vmem>>, vector<1x4xf32>
    %5 = vector.broadcast %4 : vector<1x4xf32> to vector<256x4xf32>
    %6 = arith.addf %3, %5 : vector<256x4xf32>
    %cst_6 = arith.constant 0.000000e+00 : f32
    %7 = vector.broadcast %cst_6 : f32 to vector<256x4xf32>
    %8 = arith.maximumf %6, %7 : vector<256x4xf32>
    %9 = arith.truncf %8 : vector<256x4xf32> to vector<256x4xbf16>
    %c0_7 = arith.constant 0 : index
    %c0_8 = arith.constant 0 : index
    %10 = vector.load %arg4[%c0_7, %c0_8] : memref<4x8xbf16, #tpu.memory_space<vmem>>, vector<4x8xbf16>
    %cst_9 = arith.constant dense<0.000000e+00> : vector<256x8xf32>
    %11 = tpu.matmul %9, %10, %cst_9 {dimension_numbers = #tpu.dot_dimension_numbers<[1], [0], [0], [1], [0, 0, 1, 1], [], []>} : vector<256x4xbf16>, vector<4x8xbf16>, vector<256x8xf32> -> vector<256x8xf32>
    %c0_10 = arith.constant 0 : index
    %c0_11 = arith.constant 0 : index
    %12 = vector.load %arg5[%c0_10, %c0_11] : memref<1x8xf32, #tpu.memory_space<vmem>>, vector<1x8xf32>
    %13 = vector.broadcast %12 : vector<1x8xf32> to vector<256x8xf32>
    %14 = arith.addf %11, %13 : vector<256x8xf32>
    %cst_12 = arith.constant 0.000000e+00 : f32
    %15 = vector.broadcast %cst_12 : f32 to vector<256x8xf32>
    %16 = arith.maximumf %14, %15 : vector<256x8xf32>
    %17 = tpu.iota {dimensions = array<i32: 0>} : vector<256x1xi32>
    %c16_i32 = arith.constant 16 : i32
    %c0_i32 = arith.constant 0 : i32
    %18 = arith.cmpi eq, %c16_i32, %c0_i32 : i32
    %c1_i32 = arith.constant 1 : i32
    %19 = arith.select %18, %c1_i32, %c16_i32 : i32
    %20 = vector.broadcast %19 : i32 to vector<256x1xi32>
    %21 = arith.remsi %17, %20 : vector<256x1xi32>
    %c0_i32_13 = arith.constant 0 : i32
    %22 = vector.broadcast %c0_i32_13 : i32 to vector<256x1xi32>
    %23 = arith.cmpi ne, %21, %22 : vector<256x1xi32>
    %c0_i32_14 = arith.constant 0 : i32
    %24 = vector.broadcast %c0_i32_14 : i32 to vector<256x1xi32>
    %25 = arith.cmpi slt, %21, %24 : vector<256x1xi32>
    %c0_i32_15 = arith.constant 0 : i32
    %26 = arith.cmpi slt, %19, %c0_i32_15 : i32
    %27 = vector.broadcast %26 : i1 to vector<256x1xi1>
    %28 = vector.broadcast %27 : vector<256x1xi1> to vector<256x1xi1>
    %29 = arith.xori %25, %28 : vector<256x1xi1>
    %30 = arith.andi %29, %23 : vector<256x1xi1>
    %31 = vector.broadcast %19 : i32 to vector<256x1xi32>
    %32 = arith.addi %21, %31 : vector<256x1xi32>
    %33 = arith.select %30, %32, %21 : vector<256x1xi1>, vector<256x1xi32>
    %c15_i32 = arith.constant 15 : i32
    %34 = vector.broadcast %c15_i32 : i32 to vector<256x1xi32>
    %35 = arith.cmpi eq, %33, %34 : vector<256x1xi32>
    %cst_16 = arith.constant 0.000000e+00 : f32
    %36 = vector.shape_cast %35 : vector<256x1xi1> to vector<256x1xi1>
    %37 = vector.broadcast %36 : vector<256x1xi1> to vector<256x4xi1>
    %38 = vector.broadcast %cst_16 : f32 to vector<256x4xf32>
    %39 = arith.select %37, %38, %8 : vector<256x4xi1>, vector<256x4xf32>
    %c0_i32_17 = arith.constant 0 : i32
    %40 = vector.broadcast %c0_i32_17 : i32 to vector<256x1xi32>
    %41 = arith.cmpi eq, %33, %40 : vector<256x1xi32>
    %cst_18 = arith.constant 0.000000e+00 : f32
    %42 = vector.shape_cast %41 : vector<256x1xi1> to vector<256x1xi1>
    %43 = vector.broadcast %42 : vector<256x1xi1> to vector<256x4xi1>
    %44 = vector.broadcast %cst_18 : f32 to vector<256x4xf32>
    %45 = arith.select %43, %44, %8 : vector<256x4xi1>, vector<256x4xf32>
    %cst_19 = arith.constant 0.000000e+00 : f32
    %46 = vector.broadcast %cst_19 : f32 to vector<17x36xf32>
    %c24 = arith.constant 24 : index
    %c0_20 = arith.constant 0 : index
    %47 = vector.load %arg12[%c24, %c0_20] : memref<297x36xf32, #tpu.memory_space<vmem>>, vector<17x36xf32>
    tpu.vector_store %arg12[%c24, %c0_20], %46 {strides = array<i32>} : memref<297x36xf32, #tpu.memory_space<vmem>>, vector<17x36xf32>,
    %c263 = arith.constant 263 : index
    %c0_21 = arith.constant 0 : index
    %48 = vector.load %arg12[%c263, %c0_21] : memref<297x36xf32, #tpu.memory_space<vmem>>, vector<17x36xf32>
    tpu.vector_store %arg12[%c263, %c0_21], %46 {strides = array<i32>} : memref<297x36xf32, #tpu.memory_space<vmem>>, vector<17x36xf32>,
    %c41 = arith.constant 41 : index
    %c0_22 = arith.constant 0 : index
    %49 = vector.load %arg12[%c41, %c0_22] : memref<297x36xf32, #tpu.memory_space<vmem>>, vector<256x4xf32>
    tpu.vector_store %arg12[%c41, %c0_22], %39 {strides = array<i32>} : memref<297x36xf32, #tpu.memory_space<vmem>>, vector<256x4xf32>,
    %c40 = arith.constant 40 : index
    %c4 = arith.constant 4 : index
    %50 = vector.load %arg12[%c40, %c4] : memref<297x36xf32, #tpu.memory_space<vmem>>, vector<256x4xf32>
    tpu.vector_store %arg12[%c40, %c4], %8 {strides = array<i32>} : memref<297x36xf32, #tpu.memory_space<vmem>>, vector<256x4xf32>,
    %c39 = arith.constant 39 : index
    %c8 = arith.constant 8 : index
    %51 = vector.load %arg12[%c39, %c8] : memref<297x36xf32, #tpu.memory_space<vmem>>, vector<256x4xf32>
    tpu.vector_store %arg12[%c39, %c8], %45 {strides = array<i32>} : memref<297x36xf32, #tpu.memory_space<vmem>>, vector<256x4xf32>,
    %c25 = arith.constant 25 : index
    %c12 = arith.constant 12 : index
    %52 = vector.load %arg12[%c25, %c12] : memref<297x36xf32, #tpu.memory_space<vmem>>, vector<256x4xf32>
    tpu.vector_store %arg12[%c25, %c12], %39 {strides = array<i32>} : memref<297x36xf32, #tpu.memory_space<vmem>>, vector<256x4xf32>,
    %c24_23 = arith.constant 24 : index
    %c16 = arith.constant 16 : index
    %53 = vector.load %arg12[%c24_23, %c16] : memref<297x36xf32, #tpu.memory_space<vmem>>, vector<256x4xf32>
    tpu.vector_store %arg12[%c24_23, %c16], %8 {strides = array<i32>} : memref<297x36xf32, #tpu.memory_space<vmem>>, vector<256x4xf32>,
    %c23 = arith.constant 23 : index
    %c20 = arith.constant 20 : index
    %54 = vector.load %arg12[%c23, %c20] : memref<297x36xf32, #tpu.memory_space<vmem>>, vector<256x4xf32>
    tpu.vector_store %arg12[%c23, %c20], %45 {strides = array<i32>} : memref<297x36xf32, #tpu.memory_space<vmem>>, vector<256x4xf32>,
    %c9 = arith.constant 9 : index
    %c24_24 = arith.constant 24 : index
    %55 = vector.load %arg12[%c9, %c24_24] : memref<297x36xf32, #tpu.memory_space<vmem>>, vector<256x4xf32>
    tpu.vector_store %arg12[%c9, %c24_24], %39 {strides = array<i32>} : memref<297x36xf32, #tpu.memory_space<vmem>>, vector<256x4xf32>,
    %c8_25 = arith.constant 8 : index
    %c28 = arith.constant 28 : index
    %56 = vector.load %arg12[%c8_25, %c28] : memref<297x36xf32, #tpu.memory_space<vmem>>, vector<256x4xf32>
    tpu.vector_store %arg12[%c8_25, %c28], %8 {strides = array<i32>} : memref<297x36xf32, #tpu.memory_space<vmem>>, vector<256x4xf32>,
    %c7 = arith.constant 7 : index
    %c32 = arith.constant 32 : index
    %57 = vector.load %arg12[%c7, %c32] : memref<297x36xf32, #tpu.memory_space<vmem>>, vector<256x4xf32>
    tpu.vector_store %arg12[%c7, %c32], %45 {strides = array<i32>} : memref<297x36xf32, #tpu.memory_space<vmem>>, vector<256x4xf32>,
    %c24_26 = arith.constant 24 : index
    %c0_27 = arith.constant 0 : index
    %58 = vector.load %arg12[%c24_26, %c0_27] : memref<297x36xf32, #tpu.memory_space<vmem>>, vector<256x36xf32>
    %59 = arith.truncf %58 : vector<256x36xf32> to vector<256x36xbf16>
    %c0_28 = arith.constant 0 : index
    %c0_29 = arith.constant 0 : index
    %60 = vector.load %arg6[%c0_28, %c0_29] : memref<36x8xbf16, #tpu.memory_space<vmem>>, vector<36x8xbf16>
    %cst_30 = arith.constant dense<0.000000e+00> : vector<256x8xf32>
    %61 = tpu.matmul %59, %60, %cst_30 {dimension_numbers = #tpu.dot_dimension_numbers<[1], [0], [0], [1], [0, 0, 1, 1], [], []>} : vector<256x36xbf16>, vector<36x8xbf16>, vector<256x8xf32> -> vector<256x8xf32>
    %c0_31 = arith.constant 0 : index
    %c0_32 = arith.constant 0 : index
    %62 = vector.load %arg7[%c0_31, %c0_32] : memref<1x8xf32, #tpu.memory_space<vmem>>, vector<1x8xf32>
    %63 = vector.broadcast %62 : vector<1x8xf32> to vector<256x8xf32>
    %64 = arith.addf %61, %63 : vector<256x8xf32>
    %cst_33 = arith.constant 0.000000e+00 : f32
    %65 = vector.broadcast %cst_33 : f32 to vector<256x8xf32>
    %66 = arith.maximumf %64, %65 : vector<256x8xf32>
    %67 = arith.truncf %16 : vector<256x8xf32> to vector<256x8xbf16>
    %c0_34 = arith.constant 0 : index
    %c0_35 = arith.constant 0 : index
    %68 = vector.load %arg8[%c0_34, %c0_35] : memref<8x8xbf16, #tpu.memory_space<vmem>>, vector<8x8xbf16>
    %cst_36 = arith.constant dense<0.000000e+00> : vector<256x8xf32>
    %69 = tpu.matmul %67, %68, %cst_36 {dimension_numbers = #tpu.dot_dimension_numbers<[1], [0], [0], [1], [0, 0, 1, 1], [], []>} : vector<256x8xbf16>, vector<8x8xbf16>, vector<256x8xf32> -> vector<256x8xf32>
    %70 = arith.truncf %66 : vector<256x8xf32> to vector<256x8xbf16>
    %c0_37 = arith.constant 0 : index
    %c0_38 = arith.constant 0 : index
    %71 = vector.load %arg9[%c0_37, %c0_38] : memref<8x8xbf16, #tpu.memory_space<vmem>>, vector<8x8xbf16>
    %cst_39 = arith.constant dense<0.000000e+00> : vector<256x8xf32>
    %72 = tpu.matmul %70, %71, %cst_39 {dimension_numbers = #tpu.dot_dimension_numbers<[1], [0], [0], [1], [0, 0, 1, 1], [], []>} : vector<256x8xbf16>, vector<8x8xbf16>, vector<256x8xf32> -> vector<256x8xf32>
    %73 = arith.addf %69, %72 : vector<256x8xf32>
    %c0_40 = arith.constant 0 : index
    %c0_41 = arith.constant 0 : index
    %74 = vector.load %arg10[%c0_40, %c0_41] : memref<1x8xf32, #tpu.memory_space<vmem>>, vector<1x8xf32>
    %75 = vector.broadcast %74 : vector<1x8xf32> to vector<256x8xf32>
    %76 = arith.addf %73, %75 : vector<256x8xf32>
    %cst_42 = arith.constant 0.000000e+00 : f32
    %77 = vector.broadcast %cst_42 : f32 to vector<256x8xf32>
    %78 = arith.maximumf %76, %77 : vector<256x8xf32>
    %79 = arith.truncf %78 : vector<256x8xf32> to vector<256x8xbf16>
    %c0_43 = arith.constant 0 : index
    %c0_44 = arith.constant 0 : index
    %c0_45 = arith.constant 0 : index
    %80 = vector.load %arg11[%c0_43, %c0_44, %c0_45] : memref<1x256x8xbf16, #tpu.memory_space<vmem>>, vector<1x256x8xbf16>
    %81 = vector.shape_cast %80 : vector<1x256x8xbf16> to vector<256x8xbf16>
    %82 = vector.shape_cast %79 : vector<256x8xbf16> to vector<1x256x8xbf16>
    tpu.vector_store %arg11[%c0_43, %c0_44, %c0_45], %82 {strides = array<i32>} : memref<1x256x8xbf16, #tpu.memory_space<vmem>>, vector<1x256x8xbf16>,
    return
  }
  func.func @transform_0(%arg0: i32) -> (i32, i32, i32) {
    %c0_i32 = arith.constant 0 : i32
    %c0_i32_0 = arith.constant 0 : i32
    %c0_i32_1 = arith.constant 0 : i32
    return %arg0, %c0_i32, %c0_i32_0 : i32, i32, i32
  }
  func.func @transform_1(%arg0: i32) -> (i32, i32) {
    %c0_i32 = arith.constant 0 : i32
    %c0_i32_0 = arith.constant 0 : i32
    %c0_i32_1 = arith.constant 0 : i32
    return %c0_i32, %c0_i32_0 : i32, i32
  }
  func.func @transform_2(%arg0: i32) -> (i32, i32) {
    %c0_i32 = arith.constant 0 : i32
    %c0_i32_0 = arith.constant 0 : i32
    %c0_i32_1 = arith.constant 0 : i32
    return %c0_i32, %c0_i32_0 : i32, i32
  }
  func.func @transform_3(%arg0: i32) -> (i32, i32) {
    %c0_i32 = arith.constant 0 : i32
    %c0_i32_0 = arith.constant 0 : i32
    %c0_i32_1 = arith.constant 0 : i32
    return %c0_i32, %c0_i32_0 : i32, i32
  }
  func.func @transform_4(%arg0: i32) -> (i32, i32) {
    %c0_i32 = arith.constant 0 : i32
    %c0_i32_0 = arith.constant 0 : i32
    %c0_i32_1 = arith.constant 0 : i32
    return %c0_i32, %c0_i32_0 : i32, i32
  }
  func.func @transform_5(%arg0: i32) -> (i32, i32) {
    %c0_i32 = arith.constant 0 : i32
    %c0_i32_0 = arith.constant 0 : i32
    %c0_i32_1 = arith.constant 0 : i32
    return %c0_i32, %c0_i32_0 : i32, i32
  }
  func.func @transform_6(%arg0: i32) -> (i32, i32) {
    %c0_i32 = arith.constant 0 : i32
    %c0_i32_0 = arith.constant 0 : i32
    %c0_i32_1 = arith.constant 0 : i32
    return %c0_i32, %c0_i32_0 : i32, i32
  }
  func.func @transform_7(%arg0: i32) -> (i32, i32) {
    %c0_i32 = arith.constant 0 : i32
    %c0_i32_0 = arith.constant 0 : i32
    %c0_i32_1 = arith.constant 0 : i32
    return %c0_i32, %c0_i32_0 : i32, i32
  }
  func.func @transform_8(%arg0: i32) -> (i32, i32) {
    %c0_i32 = arith.constant 0 : i32
    %c0_i32_0 = arith.constant 0 : i32
    %c0_i32_1 = arith.constant 0 : i32
    return %c0_i32, %c0_i32_0 : i32, i32
  }
  func.func @transform_9(%arg0: i32) -> (i32, i32) {
    %c0_i32 = arith.constant 0 : i32
    %c0_i32_0 = arith.constant 0 : i32
    %c0_i32_1 = arith.constant 0 : i32
    return %c0_i32, %c0_i32_0 : i32, i32
  }
  func.func @transform_10(%arg0: i32) -> (i32, i32, i32) {
    %c0_i32 = arith.constant 0 : i32
    %c0_i32_0 = arith.constant 0 : i32
    %c0_i32_1 = arith.constant 0 : i32
    return %arg0, %c0_i32, %c0_i32_0 : i32, i32, i32
  }
}

</mosaic_0001>

<bundles_post_ra>
// kernel: condecon_fs_forward.7
= control target key start
LH: loop header
LB: loop body
LE: loop exit
PB: predicated region body
PF: predicated region fallthrough
CT: control target
= control target key end

     0   :  { %s1511_s24 = smov 0   ;;  %s1903_s0 = inlined_call_operand.vmem [shape: bf16[2,49,32], index: 0, kind: input, shape index: {}]   ;;  %s1904_s1 = inlined_call_operand.vmem [shape: bf16[32,8], index: 1, kind: input, shape index: {}]   ;;  %s1905_s2 = inlined_call_operand.vmem [shape: f32[1,8], index: 2, kind: input, shape index: {}]   ;;  %s1906_s3 = inlined_call_operand.vmem [shape: bf16[8,32], index: 3, kind: input, shape index: {}]   ;;  %s1907_s4 = inlined_call_operand.vmem [shape: f32[1,32], index: 4, kind: input, shape index: {}]   ;;  %s1908_s5 = inlined_call_operand.vmem [shape: bf16[72,32], index: 5, kind: input, shape index: {}]   ;;  %s1909_s6 = inlined_call_operand.vmem [shape: f32[1,32], index: 6, kind: input, shape index: {}]   ;;  %s1910_s7 = inlined_call_operand.vmem [shape: bf16[2,49,64], index: 7, kind: output, shape index: {}]  }
   0x1 LB: > { %s1273_s25 = sadd.s32 4294967295, %s1459_s24   ;;  %p1277_p0 = scmp.ge.s32.totalorder %s1459_s24, 1  ;;  %s1459_s24 = sphi %s1511_s24, %s17_s24  }
   0x2   : > { %p237_p1 = scmp.lt.s32.totalorder %s1459_s24, 3 }
   0x4   : > { %p238_p2 = pnand %p1277_p0, %p237_p1 }
   0x5   : > { %v1442_v0 = vld [vmem:[%s1904_s1] sm:$0xff] (!%p238_p2)   ;;  %p269_p3 = scmp.lt.s32.totalorder (!%p238_p2), %s1273_s25, 1  ;;  %v1443_v1 = vld [vmem:[%s1904_s1 + $0x8] sm:$0xff] (!%p238_p2)   ;;  %vm328_vm0 = vcmask (!%p238_p2), 261120   ;;  %vm437_vm1 = vcmask (!%p238_p2), 1043456   ;;  %vm709_vm2 = vcmask (!%p238_p2), 588800   ;;  %v512_v9 = vlaneseq (!%p238_p2) }
   0x6   : > { %241 = sbr.rel (%p238_p2) target bundleno = 808 (0x328), region = 48  ;;  %1356 = vmatprep.subr.bf16.mxu0 (!%p238_p2), %v1442_v0  ;;  %v416_v6 = vld [vmem:[%s1906_s3] sm:$0xf] (!%p238_p2)  ;;  %v1461_v8 = vmov (!%p238_p2), 0.0   ;;  %v1462_v22 = vmov (!%p238_p2), 0   ;;  %s1463_s15 = smov (!%p238_p2), 32  }
   0x7   : > { %1357 = vmatpush3.bf16.msra.mxu0 (!%p238_p2), %v1442_v0  ;;  %1406 = vmatprep.subr.msk.bf16.mxu1 (!%p238_p2), %vm437_vm1, %v416_v6  ;;  %v439_v7 = vsel (!%p238_p2), %vm437_vm1, %v416_v6, 0  ;;  %711 = vst.msk [vmem:[#allocation2 + $0x31] sm:$0xff] (!%p238_p2), %vm709_vm2, %v1461_v8  ;;  %710 = vst.msk [vmem:[#allocation2 + $0x8] sm:$0xff] (!%p238_p2), %vm709_vm2, %v1461_v8  ;;  %v513_v10 = vshrl.u32 (!%p238_p2), %v512_v9, 7  ;;  %s1464_s16 = smov (!%p238_p2), 8   ;;  %s1465_s17 = smov (!%p238_p2), 56  }
   0x8   : > { %1358 = vmatprep.subr.bf16.mxu0 (!%p238_p2), %v1443_v1  ;;  %1369 = vmatpush3.bf16.msra.mxu1 (!%p238_p2), %v439_v7  ;;  %v1585_v7 = vld [vmem:[%s1905_s2] ss:$0 sm:$0xff] (!%p238_p2)  ;;  %s1466_s18 = smov (!%p238_p2), 16   ;;  %s1467_s19 = smov (!%p238_p2), 24  }
   0x9   : > { %v515_v11 = vadd.s32 (!%p238_p2), 16, %v513_v10  ;;  %v516_v12 = vadd.s32 (!%p238_p2), 24, %v513_v10  ;;  %v514_v17 = vadd.s32 (!%p238_p2), 8, %v513_v10  ;;  %v1552_v24 = vadd.s32 (!%p238_p2), 48, %v513_v10  ;;  %s1468_s20 = smov (!%p238_p2), 40   ;;  %s1469_s21 = smov (!%p238_p2), 48  }
   0xa   : > { %v1546_v18 = vmul.u32.u64.low (!%p238_p2), 2454267026, %v513_v10  ;;  %v1547_v19 = vmul.u32.u64.high 2454267026, %v513_v10, %v1546_v18  ;;  %v1554_v26 = vadd.s32 (!%p238_p2), 32, %v513_v10  ;;  %v1556_v27 = vadd.s32 (!%p238_p2), 40, %v513_v10  ;;  %s1470_s22 = smov (!%p238_p2), 64  }
   0xb   : > { %1359 = vmatpush3.bf16.msra.mxu0 (!%p238_p2), %v1443_v1  ;;  %v1540_v13 = vmul.u32.u64.low (!%p238_p2), 2454267026, %v515_v11  ;;  %v1541_v14 = vmul.u32.u64.high 2454267026, %v515_v11, %v1540_v13  ;;  %v1543_v15 = vmul.u32.u64.low (!%p238_p2), 2454267026, %v516_v12  ;;  %v1544_v16 = vmul.u32.u64.high 2454267026, %v516_v12, %v1543_v15 }
   0xc   : > { %v1549_v20 = vmul.u32.u64.low (!%p238_p2), 2454267026, %v514_v17  ;;  %v1550_v21 = vmul.u32.u64.high 2454267026, %v514_v17, %v1549_v20  ;;  %vm526_vm5 = vc.u32 (!%p238_p2), %v1546_v18, 2454267026 }
   0xd   : > { %s1916_s25 = smov (!%p269_p3, %s1273_s25), 1  ;;  %vm554_vm3 = vc.u32 %v1540_v13, 2454267026  ;;  %vm568_vm4 = vc.u32 %v1543_v15, 2454267026  ;;  %v527_v29 = vsel %vm526_vm5, 1, %v1462_v22 }
   0xe   : > { %s1409_s30 = smul.u32 28, %s1916_s25  ;;  %v555_v23 = vsel %vm554_vm3, 1, %v1462_v22  ;;  %v569_v25 = vsel %vm568_vm4, 1, %v1462_v22  ;;  %vm540_vm6 = vc.u32 %v1549_v20, 2454267026  ;;  %v528_v36 = vadd.s32 %v1547_v19, %v527_v29 }
   0xf   : > { %v556_v28 = vadd.s32 %v1541_v14, %v555_v23  ;;  %v570_v30 = vadd.s32 %v1544_v16, %v569_v25  ;;  %v1561_v31 = vmul.u32.u64.low 2454267026, %v1552_v24  ;;  %v1562_v32 = vmul.u32.u64.high 2454267026, %v1552_v24, %v1561_v31 }
  0x10   : > { %s273_s10 = scalar_lea.vmem %s1903_s0, %s1409_s30  ;;  %v541_v33 = vsel %vm540_vm6, 1, %v1462_v22  ;;  %v1565_v34 = vmul.u32.u64.low 2454267026, %v1554_v26  ;;  %v1566_v35 = vmul.u32.u64.high 2454267026, %v1554_v26, %v1565_v34  ;;  %v529_v42 = vshrl.u32 %v528_v36, 2 }
  0x11   : > { %v1444_v2 = vld [vmem:[%s273_s10] sm:$0xff]   ;;  %v1445_v3 = vld [vmem:[%s273_s10 + $0x8] sm:$0xff]   ;;  %v1446_v4 = vld [vmem:[%s273_s10 + $0x10] sm:$0xff]   ;;  %v1570_v37 = vmul.u32.u64.low 2454267026, %v1556_v27  ;;  %v1571_v38 = vmul.u32.u64.high 2454267026, %v1556_v27, %v1570_v37  ;;  %v557_v39 = vshrl.u32 %v556_v28, 2  ;;  %v542_v41 = vadd.s32 %v1550_v21, %v541_v33 }
  0x12   : > { %1360 = vmatprep.mubr.msk.bf16.mxu0 %vm328_vm0, %v1444_v2  ;;  %v1447_v5 = vld [vmem:[%s273_s10 + $0x18] ss:$0 sps:$4 sm:$0x11]   ;;  %v571_v40 = vshrl.u32 %v570_v30, 2  ;;  %vm610_vm7 = vc.u32 %v1561_v31, 2454267026 }
  0x13   : > { %1361 = vmatmul.mubr.msk.bf16.vlgmr.msra.gmra.mrb[0].mxu0 %vm328_vm0, %v1445_v3  ;;  %vm582_vm8 = vc.u32 %v1565_v34, 2454267026  ;;  %vm596_vm9 = vc.u32 %v1570_v37, 2454267026  ;;  %v558_v43 = vmul.u32 7, %v557_v39  ;;  %v611_v44 = vsel %vm610_vm7, 1, %v1462_v22 }
  0x14   : > { %1364 = vmatprep.mubr.msk.bf16.mxu0 %vm328_vm0, %v1446_v4  ;;  %v572_v45 = vmul.u32 7, %v571_v40  ;;  %v543_v46 = vshrl.u32 %v542_v41, 2  ;;  %v583_v47 = vsel %vm582_vm8, 1, %v1462_v22  ;;  %v597_v48 = vsel %vm596_vm9, 1, %v1462_v22 }
  0x15   : > { %v530_v49 = vmul.u32 7, %v529_v42  ;;  %v612_v50 = vadd.s32 %v1562_v32, %v611_v44  ;;  %v559_v51 = vsub.s32 %v515_v11, %v558_v43  ;;  %v584_v52 = vadd.s32 %v1566_v35, %v583_v47 }
  0x16   : > { %v573_v53 = vsub.s32 %v516_v12, %v572_v45  ;;  %v544_v54 = vmul.u32 7, %v543_v46  ;;  %v598_v55 = vadd.s32 %v1571_v38, %v597_v48  ;;  %vm424_vm8 = vcmask 64512  }
  0x17   : > { %v531_v56 = vsub.s32 %v513_v10, %v530_v49  ;;  %v613_v57 = vshrl.u32 %v612_v50, 2  ;;  %vm620_vm10 = vcmp.ne.s32.totalorder %v559_v51, 0  ;;  %vm627_vm11 = vcmp.lt.s32.totalorder %v559_v51, 0 }
  0x18   : > { %v585_v58 = vshrl.u32 %v584_v52, 2  ;;  %vm621_vm12 = vcmp.ne.s32.totalorder %v573_v53, 0  ;;  %vm628_vm13 = vcmp.lt.s32.totalorder %v573_v53, 0  ;;  %v545_v59 = vsub.s32 %v514_v17, %v544_v54  ;;  %vm634_vm14 = vmand %vm627_vm11, %vm620_vm10 }
  0x19   : > { %v599_v60 = vshrl.u32 %v598_v55, 2  ;;  %v641_v61 = vadd.s32 7, %v559_v51  ;;  %v642_v62 = vadd.s32 7, %v573_v53  ;;  %vm618_vm15 = vcmp.ne.s32.totalorder %v531_v56, 0  ;;  %vm635_vm3 = vmand %vm628_vm13, %vm621_vm12 }
  0x1a   : > { %v614_v63 = vmul.u32 7, %v613_v57  ;;  %v586_v0 = vmul.u32 7, %v585_v58  ;;  %vm619_vm4 = vcmp.ne.s32.totalorder %v545_v59, 0  ;;  %vm626_vm5 = vcmp.lt.s32.totalorder %v545_v59, 0 }
  0x1b   : > { %1365 = vmatmul.mubr.msk.bf16.gmra.mrb[4].mxu0 %vm328_vm0, %v1447_v5  ;;  %vm625_vm0 = vcmp.lt.s32.totalorder %v531_v56, 0  ;;  %v639_v1 = vadd.s32 7, %v531_v56  ;;  %v600_v2 = vmul.u32 7, %v599_v60  ;;  %v1577_v3 = vsel %vm634_vm14, %v641_v61, %v559_v51  ;;  %vm633_vm7 = vmand %vm626_vm5, %vm619_vm4  ;;  %v1449_v60 = vld [vmem:[%s1908_s5 + $0x8] sm:$0xff]  }
  0x1c   : > { %vm632_vm6 = vmand %vm625_vm0, %vm618_vm15  ;;  %v1579_v4 = vsel %vm635_vm3, %v642_v62, %v573_v53  ;;  %v640_v5 = vadd.s32 7, %v545_v59  ;;  %v615_v6 = vsub.s32 %v1552_v24, %v614_v63  ;;  %v587_v8 = vsub.s32 %v1554_v26, %v586_v0  ;;  %v1450_v62 = vld [vmem:[%s1908_s5 + $0x10] sm:$0xff]   ;;  %v1451_v63 = vld [vmem:[%s1908_s5 + $0x18] sm:$0xff]  }
  0x1d   : > { %v1588_v9 = vsel %vm632_vm6, %v639_v1, %v531_v56  ;;  %v601_v10 = vsub.s32 %v1556_v27, %v600_v2  ;;  %vm655_vm9 = vcmp.eq.s32.totalorder %v1577_v3, 6  ;;  %vm656_vm10 = vcmp.eq.s32.totalorder %v1579_v4, 6  ;;  %v1452_v0 = vld [vmem:[%s1908_s5 + $0x20] ss:$0 sps:$4 sm:$0xff]  }
  0x1e   : > { %v1594_v14 = vsel %vm633_vm7, %v640_v5, %v545_v59  ;;  %vm624_vm11 = vcmp.ne.s32.totalorder %v615_v6, 0  ;;  %vm631_vm12 = vcmp.lt.s32.totalorder %v615_v6, 0  ;;  %vm653_vm13 = vcmp.eq.s32.totalorder %v1588_v9, 6  ;;  %v1448_v59 = vld [vmem:[%s1908_s5] sm:$0xff]  }
  0x1f   : > { %vm622_vm14 = vcmp.ne.s32.totalorder %v587_v8, 0  ;;  %vm629_vm15 = vcmp.lt.s32.totalorder %v587_v8, 0  ;;  %v645_v20 = vadd.s32 7, %v615_v6  ;;  %vm623_vm0 = vcmp.ne.s32.totalorder %v601_v10, 0  ;;  %vm1602_vm3 = vmand %vm631_vm12, %vm624_vm11  ;;  %1396 = vmatprep.subr.bf16.mxu1 %v1448_v59  ;;  %1378 = vmatprep.subr.bf16.mxu0 %v1448_v59 }
  0x20   : > { %vm630_vm4 = vcmp.lt.s32.totalorder %v601_v10, 0  ;;  %v643_v24 = vadd.s32 7, %v587_v8  ;;  %vm654_vm5 = vcmp.eq.s32.totalorder %v1594_v14, 6  ;;  %vm636_vm6 = vmand %vm629_vm15, %vm622_vm14  ;;  %v644_v29 = vadd.s32 7, %v601_v10  ;;  %1379 = vmatpush3.bf16.msra.mxu0 %v1448_v59 }
  0x21   : > { %v1630_v32 = vsel %vm1602_vm3, %v645_v20, %v615_v6  ;;  %vm1634_vm7 = vmand %vm630_vm4, %vm623_vm0  ;;  %vm683_vm12 = vcmp.eq.s32.totalorder %v1577_v3, 0  ;;  %vm684_vm14 = vcmp.eq.s32.totalorder %v1579_v4, 0  ;;  %vm681_vm15 = vcmp.eq.s32.totalorder %v1588_v9, 0  ;;  %1380 = vmatprep.subr.bf16.mxu0 %v1449_v60 }
  0x22   : > { %v650_v37 = vsel %vm636_vm6, %v643_v24, %v587_v8  ;;  %v1654_v42 = vsel %vm1634_vm7, %v644_v29, %v601_v10  ;;  %vm687_vm0 = vcmp.eq.s32.totalorder %v1630_v32, 0  ;;  %v1048_v1 = vsel %vm437_vm1, %v1452_v0, 0 }
  0x23   : > { %vm657_vm11 = vcmp.eq.s32.totalorder %v650_v37, 6  ;;  %vm686_vm3 = vcmp.eq.s32.totalorder %v1654_v42, 0  ;;  %vm785_vm4 = vcmask 195712   ;;  %vm852_vm6 = vcmask 326912  }
  0x24   : > { %1381 = vmatpush3.bf16.msra.mxu0 %v1449_v60  ;;  %vm882_vm7 = vcmask 392512  }
  0x25   : > { %1382 = vmatprep.subr.bf16.mxu0 %v1450_v62 }
  0x28   : > { %1383 = vmatpush3.bf16.msra.mxu0 %v1450_v62 }
  0x29   : > { %1384 = vmatprep.subr.bf16.mxu0 %v1451_v63 }
  0x2c   : > { %1385 = vmatpush3.bf16.msra.mxu0 %v1451_v63 }
  0x2d   : > { %1407 = vmatprep.subr.msk.bf16.mxu0 %vm437_vm1, %v1452_v0 }
  0x30   : > { %1387 = vmatpush3.bf16.msra.mxu0 %v1048_v1 }
  0xe6   : > { %v1362_v11 = vpop.f32.mrb[0].mxu0 }
  0xe7   : > { %v384_v12 = vadd.f32 %v1362_v11, %v1585_v7  ;;  %v375_v13 = vpop.f32.mrb[1].mxu0 }
  0xe8   : > { %v376_v15 = vadd.f32 %v1585_v7, %v375_v13  ;;  %v1363_v16 = vpop.f32.mrb[2].mxu0 }
  0xe9   : > { %v407_v17 = vmax.f32 %v384_v12, 0.0  ;;  %v387_v18 = vadd.f32 %v1363_v16, %v1585_v7  ;;  %v378_v19 = vpop.f32.mrb[3].mxu0 }
  0xea   : > { %v1599_v21 = vmax.f32 %v376_v15, 0.0  ;;  %v379_v22 = vadd.f32 %v1585_v7, %v378_v19 }
  0xeb   : > { %v408_v25 = vmax.f32 %v387_v18, 0.0  ;;  %835 = vrot.lane.b32.xlu0 %v407_v17, %s1463_s15  ;;  %731 = vrot.lane.b32.xlu1 %v407_v17, %s1464_s16  ;;  %v1610_v26 = vsel %vm655_vm9, 0.0, %v407_v17  ;;  %vm659_vm9 = vcmp.eq.s32.totalorder %v1630_v32, 6  ;;  %v704_v52 = vsel %vm683_vm12, 0.0, %v407_v17 }
  0xec   : > { %v1615_v27 = vmax.f32 %v379_v22, 0.0  ;;  %714 = vst.msk [vmem:[#allocation2 + $0x20] sm:$0xff] %vm424_vm8, %v1610_v26  ;;  %v1622_v28 = vsel %vm653_vm13, 0.0, %v1599_v21  ;;  %vm658_vm13 = vcmp.eq.s32.totalorder %v1654_v42, 6  ;;  %v1715_v57 = vsel %vm681_vm15, 0.0, %v1599_v21 }
  0xed   : > { %v413_v30 = vpack.c.bf16 %v408_v25, %v407_v17  ;;  %v677_v31 = vsel %vm656_vm10, 0.0, %v408_v25  ;;  %712 = vst.msk [vmem:[#allocation2 + $0x10] sm:$0xff] %vm424_vm8, %v1622_v28  ;;  %vm685_vm10 = vcmp.eq.s32.totalorder %v650_v37, 0  ;;  %v1689_v55 = vsel %vm684_vm14, 0.0, %v408_v25 }
  0xee   : > { %v412_v34 = vpack.c.bf16 %v1615_v27, %v1599_v21  ;;  %715 = vst.msk [vmem:[#allocation2 + $0x28] sm:$0xff] %vm424_vm8, %v677_v31  ;;  %v1642_v35 = vsel %vm654_vm5, 0.0, %v1615_v27  ;;  %v1366_v36 = vpop.f32.mrb[4].mxu0  ;;  %vm822_vm5 = vcmask 261312   ;;  %vm859_vm12 = vcmask 319744  }
  0xef   : > { %925 = vrot.lane.b32.xlu0 %v407_v17, %s1465_s17  ;;  %733 = vrot.lane.b32.xlu1 %v408_v25, %s1464_s16  ;;  %713 = vst.msk [vmem:[#allocation2 + $0x18] sm:$0xff] %vm424_vm8, %v1642_v35  ;;  %v400_v38 = vadd.f32 %v1366_v36, %v1585_v7  ;;  %v391_v39 = vpop.f32.mrb[5].mxu0  ;;  %vm919_vm14 = vcmask 450944   ;;  %vm979_vm15 = vcmask 582144  }
  0xf0   : > { %1370 = vmatprep.mubr.msk.bf16.mxu1 %vm424_vm8, %v412_v34  ;;  %v392_v40 = vadd.f32 %v1585_v7, %v391_v39  ;;  %v1367_v41 = vpop.f32.mrb[6].mxu0 }
  0xf1   : > { %1371 = vmatmul.mubr.msk.bf16.vlgmr.msra.gmra.mrb[0].mxu1 %vm424_vm8, %v413_v30  ;;  %v1657_v43 = vmax.f32 %v400_v38, 0.0  ;;  %v394_v44 = vpop.f32.mrb[7].mxu0 }
  0xf2   : > { %v409_v45 = vmax.f32 %v392_v40, 0.0  ;;  %v395_v46 = vadd.f32 %v1585_v7, %v394_v44  ;;  %1401 = vmatpush3.bf16.msra.mxu1 %v1448_v59 }
  0xf3   : > { %837 = vrot.lane.b32.xlu1 %v408_v25, %s1463_s15  ;;  %727 = vrot.lane.b32.xlu0 %v1599_v21, %s1464_s16  ;;  %v1665_v47 = vsel %vm659_vm9, 0.0, %v1657_v43  ;;  %v415_v51 = vpack.c.bf16 %v1657_v43, %v1657_v43  ;;  %v708_v58 = vsel %vm687_vm0, 0.0, %v1657_v43  ;;  %vm912_vm9 = vcmask 458112  }
  0xf4   : > { %v1668_v48 = vmax.f32 %v395_v46, 0.0  ;;  %v1670_v49 = vsel %vm685_vm10, 0.0, %v409_v45  ;;  %v1672_v50 = vsel %vm657_vm11, 0.0, %v409_v45  ;;  %1397 = vmatprep.subr.bf16.mxu1 %v1449_v60  ;;  %vm942_vm10 = vcmask 523712  }
  0xf5   : > { %716 = vst.msk [vmem:[#allocation2 + $0x30] sm:$0xff] %vm424_vm8, %v1672_v50  ;;  %vm972_vm11 = vcmask 589312   ;;  %vm1150_vm0 = vcmask 257024  }
  0xf6   : > { %v414_v53 = vpack.c.bf16 %v1668_v48, %v409_v45  ;;  %v1680_v54 = vsel %vm658_vm13, 0.0, %v1668_v48  ;;  %v707_v61 = vsel %vm686_vm3, 0.0, %v1668_v48  ;;  %1402 = vmatpush3.bf16.msra.mxu1 %v1449_v60  ;;  %vm889_vm13 = vcmask 385344  }
  0xf7   : > { %927 = vrot.lane.b32.xlu1 %v408_v25, %s1465_s17  ;;  %768 = vrot.lane.b32.xlu0 %v704_v52, %s1466_s18  ;;  %717 = vst.msk [vmem:[#allocation2 + $0x38] sm:$0xff] %vm424_vm8, %v1680_v54  ;;  %vm1157_vm3 = vcmask 253952  }
  0xf8   : > { %1374 = vmatprep.mubr.msk.bf16.mxu1 %vm424_vm8, %v414_v53  ;;  %1398 = vmatprep.subr.bf16.mxu1 %v1450_v62 }
  0xf9   : > { %1375 = vmatmul.mubr.msk.bf16.gmra.mrb[4].mxu1 %vm424_vm8, %v415_v51  ;;  %vm682_vm8 = vcmp.eq.s32.totalorder %v1594_v14, 0 }
  0xfa   : > { %v703_v56 = vsel %vm682_vm8, 0.0, %v1615_v27  ;;  %1403 = vmatpush3.bf16.msra.mxu1 %v1450_v62  ;;  %vm949_vm8 = vcmask 516544  }
  0xfb   : > { %770 = vrot.lane.b32.xlu1 %v1689_v55, %s1466_s18  ;;  %805 = vrot.lane.b32.xlu0 %v1610_v26, %s1467_s19 }
  0xfc   : > { %1399 = vmatprep.subr.bf16.mxu1 %v1451_v63 }
  0xfe   : > { %1404 = vmatpush3.bf16.msra.mxu1 %v1451_v63 }
  0xff   : > { %807 = vrot.lane.b32.xlu1 %v677_v31, %s1467_s19  ;;  %831 = vrot.lane.b32.xlu0 %v1599_v21, %s1463_s15 }
 0x100   : > { %1408 = vmatprep.subr.msk.bf16.mxu1 %vm437_vm1, %v1452_v0  ;;  %vm748_vm1 = vcmask 130112  }
 0x102   : > { %1405 = vmatpush3.bf16.msra.mxu1 %v1048_v1 }
 0x103   : > { %833 = vrot.lane.b32.xlu1 %v1615_v27, %s1463_s15  ;;  %865 = vrot.lane.b32.xlu0 %v704_v52, %s1468_s20 }
 0x107   : > { %867 = vrot.lane.b32.xlu1 %v1689_v55, %s1468_s20  ;;  %895 = vrot.lane.b32.xlu0 %v1610_v26, %s1469_s21 }
 0x10b   : > { %897 = vrot.lane.b32.xlu1 %v677_v31, %s1469_s21  ;;  %921 = vrot.lane.b32.xlu0 %v1599_v21, %s1465_s17 }
 0x10f   : > { %923 = vrot.lane.b32.xlu1 %v1615_v27, %s1465_s17  ;;  %955 = vrot.lane.b32.xlu0 %v704_v52, %s1470_s22 }
 0x113   : > { %766 = vrot.lane.b32.xlu1 %v703_v56, %s1466_s18  ;;  %764 = vrot.lane.b32.xlu0 %v1715_v57, %s1466_s18 }
 0x117   : > { %803 = vrot.lane.b32.xlu1 %v1642_v35, %s1467_s19  ;;  %801 = vrot.lane.b32.xlu0 %v1622_v28, %s1467_s19 }
 0x11b   : > { %863 = vrot.lane.b32.xlu1 %v703_v56, %s1468_s20  ;;  %861 = vrot.lane.b32.xlu0 %v1715_v57, %s1468_s20 }
 0x11f   : > { %893 = vrot.lane.b32.xlu1 %v1642_v35, %s1469_s21  ;;  %891 = vrot.lane.b32.xlu0 %v1622_v28, %s1469_s21 }
 0x123   : > { %953 = vrot.lane.b32.xlu1 %v703_v56, %s1470_s22  ;;  %729 = vrot.lane.b32.xlu0 %v1615_v27, %s1464_s16 }
 0x127   : > { %843 = vrot.lane.b32.xlu1 %v1657_v43, %s1463_s15  ;;  %933 = vrot.lane.b32.xlu0 %v1657_v43, %s1465_s17 }
 0x12b   : > { %929 = vrot.lane.b32.xlu1 %v409_v45, %s1465_s17  ;;  %735 = vrot.lane.b32.xlu0 %v409_v45, %s1464_s16 }
 0x12f   : > { %873 = vrot.lane.b32.xlu1 %v708_v58, %s1468_s20  ;;  %839 = vrot.lane.b32.xlu0 %v409_v45, %s1463_s15 }
 0x133   : > { %737 = vrot.lane.b32.xlu1 %v1668_v48, %s1464_s16  ;;  %903 = vrot.lane.b32.xlu0 %v1665_v47, %s1469_s21 }
 0x137   : > { %841 = vrot.lane.b32.xlu1 %v1668_v48, %s1463_s15  ;;  %963 = vrot.lane.b32.xlu0 %v708_v58, %s1470_s22 }
 0x13b   : > { %774 = vrot.lane.b32.xlu1 %v707_v61, %s1466_s18  ;;  %772 = vrot.lane.b32.xlu0 %v1670_v49, %s1466_s18 }
 0x13f   : > { %811 = vrot.lane.b32.xlu1 %v1680_v54, %s1467_s19  ;;  %809 = vrot.lane.b32.xlu0 %v1672_v50, %s1467_s19 }
 0x143   : > { %871 = vrot.lane.b32.xlu1 %v707_v61, %s1468_s20  ;;  %869 = vrot.lane.b32.xlu0 %v1670_v49, %s1468_s20 }
 0x147   : > { %901 = vrot.lane.b32.xlu1 %v1680_v54, %s1469_s21  ;;  %899 = vrot.lane.b32.xlu0 %v1672_v50, %s1469_s21 }
 0x14b   : > { %961 = vrot.lane.b32.xlu1 %v707_v61, %s1470_s22  ;;  %931 = vrot.lane.b32.xlu0 %v1668_v48, %s1465_s17 }
 0x14f   : > { %959 = vrot.lane.b32.xlu1 %v1670_v49, %s1470_s22  ;;  %957 = vrot.lane.b32.xlu0 %v1689_v55, %s1470_s22 }
 0x153   : > { %739 = vrot.lane.b32.xlu1 %v1657_v43, %s1464_s16  ;;  %776 = vrot.lane.b32.xlu0 %v708_v58, %s1466_s18  ;;  %s1855_s18 = scalar_lea.vmem %s1910_s7, %s1409_s30 }
 0x157   : > { %813 = vrot.lane.b32.xlu1 %v1665_v47, %s1467_s19  ;;  %951 = vrot.lane.b32.xlu0 %v1715_v57, %s1470_s22  ;;  %v1291_v57 = vld [vmem:[%s1907_s4] ss:$0 sm:$0xff] }
 0x15d   : > { %v836_v2 = vpop.permute.xlu0 %835  ;;  %v732_v3 = vpop.permute.xlu1 %731 }
 0x15e   : > { %751 = vst.msk [vmem:[#allocation2 + $0x1f] sm:$0xff] %vm748_vm1, %v732_v3 }
 0x161   : > { %v926_v4 = vpop.permute.xlu0 %925  ;;  %v734_v5 = vpop.permute.xlu1 %733 }
 0x162   : > { %752 = vst.msk [vmem:[#allocation2 + $0x27] sm:$0xff] %vm748_vm1, %v734_v5 }
 0x165   : > { %v838_v6 = vpop.permute.xlu1 %837  ;;  %v728_v7 = vpop.permute.xlu0 %727 }
 0x166   : > { %749 = vst.msk [vmem:[#allocation2 + $0xf] sm:$0xff] %vm748_vm1, %v728_v7 }
 0x169   : > { %v928_v8 = vpop.permute.xlu1 %927  ;;  %v769_v9 = vpop.permute.xlu0 %768 }
 0x16d   : > { %v771_v10 = vpop.permute.xlu1 %770  ;;  %v806_v11 = vpop.permute.xlu0 %805 }
 0x16e   : > { %789 = vst.msk [vmem:[#allocation2 + $0x26] sm:$0xff] %vm785_vm4, %v771_v10 }
 0x171   : > { %v808_v12 = vpop.permute.xlu1 %807  ;;  %v832_v13 = vpop.permute.xlu0 %831 }
 0x175   : > { %v834_v14 = vpop.permute.xlu1 %833  ;;  %v866_v15 = vpop.permute.xlu0 %865 }
 0x179   : > { %v868_v16 = vpop.permute.xlu1 %867  ;;  %v896_v17 = vpop.permute.xlu0 %895 }
 0x17d   : > { %v898_v18 = vpop.permute.xlu1 %897  ;;  %v922_v19 = vpop.permute.xlu0 %921 }
 0x181   : > { %v924_v20 = vpop.permute.xlu1 %923  ;;  %v956_v21 = vpop.permute.xlu0 %955 }
 0x185   : > { %v767_v22 = vpop.permute.xlu1 %766  ;;  %v765_v23 = vpop.permute.xlu0 %764 }
 0x186   : > { %786 = vst.msk [vmem:[#allocation2 + $0xe] sm:$0xff] %vm785_vm4, %v765_v23 }
 0x189   : > { %v804_v24 = vpop.permute.xlu1 %803  ;;  %v802_v25 = vpop.permute.xlu0 %801 }
 0x18a   : > { %823 = vst.msk [vmem:[#allocation2 + $0x9] sm:$0xff] %vm822_vm5, %v802_v25 }
 0x18b   : > { %853 = vst.msk [vmem:[#allocation2 + $0x8] sm:$0xff] %vm852_vm6, %v832_v13 }
 0x18d   : > { %v864_v26 = vpop.permute.xlu1 %863  ;;  %v862_v27 = vpop.permute.xlu0 %861 }
 0x18e   : > { %883 = vst.msk [vmem:[#allocation2 + $0x7] sm:$0xff] %vm882_vm7, %v862_v27 }
 0x191   : > { %v894_v28 = vpop.permute.xlu1 %893  ;;  %v892_v29 = vpop.permute.xlu0 %891 }
 0x192   : > { %913 = vst.msk [vmem:[#allocation2 + $0x2] sm:$0xff] %vm912_vm9, %v892_v29 }
 0x193   : > { %943 = vst.msk [vmem:[#allocation2 + $0x1] sm:$0xff] %vm942_vm10, %v922_v19 }
 0x195   : > { %v954_v30 = vpop.permute.xlu1 %953  ;;  %v730_v31 = vpop.permute.xlu0 %729 }
 0x196   : > { %750 = vst.msk [vmem:[#allocation2 + $0x17] sm:$0xff] %vm748_vm1, %v730_v31  ;;  %v1160_v31 = vld [vmem:[%s1855_s18 + $0x18] sm:$0x1] }
 0x197   : > { %787 = vst.msk [vmem:[#allocation2 + $0x16] sm:$0xff] %vm785_vm4, %v767_v22  ;;  %788 = vst.msk [vmem:[#allocation2 + $0x1e] sm:$0xff] %vm785_vm4, %v769_v9 }
 0x198   : > { %824 = vst.msk [vmem:[#allocation2 + $0x11] sm:$0xff] %vm822_vm5, %v804_v24  ;;  %825 = vst.msk [vmem:[#allocation2 + $0x19] sm:$0xff] %vm822_vm5, %v806_v11 }
 0x199   : > { %826 = vst.msk [vmem:[#allocation2 + $0x21] sm:$0xff] %vm822_vm5, %v808_v12  ;;  %v844_v32 = vpop.permute.xlu1 %843  ;;  %v934_v33 = vpop.permute.xlu0 %933 }
 0x19a   : > { %854 = vst.msk [vmem:[#allocation2 + $0x10] sm:$0xff] %vm852_vm6, %v834_v14  ;;  %855 = vst.msk [vmem:[#allocation2 + $0x18] sm:$0xff] %vm852_vm6, %v836_v2 }
 0x19b   : > { %856 = vst.msk [vmem:[#allocation2 + $0x20] sm:$0xff] %vm852_vm6, %v838_v6 }
 0x19c   : > { %884 = vst.msk [vmem:[#allocation2 + $0xf] sm:$0xff] %vm882_vm7, %v864_v26  ;;  %885 = vst.msk [vmem:[#allocation2 + $0x17] sm:$0xff] %vm882_vm7, %v866_v15 }
 0x19d   : > { %886 = vst.msk [vmem:[#allocation2 + $0x1f] sm:$0xff] %vm882_vm7, %v868_v16  ;;  %v930_v34 = vpop.permute.xlu1 %929  ;;  %v736_v35 = vpop.permute.xlu0 %735 }
 0x19e   : > { %914 = vst.msk [vmem:[#allocation2 + $0xa] sm:$0xff] %vm912_vm9, %v894_v28  ;;  %915 = vst.msk [vmem:[#allocation2 + $0x12] sm:$0xff] %vm912_vm9, %v896_v17 }
 0x19f   : > { %916 = vst.msk [vmem:[#allocation2 + $0x1a] sm:$0xff] %vm912_vm9, %v898_v18 }
 0x1a0   : > { %944 = vst.msk [vmem:[#allocation2 + $0x9] sm:$0xff] %vm942_vm10, %v924_v20  ;;  %945 = vst.msk [vmem:[#allocation2 + $0x11] sm:$0xff] %vm942_vm10, %v926_v4 }
 0x1a1   : > { %946 = vst.msk [vmem:[#allocation2 + $0x19] sm:$0xff] %vm942_vm10, %v928_v8  ;;  %v874_v36 = vpop.permute.xlu1 %873  ;;  %v840_v37 = vpop.permute.xlu0 %839 }
 0x1a2   : > { %974 = vst.msk [vmem:[#allocation2 + $0x8] sm:$0xff] %vm972_vm11, %v954_v30  ;;  %975 = vst.msk [vmem:[#allocation2 + $0x10] sm:$0xff] %vm972_vm11, %v956_v21 }
 0x1a3   : > { %753 = vst.msk [vmem:[#allocation2 + $0x2f] sm:$0xff] %vm748_vm1, %v736_v35 }
 0x1a5   : > { %v738_v40 = vpop.permute.xlu1 %737  ;;  %v904_v41 = vpop.permute.xlu0 %903 }
 0x1a6   : > { %754 = vst.msk [vmem:[#allocation2 + $0x37] sm:$0xff] %vm748_vm1, %v738_v40  ;;  %vm1158_vm1 = vsmask.f32 256 }
 0x1a9   : > { %v981_v38 = vld [vmem:[#allocation2 + $0x8] sm:$0xff]  ;;  %v982_v39 = vld [vmem:[#allocation2 + $0x10] sm:$0xff]  ;;  %v842_v43 = vpop.permute.xlu1 %841  ;;  %v964_v44 = vpop.permute.xlu0 %963 }
 0x1aa   : > { %v988_v42 = vpack.c.bf16 %v982_v39, %v981_v38  ;;  %v1296_v39 = vld [vmem:[%s1909_s6] ss:$0 sm:$0xff] }
 0x1ac   : > { %1388 = vmatprep.mubr.msk.bf16.mxu0 %vm709_vm2, %v988_v42 }
 0x1ad   : > { %v775_v45 = vpop.permute.xlu1 %774  ;;  %v773_v46 = vpop.permute.xlu0 %772 }
 0x1ae   : > { %791 = vst.msk [vmem:[#allocation2 + $0x36] sm:$0xff] %vm785_vm4, %v775_v45  ;;  %790 = vst.msk [vmem:[#allocation2 + $0x2e] sm:$0xff] %vm785_vm4, %v773_v46  ;;  %vm1206_vm4 = vcmask 519424  }
 0x1b1   : > { %v812_v47 = vpop.permute.xlu1 %811  ;;  %v810_v48 = vpop.permute.xlu0 %809 }
 0x1b2   : > { %828 = vst.msk [vmem:[#allocation2 + $0x31] sm:$0xff] %vm822_vm5, %v812_v47  ;;  %827 = vst.msk [vmem:[#allocation2 + $0x29] sm:$0xff] %vm822_vm5, %v810_v48  ;;  %vm1213_vm5 = vcmask 516352  }
 0x1b3   : > { %860 = vst.msk [vmem:[#allocation2 + $0x38] sm:$0x1] %vm859_vm12, %v844_v32 }
 0x1b4   : > { %857 = vst.msk [vmem:[#allocation2 + $0x28] sm:$0xff] %vm852_vm6, %v840_v37  ;;  %858 = vst.msk [vmem:[#allocation2 + $0x30] sm:$0xff] %vm852_vm6, %v842_v43 }
 0x1b5   : > { %890 = vst.msk [vmem:[#allocation2 + $0x37] sm:$0x1] %vm889_vm13, %v874_v36  ;;  %v872_v49 = vpop.permute.xlu1 %871  ;;  %v870_v50 = vpop.permute.xlu0 %869  ;;  %vm1214_vm6 = vmand %vm1213_vm5, %vm1158_vm1 }
 0x1b6   : > { %888 = vst.msk [vmem:[#allocation2 + $0x2f] sm:$0xff] %vm882_vm7, %v872_v49  ;;  %887 = vst.msk [vmem:[#allocation2 + $0x27] sm:$0xff] %vm882_vm7, %v870_v50 }
 0x1b7   : > { %920 = vst.msk [vmem:[#allocation2 + $0x32] sm:$0x1] %vm919_vm14, %v904_v41 }
 0x1b9   : > { %v902_v51 = vpop.permute.xlu1 %901  ;;  %v900_v52 = vpop.permute.xlu0 %899 }
 0x1ba   : > { %918 = vst.msk [vmem:[#allocation2 + $0x2a] sm:$0xff] %vm912_vm9, %v902_v51  ;;  %917 = vst.msk [vmem:[#allocation2 + $0x22] sm:$0xff] %vm912_vm9, %v900_v52  ;;  %v987_v62 = vld [vmem:[#allocation2 + $0x38] sm:$0x1] }
 0x1bb   : > { %950 = vst.msk [vmem:[#allocation2 + $0x31] sm:$0x1] %vm949_vm8, %v934_v33  ;;  %v991_v8 = vpack.c.bf16 %v987_v62, %v987_v62 }
 0x1bc   : > { %947 = vst.msk [vmem:[#allocation2 + $0x21] sm:$0xff] %vm942_vm10, %v930_v34 }
 0x1bd   : > { %v962_v53 = vpop.permute.xlu1 %961  ;;  %v932_v54 = vpop.permute.xlu0 %931 }
 0x1be   : > { %948 = vst.msk [vmem:[#allocation2 + $0x29] sm:$0xff] %vm942_vm10, %v932_v54 }
 0x1bf   : > { %978 = vst.msk [vmem:[#allocation2 + $0x28] sm:$0xff] %vm972_vm11, %v962_v53 }
 0x1c0   : > { %980 = vst.msk [vmem:[#allocation2 + $0x30] sm:$0x1] %vm979_vm15, %v964_v44 }
 0x1c1   : > { %v960_v55 = vpop.permute.xlu1 %959  ;;  %v958_v56 = vpop.permute.xlu0 %957 }
 0x1c2   : > { %977 = vst.msk [vmem:[#allocation2 + $0x20] sm:$0xff] %vm972_vm11, %v960_v55  ;;  %976 = vst.msk [vmem:[#allocation2 + $0x18] sm:$0xff] %vm972_vm11, %v958_v56 }
 0x1c4   : > { %v1372_v58 = vpop.f32.mrb[0].mxu1 }
 0x1c5   : > { %v484_v59 = vadd.f32 %v1372_v58, %v1291_v57  ;;  %v740_v60 = vpop.permute.xlu1 %739  ;;  %v777_v61 = vpop.permute.xlu0 %776 }
 0x1c6   : > { %v475_v63 = vpop.f32.mrb[1].mxu1  ;;  %v985_v0 = vld [vmem:[#allocation2 + $0x28] sm:$0xff] }
 0x1c7   : > { %v986_v1 = vld [vmem:[#allocation2 + $0x30] sm:$0xff]  ;;  %v507_v2 = vmax.f32 %v484_v59, 0.0  ;;  %v476_v3 = vadd.f32 %v1291_v57, %v475_v63  ;;  %v1373_v4 = vpop.f32.mrb[2].mxu1 }
 0x1c8   : > { %v990_v5 = vpack.c.bf16 %v986_v1, %v985_v0  ;;  %v487_v6 = vadd.f32 %v1373_v4, %v1291_v57  ;;  %v478_v7 = vpop.f32.mrb[3].mxu1 }
 0x1c9   : > { %v1324_v9 = vpack.c.bf16 %v507_v2, %v507_v2  ;;  %v505_v10 = vmax.f32 %v476_v3, 0.0  ;;  %v479_v11 = vadd.f32 %v1291_v57, %v478_v7  ;;  %v814_v12 = vpop.permute.xlu1 %813  ;;  %v952_v13 = vpop.permute.xlu0 %951  ;;  %v983_v14 = vld [vmem:[#allocation2 + $0x18] sm:$0xff]  ;;  %v984_v15 = vld [vmem:[#allocation2 + $0x20] sm:$0xff] }
 0x1ca   : > { %1392 = vmatprep.mubr.msk.bf16.mxu1 %vm709_vm2, %v990_v5  ;;  %v508_v16 = vmax.f32 %v487_v6, 0.0  ;;  %v989_v17 = vpack.c.bf16 %v984_v15, %v983_v14 }
 0x1cb   : > { %1393 = vmatmul.mubr.msk.bf16.vlgmr.msra.gmra.mrb[8].mxu1 %vm709_vm2, %v991_v8  ;;  %1153 = vst.msk [vmem:[%s1855_s18 + $0x8] sm:$0xf] %vm1150_vm0, %v1324_v9  ;;  %v1322_v18 = vpack.c.bf16 %v505_v10, %v505_v10  ;;  %v506_v19 = vmax.f32 %v479_v11, 0.0 }
 0x1cc   : > { %v1325_v20 = vpack.c.bf16 %v508_v16, %v508_v16  ;;  %1389 = vmatmul.mubr.msk.bf16.vlgmr.msra.gmra.mrb[8].mxu0 %vm709_vm2, %v989_v17  ;;  %v1376_v21 = vpop.f32.mrb[4].mxu1  ;;  %vm1159_vm2 = vmand %vm1157_vm3, %vm1158_vm1 }
 0x1cd   : > { %1151 = vst.msk [vmem:[%s1855_s18] sm:$0xf] %vm1150_vm0, %v1322_v18  ;;  %v1323_v22 = vpack.c.bf16 %v506_v19, %v506_v19  ;;  %v500_v23 = vadd.f32 %v1376_v21, %v1291_v57  ;;  %v491_v24 = vpop.f32.mrb[5].mxu1 }
 0x1ce   : > { %1154 = vst.msk [vmem:[%s1855_s18 + $0xc] sm:$0xf] %vm1150_vm0, %v1325_v20  ;;  %v492_v25 = vadd.f32 %v1291_v57, %v491_v24  ;;  %v1377_v26 = vpop.f32.mrb[6].mxu1 }
 0x1cf   : > { %1152 = vst.msk [vmem:[%s1855_s18 + $0x4] sm:$0xf] %vm1150_vm0, %v1323_v22  ;;  %v511_v27 = vmax.f32 %v500_v23, 0.0  ;;  %v494_v28 = vpop.f32.mrb[7].mxu1 }
 0x1d0   : > { %v509_v29 = vmax.f32 %v492_v25, 0.0  ;;  %v495_v30 = vadd.f32 %v1291_v57, %v494_v28 }
 0x1d1   : > { %v1328_v32 = vpack.c.bf16 %v511_v27, %v511_v27 }
 0x1d2   : > { %v1326_v33 = vpack.c.bf16 %v509_v29, %v509_v29  ;;  %v510_v34 = vmax.f32 %v495_v30, 0.0 }
 0x1d3   : > { %v1161_v35 = vsel %vm1159_vm2, %v1328_v32, %v1160_v31 }
 0x1d4   : > { %1155 = vst.msk [vmem:[%s1855_s18 + $0x10] sm:$0xf] %vm1150_vm0, %v1326_v33  ;;  %v1327_v36 = vpack.c.bf16 %v510_v34, %v510_v34  ;;  %1162 = vst [vmem:[%s1855_s18 + $0x18] sm:$0x1] %v1161_v35 }
 0x1d6   : > { %1156 = vst.msk [vmem:[%s1855_s18 + $0x14] sm:$0xf] %vm1150_vm0, %v1327_v36 }
 0x1db   : > { %v1215_v6 = vld [vmem:[%s1855_s18 + $0x18] sm:$0x1] }
 0x29e   : > { %v1394_v37 = vpop.f32.mrb[8].mxu1 }
 0x29f   : > { %v1100_v38 = vpop.f32.mrb[9].mxu1  ;;  %v1390_v40 = vpop.f32.mrb[8].mxu0  ;;  %v1109_v47 = vadd.f32 %v1394_v37, %v1296_v39 }
 0x2a0   : > { %v1395_v41 = vpop.f32.mrb[10].mxu1  ;;  %v1093_v42 = vadd.f32 %v1390_v40, %v1296_v39  ;;  %v1084_v43 = vpop.f32.mrb[9].mxu0  ;;  %v1101_v51 = vadd.f32 %v1296_v39, %v1100_v38 }
 0x2a1   : > { %v1103_v44 = vpop.f32.mrb[11].mxu1  ;;  %v1085_v45 = vadd.f32 %v1296_v39, %v1084_v43  ;;  %v1391_v46 = vpop.f32.mrb[10].mxu0  ;;  %v1120_v55 = vmax.f32 %v1109_v47, 0.0 }
 0x2a2   : > { %v1116_v48 = vmax.f32 %v1093_v42, 0.0  ;;  %v1096_v49 = vadd.f32 %v1391_v46, %v1296_v39  ;;  %v1087_v50 = vpop.f32.mrb[11].mxu0  ;;  %v1118_v58 = vmax.f32 %v1101_v51, 0.0  ;;  %v1104_v61 = vadd.f32 %v1296_v39, %v1103_v44 }
 0x2a3   : > { %v1114_v53 = vmax.f32 %v1085_v45, 0.0  ;;  %v1088_v57 = vadd.f32 %v1296_v39, %v1087_v50  ;;  %v1335_v60 = vpack.c.bf16 %v1120_v55, %v1120_v55 }
 0x2a4   : > { %v1331_v52 = vpack.c.bf16 %v1116_v48, %v1116_v48  ;;  %v1117_v54 = vmax.f32 %v1096_v49, 0.0  ;;  %v1333_v63 = vpack.c.bf16 %v1118_v58, %v1118_v58  ;;  %v1119_v0 = vmax.f32 %v1104_v61, 0.0 }
 0x2a5   : > { %v1329_v59 = vpack.c.bf16 %v1114_v53, %v1114_v53  ;;  %v1115_v62 = vmax.f32 %v1088_v57, 0.0 }
 0x2a6   : > { %v1332_v56 = vpack.c.bf16 %v1117_v54, %v1117_v54  ;;  %1189 = vrot.lane.b32.xlu1 %v1331_v52, %s1463_s15  ;;  %v1334_v2 = vpack.c.bf16 %v1119_v0, %v1119_v0 }
 0x2a7   : > { %v1330_v1 = vpack.c.bf16 %v1115_v62, %v1115_v62 }
 0x2a8   : > { %1191 = vrot.lane.b32.xlu0 %v1332_v56, %s1463_s15 }
 0x2aa   : > { %1185 = vrot.lane.b32.xlu1 %v1329_v59, %s1463_s15 }
 0x2ac   : > { %1197 = vrot.lane.b32.xlu0 %v1335_v60, %s1463_s15 }
 0x2ae   : > { %1193 = vrot.lane.b32.xlu1 %v1333_v63, %s1463_s15 }
 0x2b0   : > { %1187 = vrot.lane.b32.xlu0 %v1330_v1, %s1463_s15 }
 0x2b4   : > { %1195 = vrot.lane.b32.xlu0 %v1334_v2, %s1463_s15 }
 0x318   : > { %v1190_v3 = vpop.permute.xlu1 %1189 }
 0x319   : > { %1209 = vst.msk [vmem:[%s1855_s18 + $0x8] sm:$0xf] %vm1206_vm4, %v1190_v3 }
 0x31a   : > { %v1192_v4 = vpop.permute.xlu0 %1191 }
 0x31b   : > { %1210 = vst.msk [vmem:[%s1855_s18 + $0xc] sm:$0xf] %vm1206_vm4, %v1192_v4 }
 0x31c   : > { %v1186_v5 = vpop.permute.xlu1 %1185 }
 0x31d   : > { %1207 = vst.msk [vmem:[%s1855_s18] sm:$0xf] %vm1206_vm4, %v1186_v5 }
 0x31e   : > { %v1198_v7 = vpop.permute.xlu0 %1197 }
 0x31f   : > { %v1216_v8 = vsel %vm1214_vm6, %v1198_v7, %v1215_v6 }
 0x320   : > { %1217 = vst [vmem:[%s1855_s18 + $0x18] sm:$0x1] %v1216_v8  ;;  %v1194_v9 = vpop.permute.xlu1 %1193 }
 0x321   : > { %1211 = vst.msk [vmem:[%s1855_s18 + $0x10] sm:$0xf] %vm1206_vm4, %v1194_v9 }
 0x322   : > { %v1188_v10 = vpop.permute.xlu0 %1187 }
 0x323   : > { %1208 = vst.msk [vmem:[%s1855_s18 + $0x4] sm:$0xf] %vm1206_vm4, %v1188_v10 }
 0x326   : > { %v1196_v11 = vpop.permute.xlu0 %1195 }
 0x327   : > { %1212 = vst.msk [vmem:[%s1855_s18 + $0x14] sm:$0xf] %vm1206_vm4, %v1196_v11 }
 0x328 PF: > { %s17_s24 = sadd.s32 1, %s1459_s24  }
 0x329   : > { %p14_p4 = scmp.ge.s32.totalorder %s17_s24, 4  }
 0x32b   :  { %16 = sbr.rel (!%p14_p4) target bundleno = 1 (0x1), region = 78 }

// kernel: condecon_fs_forward.6
= control target key start
LH: loop header
LB: loop body
LE: loop exit
PB: predicated region body
PF: predicated region fallthrough
CT: control target
= control target key end

     0   :  { %s4003_s24 = smov 0   ;;  %s5507_s0 = inlined_call_operand.vmem [shape: bf16[2,256,32], index: 0, kind: input, shape index: {}]   ;;  %s5508_s1 = inlined_call_operand.vmem [shape: bf16[32,4], index: 1, kind: input, shape index: {}]   ;;  %s5509_s2 = inlined_call_operand.vmem [shape: f32[1,4], index: 2, kind: input, shape index: {}]   ;;  %s5510_s3 = inlined_call_operand.vmem [shape: bf16[4,16], index: 3, kind: input, shape index: {}]   ;;  %s5511_s4 = inlined_call_operand.vmem [shape: f32[1,16], index: 4, kind: input, shape index: {}]   ;;  %s5512_s5 = inlined_call_operand.vmem [shape: bf16[36,16], index: 5, kind: input, shape index: {}]   ;;  %s5513_s6 = inlined_call_operand.vmem [shape: f32[1,16], index: 6, kind: input, shape index: {}]   ;;  %s5514_s7 = inlined_call_operand.vmem [shape: bf16[2,256,32], index: 7, kind: output, shape index: {}]  }
   0x1 LB: > { %s3528_s25 = sadd.s32 4294967295, %s3952_s24   ;;  %p3532_p0 = scmp.ge.s32.totalorder %s3952_s24, 1  ;;  %s3952_s24 = sphi %s4003_s24, %s17_s24  }
   0x2   : > { %p237_p1 = scmp.lt.s32.totalorder %s3952_s24, 3 }
   0x4   : > { %p238_p2 = pnand %p3532_p0, %p237_p1 }
   0x6   : > { %241 = sbr.rel (%p238_p2) target bundleno = 1210 (0x4ba), region = 48 }
   0xd   : > { %v3925_v0 = vld [vmem:[%s5508_s1] sm:$0xff]   ;;  %p269_p3 = scmp.lt.s32.totalorder %s3528_s25, 1  ;;  %v3926_v1 = vld [vmem:[%s5508_s1 + $0x8] sm:$0xff]   ;;  %vm415_vm0 = vcmask 261120   ;;  %vm730_vm1 = vcmask 1041408   ;;  %v927_v20 = vlaneseq  ;;  %vm681_vm2 = vcmask 31744  }
   0xe   : > { %3795 = vmatprep.subr.bf16.mxu0 %v3925_v0  ;;  %v673_v18 = vld [vmem:[%s5510_s3] sm:$0x3]  ;;  %s3954_s15 = smov 12   ;;  %s3955_s16 = smov 4   ;;  %vm1603_vm6 = vcmask 286720   ;;  %v3956_v45 = vmov 0.0  }
   0xf   : > { %s5525_s25 = smov (!%p269_p3, %s3528_s25), 1  ;;  %3796 = vmatpush3.bf16.msra.mxu0 %v3925_v0  ;;  %v732_v19 = vsel %vm730_vm1, %v673_v18, 0  ;;  %3906 = vmatprep.subr.msk.bf16.mxu1 %vm730_vm1, %v673_v18  ;;  %v4065_v21 = vshrl.u32 %v927_v20, 7  ;;  %v4073_v25 = vld [vmem:[%s5509_s2] ss:$0 sm:$0xff]  ;;  %s3957_s17 = smov 16  }
  0x10   : > { %3797 = vmatprep.subr.bf16.mxu0 %v3926_v1  ;;  %s3675_s30 = sshll.u32 %s5525_s25, 7  ;;  %3904 = vmatpush3.bf16.msra.mxu1 %v732_v19  ;;  %1604 = vst.msk [vmem:[#allocation2 + $0x28] sm:$0x1] %vm1603_vm6, %v3956_v45  ;;  %1607 = vst.msk [vmem:[#allocation2 + $0x117] sm:$0x1] %vm1603_vm6, %v3956_v45  ;;  %s3958_s18 = smov 32  }
  0x11   : > { %s4025_s10 = scalar_lea.vmem %s5507_s0, %s3675_s30  ;;  %v931_v22 = vadd.s32 24, %v4065_v21  ;;  %v930_v23 = vadd.s32 16, %v4065_v21  ;;  %v929_v24 = vadd.s32 8, %v4065_v21  ;;  %v935_v39 = vadd.s32 56, %v4065_v21  ;;  %s3959_s19 = smov 24  }
  0x12   : > { %v3927_v2 = vld [vmem:[%s4025_s10] sm:$0xff]   ;;  %v3928_v3 = vld [vmem:[%s4025_s10 + $0x8] sm:$0xff]   ;;  %v3929_v4 = vld [vmem:[%s4025_s10 + $0x10] sm:$0xff]   ;;  %v933_v41 = vadd.s32 40, %v4065_v21  ;;  %v939_v61 = vadd.s32 88, %v4065_v21  ;;  %v937_v63 = vadd.s32 72, %v4065_v21  ;;  %s4695_s13 = scalar_lea.vmem %s5514_s7, %s3675_s30 }
  0x13   : > { %3798 = vmatpush3.bf16.msra.mxu0 %v3926_v1  ;;  %3799 = vmatprep.mubr.msk.bf16.mxu0 %vm415_vm0, %v3927_v2  ;;  %v3930_v5 = vld [vmem:[%s4025_s10 + $0x18] sm:$0xff]   ;;  %v3931_v6 = vld [vmem:[%s4025_s10 + $0x20] sm:$0xff]   ;;  %v3932_v7 = vld [vmem:[%s4025_s10 + $0x28] sm:$0xff]   ;;  %v985_v27 = vand.u32 15, %v931_v22  ;;  %v978_v30 = vand.u32 15, %v930_v23  ;;  %v971_v31 = vand.u32 15, %v929_v24 }
  0x14   : > { %v3933_v8 = vld [vmem:[%s4025_s10 + $0x30] sm:$0xff]   ;;  %v3934_v9 = vld [vmem:[%s4025_s10 + $0x38] sm:$0xff]   ;;  %v3935_v10 = vld [vmem:[%s4025_s10 + $0x40] sm:$0xff]   ;;  %3905 = vmatprep.subr.msk.bf16.mxu0 %vm730_vm1, %v673_v18  ;;  %v1013_v50 = vand.u32 15, %v935_v39  ;;  %v999_v53 = vand.u32 15, %v933_v41  ;;  %vm1600_vm9 = vcmask 293888  }
  0x15   : > { %v3936_v11 = vld [vmem:[%s4025_s10 + $0x48] sm:$0xff]   ;;  %v3937_v12 = vld [vmem:[%s4025_s10 + $0x50] sm:$0xff]   ;;  %v3938_v13 = vld [vmem:[%s4025_s10 + $0x58] sm:$0xff]   ;;  %vm1347_vm3 = vcmp.eq.s32.totalorder %v985_v27, 15  ;;  %vm1474_vm4 = vcmp.eq.s32.totalorder %v978_v30, 0  ;;  %vm1345_vm5 = vcmp.eq.s32.totalorder %v971_v31, 15 }
  0x16   : > { %3800 = vmatmul.mubr.msk.bf16.vlgmr.msra.gmra.mrb[0].mxu0 %vm415_vm0, %v3928_v3  ;;  %v3939_v14 = vld [vmem:[%s4025_s10 + $0x60] sm:$0xff]   ;;  %v3940_v15 = vld [vmem:[%s4025_s10 + $0x68] sm:$0xff]   ;;  %v3941_v16 = vld [vmem:[%s4025_s10 + $0x70] sm:$0xff]   ;;  %vm1351_vm7 = vcmp.eq.s32.totalorder %v1013_v50, 15  ;;  %vm1349_vm8 = vcmp.eq.s32.totalorder %v999_v53, 15  ;;  %1601 = vst.msk [vmem:[#allocation2 + $0x18] sm:$0xff] %vm1600_vm9, %v3956_v45 }
  0x17   : > { %3803 = vmatprep.mubr.msk.bf16.mxu0 %vm415_vm0, %v3929_v4  ;;  %v3942_v17 = vld [vmem:[%s4025_s10 + $0x78] sm:$0xff]   ;;  %3832 = vmatpush3.bf16.msra.mxu0 %v732_v19  ;;  %1602 = vst.msk [vmem:[#allocation2 + $0x20] sm:$0xff] %vm1600_vm9, %v3956_v45  ;;  %1605 = vst.msk [vmem:[#allocation2 + $0x107] sm:$0xff] %vm1600_vm9, %v3956_v45  ;;  %s3960_s20 = smov 28   ;;  %s3961_s21 = smov 8   ;;  %v964_v24 = vand.u32 15, %v4065_v21 }
  0x18   : > { %1606 = vst.msk [vmem:[#allocation2 + $0x10f] sm:$0xff] %vm1600_vm9, %v3956_v45  ;;  %s3962_s22 = smov 20  }
  0x19   : > { %vm1472_vm12 = vcmp.eq.s32.totalorder %v964_v24, 0 }
  0x1e   : > { %3804 = vmatmul.mubr.msk.bf16.gmra.mrb[4].mxu0 %vm415_vm0, %v3930_v5 }
  0x1f   : > { %3807 = vmatprep.mubr.msk.bf16.mxu0 %vm415_vm0, %v3931_v6  ;;  %v1041_v6 = vand.u32 15, %v939_v61 }
  0x21   : > { %vm1355_vm10 = vcmp.eq.s32.totalorder %v1041_v6, 15 }
  0x26   : > { %3808 = vmatmul.mubr.msk.bf16.gmra.mrb[8].mxu0 %vm415_vm0, %v3932_v7 }
  0x27   : > { %3811 = vmatprep.mubr.msk.bf16.mxu0 %vm415_vm0, %v3933_v8 }
  0x2e   : > { %3812 = vmatmul.mubr.msk.bf16.gmra.mrb[12].mxu0 %vm415_vm0, %v3934_v9  ;;  %v1027_v9 = vand.u32 15, %v937_v63 }
  0x2f   : > { %3815 = vmatprep.mubr.msk.bf16.mxu0 %vm415_vm0, %v3935_v10 }
  0x30   : > { %vm1353_vm11 = vcmp.eq.s32.totalorder %v1027_v9, 15 }
  0x36   : > { %3816 = vmatmul.mubr.msk.bf16.gmra.mrb[16].mxu0 %vm415_vm0, %v3936_v11 }
  0x37   : > { %3819 = vmatprep.mubr.msk.bf16.mxu0 %vm415_vm0, %v3937_v12 }
  0x3e   : > { %3820 = vmatmul.mubr.msk.bf16.gmra.mrb[20].mxu0 %vm415_vm0, %v3938_v13 }
  0x3f   : > { %3823 = vmatprep.mubr.msk.bf16.mxu0 %vm415_vm0, %v3939_v14 }
  0x46   : > { %3824 = vmatmul.mubr.msk.bf16.gmra.mrb[24].mxu0 %vm415_vm0, %v3940_v15 }
  0x47   : > { %3827 = vmatprep.mubr.msk.bf16.mxu0 %vm415_vm0, %v3941_v16 }
  0x4e   : > { %3828 = vmatmul.mubr.msk.bf16.gmra.mrb[28].mxu0 %vm415_vm0, %v3942_v17 }
  0xe9   : > { %v3801_v26 = vpop.f32.mrb[0].mxu0 }
  0xea   : > { %v507_v28 = vadd.f32 %v3801_v26, %v4073_v25  ;;  %v498_v29 = vpop.f32.mrb[1].mxu0 }
  0xeb   : > { %v499_v32 = vadd.f32 %v4073_v25, %v498_v29  ;;  %v3802_v33 = vpop.f32.mrb[2].mxu0 }
  0xec   : > { %v4077_v34 = vmax.f32 %v507_v28, 0.0  ;;  %v510_v35 = vadd.f32 %v3802_v33, %v4073_v25  ;;  %v501_v36 = vpop.f32.mrb[3].mxu0 }
  0xed   : > { %v4080_v37 = vmax.f32 %v499_v32, 0.0  ;;  %v502_v38 = vadd.f32 %v4073_v25, %v501_v36  ;;  %v934_v36 = vadd.s32 48, %v4065_v21 }
  0xee   : > { %v4084_v40 = vmax.f32 %v510_v35, 0.0  ;;  %1998 = vrot.lane.b32.xlu0 %v4077_v34, %s3954_s15  ;;  %1676 = vrot.lane.b32.xlu1 %v4077_v34, %s3955_s16  ;;  %1610 = vst.msk [vmem:[#allocation2 + $0x39] sm:$0xff] %vm681_vm2, %v4077_v34  ;;  %v4103_v46 = vsel %vm1474_vm4, 0.0, %v4077_v34 }
  0xef   : > { %5518 = vst [vmem:[#allocation3_spill] sm:$0xff] %v4080_v37  ;;  %v4093_v42 = vmax.f32 %v502_v38, 0.0  ;;  %1608 = vst.msk [vmem:[#allocation2 + $0x29] sm:$0xff] %vm681_vm2, %v4080_v37  ;;  %v4224_v26 = vsel %vm1472_vm12, 0.0, %v4080_v37  ;;  %vm2090_vm12 = vcmask 130144  }
  0xf0   : > { %v658_v43 = vpack.c.bf16 %v4084_v40, %v4077_v34  ;;  %v4100_v44 = vsel %vm1347_vm3, 0.0, %v4084_v40  ;;  %5520 = vst [vmem:[#allocation5_spill] sm:$0xff] %v4224_v26 }
  0xf1   : > { %5519 = vst [vmem:[#allocation4_spill] sm:$0xff] %v4093_v42  ;;  %v657_v47 = vpack.c.bf16 %v4093_v42, %v4080_v37  ;;  %1611 = vst.msk [vmem:[#allocation2 + $0x41] sm:$0xff] %vm681_vm2, %v4100_v44  ;;  %v3805_v48 = vpop.f32.mrb[4].mxu0  ;;  %v4110_v49 = vsel %vm1345_vm5, 0.0, %v4093_v42  ;;  %vm1768_vm5 = vcmask 64544  }
  0xf2   : > { %2127 = vrot.lane.b32.xlu0 %v4077_v34, %s3957_s17  ;;  %2643 = vrot.lane.b32.xlu1 %v4103_v46, %s3958_s18  ;;  %v523_v51 = vadd.f32 %v3805_v48, %v4073_v25  ;;  %v514_v52 = vpop.f32.mrb[5].mxu0  ;;  %1609 = vst.msk [vmem:[#allocation2 + $0x31] sm:$0xff] %vm681_vm2, %v4110_v49 }
  0xf3   : > { %3833 = vmatprep.mubr.msk.bf16.mxu0 %vm681_vm2, %v657_v47  ;;  %v515_v54 = vadd.f32 %v4073_v25, %v514_v52  ;;  %v3806_v55 = vpop.f32.mrb[6].mxu0  ;;  %v1006_v47 = vand.u32 15, %v934_v36 }
  0xf4   : > { %3834 = vmatmul.mubr.msk.bf16.vlgmr.msra.gmra.mrb[32].mxu0 %vm681_vm2, %v658_v43  ;;  %v4122_v56 = vmax.f32 %v523_v51, 0.0  ;;  %v526_v57 = vadd.f32 %v3806_v55, %v4073_v25  ;;  %v517_v58 = vpop.f32.mrb[7].mxu0  ;;  %v943_v43 = vadd.s32 120, %v4065_v21 }
  0xf5   : > { %v4125_v59 = vmax.f32 %v515_v54, 0.0  ;;  %v518_v60 = vadd.f32 %v4073_v25, %v517_v58  ;;  %vm1478_vm15 = vcmp.eq.s32.totalorder %v1006_v47, 0 }
  0xf6   : > { %2385 = vrot.lane.b32.xlu0 %v4077_v34, %s3959_s19  ;;  %1678 = vrot.lane.b32.xlu1 %v4084_v40, %s3955_s16  ;;  %1614 = vst.msk [vmem:[#allocation2 + $0x59] sm:$0xff] %vm681_vm2, %v4122_v56  ;;  %v4135_v62 = vmax.f32 %v526_v57, 0.0  ;;  %v4283_v55 = vsel %vm1478_vm15, 0.0, %v4122_v56 }
  0xf7   : > { %1612 = vst.msk [vmem:[#allocation2 + $0x49] sm:$0xff] %vm681_vm2, %v4125_v59  ;;  %v4140_v0 = vmax.f32 %v518_v60, 0.0 }
  0xf8   : > { %v660_v1 = vpack.c.bf16 %v4135_v62, %v4122_v56  ;;  %v4145_v2 = vsel %vm1351_vm7, 0.0, %v4135_v62 }
  0xf9   : > { %v659_v3 = vpack.c.bf16 %v4140_v0, %v4125_v59  ;;  %1615 = vst.msk [vmem:[#allocation2 + $0x61] sm:$0xff] %vm681_vm2, %v4145_v2  ;;  %v3809_v4 = vpop.f32.mrb[8].mxu0  ;;  %v4156_v5 = vsel %vm1349_vm8, 0.0, %v4140_v0 }
  0xfa   : > { %2514 = vrot.lane.b32.xlu0 %v4077_v34, %s3960_s20  ;;  %1839 = vrot.lane.b32.xlu1 %v4084_v40, %s3961_s21  ;;  %v539_v7 = vadd.f32 %v3809_v4, %v4073_v25  ;;  %v530_v8 = vpop.f32.mrb[9].mxu0  ;;  %1613 = vst.msk [vmem:[#allocation2 + $0x51] sm:$0xff] %vm681_vm2, %v4156_v5 }
  0xfb   : > { %3837 = vmatprep.mubr.msk.bf16.mxu0 %vm681_vm2, %v659_v3  ;;  %v531_v10 = vadd.f32 %v4073_v25, %v530_v8  ;;  %v3810_v11 = vpop.f32.mrb[10].mxu0 }
  0xfc   : > { %3838 = vmatmul.mubr.msk.bf16.gmra.mrb[36].mxu0 %vm681_vm2, %v660_v1  ;;  %v4168_v12 = vmax.f32 %v539_v7, 0.0  ;;  %v542_v13 = vadd.f32 %v3810_v11, %v4073_v25  ;;  %v533_v14 = vpop.f32.mrb[11].mxu0 }
  0xfd   : > { %v4171_v15 = vmax.f32 %v531_v10, 0.0  ;;  %v534_v16 = vadd.f32 %v4073_v25, %v533_v14 }
  0xfe   : > { %2129 = vrot.lane.b32.xlu1 %v4084_v40, %s3957_s17  ;;  %1672 = vrot.lane.b32.xlu0 %v4080_v37, %s3955_s16  ;;  %1618 = vst.msk [vmem:[#allocation2 + $0x79] sm:$0xff] %vm681_vm2, %v4168_v12  ;;  %v4180_v17 = vmax.f32 %v542_v13, 0.0 }
  0xff   : > { %1616 = vst.msk [vmem:[#allocation2 + $0x69] sm:$0xff] %vm681_vm2, %v4171_v15  ;;  %v4184_v18 = vmax.f32 %v534_v16, 0.0 }
 0x100   : > { %v662_v19 = vpack.c.bf16 %v4180_v17, %v4168_v12  ;;  %v4189_v20 = vsel %vm1355_vm10, 0.0, %v4180_v17 }
 0x101   : > { %v661_v22 = vpack.c.bf16 %v4184_v18, %v4171_v15  ;;  %1619 = vst.msk [vmem:[#allocation2 + $0x81] sm:$0xff] %vm681_vm2, %v4189_v20  ;;  %v4196_v23 = vsel %vm1353_vm11, 0.0, %v4184_v18  ;;  %v3813_v27 = vpop.f32.mrb[12].mxu0 }
 0x102   : > { %2258 = vrot.lane.b32.xlu1 %v4084_v40, %s3962_s22  ;;  %1837 = vrot.lane.b32.xlu0 %v4103_v46, %s3961_s21  ;;  %1617 = vst.msk [vmem:[#allocation2 + $0x71] sm:$0xff] %vm681_vm2, %v4196_v23  ;;  %v546_v28 = vpop.f32.mrb[13].mxu0  ;;  %v555_v29 = vadd.f32 %v3813_v27, %v4073_v25 }
 0x103   : > { %3841 = vmatprep.mubr.msk.bf16.mxu0 %vm681_vm2, %v661_v22  ;;  %v3814_v30 = vpop.f32.mrb[14].mxu0  ;;  %v547_v33 = vadd.f32 %v4073_v25, %v546_v28 }
 0x104   : > { %3842 = vmatmul.mubr.msk.bf16.gmra.mrb[40].mxu0 %vm681_vm2, %v662_v19  ;;  %v549_v31 = vpop.f32.mrb[15].mxu0  ;;  %v4235_v32 = vmax.f32 %v555_v29, 0.0  ;;  %v558_v34 = vadd.f32 %v3814_v30, %v4073_v25 }
 0x105   : > { %v550_v35 = vadd.f32 %v4073_v25, %v549_v31  ;;  %v4247_v38 = vmax.f32 %v547_v33, 0.0 }
 0x106   : > { %2516 = vrot.lane.b32.xlu1 %v4084_v40, %s3960_s20  ;;  %1994 = vrot.lane.b32.xlu0 %v4080_v37, %s3954_s15  ;;  %1622 = vst.msk [vmem:[#allocation2 + $0x99] sm:$0xff] %vm681_vm2, %v4235_v32  ;;  %v4249_v39 = vmax.f32 %v558_v34, 0.0 }
 0x107   : > { %v4251_v41 = vmax.f32 %v550_v35, 0.0  ;;  %1620 = vst.msk [vmem:[#allocation2 + $0x89] sm:$0xff] %vm681_vm2, %v4247_v38 }
 0x108   : > { %v664_v45 = vpack.c.bf16 %v4249_v39, %v4235_v32 }
 0x109   : > { %v3817_v52 = vpop.f32.mrb[16].mxu0 }
 0x10a   : > { %1835 = vrot.lane.b32.xlu1 %v4093_v42, %s3961_s21  ;;  %2123 = vrot.lane.b32.xlu0 %v4080_v37, %s3957_s17  ;;  %v571_v53 = vadd.f32 %v3817_v52, %v4073_v25  ;;  %v562_v54 = vpop.f32.mrb[17].mxu0 }
 0x10b   : > { %v563_v58 = vadd.f32 %v4073_v25, %v562_v54  ;;  %v3818_v60 = vpop.f32.mrb[18].mxu0 }
 0x10c   : > { %v4285_v57 = vmax.f32 %v571_v53, 0.0  ;;  %v574_v61 = vadd.f32 %v3818_v60, %v4073_v25  ;;  %v565_v63 = vpop.f32.mrb[19].mxu0 }
 0x10d   : > { %v4296_v1 = vmax.f32 %v563_v58, 0.0  ;;  %v566_v3 = vadd.f32 %v4073_v25, %v565_v63 }
 0x10e   : > { %2000 = vrot.lane.b32.xlu1 %v4100_v44, %s3954_s15  ;;  %2256 = vrot.lane.b32.xlu0 %v4103_v46, %s3962_s22  ;;  %v1069_v46 = vand.u32 15, %v943_v43  ;;  %1626 = vst.msk [vmem:[#allocation2 + $0xb9] sm:$0xff] %vm681_vm2, %v4285_v57  ;;  %v4301_v4 = vmax.f32 %v574_v61, 0.0 }
 0x10f   : > { %1624 = vst.msk [vmem:[#allocation2 + $0xa9] sm:$0xff] %vm681_vm2, %v4296_v1  ;;  %v4303_v6 = vmax.f32 %v566_v3, 0.0 }
 0x110   : > { %vm1359_vm13 = vcmp.eq.s32.totalorder %v1069_v46, 15  ;;  %v666_v19 = vpack.c.bf16 %v4301_v4, %v4285_v57 }
 0x111   : > { %v4268_v50 = vsel %vm1359_vm13, 0.0, %v4249_v39  ;;  %v3821_v8 = vpop.f32.mrb[20].mxu0  ;;  %v665_v11 = vpack.c.bf16 %v4303_v6, %v4296_v1  ;;  %vm2219_vm13 = vcmask 162944  }
 0x112   : > { %2125 = vrot.lane.b32.xlu1 %v4093_v42, %s3957_s17  ;;  %2381 = vrot.lane.b32.xlu0 %v4080_v37, %s3959_s19  ;;  %1623 = vst.msk [vmem:[#allocation2 + $0xa1] sm:$0xff] %vm681_vm2, %v4268_v50  ;;  %v587_v9 = vadd.f32 %v3821_v8, %v4073_v25  ;;  %v578_v10 = vpop.f32.mrb[21].mxu0  ;;  %v947_v8 = vadd.s32 152, %v4065_v21 }
 0x113   : > { %v579_v14 = vadd.f32 %v4073_v25, %v578_v10  ;;  %v3822_v16 = vpop.f32.mrb[22].mxu0 }
 0x114   : > { %v4312_v13 = vmax.f32 %v587_v9, 0.0  ;;  %v590_v22 = vadd.f32 %v3822_v16, %v4073_v25  ;;  %v581_v24 = vpop.f32.mrb[23].mxu0 }
 0x115   : > { %v4324_v27 = vmax.f32 %v579_v14, 0.0  ;;  %v582_v28 = vadd.f32 %v4073_v25, %v581_v24 }
 0x116   : > { %2254 = vrot.lane.b32.xlu1 %v4093_v42, %s3962_s22  ;;  %1833 = vrot.lane.b32.xlu0 %v4224_v26, %s3961_s21  ;;  %1630 = vst.msk [vmem:[#allocation2 + $0xd9] sm:$0xff] %vm681_vm2, %v4312_v13  ;;  %v4334_v30 = vmax.f32 %v590_v22, 0.0 }
 0x117   : > { %1628 = vst.msk [vmem:[#allocation2 + $0xc9] sm:$0xff] %vm681_vm2, %v4324_v27  ;;  %v4336_v31 = vmax.f32 %v582_v28, 0.0 }
 0x119   : > { %v3825_v33 = vpop.f32.mrb[24].mxu0  ;;  %v667_v35 = vpack.c.bf16 %v4336_v31, %v4324_v27 }
 0x11a   : > { %2387 = vrot.lane.b32.xlu1 %v4100_v44, %s3959_s19  ;;  %2252 = vrot.lane.b32.xlu0 %v4224_v26, %s3962_s22  ;;  %v941_v44 = vadd.s32 104, %v4065_v21  ;;  %v603_v34 = vadd.f32 %v3825_v33, %v4073_v25  ;;  %v594_v43 = vpop.f32.mrb[25].mxu0 }
 0x11c   : > { %v1055_v48 = vand.u32 15, %v941_v44  ;;  %v4345_v36 = vmax.f32 %v603_v34, 0.0  ;;  %v668_v44 = vpack.c.bf16 %v4334_v30, %v4312_v13 }
 0x11e   : > { %2512 = vrot.lane.b32.xlu1 %v4093_v42, %s3960_s20  ;;  %2645 = vrot.lane.b32.xlu0 %v4084_v40, %s3958_s18  ;;  %v663_v40 = vpack.c.bf16 %v4251_v41, %v4247_v38  ;;  %vm1357_vm14 = vcmp.eq.s32.totalorder %v1055_v48, 15  ;;  %1634 = vst.msk [vmem:[#allocation2 + $0xf9] sm:$0xff] %vm681_vm2, %v4345_v36 }
 0x11f   : > { %v4273_v51 = vsel %vm1357_vm14, 0.0, %v4251_v41 }
 0x120   : > { %3845 = vmatprep.mubr.msk.bf16.mxu1 %vm681_vm2, %v663_v40  ;;  %1621 = vst.msk [vmem:[#allocation2 + $0x91] sm:$0xff] %vm681_vm2, %v4273_v51  ;;  %v3826_v40 = vpop.f32.mrb[26].mxu0 }
 0x121   : > { %3846 = vmatmul.mubr.msk.bf16.vlgmr.msra.gmra.mrb[0].mxu1 %vm681_vm2, %v664_v45  ;;  %v606_v45 = vadd.f32 %v3826_v40, %v4073_v25  ;;  %v597_v46 = vpop.f32.mrb[27].mxu0 }
 0x122   : > { %1996 = vrot.lane.b32.xlu1 %v4110_v49, %s3954_s15  ;;  %1674 = vrot.lane.b32.xlu0 %v4093_v42, %s3955_s16  ;;  %v598_v48 = vadd.f32 %v4073_v25, %v597_v46  ;;  %v3829_v54 = vpop.f32.mrb[28].mxu0 }
 0x123   : > { %3849 = vmatprep.mubr.msk.bf16.mxu1 %vm681_vm2, %v665_v11  ;;  %v4362_v52 = vmax.f32 %v606_v45, 0.0  ;;  %v619_v58 = vadd.f32 %v3829_v54, %v4073_v25  ;;  %v945_v11 = vadd.s32 136, %v4065_v21 }
 0x124   : > { %v4370_v53 = vmax.f32 %v598_v48, 0.0 }
 0x125   : > { %v670_v61 = vpack.c.bf16 %v4362_v52, %v4345_v36  ;;  %v4381_v63 = vmax.f32 %v619_v58, 0.0  ;;  %v1083_v22 = vand.u32 15, %v945_v11 }
 0x126   : > { %2383 = vrot.lane.b32.xlu1 %v4110_v49, %s3959_s19  ;;  %1684 = vrot.lane.b32.xlu0 %v4122_v56, %s3955_s16  ;;  %v932_v49 = vadd.s32 32, %v4065_v21 }
 0x127   : > { %vm1361_vm4 = vcmp.eq.s32.totalorder %v1083_v22, 15 }
 0x128   : > { %v992_v7 = vand.u32 15, %v932_v49  ;;  %v610_v49 = vpop.f32.mrb[29].mxu0  ;;  %v4408_v33 = vsel %vm1361_vm4, 0.0, %v4303_v6  ;;  %vm2606_vm4 = vcmask 261344  }
 0x129   : > { %3850 = vmatmul.mubr.msk.bf16.gmra.mrb[4].mxu1 %vm681_vm2, %v666_v19  ;;  %v611_v3 = vadd.f32 %v4073_v25, %v610_v49  ;;  %v1097_v19 = vand.u32 15, %v947_v8  ;;  %1625 = vst.msk [vmem:[#allocation2 + $0xb1] sm:$0xff] %vm681_vm2, %v4408_v33  ;;  %v938_v49 = vadd.s32 80, %v4065_v21  ;;  %v953_v8 = vadd.s32 200, %v4065_v21 }
 0x12a   : > { %2651 = vrot.lane.b32.xlu1 %v4283_v55, %s3958_s18  ;;  %2006 = vrot.lane.b32.xlu0 %v4122_v56, %s3954_s15  ;;  %vm1476_vm0 = vcmp.eq.s32.totalorder %v992_v7, 0  ;;  %v3830_v7 = vpop.f32.mrb[30].mxu0 }
 0x12b   : > { %v4330_v29 = vsel %vm1476_vm0, 0.0, %v4125_v59  ;;  %3853 = vmatprep.mubr.msk.bf16.mxu1 %vm681_vm2, %v667_v35  ;;  %v622_v9 = vadd.f32 %v3830_v7, %v4073_v25  ;;  %v613_v10 = vpop.f32.mrb[31].mxu0  ;;  %v4388_v14 = vmax.f32 %v611_v3, 0.0  ;;  %vm1363_vm3 = vcmp.eq.s32.totalorder %v1097_v19, 15 }
 0x12c   : > { %v614_v16 = vadd.f32 %v4073_v25, %v613_v10  ;;  %v955_v7 = vadd.s32 216, %v4065_v21  ;;  %v1139_v11 = vand.u32 15, %v953_v8 }
 0x12d   : > { %1636 = vst.msk [vmem:[#allocation2 + $0x109] sm:$0xff] %vm681_vm2, %v4388_v14  ;;  %v4398_v24 = vmax.f32 %v622_v9, 0.0 }
 0x12e   : > { %1686 = vrot.lane.b32.xlu1 %v4135_v62, %s3955_s16  ;;  %2393 = vrot.lane.b32.xlu0 %v4122_v56, %s3959_s19  ;;  %v4400_v28 = vmax.f32 %v614_v16, 0.0  ;;  %v1153_v10 = vand.u32 15, %v955_v7  ;;  %vm1369_vm11 = vcmp.eq.s32.totalorder %v1139_v11, 15 }
 0x12f   : > { %v672_v35 = vpack.c.bf16 %v4398_v24, %v4381_v63  ;;  %v4501_v16 = vsel %vm1369_vm11, 0.0, %v4370_v53 }
 0x130   : > { %v671_v34 = vpack.c.bf16 %v4400_v28, %v4388_v14  ;;  %vm1371_vm10 = vcmp.eq.s32.totalorder %v1153_v10, 15  ;;  %1633 = vst.msk [vmem:[#allocation2 + $0xf1] sm:$0xff] %vm681_vm2, %v4501_v16 }
 0x131   : > { %3854 = vmatmul.mubr.msk.bf16.gmra.mrb[8].mxu1 %vm681_vm2, %v668_v44  ;;  %v951_v44 = vadd.s32 184, %v4065_v21 }
 0x132   : > { %1847 = vrot.lane.b32.xlu1 %v4135_v62, %s3961_s21  ;;  %2522 = vrot.lane.b32.xlu0 %v4122_v56, %s3960_s20 }
 0x133   : > { %v1125_v40 = vand.u32 15, %v951_v44 }
 0x135   : > { %vm1367_vm7 = vcmp.eq.s32.totalorder %v1125_v40, 15  ;;  %v959_v40 = vadd.s32 248, %v4065_v21 }
 0x136   : > { %2647 = vrot.lane.b32.xlu1 %v4330_v29, %s3958_s18  ;;  %2135 = vrot.lane.b32.xlu0 %v4122_v56, %s3957_s17  ;;  %v595_v56 = vadd.f32 %v4073_v25, %v594_v43  ;;  %v4403_v25 = vsel %vm1363_vm3, 0.0, %v4301_v4  ;;  %v3943_v43 = vld [vmem:[%s5512_s5] sm:$0xff]   ;;  %v4463_v54 = vsel %vm1367_vm7, 0.0, %v4334_v30  ;;  %vm2477_vm3 = vcmask 228544  }
 0x137   : > { %1627 = vst.msk [vmem:[#allocation2 + $0xc1] sm:$0xff] %vm681_vm2, %v4403_v25  ;;  %3865 = vmatprep.subr.bf16.mxu1 %v3943_v43  ;;  %1631 = vst.msk [vmem:[#allocation2 + $0xe1] sm:$0xff] %vm681_vm2, %v4463_v54 }
 0x138   : > { %v4358_v47 = vmax.f32 %v595_v56, 0.0  ;;  %3866 = vmatpush3.bf16.msra.mxu1 %v3943_v43 }
 0x13a   : > { %2137 = vrot.lane.b32.xlu1 %v4135_v62, %s3957_s17  ;;  %1680 = vrot.lane.b32.xlu0 %v4125_v59, %s3955_s16  ;;  %1632 = vst.msk [vmem:[#allocation2 + $0xe9] sm:$0xff] %vm681_vm2, %v4358_v47  ;;  %v669_v60 = vpack.c.bf16 %v4370_v53, %v4358_v47 }
 0x13c   : > { %3857 = vmatprep.mubr.msk.bf16.mxu1 %vm681_vm2, %v669_v60 }
 0x13d   : > { %3858 = vmatmul.mubr.msk.bf16.gmra.mrb[12].mxu1 %vm681_vm2, %v670_v61 }
 0x13e   : > { %2266 = vrot.lane.b32.xlu1 %v4135_v62, %s3962_s22  ;;  %1845 = vrot.lane.b32.xlu0 %v4283_v55, %s3961_s21 }
 0x13f   : > { %3861 = vmatprep.mubr.msk.bf16.mxu1 %vm681_vm2, %v671_v34 }
 0x142   : > { %1682 = vrot.lane.b32.xlu1 %v4140_v0, %s3955_s16  ;;  %2002 = vrot.lane.b32.xlu0 %v4125_v59, %s3954_s15 }
 0x145   : > { %3862 = vmatmul.mubr.msk.bf16.gmra.mrb[16].mxu1 %vm681_vm2, %v672_v35  ;;  %v936_v35 = vadd.s32 64, %v4065_v21 }
 0x146   : > { %1843 = vrot.lane.b32.xlu1 %v4140_v0, %s3961_s21  ;;  %2131 = vrot.lane.b32.xlu0 %v4125_v59, %s3957_s17 }
 0x14a   : > { %2008 = vrot.lane.b32.xlu1 %v4145_v2, %s3954_s15  ;;  %2389 = vrot.lane.b32.xlu0 %v4125_v59, %s3959_s19 }
 0x14e   : > { %2133 = vrot.lane.b32.xlu1 %v4140_v0, %s3957_s17  ;;  %2518 = vrot.lane.b32.xlu0 %v4125_v59, %s3960_s20  ;;  %v3944_v59 = vld [vmem:[%s5512_s5 + $0x8] sm:$0xff]  }
 0x14f   : > { %3867 = vmatprep.subr.bf16.mxu1 %v3944_v59 }
 0x150   : > { %3868 = vmatpush3.bf16.msra.mxu1 %v3944_v59 }
 0x152   : > { %2262 = vrot.lane.b32.xlu1 %v4140_v0, %s3962_s22  ;;  %2264 = vrot.lane.b32.xlu0 %v4283_v55, %s3962_s22  ;;  %v949_v55 = vadd.s32 168, %v4065_v21 }
 0x154   : > { %v1111_v56 = vand.u32 15, %v949_v55  ;;  %v1020_v55 = vand.u32 15, %v936_v35 }
 0x156   : > { %2520 = vrot.lane.b32.xlu1 %v4140_v0, %s3960_s20  ;;  %1841 = vrot.lane.b32.xlu0 %v4330_v29, %s3961_s21  ;;  %vm1365_vm6 = vcmp.eq.s32.totalorder %v1111_v56, 15  ;;  %vm1480_vm14 = vcmp.eq.s32.totalorder %v1020_v55, 0 }
 0x157   : > { %v4454_v45 = vsel %vm1365_vm6, 0.0, %v4336_v31  ;;  %vm2735_vm6 = vcmask 294144  }
 0x158   : > { %1629 = vst.msk [vmem:[#allocation2 + $0xd1] sm:$0xff] %vm681_vm2, %v4454_v45 }
 0x15a   : > { %2004 = vrot.lane.b32.xlu1 %v4156_v5, %s3954_s15  ;;  %2260 = vrot.lane.b32.xlu0 %v4330_v29, %s3962_s22  ;;  %v3945_v29 = vld [vmem:[%s5512_s5 + $0x10] ss:$0 sps:$4 sm:$0x33]  }
 0x15b   : > { %3907 = vmatprep.subr.msk.bf16.mxu1 %vm730_vm1, %v3945_v29 }
 0x15e   : > { %2391 = vrot.lane.b32.xlu1 %v4156_v5, %s3959_s19  ;;  %2524 = vrot.lane.b32.xlu0 %v4135_v62, %s3960_s20  ;;  %v2892_v5 = vsel %vm730_vm1, %v3945_v29, 0  ;;  %vm1929_vm1 = vcmask 97344   ;;  %v957_v29 = vadd.s32 232, %v4065_v21 }
 0x15f   : > { %3870 = vmatpush3.bf16.msra.mxu1 %v2892_v5  ;;  %v1181_v5 = vand.u32 15, %v959_v40 }
 0x160   : > { %v4456_v46 = vpop.permute.xlu0 %1998  ;;  %v1677_v48 = vpop.permute.xlu1 %1676 }
 0x161   : > { %1771 = vst.msk [vmem:[#allocation2 + $0x38] sm:$0xff] %vm1768_vm5, %v1677_v48  ;;  %vm1375_vm15 = vcmp.eq.s32.totalorder %v1181_v5, 15 }
 0x162   : > { %2401 = vrot.lane.b32.xlu1 %v4168_v12, %s3959_s19  ;;  %2653 = vrot.lane.b32.xlu0 %v4135_v62, %s3958_s18  ;;  %v1034_v62 = vand.u32 15, %v938_v49  ;;  %v1167_v49 = vand.u32 15, %v957_v29 }
 0x164   : > { %v4472_v58 = vpop.permute.xlu0 %2127  ;;  %v4474_v60 = vpop.permute.xlu1 %2643  ;;  %vm1482_vm8 = vcmp.eq.s32.totalorder %v1034_v62, 0  ;;  %vm1373_vm0 = vcmp.eq.s32.totalorder %v1167_v49, 15  ;;  %v4535_v62 = vsel %vm1375_vm15, 0.0, %v4398_v24 }
 0x165   : > { %v1578_v34 = vsel %vm1482_vm8, 0.0, %v4168_v12  ;;  %v4538_v7 = vsel %vm1373_vm0, 0.0, %v4400_v28 }
 0x166   : > { %2530 = vrot.lane.b32.xlu1 %v4168_v12, %s3960_s20  ;;  %2649 = vrot.lane.b32.xlu0 %v4140_v0, %s3958_s18  ;;  %1637 = vst.msk [vmem:[#allocation2 + $0x111] sm:$0xff] %vm681_vm2, %v4538_v7 }
 0x168   : > { %v4481_v61 = vpop.permute.xlu0 %2385  ;;  %v1679_v3 = vpop.permute.xlu1 %1678 }
 0x169   : > { %1772 = vst.msk [vmem:[#allocation2 + $0x40] sm:$0xff] %vm1768_vm5, %v1679_v3  ;;  %v1576_v3 = vsel %vm1480_vm14, 0.0, %v4171_v15 }
 0x16a   : > { %2397 = vrot.lane.b32.xlu1 %v4171_v15, %s3959_s19  ;;  %2395 = vrot.lane.b32.xlu0 %v4145_v2, %s3959_s19  ;;  %v4498_v2 = vsel %vm1371_vm10, 0.0, %v4362_v52  ;;  %vm3215_vm10 = vcmask 125952  }
 0x16b   : > { %1635 = vst.msk [vmem:[#allocation2 + $0x101] sm:$0xff] %vm681_vm2, %v4498_v2  ;;  %vm2348_vm2 = vcmask 195744  }
 0x16c   : > { %v4490_v0 = vpop.permute.xlu0 %2514  ;;  %v1840_v9 = vpop.permute.xlu1 %1839 }
 0x16d   : > { %1933 = vst.msk [vmem:[#allocation2 + $0x3f] sm:$0xff] %vm1929_vm1, %v1840_v9 }
 0x16e   : > { %2526 = vrot.lane.b32.xlu1 %v4171_v15, %s3960_s20  ;;  %1692 = vrot.lane.b32.xlu0 %v4168_v12, %s3955_s16 }
 0x170   : > { %v4503_v19 = vpop.permute.xlu1 %2129  ;;  %v1673_v22 = vpop.permute.xlu0 %1672 }
 0x171   : > { %1769 = vst.msk [vmem:[#allocation2 + $0x28] sm:$0xff] %vm1768_vm5, %v1673_v22 }
 0x172   : > { %2659 = vrot.lane.b32.xlu1 %v1578_v34, %s3958_s18  ;;  %2014 = vrot.lane.b32.xlu0 %v4168_v12, %s3954_s15 }
 0x174   : > { %v4515_v43 = vpop.permute.xlu1 %2258  ;;  %v1838_v59 = vpop.permute.xlu0 %1837 }
 0x176   : > { %1694 = vrot.lane.b32.xlu1 %v4180_v17, %s3955_s16  ;;  %2143 = vrot.lane.b32.xlu0 %v4168_v12, %s3957_s17 }
 0x178   : > { %v4521_v44 = vpop.permute.xlu1 %2516  ;;  %v1995_v56 = vpop.permute.xlu0 %1994 }
 0x179   : > { %2091 = vst.msk [vmem:[#allocation2 + $0x19] sm:$0xff] %vm2090_vm12, %v1995_v56 }
 0x17a   : > { %1855 = vrot.lane.b32.xlu1 %v4180_v17, %s3961_s21  ;;  %1688 = vrot.lane.b32.xlu0 %v4171_v15, %s3955_s16 }
 0x17c   : > { %v1836_v12 = vpop.permute.xlu1 %1835  ;;  %v2124_v48 = vpop.permute.xlu0 %2123 }
 0x17d   : > { %2220 = vst.msk [vmem:[#allocation2 + $0x18] sm:$0xff] %vm2219_vm13, %v2124_v48 }
 0x17e   : > { %2655 = vrot.lane.b32.xlu1 %v1576_v3, %s3958_s18  ;;  %1853 = vrot.lane.b32.xlu0 %v1578_v34, %s3961_s21 }
 0x180   : > { %v2001_v8 = vpop.permute.xlu1 %2000  ;;  %v2257_v9 = vpop.permute.xlu0 %2256 }
 0x182   : > { %2145 = vrot.lane.b32.xlu1 %v4180_v17, %s3957_s17  ;;  %2010 = vrot.lane.b32.xlu0 %v4171_v15, %s3954_s15 }
 0x184   : > { %v2126_v10 = vpop.permute.xlu1 %2125  ;;  %v2382_v11 = vpop.permute.xlu0 %2381 }
 0x186   : > { %2274 = vrot.lane.b32.xlu1 %v4180_v17, %s3962_s22  ;;  %2139 = vrot.lane.b32.xlu0 %v4171_v15, %s3957_s17 }
 0x188   : > { %v2255_v22 = vpop.permute.xlu1 %2254  ;;  %v1834_v35 = vpop.permute.xlu0 %1833 }
 0x189   : > { %1930 = vst.msk [vmem:[#allocation2 + $0x27] sm:$0xff] %vm1929_vm1, %v1834_v35 }
 0x18a   : > { %1690 = vrot.lane.b32.xlu1 %v4184_v18, %s3955_s16  ;;  %2272 = vrot.lane.b32.xlu0 %v1578_v34, %s3962_s22 }
 0x18c   : > { %v2388_v55 = vpop.permute.xlu1 %2387  ;;  %v2253_v56 = vpop.permute.xlu0 %2252 }
 0x18d   : > { %2349 = vst.msk [vmem:[#allocation2 + $0x17] sm:$0xff] %vm2348_vm2, %v2253_v56 }
 0x18e   : > { %1851 = vrot.lane.b32.xlu1 %v4184_v18, %s3961_s21  ;;  %1849 = vrot.lane.b32.xlu0 %v1576_v3, %s3961_s21 }
 0x190   : > { %v2513_v15 = vpop.permute.xlu1 %2512  ;;  %v2646_v40 = vpop.permute.xlu0 %2645 }
 0x192   : > { %2016 = vrot.lane.b32.xlu1 %v4189_v20, %s3954_s15  ;;  %2268 = vrot.lane.b32.xlu0 %v1576_v3, %s3962_s22 }
 0x194   : > { %v1997_v29 = vpop.permute.xlu1 %1996  ;;  %v1675_v48 = vpop.permute.xlu0 %1674 }
 0x195   : > { %2092 = vst.msk [vmem:[#allocation2 + $0x21] sm:$0xff] %vm2090_vm12, %v1997_v29 }
 0x196   : > { %1770 = vst.msk [vmem:[#allocation2 + $0x30] sm:$0xff] %vm1768_vm5, %v1675_v48  ;;  %2141 = vrot.lane.b32.xlu1 %v4184_v18, %s3957_s17  ;;  %2528 = vrot.lane.b32.xlu0 %v4184_v18, %s3960_s20 }
 0x197   : > { %2221 = vst.msk [vmem:[#allocation2 + $0x20] sm:$0xff] %vm2219_vm13, %v2126_v10 }
 0x198   : > { %1931 = vst.msk [vmem:[#allocation2 + $0x2f] sm:$0xff] %vm1929_vm1, %v1836_v12  ;;  %1932 = vst.msk [vmem:[#allocation2 + $0x37] sm:$0xff] %vm1929_vm1, %v1838_v59  ;;  %v2384_v34 = vpop.permute.xlu1 %2383  ;;  %v1685_v59 = vpop.permute.xlu0 %1684 }
 0x199   : > { %2350 = vst.msk [vmem:[#allocation2 + $0x1f] sm:$0xff] %vm2348_vm2, %v2255_v22 }
 0x19a   : > { %2093 = vst.msk [vmem:[#allocation2 + $0x29] sm:$0xff] %vm2090_vm12, %v4456_v46  ;;  %2094 = vst.msk [vmem:[#allocation2 + $0x31] sm:$0xff] %vm2090_vm12, %v2001_v8  ;;  %2270 = vrot.lane.b32.xlu1 %v4184_v18, %s3962_s22  ;;  %2657 = vrot.lane.b32.xlu0 %v4184_v18, %s3958_s18  ;;  %v940_v8 = vadd.s32 96, %v4065_v21 }
 0x19b   : > { %2480 = vst.msk [vmem:[#allocation2 + $0x19] sm:$0xff] %vm2477_vm3, %v4481_v61  ;;  %2479 = vst.msk [vmem:[#allocation2 + $0x11] sm:$0xff] %vm2477_vm3, %v2384_v34 }
 0x19c   : > { %2222 = vst.msk [vmem:[#allocation2 + $0x28] sm:$0xff] %vm2219_vm13, %v4472_v58  ;;  %2223 = vst.msk [vmem:[#allocation2 + $0x30] sm:$0xff] %vm2219_vm13, %v4503_v19  ;;  %v4597_v46 = vpop.permute.xlu1 %2651  ;;  %v4599_v58 = vpop.permute.xlu0 %2006  ;;  %v1048_v11 = vand.u32 15, %v940_v8 }
 0x19d   : > { %2351 = vst.msk [vmem:[#allocation2 + $0x27] sm:$0xff] %vm2348_vm2, %v2257_v9  ;;  %2352 = vst.msk [vmem:[#allocation2 + $0x2f] sm:$0xff] %vm2348_vm2, %v4515_v43 }
 0x19e   : > { %1775 = vst.msk [vmem:[#allocation2 + $0x58] sm:$0xff] %vm1768_vm5, %v1685_v59  ;;  %2012 = vrot.lane.b32.xlu1 %v4196_v23, %s3954_s15  ;;  %2403 = vrot.lane.b32.xlu0 %v4189_v20, %s3959_s19  ;;  %v942_v20 = vadd.s32 112, %v4065_v21  ;;  %vm1484_vm8 = vcmp.eq.s32.totalorder %v1048_v11, 0  ;;  %v4674_v59 = vld [vmem:[%s5511_s4] ss:$0 sm:$0xff] }
 0x19f   : > { %2481 = vst.msk [vmem:[#allocation2 + $0x21] sm:$0xff] %vm2477_vm3, %v2388_v55  ;;  %v4659_v15 = vsel %vm1484_vm8, 0.0, %v4247_v38 }
 0x1a0   : > { %2609 = vst.msk [vmem:[#allocation2 + $0x18] sm:$0xff] %vm2606_vm4, %v4490_v0  ;;  %2610 = vst.msk [vmem:[#allocation2 + $0x20] sm:$0xff] %vm2606_vm4, %v4521_v44  ;;  %v1687_v61 = vpop.permute.xlu1 %1686  ;;  %v4605_v18 = vpop.permute.xlu0 %2393 }
 0x1a1   : > { %2738 = vst.msk [vmem:[#allocation2 + $0x17] sm:$0xff] %vm2735_vm6, %v4474_v60  ;;  %2739 = vst.msk [vmem:[#allocation2 + $0x1f] sm:$0xff] %vm2735_vm6, %v2646_v40 }
 0x1a2   : > { %1776 = vst.msk [vmem:[#allocation2 + $0x60] sm:$0xff] %vm1768_vm5, %v1687_v61  ;;  %2405 = vrot.lane.b32.xlu1 %v4247_v38, %s3959_s19  ;;  %2399 = vrot.lane.b32.xlu0 %v4196_v23, %s3959_s19  ;;  %v1062_v23 = vand.u32 15, %v942_v20  ;;  %v946_v61 = vadd.s32 144, %v4065_v21 }
 0x1a4   : > { %v1848_v60 = vpop.permute.xlu1 %1847  ;;  %v4612_v0 = vpop.permute.xlu0 %2522  ;;  %vm1486_vm7 = vcmp.eq.s32.totalorder %v1062_v23, 0 }
 0x1a5   : > { %1937 = vst.msk [vmem:[#allocation2 + $0x5f] sm:$0xff] %vm1929_vm1, %v1848_v60  ;;  %v4636_v3 = vsel %vm1486_vm7, 0.0, %v4235_v32 }
 0x1a6   : > { %1702 = vrot.lane.b32.xlu1 %v4249_v39, %s3955_s16  ;;  %1700 = vrot.lane.b32.xlu0 %v4235_v32, %s3955_s16 }
 0x1a8   : > { %v2648_v19 = vpop.permute.xlu1 %2647  ;;  %v4620_v43 = vpop.permute.xlu0 %2135 }
 0x1aa   : > { %1863 = vrot.lane.b32.xlu1 %v4249_v39, %s3961_s21  ;;  %2022 = vrot.lane.b32.xlu0 %v4235_v32, %s3954_s15 }
 0x1ac   : > { %v4626_v44 = vpop.permute.xlu1 %2137  ;;  %v1681_v12 = vpop.permute.xlu0 %1680 }
 0x1ad   : > { %1773 = vst.msk [vmem:[#allocation2 + $0x48] sm:$0xff] %vm1768_vm5, %v1681_v12 }
 0x1ae   : > { %1698 = vrot.lane.b32.xlu1 %v4251_v41, %s3955_s16  ;;  %1696 = vrot.lane.b32.xlu0 %v4247_v38, %s3955_s16 }
 0x1b0   : > { %v4633_v5 = vpop.permute.xlu1 %2266  ;;  %v1846_v49 = vpop.permute.xlu0 %1845 }
 0x1b2   : > { %1859 = vrot.lane.b32.xlu1 %v4251_v41, %s3961_s21  ;;  %1861 = vrot.lane.b32.xlu0 %v4636_v3, %s3961_s21 }
 0x1b4   : > { %v1683_v9 = vpop.permute.xlu1 %1682  ;;  %v2003_v10 = vpop.permute.xlu0 %2002 }
 0x1b5   : > { %1774 = vst.msk [vmem:[#allocation2 + $0x50] sm:$0xff] %vm1768_vm5, %v1683_v9 }
 0x1b6   : > { %2095 = vst.msk [vmem:[#allocation2 + $0x39] sm:$0xff] %vm2090_vm12, %v2003_v10  ;;  %2024 = vrot.lane.b32.xlu1 %v4268_v50, %s3954_s15  ;;  %2018 = vrot.lane.b32.xlu0 %v4247_v38, %s3954_s15 }
 0x1b7   : > { %1936 = vst.msk [vmem:[#allocation2 + $0x57] sm:$0xff] %vm1929_vm1, %v1846_v49  ;;  %v2768_v49 = vld [vmem:[#allocation2 + $0x18] sm:$0xff] }
 0x1b8   : > { %v1844_v22 = vpop.permute.xlu1 %1843  ;;  %v2132_v35 = vpop.permute.xlu0 %2131 }
 0x1b9   : > { %1935 = vst.msk [vmem:[#allocation2 + $0x4f] sm:$0xff] %vm1929_vm1, %v1844_v22 }
 0x1ba   : > { %2224 = vst.msk [vmem:[#allocation2 + $0x38] sm:$0xff] %vm2219_vm13, %v2132_v35  ;;  %2149 = vrot.lane.b32.xlu1 %v4251_v41, %s3957_s17  ;;  %2147 = vrot.lane.b32.xlu0 %v4247_v38, %s3957_s17  ;;  %v1090_v35 = vand.u32 15, %v946_v61 }
 0x1bc   : > { %v2009_v55 = vpop.permute.xlu1 %2008  ;;  %v2390_v56 = vpop.permute.xlu0 %2389  ;;  %vm1490_vm11 = vcmp.eq.s32.totalorder %v1090_v35, 0 }
 0x1bd   : > { %2098 = vst.msk [vmem:[#allocation2 + $0x51] sm:$0xff] %vm2090_vm12, %v2009_v55 }
 0x1be   : > { %2482 = vst.msk [vmem:[#allocation2 + $0x29] sm:$0xff] %vm2477_vm3, %v2390_v56  ;;  %2278 = vrot.lane.b32.xlu1 %v4251_v41, %s3962_s22  ;;  %1857 = vrot.lane.b32.xlu0 %v4659_v15, %s3961_s21 }
 0x1c0   : > { %v2134_v40 = vpop.permute.xlu1 %2133  ;;  %v2519_v29 = vpop.permute.xlu0 %2518 }
 0x1c1   : > { %2611 = vst.msk [vmem:[#allocation2 + $0x28] sm:$0xff] %vm2606_vm4, %v2519_v29 }
 0x1c2   : > { %2740 = vst.msk [vmem:[#allocation2 + $0x27] sm:$0xff] %vm2735_vm6, %v2648_v19  ;;  %2020 = vrot.lane.b32.xlu1 %v4273_v51, %s3954_s15  ;;  %2276 = vrot.lane.b32.xlu0 %v4659_v15, %s3962_s22 }
 0x1c4   : > { %v2263_v48 = vpop.permute.xlu1 %2262  ;;  %v2265_v34 = vpop.permute.xlu0 %2264 }
 0x1c6   : > { %1710 = vrot.lane.b32.xlu1 %v4301_v4, %s3955_s16  ;;  %1708 = vrot.lane.b32.xlu0 %v4285_v57, %s3955_s16 }
 0x1c7   : > { %v3835_v60 = vpop.f32.mrb[32].mxu0 }
 0x1c8   : > { %v777_v20 = vadd.f32 %v3835_v60, %v4674_v59  ;;  %v2521_v19 = vpop.permute.xlu1 %2520  ;;  %v1842_v23 = vpop.permute.xlu0 %1841 }
 0x1c9   : > { %1934 = vst.msk [vmem:[#allocation2 + $0x47] sm:$0xff] %vm1929_vm1, %v1842_v23  ;;  %v768_v12 = vpop.f32.mrb[33].mxu0  ;;  %v2769_v8 = vld [vmem:[#allocation2 + $0x20] sm:$0xff] }
 0x1ca   : > { %v897_v9 = vmax.f32 %v777_v20, 0.0  ;;  %2097 = vst.msk [vmem:[#allocation2 + $0x49] sm:$0xff] %vm2090_vm12, %v4599_v58  ;;  %v769_v10 = vadd.f32 %v4674_v59, %v768_v12  ;;  %v3836_v11 = vpop.f32.mrb[34].mxu0  ;;  %1871 = vrot.lane.b32.xlu1 %v4301_v4, %s3961_s21  ;;  %2030 = vrot.lane.b32.xlu0 %v4285_v57, %s3954_s15  ;;  %v2800_v22 = vpack.c.bf16 %v2769_v8, %v2768_v49  ;;  %v944_v49 = vadd.s32 128, %v4065_v21 }
 0x1cb   : > { %2227 = vst.msk [vmem:[#allocation2 + $0x50] sm:$0xff] %vm2219_vm13, %v4626_v44  ;;  %v780_v58 = vadd.f32 %v3836_v11, %v4674_v59  ;;  %v771_v55 = vpop.f32.mrb[35].mxu0 }
 0x1cc   : > { %v3679_v56 = vpack.c.bf16 %v897_v9, %v897_v9  ;;  %v895_v29 = vmax.f32 %v769_v10, 0.0  ;;  %v772_v60 = vadd.f32 %v4674_v59, %v771_v55  ;;  %v2005_v20 = vpop.permute.xlu1 %2004  ;;  %3871 = vmatprep.mubr.msk.bf16.mxu1 %vm1600_vm9, %v2800_v22  ;;  %v2261_v61 = vpop.permute.xlu0 %2260 }
 0x1cd   : > { %v898_v23 = vmax.f32 %v780_v58, 0.0  ;;  %2096 = vst.msk [vmem:[#allocation2 + $0x41] sm:$0xff] %vm2090_vm12, %v2005_v20 }
 0x1ce   : > { %2353 = vst.msk [vmem:[#allocation2 + $0x37] sm:$0xff] %vm2348_vm2, %v2261_v61  ;;  %v3677_v44 = vpack.c.bf16 %v895_v29, %v895_v29  ;;  %v896_v12 = vmax.f32 %v772_v60, 0.0  ;;  %1706 = vrot.lane.b32.xlu1 %v4303_v6, %s3955_s16  ;;  %1704 = vrot.lane.b32.xlu0 %v4296_v1, %s3955_s16 }
 0x1cf   : > { %3218 = vst.msk [vmem:[%s4695_s13 + $0x8] sm:$0xf] %vm3215_vm10, %v3679_v56  ;;  %v3680_v8 = vpack.c.bf16 %v898_v23, %v898_v23 }
 0x1d0   : > { %2225 = vst.msk [vmem:[#allocation2 + $0x40] sm:$0xff] %vm2219_vm13, %v2134_v40  ;;  %2226 = vst.msk [vmem:[#allocation2 + $0x48] sm:$0xff] %vm2219_vm13, %v4620_v43  ;;  %v3839_v43 = vpop.f32.mrb[36].mxu0  ;;  %v3678_v40 = vpack.c.bf16 %v896_v12, %v896_v12  ;;  %v2392_v9 = vpop.permute.xlu1 %2391 }
 0x1d1   : > { %2354 = vst.msk [vmem:[#allocation2 + $0x3f] sm:$0xff] %vm2348_vm2, %v2263_v48  ;;  %2355 = vst.msk [vmem:[#allocation2 + $0x47] sm:$0xff] %vm2348_vm2, %v2265_v34  ;;  %v2525_v10 = vpop.permute.xlu0 %2524  ;;  %v793_v11 = vadd.f32 %v3839_v43, %v4674_v59  ;;  %v4727_v48 = vsel %vm1490_vm11, 0.0, %v4285_v57  ;;  %v784_v34 = vpop.f32.mrb[37].mxu0 }
 0x1d2   : > { %2356 = vst.msk [vmem:[#allocation2 + $0x4f] sm:$0xff] %vm2348_vm2, %v4633_v5  ;;  %1867 = vrot.lane.b32.xlu1 %v4303_v6, %s3961_s21  ;;  %1869 = vrot.lane.b32.xlu0 %v4727_v48, %s3961_s21  ;;  %v785_v22 = vadd.f32 %v4674_v59, %v784_v34  ;;  %v3840_v35 = vpop.f32.mrb[38].mxu0 }
 0x1d3   : > { %3216 = vst.msk [vmem:[%s4695_s13] sm:$0xf] %vm3215_vm10, %v3677_v44  ;;  %3219 = vst.msk [vmem:[%s4695_s13 + $0xc] sm:$0xf] %vm3215_vm10, %v3680_v8  ;;  %v901_v5 = vmax.f32 %v793_v11, 0.0  ;;  %v796_v58 = vadd.f32 %v3840_v35, %v4674_v59  ;;  %v950_v11 = vadd.s32 176, %v4065_v21 }
 0x1d4   : > { %2484 = vst.msk [vmem:[#allocation2 + $0x39] sm:$0xff] %vm2477_vm3, %v4605_v18  ;;  %2483 = vst.msk [vmem:[#allocation2 + $0x31] sm:$0xff] %vm2477_vm3, %v2392_v9  ;;  %v1076_v18 = vand.u32 15, %v944_v49  ;;  %v4742_v55 = vpop.permute.xlu1 %2401  ;;  %v899_v29 = vmax.f32 %v785_v22, 0.0 }
 0x1d5   : > { %3217 = vst.msk [vmem:[%s4695_s13 + $0x4] sm:$0xf] %vm3215_vm10, %v3678_v40  ;;  %v3683_v56 = vpack.c.bf16 %v901_v5, %v901_v5  ;;  %v902_v20 = vmax.f32 %v796_v58, 0.0 }
 0x1d6   : > { %2613 = vst.msk [vmem:[#allocation2 + $0x38] sm:$0xff] %vm2606_vm4, %v4612_v0  ;;  %2612 = vst.msk [vmem:[#allocation2 + $0x30] sm:$0xff] %vm2606_vm4, %v2521_v19  ;;  %v787_v0 = vpop.f32.mrb[39].mxu0  ;;  %v2654_v19 = vpop.permute.xlu0 %2653  ;;  %2032 = vrot.lane.b32.xlu1 %v4403_v25, %s3954_s15  ;;  %2026 = vrot.lane.b32.xlu0 %v4296_v1, %s3954_s15  ;;  %vm1488_vm14 = vcmp.eq.s32.totalorder %v1076_v18, 0 }
 0x1d7   : > { %2742 = vst.msk [vmem:[#allocation2 + $0x37] sm:$0xff] %vm2735_vm6, %v4597_v46  ;;  %v788_v60 = vadd.f32 %v4674_v59, %v787_v0  ;;  %v3681_v46 = vpack.c.bf16 %v899_v29, %v899_v29  ;;  %v3684_v23 = vpack.c.bf16 %v902_v20, %v902_v20  ;;  %v3843_v44 = vpop.f32.mrb[40].mxu0  ;;  %v4758_v40 = vsel %vm1488_vm14, 0.0, %v4296_v1 }
 0x1d8   : > { %3222 = vst.msk [vmem:[%s4695_s13 + $0x18] sm:$0xf] %vm3215_vm10, %v3683_v56  ;;  %v4751_v12 = vpop.permute.xlu1 %2530  ;;  %v809_v43 = vadd.f32 %v3843_v44, %v4674_v59  ;;  %v800_v9 = vpop.f32.mrb[41].mxu0 }
 0x1d9   : > { %v900_v61 = vmax.f32 %v788_v60, 0.0  ;;  %3220 = vst.msk [vmem:[%s4695_s13 + $0x10] sm:$0xf] %vm3215_vm10, %v3681_v46  ;;  %3223 = vst.msk [vmem:[%s4695_s13 + $0x1c] sm:$0xf] %vm3215_vm10, %v3684_v23  ;;  %v801_v18 = vadd.f32 %v4674_v59, %v800_v9  ;;  %v3844_v5 = vpop.f32.mrb[42].mxu0 }
 0x1da   : > { %v2650_v49 = vpop.permute.xlu0 %2649  ;;  %2028 = vrot.lane.b32.xlu1 %v4408_v33, %s3954_s15  ;;  %1865 = vrot.lane.b32.xlu0 %v4758_v40, %s3961_s21  ;;  %v905_v34 = vmax.f32 %v809_v43, 0.0  ;;  %v812_v22 = vadd.f32 %v3844_v5, %v4674_v59  ;;  %v803_v35 = vpop.f32.mrb[43].mxu0  ;;  %v1118_v46 = vand.u32 15, %v950_v11 }
 0x1db   : > { %v3682_v8 = vpack.c.bf16 %v900_v61, %v900_v61  ;;  %2741 = vst.msk [vmem:[#allocation2 + $0x2f] sm:$0xff] %vm2735_vm6, %v2650_v49  ;;  %v903_v29 = vmax.f32 %v801_v18, 0.0  ;;  %v804_v60 = vadd.f32 %v4674_v59, %v803_v35  ;;  %v948_v61 = vadd.s32 160, %v4065_v21 }
 0x1dc   : > { %v2398_v58 = vpop.permute.xlu1 %2397  ;;  %v3687_v56 = vpack.c.bf16 %v905_v34, %v905_v34  ;;  %v906_v20 = vmax.f32 %v812_v22, 0.0  ;;  %vm1494_vm15 = vcmp.eq.s32.totalorder %v1118_v46, 0  ;;  %v952_v46 = vadd.s32 192, %v4065_v21 }
 0x1dd   : > { %3221 = vst.msk [vmem:[%s4695_s13 + $0x14] sm:$0xf] %vm3215_vm10, %v3682_v8  ;;  %v3685_v23 = vpack.c.bf16 %v903_v29, %v903_v29  ;;  %v904_v44 = vmax.f32 %v804_v60, 0.0  ;;  %v4801_v22 = vsel %vm1494_vm15, 0.0, %v4312_v13 }
 0x1de   : > { %v2396_v0 = vpop.permute.xlu0 %2395  ;;  %2486 = vst.msk [vmem:[#allocation2 + $0x49] sm:$0xff] %vm2477_vm3, %v2398_v58  ;;  %1718 = vrot.lane.b32.xlu1 %v4334_v30, %s3955_s16  ;;  %1716 = vrot.lane.b32.xlu0 %v4312_v13, %s3955_s16  ;;  %v3688_v49 = vpack.c.bf16 %v906_v20, %v906_v20 }
 0x1df   : > { %2485 = vst.msk [vmem:[#allocation2 + $0x41] sm:$0xff] %vm2477_vm3, %v2396_v0  ;;  %v3686_v34 = vpack.c.bf16 %v904_v44, %v904_v44  ;;  %v1132_v44 = vand.u32 15, %v952_v46 }
 0x1e0   : > { %2614 = vst.msk [vmem:[#allocation2 + $0x40] sm:$0xff] %vm2606_vm4, %v2525_v10  ;;  %v2527_v8 = vpop.permute.xlu1 %2526 }
 0x1e1   : > { %3226 = vst.msk [vmem:[%s4695_s13 + $0x28] sm:$0xf] %vm3215_vm10, %v3687_v56  ;;  %3224 = vst.msk [vmem:[%s4695_s13 + $0x20] sm:$0xf] %vm3215_vm10, %v3685_v23  ;;  %v954_v56 = vadd.s32 208, %v4065_v21  ;;  %vm1496_vm8 = vcmp.eq.s32.totalorder %v1132_v44, 0 }
 0x1e2   : > { %2743 = vst.msk [vmem:[#allocation2 + $0x3f] sm:$0xff] %vm2735_vm6, %v2654_v19  ;;  %v1693_v10 = vpop.permute.xlu0 %1692  ;;  %v2770_v43 = vld [vmem:[#allocation2 + $0x28] sm:$0xff]  ;;  %v2771_v9 = vld [vmem:[#allocation2 + $0x30] sm:$0xff]  ;;  %1879 = vrot.lane.b32.xlu1 %v4334_v30, %s3961_s21  ;;  %1712 = vrot.lane.b32.xlu0 %v4324_v27, %s3955_s16  ;;  %v1104_v19 = vand.u32 15, %v948_v61 }
 0x1e3   : > { %2615 = vst.msk [vmem:[#allocation2 + $0x48] sm:$0xff] %vm2606_vm4, %v2527_v8  ;;  %v2801_v11 = vpack.c.bf16 %v2771_v9, %v2770_v43  ;;  %v1146_v20 = vand.u32 15, %v954_v56  ;;  %v4843_v56 = vsel %vm1496_vm8, 0.0, %v4358_v47 }
 0x1e4   : > { %1779 = vst.msk [vmem:[#allocation2 + $0x78] sm:$0xff] %vm1768_vm5, %v1693_v10  ;;  %v4796_v18 = vpop.permute.xlu1 %2659  ;;  %vm1492_vm0 = vcmp.eq.s32.totalorder %v1104_v19, 0 }
 0x1e5   : > { %3227 = vst.msk [vmem:[%s4695_s13 + $0x2c] sm:$0xf] %vm3215_vm10, %v3688_v49  ;;  %3225 = vst.msk [vmem:[%s4695_s13 + $0x24] sm:$0xf] %vm3215_vm10, %v3686_v34  ;;  %3872 = vmatmul.mubr.msk.bf16.vlgmr.msra.gmra.mrb[20].mxu1 %vm1600_vm9, %v2801_v11  ;;  %v4811_v0 = vsel %vm1492_vm0, 0.0, %v4324_v27  ;;  %vm1498_vm7 = vcmp.eq.s32.totalorder %v1146_v20, 0 }
 0x1e6   : > { %v4798_v5 = vpop.permute.xlu0 %2014  ;;  %1714 = vrot.lane.b32.xlu1 %v4336_v31, %s3955_s16  ;;  %1877 = vrot.lane.b32.xlu0 %v4801_v22, %s3961_s21  ;;  %v4832_v10 = vsel %vm1498_vm7, 0.0, %v4345_v36  ;;  %v958_v20 = vadd.s32 240, %v4065_v21 }
 0x1e8   : > { %v1695_v35 = vpop.permute.xlu1 %1694 }
 0x1e9   : > { %1780 = vst.msk [vmem:[#allocation2 + $0x80] sm:$0xff] %vm1768_vm5, %v1695_v35  ;;  %v2772_v11 = vld [vmem:[#allocation2 + $0x38] sm:$0xff] }
 0x1ea   : > { %v4807_v58 = vpop.permute.xlu0 %2143  ;;  %1875 = vrot.lane.b32.xlu1 %v4336_v31, %s3961_s21  ;;  %1873 = vrot.lane.b32.xlu0 %v4811_v0, %s3961_s21 }
 0x1ec   : > { %v1856_v29 = vpop.permute.xlu1 %1855 }
 0x1ed   : > { %1941 = vst.msk [vmem:[#allocation2 + $0x7f] sm:$0xff] %vm1929_vm1, %v1856_v29 }
 0x1ee   : > { %v1689_v60 = vpop.permute.xlu0 %1688  ;;  %1726 = vrot.lane.b32.xlu1 %v4362_v52, %s3955_s16  ;;  %1724 = vrot.lane.b32.xlu0 %v4345_v36, %s3955_s16 }
 0x1ef   : > { %1777 = vst.msk [vmem:[#allocation2 + $0x68] sm:$0xff] %vm1768_vm5, %v1689_v60 }
 0x1f0   : > { %v2656_v61 = vpop.permute.xlu1 %2655 }
 0x1f1   : > { %2744 = vst.msk [vmem:[#allocation2 + $0x47] sm:$0xff] %vm2735_vm6, %v2656_v61 }
 0x1f2   : > { %v1854_v23 = vpop.permute.xlu0 %1853  ;;  %1887 = vrot.lane.b32.xlu1 %v4362_v52, %s3961_s21  ;;  %1720 = vrot.lane.b32.xlu0 %v4358_v47, %s3955_s16 }
 0x1f4   : > { %v2146_v49 = vpop.permute.xlu1 %2145  ;;  %v3847_v43 = vpop.f32.mrb[0].mxu1 }
 0x1f5   : > { %v825_v35 = vadd.f32 %v3847_v43, %v4674_v59  ;;  %v816_v60 = vpop.f32.mrb[1].mxu1 }
 0x1f6   : > { %v2011_v8 = vpop.permute.xlu0 %2010  ;;  %1722 = vrot.lane.b32.xlu1 %v4370_v53, %s3955_s16  ;;  %1885 = vrot.lane.b32.xlu0 %v4832_v10, %s3961_s21  ;;  %v817_v61 = vadd.f32 %v4674_v59, %v816_v60  ;;  %v3848_v44 = vpop.f32.mrb[2].mxu1 }
 0x1f7   : > { %2099 = vst.msk [vmem:[#allocation2 + $0x59] sm:$0xff] %vm2090_vm12, %v2011_v8  ;;  %v909_v46 = vmax.f32 %v825_v35, 0.0  ;;  %v828_v8 = vadd.f32 %v3848_v44, %v4674_v59  ;;  %v819_v43 = vpop.f32.mrb[3].mxu1  ;;  %v1174_v35 = vand.u32 15, %v958_v20 }
 0x1f8   : > { %v4838_v9 = vpop.permute.xlu1 %2274  ;;  %v2773_v19 = vld [vmem:[#allocation2 + $0x40] sm:$0xff]  ;;  %v907_v26 = vmax.f32 %v817_v61, 0.0  ;;  %v820_v42 = vadd.f32 %v4674_v59, %v819_v43 }
 0x1f9   : > { %v2802_v29 = vpack.c.bf16 %v2773_v19, %v2772_v11  ;;  %v3691_v19 = vpack.c.bf16 %v909_v46, %v909_v46  ;;  %v910_v37 = vmax.f32 %v828_v8, 0.0  ;;  %vm1502_vm11 = vcmp.eq.s32.totalorder %v1174_v35, 0 }
 0x1fa   : > { %v2140_v34 = vpop.permute.xlu0 %2139  ;;  %1883 = vrot.lane.b32.xlu1 %v4370_v53, %s3961_s21  ;;  %1881 = vrot.lane.b32.xlu0 %v4843_v56, %s3961_s21  ;;  %v3689_v60 = vpack.c.bf16 %v907_v26, %v907_v26  ;;  %v908_v46 = vmax.f32 %v820_v42, 0.0  ;;  %v4880_v26 = vsel %vm1502_vm11, 0.0, %v4381_v63 }
 0x1fb   : > { %2228 = vst.msk [vmem:[#allocation2 + $0x58] sm:$0xff] %vm2219_vm13, %v2140_v34  ;;  %3875 = vmatprep.mubr.msk.bf16.mxu1 %vm1600_vm9, %v2802_v29  ;;  %v956_v29 = vadd.s32 224, %v4065_v21  ;;  %v3692_v61 = vpack.c.bf16 %v910_v37, %v910_v37 }
 0x1fc   : > { %v1691_v34 = vpop.permute.xlu1 %1690  ;;  %3230 = vst.msk [vmem:[%s4695_s13 + $0x38] sm:$0xf] %vm3215_vm10, %v3691_v19  ;;  %3228 = vst.msk [vmem:[%s4695_s13 + $0x30] sm:$0xf] %vm3215_vm10, %v3689_v60 }
 0x1fd   : > { %1778 = vst.msk [vmem:[#allocation2 + $0x70] sm:$0xff] %vm1768_vm5, %v1691_v34  ;;  %v1160_v21 = vand.u32 15, %v956_v29 }
 0x1fe   : > { %v2273_v11 = vpop.permute.xlu0 %2272  ;;  %1940 = vst.msk [vmem:[#allocation2 + $0x77] sm:$0xff] %vm1929_vm1, %v1854_v23  ;;  %1734 = vrot.lane.b32.xlu1 %v4398_v24, %s3955_s16  ;;  %1732 = vrot.lane.b32.xlu0 %v4381_v63, %s3955_s16  ;;  %v3690_v23 = vpack.c.bf16 %v908_v46, %v908_v46 }
 0x1ff   : > { %3231 = vst.msk [vmem:[%s4695_s13 + $0x3c] sm:$0xf] %vm3215_vm10, %v3692_v61  ;;  %vm1500_vm14 = vcmp.eq.s32.totalorder %v1160_v21, 0 }
 0x200   : > { %v1852_v44 = vpop.permute.xlu1 %1851  ;;  %3229 = vst.msk [vmem:[%s4695_s13 + $0x34] sm:$0xf] %vm3215_vm10, %v3690_v23  ;;  %v4888_v43 = vsel %vm1500_vm14, 0.0, %v4388_v14 }
 0x201   : > { %1939 = vst.msk [vmem:[#allocation2 + $0x6f] sm:$0xff] %vm1929_vm1, %v1852_v44 }
 0x202   : > { %v1850_v8 = vpop.permute.xlu0 %1849  ;;  %1895 = vrot.lane.b32.xlu1 %v4398_v24, %s3961_s21  ;;  %1728 = vrot.lane.b32.xlu0 %v4388_v14, %s3955_s16 }
 0x203   : > { %1938 = vst.msk [vmem:[#allocation2 + $0x67] sm:$0xff] %vm1929_vm1, %v1850_v8 }
 0x204   : > { %2101 = vst.msk [vmem:[#allocation2 + $0x69] sm:$0xff] %vm2090_vm12, %v4798_v5  ;;  %v2017_v37 = vpop.permute.xlu1 %2016 }
 0x205   : > { %2102 = vst.msk [vmem:[#allocation2 + $0x71] sm:$0xff] %vm2090_vm12, %v2017_v37 }
 0x206   : > { %v2269_v42 = vpop.permute.xlu0 %2268  ;;  %2231 = vst.msk [vmem:[#allocation2 + $0x70] sm:$0xff] %vm2219_vm13, %v2146_v49  ;;  %1730 = vrot.lane.b32.xlu1 %v4400_v28, %s3955_s16  ;;  %1893 = vrot.lane.b32.xlu0 %v4880_v26, %s3961_s21 }
 0x207   : > { %2357 = vst.msk [vmem:[#allocation2 + $0x57] sm:$0xff] %vm2348_vm2, %v2269_v42 }
 0x208   : > { %v2142_v5 = vpop.permute.xlu1 %2141 }
 0x20a   : > { %v2529_v20 = vpop.permute.xlu0 %2528  ;;  %1891 = vrot.lane.b32.xlu1 %v4400_v28, %s3961_s21  ;;  %1889 = vrot.lane.b32.xlu0 %v4888_v43, %s3961_s21 }
 0x20c   : > { %v2271_v34 = vpop.permute.xlu1 %2270 }
 0x20e   : > { %v2658_v49 = vpop.permute.xlu0 %2657  ;;  %2409 = vrot.lane.b32.xlu1 %v4235_v32, %s3959_s19  ;;  %2407 = vrot.lane.b32.xlu0 %v4273_v51, %s3959_s19 }
 0x210   : > { %v2013_v19 = vpop.permute.xlu1 %2012 }
 0x211   : > { %2100 = vst.msk [vmem:[#allocation2 + $0x61] sm:$0xff] %vm2090_vm12, %v2013_v19 }
 0x212   : > { %v2404_v35 = vpop.permute.xlu0 %2403  ;;  %2229 = vst.msk [vmem:[#allocation2 + $0x60] sm:$0xff] %vm2219_vm13, %v2142_v5  ;;  %2230 = vst.msk [vmem:[#allocation2 + $0x68] sm:$0xff] %vm2219_vm13, %v4807_v58  ;;  %2534 = vrot.lane.b32.xlu1 %v4247_v38, %s3960_s20  ;;  %2532 = vrot.lane.b32.xlu0 %v4180_v17, %s3960_s20  ;;  %v3851_v38 = vpop.f32.mrb[4].mxu1 }
 0x213   : > { %2358 = vst.msk [vmem:[#allocation2 + $0x5f] sm:$0xff] %vm2348_vm2, %v2271_v34  ;;  %2359 = vst.msk [vmem:[#allocation2 + $0x67] sm:$0xff] %vm2348_vm2, %v2273_v11  ;;  %v841_v11 = vadd.f32 %v3851_v38, %v4674_v59 }
 0x214   : > { %2360 = vst.msk [vmem:[#allocation2 + $0x6f] sm:$0xff] %vm2348_vm2, %v4838_v9  ;;  %v2406_v51 = vpop.permute.xlu1 %2405 }
 0x215   : > { %2489 = vst.msk [vmem:[#allocation2 + $0x61] sm:$0xff] %vm2477_vm3, %v2404_v35  ;;  %2488 = vst.msk [vmem:[#allocation2 + $0x59] sm:$0xff] %vm2477_vm3, %v4742_v55  ;;  %v913_v29 = vmax.f32 %v841_v11, 0.0 }
 0x216   : > { %v2400_v58 = vpop.permute.xlu0 %2399  ;;  %2490 = vst.msk [vmem:[#allocation2 + $0x69] sm:$0xff] %vm2477_vm3, %v2406_v51  ;;  %2538 = vrot.lane.b32.xlu1 %v4235_v32, %s3960_s20  ;;  %2536 = vrot.lane.b32.xlu0 %v4251_v41, %s3960_s20 }
 0x217   : > { %2487 = vst.msk [vmem:[#allocation2 + $0x51] sm:$0xff] %vm2477_vm3, %v2400_v58  ;;  %v3695_v23 = vpack.c.bf16 %v913_v29, %v913_v29 }
 0x218   : > { %2616 = vst.msk [vmem:[#allocation2 + $0x50] sm:$0xff] %vm2606_vm4, %v2529_v20  ;;  %2617 = vst.msk [vmem:[#allocation2 + $0x58] sm:$0xff] %vm2606_vm4, %v4751_v12  ;;  %v1703_v55 = vpop.permute.xlu1 %1702  ;;  %v832_v12 = vpop.f32.mrb[5].mxu1 }
 0x219   : > { %2745 = vst.msk [vmem:[#allocation2 + $0x4f] sm:$0xff] %vm2735_vm6, %v2658_v49  ;;  %2746 = vst.msk [vmem:[#allocation2 + $0x57] sm:$0xff] %vm2735_vm6, %v4796_v18  ;;  %v833_v18 = vadd.f32 %v4674_v59, %v832_v12  ;;  %v3852_v60 = vpop.f32.mrb[6].mxu1 }
 0x21a   : > { %v1701_v9 = vpop.permute.xlu0 %1700  ;;  %1784 = vst.msk [vmem:[#allocation2 + $0xa0] sm:$0xff] %vm1768_vm5, %v1703_v55  ;;  %2663 = vrot.lane.b32.xlu1 %v4659_v15, %s3958_s18  ;;  %2661 = vrot.lane.b32.xlu0 %v4180_v17, %s3958_s18  ;;  %v844_v46 = vadd.f32 %v3852_v60, %v4674_v59  ;;  %v835_v61 = vpop.f32.mrb[7].mxu1 }
 0x21b   : > { %1783 = vst.msk [vmem:[#allocation2 + $0x98] sm:$0xff] %vm1768_vm5, %v1701_v9  ;;  %v911_v21 = vmax.f32 %v833_v18, 0.0  ;;  %v836_v37 = vadd.f32 %v4674_v59, %v835_v61 }
 0x21c   : > { %v1864_v44 = vpop.permute.xlu1 %1863  ;;  %v914_v15 = vmax.f32 %v844_v46, 0.0  ;;  %3234 = vst.msk [vmem:[%s4695_s13 + $0x48] sm:$0xf] %vm3215_vm10, %v3695_v23 }
 0x21d   : > { %1945 = vst.msk [vmem:[#allocation2 + $0x9f] sm:$0xff] %vm1929_vm1, %v1864_v44  ;;  %v3693_v5 = vpack.c.bf16 %v911_v21, %v911_v21  ;;  %v912_v20 = vmax.f32 %v836_v37, 0.0 }
 0x21e   : > { %v4934_v8 = vpop.permute.xlu0 %2022  ;;  %2667 = vrot.lane.b32.xlu1 %v4636_v3, %s3958_s18  ;;  %2665 = vrot.lane.b32.xlu0 %v4251_v41, %s3958_s18  ;;  %v3696_v49 = vpack.c.bf16 %v914_v15, %v914_v15 }
 0x21f   : > { %3232 = vst.msk [vmem:[%s4695_s13 + $0x40] sm:$0xf] %vm3215_vm10, %v3693_v5  ;;  %v3694_v51 = vpack.c.bf16 %v912_v20, %v912_v20 }
 0x220   : > { %v2774_v17 = vld [vmem:[#allocation2 + $0x48] sm:$0xff]  ;;  %v2775_v42 = vld [vmem:[#allocation2 + $0x50] sm:$0xff]  ;;  %v1699_v19 = vpop.permute.xlu1 %1698  ;;  %3235 = vst.msk [vmem:[%s4695_s13 + $0x4c] sm:$0xf] %vm3215_vm10, %v3696_v49 }
 0x221   : > { %v2803_v34 = vpack.c.bf16 %v2775_v42, %v2774_v17  ;;  %1782 = vst.msk [vmem:[#allocation2 + $0x90] sm:$0xff] %vm1768_vm5, %v1699_v19 }
 0x222   : > { %v1697_v35 = vpop.permute.xlu0 %1696  ;;  %2153 = vrot.lane.b32.xlu1 %v4249_v39, %s3957_s17  ;;  %2151 = vrot.lane.b32.xlu0 %v4235_v32, %s3957_s17  ;;  %3233 = vst.msk [vmem:[%s4695_s13 + $0x44] sm:$0xf] %vm3215_vm10, %v3694_v51  ;;  %v3855_v32 = vpop.f32.mrb[8].mxu1 }
 0x223   : > { %1781 = vst.msk [vmem:[#allocation2 + $0x88] sm:$0xff] %vm1768_vm5, %v1697_v35  ;;  %3876 = vmatmul.mubr.msk.bf16.gmra.mrb[24].mxu1 %vm1600_vm9, %v2803_v34  ;;  %v857_v9 = vadd.f32 %v3855_v32, %v4674_v59  ;;  %v848_v11 = vpop.f32.mrb[9].mxu1 }
 0x224   : > { %v1860_v41 = vpop.permute.xlu1 %1859  ;;  %v849_v12 = vadd.f32 %v4674_v59, %v848_v11  ;;  %v3856_v29 = vpop.f32.mrb[10].mxu1 }
 0x225   : > { %1943 = vst.msk [vmem:[#allocation2 + $0x8f] sm:$0xff] %vm1929_vm1, %v1860_v41  ;;  %v917_v46 = vmax.f32 %v857_v9, 0.0  ;;  %v860_v61 = vadd.f32 %v3856_v29, %v4674_v59  ;;  %v851_v23 = vpop.f32.mrb[11].mxu1 }
 0x226   : > { %v1862_v58 = vpop.permute.xlu0 %1861  ;;  %2157 = vrot.lane.b32.xlu1 %v4303_v6, %s3957_s17  ;;  %2155 = vrot.lane.b32.xlu0 %v4296_v1, %s3957_s17  ;;  %v915_v44 = vmax.f32 %v849_v12, 0.0  ;;  %v852_v37 = vadd.f32 %v4674_v59, %v851_v23  ;;  %v3859_v15 = vpop.f32.mrb[12].mxu1 }
 0x227   : > { %1944 = vst.msk [vmem:[#allocation2 + $0x97] sm:$0xff] %vm1929_vm1, %v1862_v58  ;;  %v918_v21 = vmax.f32 %v860_v61, 0.0  ;;  %v873_v42 = vadd.f32 %v3859_v15, %v4674_v59  ;;  %v864_v5 = vpop.f32.mrb[13].mxu1 }
 0x228   : > { %v2025_v38 = vpop.permute.xlu1 %2024  ;;  %v3697_v17 = vpack.c.bf16 %v915_v44, %v915_v44  ;;  %v916_v19 = vmax.f32 %v852_v37, 0.0  ;;  %v865_v35 = vadd.f32 %v4674_v59, %v864_v5  ;;  %v3860_v41 = vpop.f32.mrb[14].mxu1 }
 0x229   : > { %2106 = vst.msk [vmem:[#allocation2 + $0x91] sm:$0xff] %vm2090_vm12, %v2025_v38  ;;  %v3700_v49 = vpack.c.bf16 %v918_v21, %v918_v21  ;;  %v921_v51 = vmax.f32 %v873_v42, 0.0  ;;  %v867_v32 = vpop.f32.mrb[15].mxu1 }
 0x22a   : > { %v2019_v55 = vpop.permute.xlu0 %2018  ;;  %2282 = vrot.lane.b32.xlu1 %v4249_v39, %s3962_s22  ;;  %2280 = vrot.lane.b32.xlu0 %v4636_v3, %s3962_s22  ;;  %v3699_v3 = vpack.c.bf16 %v917_v46, %v917_v46  ;;  %3236 = vst.msk [vmem:[%s4695_s13 + $0x50] sm:$0xf] %vm3215_vm10, %v3697_v17  ;;  %v3698_v58 = vpack.c.bf16 %v916_v19, %v916_v19  ;;  %v919_v38 = vmax.f32 %v865_v35, 0.0  ;;  %v3863_v12 = vpop.f32.mrb[16].mxu1 }
 0x22b   : > { %2103 = vst.msk [vmem:[#allocation2 + $0x79] sm:$0xff] %vm2090_vm12, %v2019_v55  ;;  %v876_v55 = vadd.f32 %v3860_v41, %v4674_v59  ;;  %v3703_v9 = vpack.c.bf16 %v921_v51, %v921_v51  ;;  %v868_v11 = vadd.f32 %v4674_v59, %v867_v32  ;;  %v880_v44 = vpop.f32.mrb[17].mxu1 }
 0x22c   : > { %v2150_v18 = vpop.permute.xlu1 %2149  ;;  %3238 = vst.msk [vmem:[%s4695_s13 + $0x58] sm:$0xf] %vm3215_vm10, %v3699_v3  ;;  %3239 = vst.msk [vmem:[%s4695_s13 + $0x5c] sm:$0xf] %vm3215_vm10, %v3700_v49  ;;  %v881_v21 = vadd.f32 %v4674_v59, %v880_v44  ;;  %v3864_v37 = vpop.f32.mrb[18].mxu1 }
 0x22d   : > { %3237 = vst.msk [vmem:[%s4695_s13 + $0x54] sm:$0xf] %vm3215_vm10, %v3698_v58  ;;  %v922_v46 = vmax.f32 %v876_v55, 0.0  ;;  %3242 = vst.msk [vmem:[%s4695_s13 + $0x68] sm:$0xf] %vm3215_vm10, %v3703_v9  ;;  %v920_v61 = vmax.f32 %v868_v11, 0.0 }
 0x22e   : > { %v2148_v60 = vpop.permute.xlu0 %2147  ;;  %2286 = vrot.lane.b32.xlu1 %v4303_v6, %s3962_s22  ;;  %2284 = vrot.lane.b32.xlu0 %v4758_v40, %s3962_s22  ;;  %v883_v17 = vpop.f32.mrb[19].mxu1 }
 0x22f   : > { %2232 = vst.msk [vmem:[#allocation2 + $0x78] sm:$0xff] %vm2219_vm13, %v2148_v60  ;;  %v3701_v60 = vpack.c.bf16 %v919_v38, %v919_v38  ;;  %v3704_v23 = vpack.c.bf16 %v922_v46, %v922_v46  ;;  %v3702_v15 = vpack.c.bf16 %v920_v61, %v920_v61  ;;  %v884_v49 = vadd.f32 %v4674_v59, %v883_v17 }
 0x230   : > { %v2279_v20 = vpop.permute.xlu1 %2278 }
 0x231   : > { %3240 = vst.msk [vmem:[%s4695_s13 + $0x60] sm:$0xf] %vm3215_vm10, %v3701_v60  ;;  %3243 = vst.msk [vmem:[%s4695_s13 + $0x6c] sm:$0xf] %vm3215_vm10, %v3704_v23  ;;  %v924_v35 = vmax.f32 %v884_v49, 0.0 }
 0x232   : > { %v1858_v34 = vpop.permute.xlu0 %1857  ;;  %2413 = vrot.lane.b32.xlu1 %v4296_v1, %s3959_s19  ;;  %2411 = vrot.lane.b32.xlu0 %v4268_v50, %s3959_s19  ;;  %v889_v50 = vadd.f32 %v3863_v12, %v4674_v59  ;;  %3241 = vst.msk [vmem:[%s4695_s13 + $0x64] sm:$0xf] %vm3215_vm10, %v3702_v15 }
 0x233   : > { %1942 = vst.msk [vmem:[#allocation2 + $0x87] sm:$0xff] %vm1929_vm1, %v1858_v34  ;;  %v923_v34 = vmax.f32 %v881_v21, 0.0  ;;  %v3706_v58 = vpack.c.bf16 %v924_v35, %v924_v35 }
 0x234   : > { %2105 = vst.msk [vmem:[#allocation2 + $0x89] sm:$0xff] %vm2090_vm12, %v4934_v8  ;;  %v2021_v8 = vpop.permute.xlu1 %2020  ;;  %v925_v3 = vmax.f32 %v889_v50, 0.0 }
 0x235   : > { %2104 = vst.msk [vmem:[#allocation2 + $0x81] sm:$0xff] %vm2090_vm12, %v2021_v8  ;;  %v3705_v19 = vpack.c.bf16 %v923_v34, %v923_v34 }
 0x236   : > { %v2277_v29 = vpop.permute.xlu0 %2276  ;;  %2233 = vst.msk [vmem:[#allocation2 + $0x80] sm:$0xff] %vm2219_vm13, %v2150_v18  ;;  %2417 = vrot.lane.b32.xlu1 %v4285_v57, %s3959_s19  ;;  %2415 = vrot.lane.b32.xlu0 %v4408_v33, %s3959_s19  ;;  %v892_v18 = vadd.f32 %v3864_v37, %v4674_v59  ;;  %v3707_v33 = vpack.c.bf16 %v925_v3, %v925_v3 }
 0x237   : > { %2361 = vst.msk [vmem:[#allocation2 + $0x77] sm:$0xff] %vm2348_vm2, %v2277_v29  ;;  %2362 = vst.msk [vmem:[#allocation2 + $0x7f] sm:$0xff] %vm2348_vm2, %v2279_v20 }
 0x238   : > { %v1711_v42 = vpop.permute.xlu1 %1710  ;;  %v926_v20 = vmax.f32 %v892_v18, 0.0  ;;  %3246 = vst.msk [vmem:[%s4695_s13 + $0x78] sm:$0xf] %vm3215_vm10, %v3707_v33  ;;  %3244 = vst.msk [vmem:[%s4695_s13 + $0x70] sm:$0xf] %vm3215_vm10, %v3705_v19 }
 0x239   : > { %1788 = vst.msk [vmem:[#allocation2 + $0xc0] sm:$0xff] %vm1768_vm5, %v1711_v42 }
 0x23a   : > { %v1709_v5 = vpop.permute.xlu0 %1708  ;;  %2542 = vrot.lane.b32.xlu1 %v4296_v1, %s3960_s20  ;;  %2540 = vrot.lane.b32.xlu0 %v4249_v39, %s3960_s20  ;;  %v3708_v59 = vpack.c.bf16 %v926_v20, %v926_v20  ;;  %3245 = vst.msk [vmem:[%s4695_s13 + $0x74] sm:$0xf] %vm3215_vm10, %v3706_v58 }
 0x23b   : > { %1787 = vst.msk [vmem:[#allocation2 + $0xb8] sm:$0xff] %vm1768_vm5, %v1709_v5 }
 0x23c   : > { %v1872_v51 = vpop.permute.xlu1 %1871  ;;  %3247 = vst.msk [vmem:[%s4695_s13 + $0x7c] sm:$0xf] %vm3215_vm10, %v3708_v59 }
 0x23d   : > { %1949 = vst.msk [vmem:[#allocation2 + $0xbf] sm:$0xff] %vm1929_vm1, %v1872_v51 }
 0x23e   : > { %v2031_v41 = vpop.permute.xlu0 %2030  ;;  %2546 = vrot.lane.b32.xlu1 %v4285_v57, %s3960_s20  ;;  %2544 = vrot.lane.b32.xlu0 %v4303_v6, %s3960_s20 }
 0x240   : > { %v1707_v1 = vpop.permute.xlu1 %1706 }
 0x241   : > { %1786 = vst.msk [vmem:[#allocation2 + $0xb0] sm:$0xff] %vm1768_vm5, %v1707_v1 }
 0x242   : > { %v1705_v38 = vpop.permute.xlu0 %1704  ;;  %2671 = vrot.lane.b32.xlu1 %v4758_v40, %s3958_s18  ;;  %2669 = vrot.lane.b32.xlu0 %v4249_v39, %s3958_s18 }
 0x243   : > { %1785 = vst.msk [vmem:[#allocation2 + $0xa8] sm:$0xff] %vm1768_vm5, %v1705_v38 }
 0x244   : > { %v1868_v55 = vpop.permute.xlu1 %1867 }
 0x245   : > { %1947 = vst.msk [vmem:[#allocation2 + $0xaf] sm:$0xff] %vm1929_vm1, %v1868_v55 }
 0x246   : > { %v1870_v32 = vpop.permute.xlu0 %1869  ;;  %2675 = vrot.lane.b32.xlu1 %v4727_v48, %s3958_s18  ;;  %2673 = vrot.lane.b32.xlu0 %v4303_v6, %s3958_s18 }
 0x247   : > { %1948 = vst.msk [vmem:[#allocation2 + $0xb7] sm:$0xff] %vm1929_vm1, %v1870_v32 }
 0x248   : > { %v2033_v9 = vpop.permute.xlu1 %2032 }
 0x249   : > { %2110 = vst.msk [vmem:[#allocation2 + $0xb1] sm:$0xff] %vm2090_vm12, %v2033_v9 }
 0x24a   : > { %v2027_v11 = vpop.permute.xlu0 %2026  ;;  %2036 = vrot.lane.b32.xlu1 %v4454_v45, %s3954_s15  ;;  %2034 = vrot.lane.b32.xlu0 %v4324_v27, %s3954_s15 }
 0x24b   : > { %2107 = vst.msk [vmem:[#allocation2 + $0x99] sm:$0xff] %vm2090_vm12, %v2027_v11 }
 0x24c   : > { %v2029_v39 = vpop.permute.xlu1 %2028 }
 0x24e   : > { %v1866_v40 = vpop.permute.xlu0 %1865  ;;  %2161 = vrot.lane.b32.xlu1 %v4301_v4, %s3957_s17  ;;  %2159 = vrot.lane.b32.xlu0 %v4285_v57, %s3957_s17 }
 0x24f   : > { %1946 = vst.msk [vmem:[#allocation2 + $0xa7] sm:$0xff] %vm1929_vm1, %v1866_v40 }
 0x250   : > { %2108 = vst.msk [vmem:[#allocation2 + $0xa1] sm:$0xff] %vm2090_vm12, %v2029_v39  ;;  %2109 = vst.msk [vmem:[#allocation2 + $0xa9] sm:$0xff] %vm2090_vm12, %v2031_v41  ;;  %v1719_v6 = vpop.permute.xlu1 %1718 }
 0x251   : > { %1792 = vst.msk [vmem:[#allocation2 + $0xe0] sm:$0xff] %vm1768_vm5, %v1719_v6 }
 0x252   : > { %v1717_v12 = vpop.permute.xlu0 %1716  ;;  %2165 = vrot.lane.b32.xlu1 %v4336_v31, %s3957_s17  ;;  %2163 = vrot.lane.b32.xlu0 %v4324_v27, %s3957_s17 }
 0x253   : > { %1791 = vst.msk [vmem:[#allocation2 + $0xd8] sm:$0xff] %vm1768_vm5, %v1717_v12 }
 0x254   : > { %v1880_v8 = vpop.permute.xlu1 %1879 }
 0x255   : > { %1953 = vst.msk [vmem:[#allocation2 + $0xdf] sm:$0xff] %vm1929_vm1, %v1880_v8 }
 0x256   : > { %v1713_v29 = vpop.permute.xlu0 %1712  ;;  %2290 = vrot.lane.b32.xlu1 %v4301_v4, %s3962_s22  ;;  %2288 = vrot.lane.b32.xlu0 %v4727_v48, %s3962_s22 }
 0x257   : > { %1789 = vst.msk [vmem:[#allocation2 + $0xc8] sm:$0xff] %vm1768_vm5, %v1713_v29 }
 0x258   : > { %v1715_v57 = vpop.permute.xlu1 %1714 }
 0x259   : > { %1790 = vst.msk [vmem:[#allocation2 + $0xd0] sm:$0xff] %vm1768_vm5, %v1715_v57 }
 0x25a   : > { %v1878_v60 = vpop.permute.xlu0 %1877  ;;  %2294 = vrot.lane.b32.xlu1 %v4336_v31, %s3962_s22  ;;  %2292 = vrot.lane.b32.xlu0 %v4811_v0, %s3962_s22 }
 0x25b   : > { %1952 = vst.msk [vmem:[#allocation2 + $0xd7] sm:$0xff] %vm1929_vm1, %v1878_v60 }
 0x25c   : > { %v1876_v46 = vpop.permute.xlu1 %1875 }
 0x25d   : > { %1951 = vst.msk [vmem:[#allocation2 + $0xcf] sm:$0xff] %vm1929_vm1, %v1876_v46 }
 0x25e   : > { %v1874_v50 = vpop.permute.xlu0 %1873  ;;  %2421 = vrot.lane.b32.xlu1 %v4324_v27, %s3959_s19  ;;  %2419 = vrot.lane.b32.xlu0 %v4403_v25, %s3959_s19 }
 0x25f   : > { %1950 = vst.msk [vmem:[#allocation2 + $0xc7] sm:$0xff] %vm1929_vm1, %v1874_v50 }
 0x260   : > { %v1727_v48 = vpop.permute.xlu1 %1726 }
 0x261   : > { %1796 = vst.msk [vmem:[#allocation2 + $0x100] sm:$0xff] %vm1768_vm5, %v1727_v48 }
 0x262   : > { %v1725_v61 = vpop.permute.xlu0 %1724  ;;  %2425 = vrot.lane.b32.xlu1 %v4312_v13, %s3959_s19  ;;  %2423 = vrot.lane.b32.xlu0 %v4454_v45, %s3959_s19 }
 0x263   : > { %1795 = vst.msk [vmem:[#allocation2 + $0xf8] sm:$0xff] %vm1768_vm5, %v1725_v61 }
 0x264   : > { %v1888_v44 = vpop.permute.xlu1 %1887 }
 0x265   : > { %1957 = vst.msk [vmem:[#allocation2 + $0xff] sm:$0xff] %vm1929_vm1, %v1888_v44 }
 0x266   : > { %v1721_v23 = vpop.permute.xlu0 %1720  ;;  %2550 = vrot.lane.b32.xlu1 %v4324_v27, %s3960_s20  ;;  %2548 = vrot.lane.b32.xlu0 %v4301_v4, %s3960_s20 }
 0x267   : > { %1793 = vst.msk [vmem:[#allocation2 + $0xe8] sm:$0xff] %vm1768_vm5, %v1721_v23 }
 0x268   : > { %v1723_v25 = vpop.permute.xlu1 %1722 }
 0x269   : > { %1794 = vst.msk [vmem:[#allocation2 + $0xf0] sm:$0xff] %vm1768_vm5, %v1723_v25 }
 0x26a   : > { %v1886_v3 = vpop.permute.xlu0 %1885  ;;  %2554 = vrot.lane.b32.xlu1 %v4312_v13, %s3960_s20  ;;  %2552 = vrot.lane.b32.xlu0 %v4336_v31, %s3960_s20 }
 0x26b   : > { %1956 = vst.msk [vmem:[#allocation2 + $0xf7] sm:$0xff] %vm1929_vm1, %v1886_v3 }
 0x26c   : > { %v1884_v45 = vpop.permute.xlu1 %1883 }
 0x26d   : > { %1955 = vst.msk [vmem:[#allocation2 + $0xef] sm:$0xff] %vm1929_vm1, %v1884_v45 }
 0x26e   : > { %v1882_v21 = vpop.permute.xlu0 %1881  ;;  %2679 = vrot.lane.b32.xlu1 %v4811_v0, %s3958_s18  ;;  %2677 = vrot.lane.b32.xlu0 %v4301_v4, %s3958_s18 }
 0x26f   : > { %1954 = vst.msk [vmem:[#allocation2 + $0xe7] sm:$0xff] %vm1929_vm1, %v1882_v21 }
 0x270   : > { %v1735_v27 = vpop.permute.xlu1 %1734 }
 0x272   : > { %v1733_v37 = vpop.permute.xlu0 %1732  ;;  %2683 = vrot.lane.b32.xlu1 %v4801_v22, %s3958_s18  ;;  %2681 = vrot.lane.b32.xlu0 %v4336_v31, %s3958_s18 }
 0x274   : > { %v1896_v15 = vpop.permute.xlu1 %1895 }
 0x276   : > { %v1729_v18 = vpop.permute.xlu0 %1728  ;;  %2040 = vrot.lane.b32.xlu1 %v4463_v54, %s3954_s15  ;;  %2038 = vrot.lane.b32.xlu0 %v4312_v13, %s3954_s15 }
 0x277   : > { %1797 = vst.msk [vmem:[#allocation2 + $0x108] sm:$0xff] %vm1768_vm5, %v1729_v18 }
 0x278   : > { %v1731_v0 = vpop.permute.xlu1 %1730 }
 0x279   : > { %1798 = vst.msk [vmem:[#allocation2 + $0x110] sm:$0xff] %vm1768_vm5, %v1731_v0  ;;  %vm3440_vm5 = vcmask 257152  }
 0x27a   : > { %v1894_v4 = vpop.permute.xlu0 %1893  ;;  %2044 = vrot.lane.b32.xlu1 %v4501_v16, %s3954_s15  ;;  %2042 = vrot.lane.b32.xlu0 %v4358_v47, %s3954_s15 }
 0x27b   : > { %1960 = vst.msk [vmem:[#allocation2 + $0x117] sm:$0xff] %vm1929_vm1, %v1894_v4 }
 0x27c   : > { %v1892_v31 = vpop.permute.xlu1 %1891 }
 0x27d   : > { %1959 = vst.msk [vmem:[#allocation2 + $0x10f] sm:$0xff] %vm1929_vm1, %v1892_v31 }
 0x27e   : > { %v1890_v17 = vpop.permute.xlu0 %1889  ;;  %2169 = vrot.lane.b32.xlu1 %v4334_v30, %s3957_s17  ;;  %2167 = vrot.lane.b32.xlu0 %v4312_v13, %s3957_s17 }
 0x27f   : > { %1958 = vst.msk [vmem:[#allocation2 + $0x107] sm:$0xff] %vm1929_vm1, %v1890_v17 }
 0x280   : > { %v2410_v42 = vpop.permute.xlu1 %2409 }
 0x281   : > { %2492 = vst.msk [vmem:[#allocation2 + $0x79] sm:$0xff] %vm2477_vm3, %v2410_v42 }
 0x282   : > { %v2408_v5 = vpop.permute.xlu0 %2407  ;;  %2173 = vrot.lane.b32.xlu1 %v4370_v53, %s3957_s17  ;;  %2171 = vrot.lane.b32.xlu0 %v4358_v47, %s3957_s17 }
 0x283   : > { %2491 = vst.msk [vmem:[#allocation2 + $0x71] sm:$0xff] %vm2477_vm3, %v2408_v5 }
 0x284   : > { %v2535_v33 = vpop.permute.xlu1 %2534 }
 0x285   : > { %2619 = vst.msk [vmem:[#allocation2 + $0x68] sm:$0xff] %vm2606_vm4, %v2535_v33 }
 0x286   : > { %v2533_v34 = vpop.permute.xlu0 %2532  ;;  %2298 = vrot.lane.b32.xlu1 %v4334_v30, %s3962_s22  ;;  %2296 = vrot.lane.b32.xlu0 %v4801_v22, %s3962_s22 }
 0x287   : > { %2618 = vst.msk [vmem:[#allocation2 + $0x60] sm:$0xff] %vm2606_vm4, %v2533_v34 }
 0x288   : > { %v2539_v13 = vpop.permute.xlu1 %2538 }
 0x289   : > { %2621 = vst.msk [vmem:[#allocation2 + $0x78] sm:$0xff] %vm2606_vm4, %v2539_v13  ;;  %v5289_v13 = vld [vmem:[%s5513_s6] ss:$0 sm:$0xff] }
 0x28a   : > { %v2537_v49 = vpop.permute.xlu0 %2536  ;;  %2302 = vrot.lane.b32.xlu1 %v4370_v53, %s3962_s22  ;;  %2300 = vrot.lane.b32.xlu0 %v4843_v56, %s3962_s22 }
 0x28b   : > { %2620 = vst.msk [vmem:[#allocation2 + $0x70] sm:$0xff] %vm2606_vm4, %v2537_v49 }
 0x28c   : > { %v2664_v20 = vpop.permute.xlu1 %2663 }
 0x28d   : > { %2748 = vst.msk [vmem:[#allocation2 + $0x67] sm:$0xff] %vm2735_vm6, %v2664_v20 }
 0x28e   : > { %v2662_v19 = vpop.permute.xlu0 %2661  ;;  %2429 = vrot.lane.b32.xlu1 %v4358_v47, %s3959_s19  ;;  %2427 = vrot.lane.b32.xlu0 %v4463_v54, %s3959_s19 }
 0x28f   : > { %2747 = vst.msk [vmem:[#allocation2 + $0x5f] sm:$0xff] %vm2735_vm6, %v2662_v19 }
 0x290   : > { %v2668_v22 = vpop.permute.xlu1 %2667 }
 0x291   : > { %2750 = vst.msk [vmem:[#allocation2 + $0x77] sm:$0xff] %vm2735_vm6, %v2668_v22  ;;  %v5521_v22 = vld [vmem:[#allocation3_spill] sm:$0xff] }
 0x292   : > { %v2666_v35 = vpop.permute.xlu0 %2665  ;;  %2433 = vrot.lane.b32.xlu1 %v4345_v36, %s3959_s19  ;;  %2431 = vrot.lane.b32.xlu0 %v4501_v16, %s3959_s19 }
 0x293   : > { %2749 = vst.msk [vmem:[#allocation2 + $0x6f] sm:$0xff] %vm2735_vm6, %v2666_v35 }
 0x294   : > { %v2154_v59 = vpop.permute.xlu1 %2153 }
 0x295   : > { %2235 = vst.msk [vmem:[#allocation2 + $0x90] sm:$0xff] %vm2219_vm13, %v2154_v59 }
 0x296   : > { %v2152_v51 = vpop.permute.xlu0 %2151  ;;  %v2776_v41 = vld [vmem:[#allocation2 + $0x58] sm:$0xff]  ;;  %v2777_v58 = vld [vmem:[#allocation2 + $0x60] sm:$0xff]  ;;  %2558 = vrot.lane.b32.xlu1 %v4358_v47, %s3960_s20  ;;  %2556 = vrot.lane.b32.xlu0 %v4334_v30, %s3960_s20 }
 0x297   : > { %2234 = vst.msk [vmem:[#allocation2 + $0x88] sm:$0xff] %vm2219_vm13, %v2152_v51  ;;  %v2804_v54 = vpack.c.bf16 %v2777_v58, %v2776_v41 }
 0x298   : > { %v2158_v1 = vpop.permute.xlu1 %2157 }
 0x299   : > { %3879 = vmatprep.mubr.msk.bf16.mxu1 %vm1600_vm9, %v2804_v54  ;;  %2237 = vst.msk [vmem:[#allocation2 + $0xa0] sm:$0xff] %vm2219_vm13, %v2158_v1 }
 0x29a   : > { %v2156_v38 = vpop.permute.xlu0 %2155  ;;  %v2778_v16 = vld [vmem:[#allocation2 + $0x68] sm:$0xff]  ;;  %v2779_v55 = vld [vmem:[#allocation2 + $0x70] sm:$0xff]  ;;  %2562 = vrot.lane.b32.xlu1 %v4345_v36, %s3960_s20  ;;  %2560 = vrot.lane.b32.xlu0 %v4370_v53, %s3960_s20 }
 0x29b   : > { %2236 = vst.msk [vmem:[#allocation2 + $0x98] sm:$0xff] %vm2219_vm13, %v2156_v38  ;;  %v2805_v32 = vpack.c.bf16 %v2779_v55, %v2778_v16  ;;  %v5522_v16 = vld [vmem:[#allocation4_spill] sm:$0xff] }
 0x29c   : > { %v2283_v47 = vpop.permute.xlu1 %2282 }
 0x29d   : > { %3880 = vmatmul.mubr.msk.bf16.gmra.mrb[28].mxu1 %vm1600_vm9, %v2805_v32  ;;  %2364 = vst.msk [vmem:[#allocation2 + $0x8f] sm:$0xff] %vm2348_vm2, %v2283_v47 }
 0x29e   : > { %v2281_v9 = vpop.permute.xlu0 %2280  ;;  %2687 = vrot.lane.b32.xlu1 %v4843_v56, %s3958_s18  ;;  %2685 = vrot.lane.b32.xlu0 %v4334_v30, %s3958_s18 }
 0x29f   : > { %2363 = vst.msk [vmem:[#allocation2 + $0x87] sm:$0xff] %vm2348_vm2, %v2281_v9 }
 0x2a0   : > { %v2287_v11 = vpop.permute.xlu1 %2286 }
 0x2a1   : > { %2366 = vst.msk [vmem:[#allocation2 + $0x9f] sm:$0xff] %vm2348_vm2, %v2287_v11 }
 0x2a2   : > { %v2285_v39 = vpop.permute.xlu0 %2284  ;;  %2691 = vrot.lane.b32.xlu1 %v4832_v10, %s3958_s18  ;;  %2689 = vrot.lane.b32.xlu0 %v4370_v53, %s3958_s18 }
 0x2a3   : > { %2365 = vst.msk [vmem:[#allocation2 + $0x97] sm:$0xff] %vm2348_vm2, %v2285_v39 }
 0x2a4   : > { %v2414_v40 = vpop.permute.xlu1 %2413 }
 0x2a5   : > { %2494 = vst.msk [vmem:[#allocation2 + $0x89] sm:$0xff] %vm2477_vm3, %v2414_v40 }
 0x2a6   : > { %v2412_v6 = vpop.permute.xlu0 %2411  ;;  %2048 = vrot.lane.b32.xlu1 %v4498_v2, %s3954_s15  ;;  %2046 = vrot.lane.b32.xlu0 %v4345_v36, %s3954_s15 }
 0x2a7   : > { %2493 = vst.msk [vmem:[#allocation2 + $0x81] sm:$0xff] %vm2477_vm3, %v2412_v6 }
 0x2a8   : > { %v2418_v30 = vpop.permute.xlu1 %2417 }
 0x2a9   : > { %2496 = vst.msk [vmem:[#allocation2 + $0x99] sm:$0xff] %vm2477_vm3, %v2418_v30 }
 0x2aa   : > { %v2416_v56 = vpop.permute.xlu0 %2415  ;;  %2052 = vrot.lane.b32.xlu1 %v4538_v7, %s3954_s15  ;;  %2050 = vrot.lane.b32.xlu0 %v4388_v14, %s3954_s15 }
 0x2ab   : > { %2495 = vst.msk [vmem:[#allocation2 + $0x91] sm:$0xff] %vm2477_vm3, %v2416_v56 }
 0x2ac   : > { %v2543_v53 = vpop.permute.xlu1 %2542 }
 0x2ad   : > { %2623 = vst.msk [vmem:[#allocation2 + $0x88] sm:$0xff] %vm2606_vm4, %v2543_v53 }
 0x2ae   : > { %v2541_v12 = vpop.permute.xlu0 %2540  ;;  %2177 = vrot.lane.b32.xlu1 %v4362_v52, %s3957_s17  ;;  %2175 = vrot.lane.b32.xlu0 %v4345_v36, %s3957_s17 }
 0x2af   : > { %2622 = vst.msk [vmem:[#allocation2 + $0x80] sm:$0xff] %vm2606_vm4, %v2541_v12 }
 0x2b0   : > { %v2547_v8 = vpop.permute.xlu1 %2546 }
 0x2b1   : > { %2625 = vst.msk [vmem:[#allocation2 + $0x98] sm:$0xff] %vm2606_vm4, %v2547_v8 }
 0x2b2   : > { %v2545_v29 = vpop.permute.xlu0 %2544  ;;  %2181 = vrot.lane.b32.xlu1 %v4400_v28, %s3957_s17  ;;  %2179 = vrot.lane.b32.xlu0 %v4388_v14, %s3957_s17 }
 0x2b3   : > { %2624 = vst.msk [vmem:[#allocation2 + $0x90] sm:$0xff] %vm2606_vm4, %v2545_v29 }
 0x2b4   : > { %v2672_v57 = vpop.permute.xlu1 %2671 }
 0x2b5   : > { %2752 = vst.msk [vmem:[#allocation2 + $0x87] sm:$0xff] %vm2735_vm6, %v2672_v57 }
 0x2b6   : > { %v2670_v60 = vpop.permute.xlu0 %2669  ;;  %2306 = vrot.lane.b32.xlu1 %v4362_v52, %s3962_s22  ;;  %2304 = vrot.lane.b32.xlu0 %v4832_v10, %s3962_s22 }
 0x2b7   : > { %2751 = vst.msk [vmem:[#allocation2 + $0x7f] sm:$0xff] %vm2735_vm6, %v2670_v60 }
 0x2b8   : > { %v5214_v36 = vpop.f32.mrb[20].mxu1  ;;  %v2676_v50 = vpop.permute.xlu1 %2675 }
 0x2b9   : > { %v5218_v46 = vpop.f32.mrb[21].mxu1  ;;  %2754 = vst.msk [vmem:[#allocation2 + $0x97] sm:$0xff] %vm2735_vm6, %v2676_v50 }
 0x2ba   : > { %v5220_v48 = vpop.f32.mrb[22].mxu1  ;;  %v2674_v61 = vpop.permute.xlu0 %2673  ;;  %2310 = vrot.lane.b32.xlu1 %v4400_v28, %s3962_s22  ;;  %2308 = vrot.lane.b32.xlu0 %v4888_v43, %s3962_s22  ;;  %v2929_v59 = vadd.f32 %v5289_v13, %v5218_v46 }
 0x2bb   : > { %v5223_v44 = vpop.f32.mrb[23].mxu1  ;;  %2753 = vst.msk [vmem:[#allocation2 + $0x8f] sm:$0xff] %vm2735_vm6, %v2674_v61  ;;  %v2940_v49 = vadd.f32 %v5220_v48, %v5289_v13 }
 0x2bc   : > { %v2037_v23 = vpop.permute.xlu1 %2036  ;;  %v2932_v41 = vadd.f32 %v5289_v13, %v5223_v44  ;;  %v3055_v47 = vmax.f32 %v2929_v59, 0.0 }
 0x2bd   : > { %2112 = vst.msk [vmem:[#allocation2 + $0xc1] sm:$0xff] %vm2090_vm12, %v2037_v23  ;;  %v3058_v51 = vmax.f32 %v2940_v49, 0.0 }
 0x2be   : > { %v2780_v10 = vld [vmem:[#allocation2 + $0x78] sm:$0xff]  ;;  %v2781_v25 = vld [vmem:[#allocation2 + $0x80] sm:$0xff]  ;;  %v2035_v3 = vpop.permute.xlu0 %2034  ;;  %2437 = vrot.lane.b32.xlu1 %v4388_v14, %s3959_s19  ;;  %2435 = vrot.lane.b32.xlu0 %v4498_v2, %s3959_s19  ;;  %v3056_v11 = vmax.f32 %v2932_v41, 0.0  ;;  %v3709_v53 = vpack.c.bf16 %v3055_v47, %v3055_v47 }
 0x2bf   : > { %v2806_v45 = vpack.c.bf16 %v2781_v25, %v2780_v10  ;;  %2111 = vst.msk [vmem:[#allocation2 + $0xb9] sm:$0xff] %vm2090_vm12, %v2035_v3  ;;  %v3712_v9 = vpack.c.bf16 %v3058_v51, %v3058_v51 }
 0x2c0   : > { %v2162_v21 = vpop.permute.xlu1 %2161  ;;  %v3710_v12 = vpack.c.bf16 %v3056_v11, %v3056_v11 }
 0x2c1   : > { %3883 = vmatprep.mubr.msk.bf16.mxu1 %vm1600_vm9, %v2806_v45  ;;  %2239 = vst.msk [vmem:[#allocation2 + $0xb0] sm:$0xff] %vm2219_vm13, %v2162_v21 }
 0x2c2   : > { %v2160_v27 = vpop.permute.xlu0 %2159  ;;  %v2782_v37 = vld [vmem:[#allocation2 + $0x88] sm:$0xff]  ;;  %v2783_v15 = vld [vmem:[#allocation2 + $0x90] sm:$0xff]  ;;  %2441 = vrot.lane.b32.xlu1 %v4381_v63, %s3959_s19  ;;  %2439 = vrot.lane.b32.xlu0 %v4538_v7, %s3959_s19 }
 0x2c3   : > { %2238 = vst.msk [vmem:[#allocation2 + $0xa8] sm:$0xff] %vm2219_vm13, %v2160_v27  ;;  %v2807_v18 = vpack.c.bf16 %v2783_v15, %v2782_v37 }
 0x2c4   : > { %v2166_v2 = vpop.permute.xlu1 %2165 }
 0x2c5   : > { %3884 = vmatmul.mubr.msk.bf16.gmra.mrb[32].mxu1 %vm1600_vm9, %v2807_v18  ;;  %2241 = vst.msk [vmem:[#allocation2 + $0xc0] sm:$0xff] %vm2219_vm13, %v2166_v2 }
 0x2c6   : > { %v2164_v0 = vpop.permute.xlu0 %2163  ;;  %2566 = vrot.lane.b32.xlu1 %v4388_v14, %s3960_s20  ;;  %2564 = vrot.lane.b32.xlu0 %v4362_v52, %s3960_s20 }
 0x2c7   : > { %2240 = vst.msk [vmem:[#allocation2 + $0xb8] sm:$0xff] %vm2219_vm13, %v2164_v0 }
 0x2c8   : > { %v2291_v4 = vpop.permute.xlu1 %2290 }
 0x2c9   : > { %2368 = vst.msk [vmem:[#allocation2 + $0xaf] sm:$0xff] %vm2348_vm2, %v2291_v4 }
 0x2ca   : > { %v2289_v31 = vpop.permute.xlu0 %2288  ;;  %2570 = vrot.lane.b32.xlu1 %v4381_v63, %s3960_s20  ;;  %2568 = vrot.lane.b32.xlu0 %v4400_v28, %s3960_s20 }
 0x2cb   : > { %2367 = vst.msk [vmem:[#allocation2 + $0xa7] sm:$0xff] %vm2348_vm2, %v2289_v31 }
 0x2cc   : > { %v2295_v7 = vpop.permute.xlu1 %2294 }
 0x2cd   : > { %2370 = vst.msk [vmem:[#allocation2 + $0xbf] sm:$0xff] %vm2348_vm2, %v2295_v7 }
 0x2ce   : > { %v2293_v17 = vpop.permute.xlu0 %2292  ;;  %2695 = vrot.lane.b32.xlu1 %v4888_v43, %s3958_s18  ;;  %2693 = vrot.lane.b32.xlu0 %v4362_v52, %s3958_s18 }
 0x2cf   : > { %2369 = vst.msk [vmem:[#allocation2 + $0xb7] sm:$0xff] %vm2348_vm2, %v2293_v17 }
 0x2d0   : > { %v2422_v14 = vpop.permute.xlu1 %2421 }
 0x2d1   : > { %2498 = vst.msk [vmem:[#allocation2 + $0xa9] sm:$0xff] %vm2477_vm3, %v2422_v14 }
 0x2d2   : > { %v2420_v42 = vpop.permute.xlu0 %2419  ;;  %2699 = vrot.lane.b32.xlu1 %v4880_v26, %s3958_s18  ;;  %2697 = vrot.lane.b32.xlu0 %v4400_v28, %s3958_s18 }
 0x2d3   : > { %2497 = vst.msk [vmem:[#allocation2 + $0xa1] sm:$0xff] %vm2477_vm3, %v2420_v42 }
 0x2d4   : > { %v2426_v5 = vpop.permute.xlu1 %2425 }
 0x2d5   : > { %2500 = vst.msk [vmem:[#allocation2 + $0xb9] sm:$0xff] %vm2477_vm3, %v2426_v5 }
 0x2d6   : > { %v2424_v33 = vpop.permute.xlu0 %2423  ;;  %2183 = vrot.lane.b32.xlu1 %v4381_v63, %s3957_s17  ;;  %2054 = vrot.lane.b32.xlu0 %v4381_v63, %s3954_s15 }
 0x2d7   : > { %2499 = vst.msk [vmem:[#allocation2 + $0xb1] sm:$0xff] %vm2477_vm3, %v2424_v33 }
 0x2d8   : > { %v2551_v52 = vpop.permute.xlu1 %2550 }
 0x2d9   : > { %2627 = vst.msk [vmem:[#allocation2 + $0xa8] sm:$0xff] %vm2606_vm4, %v2551_v52 }
 0x2da   : > { %v2549_v43 = vpop.permute.xlu0 %2548  ;;  %2443 = vrot.lane.b32.xlu1 %v4535_v62, %s3959_s19  ;;  %2312 = vrot.lane.b32.xlu0 %v4880_v26, %s3962_s22 }
 0x2db   : > { %2626 = vst.msk [vmem:[#allocation2 + $0xa0] sm:$0xff] %vm2606_vm4, %v2549_v43 }
 0x2dc   : > { %v2555_v28 = vpop.permute.xlu1 %2554 }
 0x2dd   : > { %2629 = vst.msk [vmem:[#allocation2 + $0xb8] sm:$0xff] %vm2606_vm4, %v2555_v28 }
 0x2de   : > { %v2553_v34 = vpop.permute.xlu0 %2552  ;;  %2572 = vrot.lane.b32.xlu1 %v4398_v24, %s3960_s20  ;;  %2056 = vrot.lane.b32.xlu0 %v4535_v62, %s3954_s15  ;;  %v2937_v62 = vadd.f32 %v5214_v36, %v5289_v13 }
 0x2df   : > { %2628 = vst.msk [vmem:[#allocation2 + $0xb0] sm:$0xff] %vm2606_vm4, %v2553_v34 }
 0x2e0   : > { %v2680_v63 = vpop.permute.xlu1 %2679  ;;  %v3057_v35 = vmax.f32 %v2937_v62, 0.0 }
 0x2e1   : > { %2756 = vst.msk [vmem:[#allocation2 + $0xa7] sm:$0xff] %vm2735_vm6, %v2680_v63 }
 0x2e2   : > { %v2678_v26 = vpop.permute.xlu0 %2677  ;;  %2701 = vrot.lane.b32.xlu1 %v4398_v24, %s3958_s18  ;;  %2185 = vrot.lane.b32.xlu0 %v4398_v24, %s3957_s17  ;;  %v3711_v32 = vpack.c.bf16 %v3057_v35, %v3057_v35 }
 0x2e3   : > { %2755 = vst.msk [vmem:[#allocation2 + $0x9f] sm:$0xff] %vm2735_vm6, %v2678_v26 }
 0x2e4   : > { %v2684_v20 = vpop.permute.xlu1 %2683 }
 0x2e5   : > { %2758 = vst.msk [vmem:[#allocation2 + $0xb7] sm:$0xff] %vm2735_vm6, %v2684_v20 }
 0x2e6   : > { %v2682_v19 = vpop.permute.xlu0 %2681  ;;  %2510 = vrot.lane.b32.xlu1 %v5521_v22, %s3960_s20  ;;  %2314 = vrot.lane.b32.xlu0 %v4398_v24, %s3962_s22  ;;  %v5523_v24 = vld [vmem:[#allocation5_spill] sm:$0xff] }
 0x2e7   : > { %2757 = vst.msk [vmem:[#allocation2 + $0xaf] sm:$0xff] %vm2735_vm6, %v2682_v19 }
 0x2e8   : > { %v2041_v58 = vpop.permute.xlu1 %2040 }
 0x2e9   : > { %2114 = vst.msk [vmem:[#allocation2 + $0xd1] sm:$0xff] %vm2090_vm12, %v2041_v58 }
 0x2ea   : > { %v2039_v54 = vpop.permute.xlu0 %2038  ;;  %v2784_v1 = vld [vmem:[#allocation2 + $0x98] sm:$0xff]  ;;  %v2785_v38 = vld [vmem:[#allocation2 + $0xa0] sm:$0xff]  ;;  %2641 = vrot.lane.b32.xlu1 %v5522_v16, %s3958_s18  ;;  %2639 = vrot.lane.b32.xlu0 %v5523_v24, %s3958_s18 }
 0x2eb   : > { %2113 = vst.msk [vmem:[#allocation2 + $0xc9] sm:$0xff] %vm2090_vm12, %v2039_v54  ;;  %v2808_v55 = vpack.c.bf16 %v2785_v38, %v2784_v1 }
 0x2ec   : > { %v2045_v39 = vpop.permute.xlu1 %2044 }
 0x2ed   : > { %3887 = vmatprep.mubr.msk.bf16.mxu1 %vm1600_vm9, %v2808_v55  ;;  %2116 = vst.msk [vmem:[#allocation2 + $0xe1] sm:$0xff] %vm2090_vm12, %v2045_v39 }
 0x2ee   : > { %v2043_v40 = vpop.permute.xlu0 %2042  ;;  %v2786_v6 = vld [vmem:[#allocation2 + $0xa8] sm:$0xff]  ;;  %v2787_v30 = vld [vmem:[#allocation2 + $0xb0] sm:$0xff]  ;;  %3350 = vrot.lane.b32.xlu1 %v3712_v9, %s3957_s17  ;;  %3348 = vrot.lane.b32.xlu0 %v3711_v32, %s3957_s17 }
 0x2ef   : > { %2115 = vst.msk [vmem:[#allocation2 + $0xd9] sm:$0xff] %vm2090_vm12, %v2043_v40  ;;  %v2809_v56 = vpack.c.bf16 %v2787_v30, %v2786_v6 }
 0x2f0   : > { %v2170_v8 = vpop.permute.xlu1 %2169 }
 0x2f1   : > { %3888 = vmatmul.mubr.msk.bf16.gmra.mrb[36].mxu1 %vm1600_vm9, %v2809_v56  ;;  %2243 = vst.msk [vmem:[#allocation2 + $0xd0] sm:$0xff] %vm2219_vm13, %v2170_v8 }
 0x2f2   : > { %v2168_v29 = vpop.permute.xlu0 %2167  ;;  %3346 = vrot.lane.b32.xlu1 %v3710_v12, %s3957_s17  ;;  %3344 = vrot.lane.b32.xlu0 %v3709_v53, %s3957_s17 }
 0x2f3   : > { %2242 = vst.msk [vmem:[#allocation2 + $0xc8] sm:$0xff] %vm2219_vm13, %v2168_v29 }
 0x2f4   : > { %v2174_v57 = vpop.permute.xlu1 %2173 }
 0x2f5   : > { %2245 = vst.msk [vmem:[#allocation2 + $0xe0] sm:$0xff] %vm2219_vm13, %v2174_v57 }
 0x2f6   : > { %v3877_v60 = vpop.f32.mrb[24].mxu1  ;;  %v2172_v46 = vpop.permute.xlu0 %2171 }
 0x2f7   : > { %v2953_v36 = vadd.f32 %v3877_v60, %v5289_v13  ;;  %v2944_v50 = vpop.f32.mrb[25].mxu1  ;;  %2244 = vst.msk [vmem:[#allocation2 + $0xd8] sm:$0xff] %vm2219_vm13, %v2172_v46 }
 0x2f8   : > { %v2945_v48 = vadd.f32 %v5289_v13, %v2944_v50  ;;  %v3878_v61 = vpop.f32.mrb[26].mxu1  ;;  %v2299_v3 = vpop.permute.xlu1 %2298 }
 0x2f9   : > { %v3061_v44 = vmax.f32 %v2953_v36, 0.0  ;;  %v2956_v23 = vadd.f32 %v3878_v61, %v5289_v13  ;;  %v2947_v10 = vpop.f32.mrb[27].mxu1  ;;  %2372 = vst.msk [vmem:[#allocation2 + $0xcf] sm:$0xff] %vm2348_vm2, %v2299_v3 }
 0x2fa   : > { %v2948_v25 = vadd.f32 %v5289_v13, %v2947_v10  ;;  %v3059_v21 = vmax.f32 %v2945_v48, 0.0  ;;  %v2297_v37 = vpop.permute.xlu0 %2296 }
 0x2fb   : > { %v3715_v45 = vpack.c.bf16 %v3061_v44, %v3061_v44  ;;  %v3062_v27 = vmax.f32 %v2956_v23, 0.0  ;;  %2371 = vst.msk [vmem:[#allocation2 + $0xc7] sm:$0xff] %vm2348_vm2, %v2297_v37 }
 0x2fc   : > { %v3060_v18 = vmax.f32 %v2948_v25, 0.0  ;;  %v2303_v2 = vpop.permute.xlu1 %2302  ;;  %v3713_v0 = vpack.c.bf16 %v3059_v21, %v3059_v21 }
 0x2fd   : > { %v3716_v15 = vpack.c.bf16 %v3062_v27, %v3062_v27  ;;  %3356 = vrot.lane.b32.xlu0 %v3715_v45, %s3957_s17  ;;  %2374 = vst.msk [vmem:[#allocation2 + $0xdf] sm:$0xff] %vm2348_vm2, %v2303_v2 }
 0x2fe   : > { %v2301_v4 = vpop.permute.xlu0 %2300  ;;  %v3714_v31 = vpack.c.bf16 %v3060_v18, %v3060_v18 }
 0x2ff   : > { %3358 = vrot.lane.b32.xlu1 %v3716_v15, %s3957_s17  ;;  %2373 = vst.msk [vmem:[#allocation2 + $0xd7] sm:$0xff] %vm2348_vm2, %v2301_v4 }
 0x300   : > { %v2430_v7 = vpop.permute.xlu1 %2429 }
 0x301   : > { %3352 = vrot.lane.b32.xlu0 %v3713_v0, %s3957_s17  ;;  %2502 = vst.msk [vmem:[#allocation2 + $0xc9] sm:$0xff] %vm2477_vm3, %v2430_v7 }
 0x302   : > { %v2428_v17 = vpop.permute.xlu0 %2427 }
 0x303   : > { %3354 = vrot.lane.b32.xlu1 %v3714_v31, %s3957_s17  ;;  %2501 = vst.msk [vmem:[#allocation2 + $0xc1] sm:$0xff] %vm2477_vm3, %v2428_v17 }
 0x304   : > { %v2434_v14 = vpop.permute.xlu1 %2433 }
 0x305   : > { %2504 = vst.msk [vmem:[#allocation2 + $0xd9] sm:$0xff] %vm2477_vm3, %v2434_v14 }
 0x306   : > { %v2432_v42 = vpop.permute.xlu0 %2431 }
 0x307   : > { %2503 = vst.msk [vmem:[#allocation2 + $0xd1] sm:$0xff] %vm2477_vm3, %v2432_v42 }
 0x308   : > { %v2559_v5 = vpop.permute.xlu1 %2558 }
 0x309   : > { %2631 = vst.msk [vmem:[#allocation2 + $0xc8] sm:$0xff] %vm2606_vm4, %v2559_v5 }
 0x30a   : > { %v2557_v33 = vpop.permute.xlu0 %2556 }
 0x30b   : > { %2630 = vst.msk [vmem:[#allocation2 + $0xc0] sm:$0xff] %vm2606_vm4, %v2557_v33 }
 0x30c   : > { %v2563_v52 = vpop.permute.xlu1 %2562 }
 0x30d   : > { %2633 = vst.msk [vmem:[#allocation2 + $0xd8] sm:$0xff] %vm2606_vm4, %v2563_v52 }
 0x30e   : > { %v2561_v43 = vpop.permute.xlu0 %2560 }
 0x30f   : > { %2632 = vst.msk [vmem:[#allocation2 + $0xd0] sm:$0xff] %vm2606_vm4, %v2561_v43 }
 0x310   : > { %v2688_v28 = vpop.permute.xlu1 %2687 }
 0x311   : > { %2760 = vst.msk [vmem:[#allocation2 + $0xc7] sm:$0xff] %vm2735_vm6, %v2688_v28 }
 0x312   : > { %v2686_v34 = vpop.permute.xlu0 %2685 }
 0x313   : > { %2759 = vst.msk [vmem:[#allocation2 + $0xbf] sm:$0xff] %vm2735_vm6, %v2686_v34 }
 0x314   : > { %v2692_v63 = vpop.permute.xlu1 %2691 }
 0x315   : > { %2762 = vst.msk [vmem:[#allocation2 + $0xd7] sm:$0xff] %vm2735_vm6, %v2692_v63 }
 0x316   : > { %v2690_v26 = vpop.permute.xlu0 %2689 }
 0x317   : > { %2761 = vst.msk [vmem:[#allocation2 + $0xcf] sm:$0xff] %vm2735_vm6, %v2690_v26 }
 0x318   : > { %v2049_v62 = vpop.permute.xlu1 %2048 }
 0x319   : > { %2118 = vst.msk [vmem:[#allocation2 + $0xf1] sm:$0xff] %vm2090_vm12, %v2049_v62 }
 0x31a   : > { %v2047_v49 = vpop.permute.xlu0 %2046  ;;  %v2788_v20 = vld [vmem:[#allocation2 + $0xb8] sm:$0xff]  ;;  %v2789_v19 = vld [vmem:[#allocation2 + $0xc0] sm:$0xff] }
 0x31b   : > { %2117 = vst.msk [vmem:[#allocation2 + $0xe9] sm:$0xff] %vm2090_vm12, %v2047_v49  ;;  %v2810_v22 = vpack.c.bf16 %v2789_v19, %v2788_v20 }
 0x31c   : > { %v2053_v35 = vpop.permute.xlu1 %2052 }
 0x31d   : > { %3891 = vmatprep.mubr.msk.bf16.mxu1 %vm1600_vm9, %v2810_v22  ;;  %2120 = vst.msk [vmem:[#allocation2 + $0x101] sm:$0xff] %vm2090_vm12, %v2053_v35 }
 0x31e   : > { %v2051_v59 = vpop.permute.xlu0 %2050  ;;  %v2790_v51 = vld [vmem:[#allocation2 + $0xc8] sm:$0xff]  ;;  %v2791_v41 = vld [vmem:[#allocation2 + $0xd0] sm:$0xff] }
 0x31f   : > { %2119 = vst.msk [vmem:[#allocation2 + $0xf9] sm:$0xff] %vm2090_vm12, %v2051_v59  ;;  %v2811_v58 = vpack.c.bf16 %v2791_v41, %v2790_v51 }
 0x320   : > { %v2178_v54 = vpop.permute.xlu1 %2177 }
 0x321   : > { %3892 = vmatmul.mubr.msk.bf16.gmra.mrb[40].mxu1 %vm1600_vm9, %v2811_v58  ;;  %2247 = vst.msk [vmem:[#allocation2 + $0xf0] sm:$0xff] %vm2219_vm13, %v2178_v54 }
 0x322   : > { %v2176_v1 = vpop.permute.xlu0 %2175 }
 0x323   : > { %2246 = vst.msk [vmem:[#allocation2 + $0xe8] sm:$0xff] %vm2219_vm13, %v2176_v1 }
 0x324   : > { %v2182_v38 = vpop.permute.xlu1 %2181 }
 0x325   : > { %2249 = vst.msk [vmem:[#allocation2 + $0x100] sm:$0xff] %vm2219_vm13, %v2182_v38 }
 0x326   : > { %v2180_v16 = vpop.permute.xlu0 %2179 }
 0x327   : > { %2248 = vst.msk [vmem:[#allocation2 + $0xf8] sm:$0xff] %vm2219_vm13, %v2180_v16 }
 0x328   : > { %v2307_v24 = vpop.permute.xlu1 %2306 }
 0x329   : > { %2376 = vst.msk [vmem:[#allocation2 + $0xef] sm:$0xff] %vm2348_vm2, %v2307_v24 }
 0x32a   : > { %v2305_v55 = vpop.permute.xlu0 %2304 }
 0x32b   : > { %2375 = vst.msk [vmem:[#allocation2 + $0xe7] sm:$0xff] %vm2348_vm2, %v2305_v55 }
 0x32c   : > { %v2311_v32 = vpop.permute.xlu1 %2310 }
 0x32d   : > { %2378 = vst.msk [vmem:[#allocation2 + $0xff] sm:$0xff] %vm2348_vm2, %v2311_v32 }
 0x32e   : > { %v2309_v47 = vpop.permute.xlu0 %2308 }
 0x32f   : > { %2377 = vst.msk [vmem:[#allocation2 + $0xf7] sm:$0xff] %vm2348_vm2, %v2309_v47 }
 0x330   : > { %v2438_v9 = vpop.permute.xlu1 %2437 }
 0x331   : > { %2506 = vst.msk [vmem:[#allocation2 + $0xe9] sm:$0xff] %vm2477_vm3, %v2438_v9 }
 0x332   : > { %v2436_v11 = vpop.permute.xlu0 %2435 }
 0x333   : > { %2505 = vst.msk [vmem:[#allocation2 + $0xe1] sm:$0xff] %vm2477_vm3, %v2436_v11 }
 0x334   : > { %v2442_v39 = vpop.permute.xlu1 %2441 }
 0x335   : > { %2508 = vst.msk [vmem:[#allocation2 + $0xf9] sm:$0xff] %vm2477_vm3, %v2442_v39 }
 0x336   : > { %v2440_v40 = vpop.permute.xlu0 %2439 }
 0x337   : > { %2507 = vst.msk [vmem:[#allocation2 + $0xf1] sm:$0xff] %vm2477_vm3, %v2440_v40 }
 0x338   : > { %v2567_v6 = vpop.permute.xlu1 %2566 }
 0x339   : > { %2635 = vst.msk [vmem:[#allocation2 + $0xe8] sm:$0xff] %vm2606_vm4, %v2567_v6 }
 0x33a   : > { %v2565_v30 = vpop.permute.xlu0 %2564 }
 0x33b   : > { %2634 = vst.msk [vmem:[#allocation2 + $0xe0] sm:$0xff] %vm2606_vm4, %v2565_v30 }
 0x33c   : > { %v2571_v56 = vpop.permute.xlu1 %2570 }
 0x33d   : > { %2637 = vst.msk [vmem:[#allocation2 + $0xf8] sm:$0xff] %vm2606_vm4, %v2571_v56 }
 0x33e   : > { %v2569_v53 = vpop.permute.xlu0 %2568 }
 0x33f   : > { %2636 = vst.msk [vmem:[#allocation2 + $0xf0] sm:$0xff] %vm2606_vm4, %v2569_v53 }
 0x340   : > { %v2696_v12 = vpop.permute.xlu1 %2695 }
 0x341   : > { %2764 = vst.msk [vmem:[#allocation2 + $0xe7] sm:$0xff] %vm2735_vm6, %v2696_v12 }
 0x342   : > { %v2694_v8 = vpop.permute.xlu0 %2693 }
 0x343   : > { %2763 = vst.msk [vmem:[#allocation2 + $0xdf] sm:$0xff] %vm2735_vm6, %v2694_v8 }
 0x344   : > { %v2700_v29 = vpop.permute.xlu1 %2699 }
 0x345   : > { %2766 = vst.msk [vmem:[#allocation2 + $0xf7] sm:$0xff] %vm2735_vm6, %v2700_v29 }
 0x346   : > { %v2698_v57 = vpop.permute.xlu0 %2697 }
 0x347   : > { %2765 = vst.msk [vmem:[#allocation2 + $0xef] sm:$0xff] %vm2735_vm6, %v2698_v57 }
 0x348   : > { %v2184_v60 = vpop.permute.xlu1 %2183 }
 0x34a   : > { %v2055_v36 = vpop.permute.xlu0 %2054  ;;  %v2792_v46 = vld [vmem:[#allocation2 + $0xd8] sm:$0xff]  ;;  %v2793_v50 = vld [vmem:[#allocation2 + $0xe0] sm:$0xff] }
 0x34b   : > { %2121 = vst.msk [vmem:[#allocation2 + $0x109] sm:$0xff] %vm2090_vm12, %v2055_v36  ;;  %v2812_v48 = vpack.c.bf16 %v2793_v50, %v2792_v46 }
 0x34c   : > { %2250 = vst.msk [vmem:[#allocation2 + $0x108] sm:$0xff] %vm2219_vm13, %v2184_v60  ;;  %v2444_v61 = vpop.permute.xlu1 %2443 }
 0x34d   : > { %3895 = vmatprep.mubr.msk.bf16.mxu1 %vm1600_vm9, %v2812_v48 }
 0x34e   : > { %v2313_v44 = vpop.permute.xlu0 %2312  ;;  %v2794_v23 = vld [vmem:[#allocation2 + $0xe8] sm:$0xff]  ;;  %v2795_v10 = vld [vmem:[#allocation2 + $0xf0] sm:$0xff] }
 0x34f   : > { %2379 = vst.msk [vmem:[#allocation2 + $0x107] sm:$0xff] %vm2348_vm2, %v2313_v44  ;;  %v2813_v25 = vpack.c.bf16 %v2795_v10, %v2794_v23 }
 0x350   : > { %2509 = vst.msk [vmem:[#allocation2 + $0x101] sm:$0xff] %vm2477_vm3, %v2444_v61  ;;  %v2573_v3 = vpop.permute.xlu1 %2572 }
 0x351   : > { %3896 = vmatmul.mubr.msk.bf16.gmra.mrb[44].mxu1 %vm1600_vm9, %v2813_v25  ;;  %2638 = vst.msk [vmem:[#allocation2 + $0x100] sm:$0xff] %vm2606_vm4, %v2573_v3 }
 0x352   : > { %v2057_v45 = vpop.permute.xlu0 %2056 }
 0x353   : > { %2122 = vst.msk [vmem:[#allocation2 + $0x111] sm:$0xff] %vm2090_vm12, %v2057_v45 }
 0x354   : > { %v2702_v21 = vpop.permute.xlu1 %2701 }
 0x355   : > { %2767 = vst.msk [vmem:[#allocation2 + $0xff] sm:$0xff] %vm2735_vm6, %v2702_v21 }
 0x356   : > { %v2186_v27 = vpop.permute.xlu0 %2185 }
 0x357   : > { %2251 = vst.msk [vmem:[#allocation2 + $0x110] sm:$0xff] %vm2219_vm13, %v2186_v27 }
 0x358   : > { %v2511_v37 = vpop.permute.xlu1 %2510 }
 0x35a   : > { %v2315_v15 = vpop.permute.xlu0 %2314 }
 0x35b   : > { %2380 = vst.msk [vmem:[#allocation2 + $0x10f] sm:$0xff] %vm2348_vm2, %v2315_v15 }
 0x35c   : > { %v2642_v18 = vpop.permute.xlu1 %2641  ;;  %v2796_v2 = vld [vmem:[#allocation2 + $0xf8] sm:$0xff]  ;;  %v2797_v0 = vld [vmem:[#allocation2 + $0x100] sm:$0xff] }
 0x35d   : > { %v2814_v31 = vpack.c.bf16 %v2797_v0, %v2796_v2 }
 0x35e   : > { %v2640_v4 = vpop.permute.xlu0 %2639 }
 0x35f   : > { %3899 = vmatprep.mubr.msk.bf16.mxu1 %vm1600_vm9, %v2814_v31 }
 0x360   : > { %v3351_v7 = vpop.permute.xlu1 %3350 }
 0x361   : > { %3444 = vst.msk [vmem:[%s4695_s13 + $0xc] sm:$0xf] %vm3440_vm5, %v3351_v7 }
 0x362   : > { %v3349_v17 = vpop.permute.xlu0 %3348  ;;  %v2798_v14 = vld [vmem:[#allocation2 + $0x108] sm:$0xff]  ;;  %v2799_v42 = vld [vmem:[#allocation2 + $0x110] sm:$0xff] }
 0x363   : > { %3443 = vst.msk [vmem:[%s4695_s13 + $0x8] sm:$0xf] %vm3440_vm5, %v3349_v17  ;;  %v2815_v5 = vpack.c.bf16 %v2799_v42, %v2798_v14 }
 0x364   : > { %v3347_v33 = vpop.permute.xlu1 %3346 }
 0x365   : > { %3900 = vmatmul.mubr.msk.bf16.gmra.mrb[48].mxu1 %vm1600_vm9, %v2815_v5  ;;  %3442 = vst.msk [vmem:[%s4695_s13 + $0x4] sm:$0xf] %vm3440_vm5, %v3347_v33 }
 0x366   : > { %v3345_v52 = vpop.permute.xlu0 %3344 }
 0x367   : > { %3441 = vst.msk [vmem:[%s4695_s13] sm:$0xf] %vm3440_vm5, %v3345_v52 }
 0x36f   : > { %v3357_v43 = vpop.permute.xlu0 %3356 }
 0x370   : > { %3447 = vst.msk [vmem:[%s4695_s13 + $0x18] sm:$0xf] %vm3440_vm5, %v3357_v43  ;;  %v3881_v28 = vpop.f32.mrb[28].mxu1 }
 0x371   : > { %v2969_v34 = vadd.f32 %v3881_v28, %v5289_v13  ;;  %v3359_v63 = vpop.permute.xlu1 %3358  ;;  %v2960_v26 = vpop.f32.mrb[29].mxu1 }
 0x372   : > { %3448 = vst.msk [vmem:[%s4695_s13 + $0x1c] sm:$0xf] %vm3440_vm5, %v3359_v63  ;;  %v2961_v62 = vadd.f32 %v5289_v13, %v2960_v26  ;;  %v3882_v49 = vpop.f32.mrb[30].mxu1 }
 0x373   : > { %v3065_v20 = vmax.f32 %v2969_v34, 0.0  ;;  %v2972_v19 = vadd.f32 %v3882_v49, %v5289_v13  ;;  %v2963_v22 = vpop.f32.mrb[31].mxu1  ;;  %v3353_v35 = vpop.permute.xlu0 %3352 }
 0x374   : > { %v2964_v59 = vadd.f32 %v5289_v13, %v2963_v22  ;;  %3445 = vst.msk [vmem:[%s4695_s13 + $0x10] sm:$0xf] %vm3440_vm5, %v3353_v35  ;;  %v3063_v41 = vmax.f32 %v2961_v62, 0.0 }
 0x375   : > { %v3719_v51 = vpack.c.bf16 %v3065_v20, %v3065_v20  ;;  %v3066_v58 = vmax.f32 %v2972_v19, 0.0  ;;  %v3355_v54 = vpop.permute.xlu1 %3354 }
 0x376   : > { %3446 = vst.msk [vmem:[%s4695_s13 + $0x14] sm:$0xf] %vm3440_vm5, %v3355_v54  ;;  %v3064_v38 = vmax.f32 %v2964_v59, 0.0  ;;  %v3717_v16 = vpack.c.bf16 %v3063_v41, %v3063_v41 }
 0x377   : > { %v3720_v1 = vpack.c.bf16 %v3066_v58, %v3066_v58  ;;  %3364 = vrot.lane.b32.xlu0 %v3719_v51, %s3957_s17 }
 0x378   : > { %v3718_v24 = vpack.c.bf16 %v3064_v38, %v3064_v38 }
 0x379   : > { %3366 = vrot.lane.b32.xlu1 %v3720_v1, %s3957_s17 }
 0x37b   : > { %3360 = vrot.lane.b32.xlu0 %v3717_v16, %s3957_s17 }
 0x37d   : > { %3362 = vrot.lane.b32.xlu1 %v3718_v24, %s3957_s17 }
 0x398   : > { %v3885_v55 = vpop.f32.mrb[32].mxu1 }
 0x399   : > { %v2985_v32 = vadd.f32 %v3885_v55, %v5289_v13  ;;  %v2976_v47 = vpop.f32.mrb[33].mxu1 }
 0x39a   : > { %v2977_v9 = vadd.f32 %v5289_v13, %v2976_v47  ;;  %v3886_v11 = vpop.f32.mrb[34].mxu1 }
 0x39b   : > { %v3069_v39 = vmax.f32 %v2985_v32, 0.0  ;;  %v2988_v40 = vadd.f32 %v3886_v11, %v5289_v13  ;;  %v2979_v6 = vpop.f32.mrb[35].mxu1 }
 0x39c   : > { %v2980_v30 = vadd.f32 %v5289_v13, %v2979_v6  ;;  %v3067_v53 = vmax.f32 %v2977_v9, 0.0 }
 0x39d   : > { %v3723_v56 = vpack.c.bf16 %v3069_v39, %v3069_v39  ;;  %v3070_v12 = vmax.f32 %v2988_v40, 0.0 }
 0x39e   : > { %v3068_v29 = vmax.f32 %v2980_v30, 0.0  ;;  %v3721_v57 = vpack.c.bf16 %v3067_v53, %v3067_v53 }
 0x39f   : > { %v3724_v8 = vpack.c.bf16 %v3070_v12, %v3070_v12  ;;  %3372 = vrot.lane.b32.xlu0 %v3723_v56, %s3957_s17 }
 0x3a0   : > { %v3722_v60 = vpack.c.bf16 %v3068_v29, %v3068_v29 }
 0x3a1   : > { %3374 = vrot.lane.b32.xlu1 %v3724_v8, %s3957_s17 }
 0x3a3   : > { %3368 = vrot.lane.b32.xlu0 %v3721_v57, %s3957_s17 }
 0x3a5   : > { %3370 = vrot.lane.b32.xlu1 %v3722_v60, %s3957_s17 }
 0x3c4   : > { %v3889_v36 = vpop.f32.mrb[36].mxu1 }
 0x3c5   : > { %v3001_v46 = vadd.f32 %v3889_v36, %v5289_v13  ;;  %v2992_v50 = vpop.f32.mrb[37].mxu1 }
 0x3c6   : > { %v2993_v48 = vadd.f32 %v5289_v13, %v2992_v50  ;;  %v3890_v61 = vpop.f32.mrb[38].mxu1 }
 0x3c7   : > { %v3073_v44 = vmax.f32 %v3001_v46, 0.0  ;;  %v3004_v23 = vadd.f32 %v3890_v61, %v5289_v13  ;;  %v2995_v10 = vpop.f32.mrb[39].mxu1 }
 0x3c8   : > { %v2996_v25 = vadd.f32 %v5289_v13, %v2995_v10  ;;  %v3071_v45 = vmax.f32 %v2993_v48, 0.0 }
 0x3c9   : > { %v3727_v3 = vpack.c.bf16 %v3073_v44, %v3073_v44  ;;  %v3074_v21 = vmax.f32 %v3004_v23, 0.0 }
 0x3ca   : > { %v3072_v37 = vmax.f32 %v2996_v25, 0.0  ;;  %v3725_v15 = vpack.c.bf16 %v3071_v45, %v3071_v45 }
 0x3cb   : > { %v3728_v27 = vpack.c.bf16 %v3074_v21, %v3074_v21  ;;  %3380 = vrot.lane.b32.xlu0 %v3727_v3, %s3957_s17 }
 0x3cc   : > { %v3726_v18 = vpack.c.bf16 %v3072_v37, %v3072_v37 }
 0x3cd   : > { %3382 = vrot.lane.b32.xlu1 %v3728_v27, %s3957_s17 }
 0x3cf   : > { %3376 = vrot.lane.b32.xlu0 %v3725_v15, %s3957_s17 }
 0x3d1   : > { %3378 = vrot.lane.b32.xlu1 %v3726_v18, %s3957_s17 }
 0x3e9   : > { %v3365_v2 = vpop.permute.xlu0 %3364 }
 0x3ea   : > { %3451 = vst.msk [vmem:[%s4695_s13 + $0x28] sm:$0xf] %vm3440_vm5, %v3365_v2 }
 0x3eb   : > { %v3367_v0 = vpop.permute.xlu1 %3366 }
 0x3ec   : > { %3452 = vst.msk [vmem:[%s4695_s13 + $0x2c] sm:$0xf] %vm3440_vm5, %v3367_v0 }
 0x3ed   : > { %v3361_v4 = vpop.permute.xlu0 %3360 }
 0x3ee   : > { %3449 = vst.msk [vmem:[%s4695_s13 + $0x20] sm:$0xf] %vm3440_vm5, %v3361_v4 }
 0x3ef   : > { %v3363_v31 = vpop.permute.xlu1 %3362 }
 0x3f0   : > { %3450 = vst.msk [vmem:[%s4695_s13 + $0x24] sm:$0xf] %vm3440_vm5, %v3363_v31 }
 0x3f4   : > { %v3893_v7 = vpop.f32.mrb[40].mxu1 }
 0x3f5   : > { %v3017_v17 = vadd.f32 %v3893_v7, %v5289_v13  ;;  %v3008_v14 = vpop.f32.mrb[41].mxu1 }
 0x3f6   : > { %v3009_v42 = vadd.f32 %v5289_v13, %v3008_v14  ;;  %v3894_v5 = vpop.f32.mrb[42].mxu1 }
 0x3f7   : > { %v3077_v33 = vmax.f32 %v3017_v17, 0.0  ;;  %v3020_v52 = vadd.f32 %v3894_v5, %v5289_v13  ;;  %v3011_v43 = vpop.f32.mrb[43].mxu1 }
 0x3f8   : > { %v3012_v28 = vadd.f32 %v5289_v13, %v3011_v43  ;;  %v3075_v63 = vmax.f32 %v3009_v42, 0.0 }
 0x3f9   : > { %v3731_v34 = vpack.c.bf16 %v3077_v33, %v3077_v33  ;;  %v3078_v26 = vmax.f32 %v3020_v52, 0.0 }
 0x3fa   : > { %v3076_v49 = vmax.f32 %v3012_v28, 0.0  ;;  %v3729_v20 = vpack.c.bf16 %v3075_v63, %v3075_v63 }
 0x3fb   : > { %v3732_v62 = vpack.c.bf16 %v3078_v26, %v3078_v26  ;;  %3388 = vrot.lane.b32.xlu0 %v3731_v34, %s3957_s17 }
 0x3fc   : > { %v3730_v19 = vpack.c.bf16 %v3076_v49, %v3076_v49 }
 0x3fd   : > { %3390 = vrot.lane.b32.xlu1 %v3732_v62, %s3957_s17 }
 0x3ff   : > { %3384 = vrot.lane.b32.xlu0 %v3729_v20, %s3957_s17 }
 0x401   : > { %3386 = vrot.lane.b32.xlu1 %v3730_v19, %s3957_s17 }
 0x411   : > { %v3373_v22 = vpop.permute.xlu0 %3372 }
 0x412   : > { %3455 = vst.msk [vmem:[%s4695_s13 + $0x38] sm:$0xf] %vm3440_vm5, %v3373_v22 }
 0x413   : > { %v3375_v35 = vpop.permute.xlu1 %3374 }
 0x414   : > { %3456 = vst.msk [vmem:[%s4695_s13 + $0x3c] sm:$0xf] %vm3440_vm5, %v3375_v35 }
 0x415   : > { %v3369_v59 = vpop.permute.xlu0 %3368 }
 0x416   : > { %3453 = vst.msk [vmem:[%s4695_s13 + $0x30] sm:$0xf] %vm3440_vm5, %v3369_v59 }
 0x417   : > { %v3371_v51 = vpop.permute.xlu1 %3370 }
 0x418   : > { %3454 = vst.msk [vmem:[%s4695_s13 + $0x34] sm:$0xf] %vm3440_vm5, %v3371_v51 }
 0x424   : > { %v3897_v41 = vpop.f32.mrb[44].mxu1 }
 0x425   : > { %v3033_v58 = vadd.f32 %v3897_v41, %v5289_v13  ;;  %v3024_v54 = vpop.f32.mrb[45].mxu1 }
 0x426   : > { %v3025_v1 = vadd.f32 %v5289_v13, %v3024_v54  ;;  %v3898_v38 = vpop.f32.mrb[46].mxu1 }
 0x427   : > { %v3081_v16 = vmax.f32 %v3033_v58, 0.0  ;;  %v3036_v24 = vadd.f32 %v3898_v38, %v5289_v13  ;;  %v3027_v55 = vpop.f32.mrb[47].mxu1 }
 0x428   : > { %v3028_v32 = vadd.f32 %v5289_v13, %v3027_v55  ;;  %v3079_v9 = vmax.f32 %v3025_v1, 0.0 }
 0x429   : > { %v3735_v47 = vpack.c.bf16 %v3081_v16, %v3081_v16  ;;  %v3082_v11 = vmax.f32 %v3036_v24, 0.0 }
 0x42a   : > { %v3080_v40 = vmax.f32 %v3028_v32, 0.0  ;;  %v3733_v6 = vpack.c.bf16 %v3079_v9, %v3079_v9 }
 0x42b   : > { %v3736_v39 = vpack.c.bf16 %v3082_v11, %v3082_v11  ;;  %3396 = vrot.lane.b32.xlu0 %v3735_v47, %s3957_s17 }
 0x42c   : > { %v3734_v30 = vpack.c.bf16 %v3080_v40, %v3080_v40 }
 0x42d   : > { %3398 = vrot.lane.b32.xlu1 %v3736_v39, %s3957_s17 }
 0x42f   : > { %3392 = vrot.lane.b32.xlu0 %v3733_v6, %s3957_s17 }
 0x431   : > { %3394 = vrot.lane.b32.xlu1 %v3734_v30, %s3957_s17 }
 0x438   : > { %v3901_v56 = vpop.f32.mrb[48].mxu1 }
 0x439   : > { %v3040_v53 = vpop.f32.mrb[49].mxu1  ;;  %v3049_v12 = vadd.f32 %v3901_v56, %v5289_v13 }
 0x43a   : > { %v3041_v8 = vadd.f32 %v5289_v13, %v3040_v53  ;;  %v3902_v29 = vpop.f32.mrb[50].mxu1 }
 0x43b   : > { %v3043_v57 = vpop.f32.mrb[51].mxu1  ;;  %v3052_v36 = vadd.f32 %v3902_v29, %v5289_v13  ;;  %v3085_v48 = vmax.f32 %v3049_v12, 0.0 }
 0x43c   : > { %v3083_v60 = vmax.f32 %v3041_v8, 0.0  ;;  %v3044_v46 = vadd.f32 %v5289_v13, %v3043_v57 }
 0x43d   : > { %v3381_v50 = vpop.permute.xlu0 %3380  ;;  %v3086_v10 = vmax.f32 %v3052_v36, 0.0  ;;  %v3739_v13 = vpack.c.bf16 %v3085_v48, %v3085_v48 }
 0x43e   : > { %v3737_v61 = vpack.c.bf16 %v3083_v60, %v3083_v60  ;;  %v3084_v44 = vmax.f32 %v3044_v46, 0.0  ;;  %3459 = vst.msk [vmem:[%s4695_s13 + $0x48] sm:$0xf] %vm3440_vm5, %v3381_v50 }
 0x43f   : > { %v3383_v23 = vpop.permute.xlu1 %3382  ;;  %v3740_v21 = vpack.c.bf16 %v3086_v10, %v3086_v10 }
 0x440   : > { %v3738_v25 = vpack.c.bf16 %v3084_v44, %v3084_v44  ;;  %3460 = vst.msk [vmem:[%s4695_s13 + $0x4c] sm:$0xf] %vm3440_vm5, %v3383_v23  ;;  %3400 = vrot.lane.b32.xlu0 %v3737_v61, %s3957_s17 }
 0x441   : > { %v3377_v3 = vpop.permute.xlu0 %3376 }
 0x442   : > { %3457 = vst.msk [vmem:[%s4695_s13 + $0x40] sm:$0xf] %vm3440_vm5, %v3377_v3  ;;  %3402 = vrot.lane.b32.xlu1 %v3738_v25, %s3957_s17 }
 0x443   : > { %v3379_v45 = vpop.permute.xlu1 %3378 }
 0x444   : > { %3458 = vst.msk [vmem:[%s4695_s13 + $0x44] sm:$0xf] %vm3440_vm5, %v3379_v45  ;;  %3404 = vrot.lane.b32.xlu0 %v3739_v13, %s3957_s17 }
 0x446   : > { %3406 = vrot.lane.b32.xlu1 %v3740_v21, %s3957_s17 }
 0x46d   : > { %v3389_v27 = vpop.permute.xlu0 %3388 }
 0x46e   : > { %3463 = vst.msk [vmem:[%s4695_s13 + $0x58] sm:$0xf] %vm3440_vm5, %v3389_v27 }
 0x46f   : > { %v3391_v37 = vpop.permute.xlu1 %3390 }
 0x470   : > { %3464 = vst.msk [vmem:[%s4695_s13 + $0x5c] sm:$0xf] %vm3440_vm5, %v3391_v37 }
 0x471   : > { %v3385_v15 = vpop.permute.xlu0 %3384 }
 0x472   : > { %3461 = vst.msk [vmem:[%s4695_s13 + $0x50] sm:$0xf] %vm3440_vm5, %v3385_v15 }
 0x473   : > { %v3387_v18 = vpop.permute.xlu1 %3386 }
 0x474   : > { %3462 = vst.msk [vmem:[%s4695_s13 + $0x54] sm:$0xf] %vm3440_vm5, %v3387_v18 }
 0x49d   : > { %v3397_v2 = vpop.permute.xlu0 %3396 }
 0x49e   : > { %3467 = vst.msk [vmem:[%s4695_s13 + $0x68] sm:$0xf] %vm3440_vm5, %v3397_v2 }
 0x49f   : > { %v3399_v0 = vpop.permute.xlu1 %3398 }
 0x4a0   : > { %3468 = vst.msk [vmem:[%s4695_s13 + $0x6c] sm:$0xf] %vm3440_vm5, %v3399_v0 }
 0x4a1   : > { %v3393_v4 = vpop.permute.xlu0 %3392 }
 0x4a2   : > { %3465 = vst.msk [vmem:[%s4695_s13 + $0x60] sm:$0xf] %vm3440_vm5, %v3393_v4 }
 0x4a3   : > { %v3395_v31 = vpop.permute.xlu1 %3394 }
 0x4a4   : > { %3466 = vst.msk [vmem:[%s4695_s13 + $0x64] sm:$0xf] %vm3440_vm5, %v3395_v31 }
 0x4b2   : > { %v3401_v7 = vpop.permute.xlu0 %3400 }
 0x4b3   : > { %3469 = vst.msk [vmem:[%s4695_s13 + $0x70] sm:$0xf] %vm3440_vm5, %v3401_v7 }
 0x4b4   : > { %v3403_v17 = vpop.permute.xlu1 %3402 }
 0x4b5   : > { %3470 = vst.msk [vmem:[%s4695_s13 + $0x74] sm:$0xf] %vm3440_vm5, %v3403_v17 }
 0x4b6   : > { %v3405_v14 = vpop.permute.xlu0 %3404 }
 0x4b7   : > { %3471 = vst.msk [vmem:[%s4695_s13 + $0x78] sm:$0xf] %vm3440_vm5, %v3405_v14 }
 0x4b8   : > { %v3407_v42 = vpop.permute.xlu1 %3406 }
 0x4b9   : > { %3472 = vst.msk [vmem:[%s4695_s13 + $0x7c] sm:$0xf] %vm3440_vm5, %v3407_v42 }
 0x4ba PF: > { %s17_s24 = sadd.s32 1, %s3952_s24  }
 0x4bb   : > { %p14_p4 = scmp.ge.s32.totalorder %s17_s24, 4  }
 0x4bd   :  { %16 = sbr.rel (!%p14_p4) target bundleno = 1 (0x1), region = 78 }

// kernel: condecon_fs_forward.9
= control target key start
LH: loop header
LB: loop body
LE: loop exit
PB: predicated region body
PF: predicated region fallthrough
CT: control target
= control target key end

     0   :  { %s1044_s24 = smov 0   ;;  %s1209_s0 = inlined_call_operand.vmem [shape: bf16[2,9,128], index: 0, kind: input, shape index: {}]   ;;  %s1210_s1 = inlined_call_operand.vmem [shape: bf16[128,16], index: 1, kind: input, shape index: {}]   ;;  %s1211_s2 = inlined_call_operand.vmem [shape: f32[1,16], index: 2, kind: input, shape index: {}]   ;;  %s1212_s3 = inlined_call_operand.vmem [shape: bf16[16,32], index: 3, kind: input, shape index: {}]   ;;  %s1213_s4 = inlined_call_operand.vmem [shape: f32[1,32], index: 4, kind: input, shape index: {}]   ;;  %s1214_s5 = inlined_call_operand.vmem [shape: bf16[144,32], index: 5, kind: input, shape index: {}]   ;;  %s1215_s6 = inlined_call_operand.vmem [shape: f32[1,32], index: 6, kind: input, shape index: {}]   ;;  %s1216_s7 = inlined_call_operand.vmem [shape: bf16[2,9,64], index: 7, kind: output, shape index: {}]  }
   0x1 LB: > { %s863_s25 = sadd.s32 4294967295, %s992_s24   ;;  %p867_p0 = scmp.ge.s32.totalorder %s992_s24, 1  ;;  %s992_s24 = sphi %s1044_s24, %s17_s24  }
   0x2   : > { %p237_p1 = scmp.lt.s32.totalorder %s992_s24, 3 }
   0x4   : > { %p238_p2 = pnand %p867_p0, %p237_p1 }
   0x5   : > { %v967_v0 = vld [vmem:[%s1210_s1] sm:$0xff] (!%p238_p2)   ;;  %v994_v1 = vmov (!%p238_p2), 0.0   ;;  %v968_v2 = vld [vmem:[%s1210_s1 + $0x8] sm:$0xff] (!%p238_p2)   ;;  %vm995_vm0 = vmmov (!%p238_p2), 0   ;;  %p269_p3 = scmp.lt.s32.totalorder (!%p238_p2), %s863_s25, 1  ;;  %v969_v3 = vld [vmem:[%s1210_s1 + $0x10] sm:$0xff] (!%p238_p2)   ;;  %v465_v12 = vlaneseq (!%p238_p2) }
   0x6   : > { %241 = sbr.rel (%p238_p2) target bundleno = 739 (0x2e3), region = 48  ;;  %919 = vmatprep.subr.bf16.mxu0 (!%p238_p2), %v994_v1  ;;  %516 = vst [vmem:[#allocation2 + $0x10] sm:$0xf] (!%p238_p2), %v994_v1  ;;  %519 = vst [vmem:[#allocation2 + $0x10] sm:$0xe0] (!%p238_p2), %v994_v1  ;;  %939 = vmatprep.subr.bf16.mxu1 (!%p238_p2), %v994_v1  ;;  %v970_v4 = vld [vmem:[%s1210_s1 + $0x18] sm:$0xff] (!%p238_p2)  }
   0x7   : > { %522 = vst [vmem:[#allocation2 + $0x20] sm:$0x1] (!%p238_p2), %v994_v1  ;;  %920 = vmatpush3.bf16.msra.mxu0 (!%p238_p2), %v967_v0  ;;  %935 = vmatprep.mubr.msk.bf16.mxu0 (!%p238_p2), %vm995_vm0, %v994_v1  ;;  %v971_v5 = vld [vmem:[%s1210_s1 + $0x20] sm:$0xff] (!%p238_p2)   ;;  %v972_v6 = vld [vmem:[%s1210_s1 + $0x28] sm:$0xff] (!%p238_p2)   ;;  %v973_v7 = vld [vmem:[%s1210_s1 + $0x30] sm:$0xff] (!%p238_p2)   ;;  %vm517_vm1 = vcmask (!%p238_p2), 125952  }
   0x8   : > { %921 = vmatprep.subr.bf16.mxu0 (!%p238_p2), %v994_v1  ;;  %941 = vmatprep.mubr.msk.bf16.mxu1 (!%p238_p2), %vm995_vm0, %v994_v1  ;;  %v974_v8 = vld [vmem:[%s1210_s1 + $0x38] sm:$0xff] (!%p238_p2)   ;;  %v976_v10 = vld [vmem:[%s1212_s3] sm:$0xff] (!%p238_p2)   ;;  %518 = vst.msk [vmem:[#allocation2 + $0x18] sm:$0xf] (!%p238_p2), %vm517_vm1, %v994_v1  ;;  %vm520_vm2 = vcmask (!%p238_p2), 130053   ;;  %vm523_vm3 = vcmask (!%p238_p2), 122880  }
   0x9   : > { %940 = vmatpush3.bf16.msra.mxu1 (!%p238_p2), %v976_v10  ;;  %521 = vst.msk [vmem:[#allocation2 + $0x18] sm:$0xe0] (!%p238_p2), %vm520_vm2, %v994_v1  ;;  %v996_v11 = vmov (!%p238_p2), 0   ;;  %v466_v13 = vshrl.u32 (!%p238_p2), %v465_v12, 7  ;;  %v872_v27 = vld [vmem:[%s1211_s2] ss:$0 sm:$0xff] (!%p238_p2) }
   0xa   : > { %524 = vst.msk [vmem:[#allocation2 + $0x28] sm:$0x1] (!%p238_p2), %vm523_vm3, %v994_v1  ;;  %730 = vmatprep.subr.bf16.mxu1 (!%p238_p2), %v996_v11  ;;  %vm418_vm12 = vcmask (!%p238_p2), 130048   ;;  %vm539_vm13 = vcmask (!%p238_p2), 1042432   ;;  %vm527_vm15 = vcmask (!%p238_p2), 1043456   ;;  %vm555_vm1 = vcmask (!%p238_p2), 1041408  }
   0xb   : > { %922 = vmatpush3.bf16.msra.mxu0 (!%p238_p2), %v968_v2  ;;  %v467_v14 = vadd.s32 (!%p238_p2), 8, %v466_v13  ;;  %v1088_v15 = vmul.u32.u64.low (!%p238_p2), 2863311531, %v466_v13  ;;  %v1089_v16 = vmul.u32.u64.high 2863311531, %v466_v13, %v1088_v15  ;;  %vm593_vm2 = vcmask (!%p238_p2), 1046528   ;;  %s997_s29 = smov (!%p238_p2), 64   ;;  %v977_v44 = vld [vmem:[%s1214_s5] sm:$0xff] (!%p238_p2)  }
   0xc   : > { %923 = vmatprep.subr.bf16.mxu0 (!%p238_p2), %v994_v1  ;;  %vm535_vm3 = vcmask (!%p238_p2), 126976   ;;  %s998_s10 = smov (!%p238_p2), 48   ;;  %s999_s11 = smov (!%p238_p2), 16   ;;  %v978_v61 = vld [vmem:[%s1214_s5 + $0x8] sm:$0xff] (!%p238_p2)   ;;  %v981_v10 = vld [vmem:[%s1214_s5 + $0x20] sm:$0xff] (!%p238_p2)  }
   0xd   : > { %s1218_s25 = smov (!%p269_p3, %s863_s25), 1  ;;  %v1091_v17 = vmul.u32.u64.low 2863311531, %v467_v14  ;;  %v1092_v18 = vmul.u32.u64.high 2863311531, %v467_v14, %v1091_v17  ;;  %v474_v19 = vshrl.u32 %v1089_v16, 1  ;;  %s1000_s14 = smov 32   ;;  %v982_v12 = vld [vmem:[%s1214_s5 + $0x28] sm:$0xff]  }
   0xe   : > { %s902_s9 = sshll.u32 %s1218_s25, 3  ;;  %s1001_s17 = smov 80   ;;  %v985_v15 = vld [vmem:[%s1214_s5 + $0x40] sm:$0xff]  }
   0xf   : > { %s273_s12 = scalar_lea.vmem %s1209_s0, %s902_s9  ;;  %924 = vmatpush3.bf16.msra.mxu0 %v969_v3  ;;  %v485_v20 = vshrl.u32 %v1092_v18, 1  ;;  %v475_v21 = vmul.u32 3, %v474_v19  ;;  %s1002_s20 = smov 96  }
  0x10   : > { %925 = vmatprep.subr.bf16.mxu0 %v994_v1  ;;  %v975_v9 = vld [vmem:[%s273_s12] sm:$0x1f]   ;;  %s1003_s23 = smov 112  }
  0x11   : > { %v486_v22 = vmul.u32 3, %v485_v20  ;;  %v476_v23 = vsub.s32 %v466_v13, %v475_v21  ;;  %v983_v13 = vld [vmem:[%s1214_s5 + $0x30] sm:$0xff]  }
  0x13   : > { %926 = vmatpush3.bf16.msra.mxu0 %v970_v4  ;;  %v487_v24 = vsub.s32 %v467_v14, %v486_v22  ;;  %vm490_vm4 = vcmp.ne.s32.totalorder %v476_v23, 0  ;;  %vm492_vm5 = vcmp.lt.s32.totalorder %v476_v23, 0  ;;  %v496_v25 = vadd.s32 3, %v476_v23  ;;  %v984_v14 = vld [vmem:[%s1214_s5 + $0x38] sm:$0xff]  }
  0x14   : > { %927 = vmatprep.subr.bf16.mxu0 %v994_v1  ;;  %vm494_vm8 = vmand %vm492_vm5, %vm490_vm4  ;;  %vm569_vm4 = vcmask 1040384   ;;  %vm607_vm5 = vcmask 1045504  }
  0x15   : > { %vm491_vm6 = vcmp.ne.s32.totalorder %v487_v24, 0  ;;  %vm493_vm7 = vcmp.lt.s32.totalorder %v487_v24, 0  ;;  %v497_v26 = vadd.s32 3, %v487_v24  ;;  %v498_v28 = vsel %vm494_vm8, %v496_v25, %v476_v23 }
  0x16   : > { %vm495_vm9 = vmand %vm493_vm7, %vm491_vm6  ;;  %vm500_vm10 = vcmp.eq.s32.totalorder %v498_v28, 2  ;;  %vm508_vm11 = vcmp.eq.s32.totalorder %v498_v28, 0  ;;  %vm621_vm6 = vcmask 1044480   ;;  %vm533_vm7 = vcmask 130052  }
  0x17   : > { %928 = vmatpush3.bf16.msra.mxu0 %v971_v5  ;;  %v499_v29 = vsel %vm495_vm9, %v497_v26, %v487_v24  ;;  %v979_v5 = vld [vmem:[%s1214_s5 + $0x10] sm:$0xff]   ;;  %vm549_vm8 = vcmask 261251   ;;  %vm551_vm9 = vcmask 257152  }
  0x18   : > { %929 = vmatprep.subr.bf16.mxu0 %v994_v1  ;;  %vm509_vm14 = vcmp.eq.s32.totalorder %v499_v29, 0  ;;  %vm501_vm0 = vcmp.eq.s32.totalorder %v499_v29, 2 }
  0x1b   : > { %930 = vmatpush3.bf16.msra.mxu0 %v972_v6  ;;  %v645_v6 = vld [vmem:[#allocation2 + $0x28] sm:$0x1] }
  0x1c   : > { %931 = vmatprep.subr.bf16.mxu0 %v994_v1 }
  0x1f   : > { %932 = vmatpush3.bf16.msra.mxu0 %v973_v7 }
  0x20   : > { %933 = vmatprep.subr.bf16.mxu0 %v994_v1 }
  0x23   : > { %934 = vmatpush3.bf16.msra.mxu0 %v974_v8  ;;  %v980_v8 = vld [vmem:[%s1214_s5 + $0x18] sm:$0xff]  }
  0x26   : > { %936 = vmatmul.mubr.bf16.vlgmr.msra.gmra.mrb[0].mxu0 %v975_v9 }
  0xf9   : > { %v393_v30 = vpop.f32.mrb[0].mxu0 }
  0xfa   : > { %v394_v31 = vadd.f32 %v872_v27, %v393_v30  ;;  %v937_v32 = vpop.f32.mrb[1].mxu0 }
  0xfb   : > { %v396_v33 = vpop.f32.mrb[2].mxu0  ;;  %v882_v32 = vld [vmem:[%s1213_s4] ss:$0 sm:$0xff] }
  0xfc   : > { %v1099_v34 = vmax.f32 %v394_v31, 0.0  ;;  %v397_v35 = vadd.f32 %v872_v27, %v396_v33  ;;  %v938_v36 = vpop.f32.mrb[3].mxu0 }
  0xfe   : > { %v1101_v37 = vmax.f32 %v397_v35, 0.0  ;;  %583 = vrot.lane.b32.xlu0 %v1099_v34, %s997_s29  ;;  %v1107_v38 = vsel %vm500_vm10, 0.0, %v1099_v34  ;;  %v1111_v39 = vsel %vm508_vm11, 0.0, %v1099_v34  ;;  %v540_v42 = vrot.slane %v1099_v34, 5 }
  0xff   : > { %v570_v40 = vrot.slane %v1107_v38, 7  ;;  %v528_v41 = vrot.slane %v1107_v38, 4  ;;  %v556_v43 = vrot.slane %v1111_v39, 6  ;;  %v635_v47 = vrot.slane %v1111_v39, 4 }
 0x100   : > { %v402_v45 = vpack.c.bf16 %v1101_v37, %v1099_v34  ;;  %v541_v46 = vrot.slane %v1101_v37, 5  ;;  %v515_v48 = vsel %vm509_vm14, 0.0, %v1101_v37  ;;  %v594_v51 = vrot.slane %v1111_v39, 1 }
 0x101   : > { %573 = vrot.lane.b32.xlu1 %v570_v40, %s998_s10  ;;  %v557_v49 = vrot.slane %v515_v48, 6  ;;  %v636_v50 = vrot.slane %v515_v48, 4  ;;  %v595_v52 = vrot.slane %v515_v48, 1  ;;  %534 = vst.msk [vmem:[#allocation2 + $0x10] sm:$0xf0] %vm533_vm7, %v528_v41  ;;  %v507_v54 = vsel %vm501_vm0, 0.0, %v1101_v37 }
 0x102   : > { %543 = vrot.lane.b32.xlu0 %v540_v42, %s999_s11  ;;  %942 = vmatmul.mubr.msk.bf16.vlgmr.msra.gmra.mrb[0].mxu1 %vm418_vm12, %v402_v45  ;;  %v542_v53 = vsel %vm539_vm13, %v540_v42, %v541_v46  ;;  %v622_v55 = vrot.slane %v1099_v34, 3  ;;  %v623_v56 = vrot.slane %v1101_v37, 3  ;;  %v571_v60 = vrot.slane %v507_v54, 7  ;;  %v885_v45 = vld [vmem:[%s1215_s6] ss:$0 sm:$0xff] }
 0x103   : > { %v558_v57 = vsel %vm555_vm1, %v556_v43, %v557_v49  ;;  %v637_v58 = vsel %vm527_vm15, %v635_v47, %v636_v50  ;;  %v596_v59 = vsel %vm593_vm2, %v594_v51, %v595_v52  ;;  %731 = vmatpush1.bf16.msra.mxu1 %v977_v44  ;;  %v608_v62 = vrot.slane %v1107_v38, 2 }
 0x104   : > { %641 = vst.msk [vmem:[#allocation2 + $0x18] sm:$0x1f] %vm535_vm3, %v637_v58  ;;  %v609_v63 = vrot.slane %v507_v54, 2  ;;  %v624_v0 = vsel %vm621_vm6, %v622_v55, %v623_v56  ;;  %732 = vmatprep.subr.bf16.mxu1 %v996_v11  ;;  %v529_v1 = vrot.slane %v507_v54, 4  ;;  %v572_v2 = vsel %vm569_vm4, %v570_v40, %v571_v60 }
 0x105   : > { %545 = vrot.lane.b32.xlu1 %v542_v53, %s999_s11  ;;  %vm565_vm10 = vcmask 392450   ;;  %vm579_vm11 = vcmask 523649   ;;  %vm567_vm13 = vcmask 387328   ;;  %vm605_vm14 = vcmask 786048  }
 0x106   : > { %559 = vrot.lane.b32.xlu0 %v556_v43, %s1000_s14  ;;  %v610_v3 = vsel %vm607_vm5, %v608_v62, %v609_v63  ;;  %v530_v4 = vsel %vm527_vm15, %v528_v41, %v529_v1  ;;  %vm581_vm15 = vcmask 517504   ;;  %vm619_vm0 = vcmask 916224  }
 0x107   : > { %733 = vmatpush1.bf16.msra.mxu1 %v978_v61  ;;  %536 = vst.msk [vmem:[#allocation2 + $0x20] sm:$0x1f] %vm535_vm3, %v530_v4  ;;  %vm591_vm1 = vcmask 647680   ;;  %vm633_vm2 = vcmask 1046400   ;;  %vm783_vm3 = vcmask 253952   ;;  %vm781_vm5 = vcmask 257024  }
 0x108   : > { %734 = vmatprep.subr.bf16.mxu1 %v996_v11  ;;  %vm784_vm4 = vsmask.f32 256  ;;  %vm803_vm7 = vcmask 516352  }
 0x109   : > { %561 = vrot.lane.b32.xlu1 %v558_v57, %s1000_s14  ;;  %vm785_vm6 = vmand %vm783_vm3, %vm784_vm4 }
 0x10a   : > { %599 = vrot.lane.b32.xlu0 %v596_v59, %s1001_s17 }
 0x10b   : > { %v643_v7 = vld [vmem:[#allocation2 + $0x18] sm:$0xff]  ;;  %735 = vmatpush1.bf16.msra.mxu1 %v979_v5 }
 0x10c   : > { %v647_v9 = vpack.c.bf16 %v645_v6, %v643_v7  ;;  %736 = vmatprep.subr.bf16.mxu1 %v996_v11 }
 0x10d   : > { %575 = vrot.lane.b32.xlu1 %v572_v2, %s998_s10 }
 0x10e   : > { %613 = vrot.lane.b32.xlu0 %v610_v3, %s1002_s20  ;;  %895 = vmatprep.mubr.msk.bf16.mxu1 %vm418_vm12, %v647_v9  ;;  %vm589_vm12 = vcmask 654848  }
 0x10f   : > { %737 = vmatpush1.bf16.msra.mxu1 %v980_v8 }
 0x110   : > { %738 = vmatprep.subr.bf16.mxu1 %v996_v11 }
 0x111   : > { %585 = vrot.lane.b32.xlu1 %v1101_v37, %s997_s29 }
 0x112   : > { %627 = vrot.lane.b32.xlu0 %v624_v0, %s1003_s23 }
 0x113   : > { %739 = vmatpush1.bf16.msra.mxu1 %v981_v10 }
 0x114   : > { %740 = vmatprep.subr.bf16.mxu1 %v996_v11 }
 0x115   : > { %597 = vrot.lane.b32.xlu1 %v594_v51, %s1001_s17  ;;  %s1191_s17 = scalar_lea.vmem %s1216_s7, %s902_s9 }
 0x116   : > { %611 = vrot.lane.b32.xlu0 %v608_v62, %s1002_s20  ;;  %v786_v42 = vld [vmem:[%s1191_s17 + $0x4] sm:$0x1] }
 0x117   : > { %741 = vmatpush1.bf16.msra.mxu1 %v982_v12 }
 0x118   : > { %742 = vmatprep.subr.bf16.mxu1 %v996_v11 }
 0x11a   : > { %625 = vrot.lane.b32.xlu0 %v622_v55, %s1003_s23 }
 0x11b   : > { %743 = vmatpush1.bf16.msra.mxu1 %v983_v13 }
 0x11c   : > { %744 = vmatprep.subr.bf16.mxu1 %v996_v11 }
 0x11f   : > { %745 = vmatpush1.bf16.msra.mxu1 %v984_v14 }
 0x120   : > { %746 = vmatprep.subr.bf16.mxu1 %v996_v11 }
 0x123   : > { %747 = vmatpush1.bf16.msra.mxu1 %v985_v15 }
 0x170   : > { %v584_v16 = vpop.permute.xlu0 %583 }
 0x173   : > { %v574_v17 = vpop.permute.xlu1 %573 }
 0x174   : > { %v544_v18 = vpop.permute.xlu0 %543 }
 0x175   : > { %550 = vst.msk [vmem:[#allocation2 + $0x10] sm:$0xf8] %vm549_vm8, %v544_v18  ;;  %vm804_vm8 = vmand %vm803_vm7, %vm784_vm4 }
 0x177   : > { %v546_v19 = vpop.permute.xlu1 %545 }
 0x178   : > { %552 = vst.msk [vmem:[#allocation2 + $0x20] sm:$0xf] %vm551_vm9, %v546_v19  ;;  %v560_v20 = vpop.permute.xlu0 %559  ;;  %vm801_vm9 = vcmask 519424  }
 0x179   : > { %566 = vst.msk [vmem:[#allocation2 + $0x10] sm:$0xfc] %vm565_vm10, %v560_v20 }
 0x17a   : > { %580 = vst.msk [vmem:[#allocation2 + $0x10] sm:$0xfe] %vm579_vm11, %v574_v17 }
 0x17b   : > { %v562_v21 = vpop.permute.xlu1 %561  ;;  %590 = vst.msk [vmem:[#allocation2 + $0x10] sm:$0xff] %vm589_vm12, %v584_v16 }
 0x17c   : > { %568 = vst.msk [vmem:[#allocation2 + $0x20] sm:$0x7] %vm567_vm13, %v562_v21  ;;  %v600_v11 = vpop.permute.xlu0 %599 }
 0x17d   : > { %606 = vst.msk [vmem:[#allocation2 + $0x10] sm:$0xff] %vm605_vm14, %v600_v11 }
 0x17f   : > { %v576_v22 = vpop.permute.xlu1 %575 }
 0x180   : > { %582 = vst.msk [vmem:[#allocation2 + $0x20] sm:$0x3] %vm581_vm15, %v576_v22  ;;  %v614_v23 = vpop.permute.xlu0 %613 }
 0x181   : > { %620 = vst.msk [vmem:[#allocation2 + $0x10] sm:$0x7f] %vm619_vm0, %v614_v23 }
 0x183   : > { %v586_v24 = vpop.permute.xlu1 %585 }
 0x184   : > { %592 = vst.msk [vmem:[#allocation2 + $0x20] sm:$0x1] %vm591_vm1, %v586_v24  ;;  %v628_v25 = vpop.permute.xlu0 %627 }
 0x185   : > { %634 = vst.msk [vmem:[#allocation2 + $0x10] sm:$0x3f] %vm633_vm2, %v628_v25 }
 0x187   : > { %v598_v26 = vpop.permute.xlu1 %597 }
 0x188   : > { %v612_v27 = vpop.permute.xlu0 %611 }
 0x18b   : > { %v644_v28 = vld [vmem:[#allocation2 + $0x20] sm:$0x1] }
 0x18c   : > { %v626_v29 = vpop.permute.xlu0 %625  ;;  %v642_v30 = vld [vmem:[#allocation2 + $0x10] sm:$0xff] }
 0x18d   : > { %v646_v31 = vpack.c.bf16 %v644_v28, %v642_v30 }
 0x18f   : > { %763 = vmatmul.mubr.bf16.vlgmr.msra.gmra.mrb[4].mxu1 %v646_v31 }
 0x1d5   : > { %v456_v33 = vpop.f32.mrb[0].mxu1 }
 0x1d6   : > { %v457_v34 = vadd.f32 %v882_v32, %v456_v33  ;;  %v943_v35 = vpop.f32.mrb[1].mxu1 }
 0x1d7   : > { %v459_v36 = vpop.f32.mrb[2].mxu1 }
 0x1d8   : > { %v463_v37 = vmax.f32 %v457_v34, 0.0  ;;  %v460_v38 = vadd.f32 %v882_v32, %v459_v36  ;;  %v944_v39 = vpop.f32.mrb[3].mxu1 }
 0x1da   : > { %v904_v40 = vpack.c.bf16 %v463_v37, %v463_v37  ;;  %v464_v41 = vmax.f32 %v460_v38, 0.0 }
 0x1dc   : > { %782 = vst.msk [vmem:[%s1191_s17] sm:$0xf] %vm781_vm5, %v904_v40  ;;  %v905_v43 = vpack.c.bf16 %v464_v41, %v464_v41 }
 0x1de   : > { %v787_v44 = vsel %vm785_vm6, %v905_v43, %v786_v42 }
 0x1df   : > { %788 = vst [vmem:[%s1191_s17 + $0x4] sm:$0x1] %v787_v44 }
 0x1e6   : > { %v805_v56 = vld [vmem:[%s1191_s17 + $0x4] sm:$0x1] }
 0x262   : > { %v764_v46 = vpop.f32.mrb[4].mxu1 }
 0x263   : > { %v766_v47 = vpop.f32.mrb[5].mxu1  ;;  %v765_v49 = vadd.f32 %v885_v45, %v764_v46 }
 0x264   : > { %v767_v48 = vpop.f32.mrb[6].mxu1 }
 0x265   : > { %v768_v50 = vadd.f32 %v885_v45, %v767_v48  ;;  %v769_v51 = vpop.f32.mrb[7].mxu1  ;;  %v771_v53 = vmax.f32 %v765_v49, 0.0 }
 0x267   : > { %v772_v52 = vmax.f32 %v768_v50, 0.0  ;;  %v906_v55 = vpack.c.bf16 %v771_v53, %v771_v53 }
 0x269   : > { %v907_v54 = vpack.c.bf16 %v772_v52, %v772_v52 }
 0x26b   : > { %797 = vrot.lane.b32.xlu1 %v907_v54, %s1000_s14 }
 0x26f   : > { %795 = vrot.lane.b32.xlu1 %v906_v55, %s1000_s14 }
 0x2dd   : > { %v798_v57 = vpop.permute.xlu1 %797 }
 0x2de   : > { %v806_v58 = vsel %vm804_vm8, %v798_v57, %v805_v56 }
 0x2df   : > { %807 = vst [vmem:[%s1191_s17 + $0x4] sm:$0x1] %v806_v58 }
 0x2e1   : > { %v796_v59 = vpop.permute.xlu1 %795 }
 0x2e2   : > { %802 = vst.msk [vmem:[%s1191_s17] sm:$0xf] %vm801_vm9, %v796_v59 }
 0x2e3 PF: > { %s17_s24 = sadd.s32 1, %s992_s24  }
 0x2e4   : > { %p14_p4 = scmp.ge.s32.totalorder %s17_s24, 4  }
 0x2e6   :  { %16 = sbr.rel (!%p14_p4) target bundleno = 1 (0x1), region = 78 }

// kernel: condecon_fs_forward.8
= control target key start
LH: loop header
LB: loop body
LE: loop exit
PB: predicated region body
PF: predicated region fallthrough
CT: control target
= control target key end

     0   :  { %s996_s24 = smov 0   ;;  %s1149_s0 = inlined_call_operand.vmem [shape: bf16[2,9,64], index: 0, kind: input, shape index: {}]   ;;  %s1150_s1 = inlined_call_operand.vmem [shape: bf16[64,16], index: 1, kind: input, shape index: {}]   ;;  %s1151_s2 = inlined_call_operand.vmem [shape: f32[1,16], index: 2, kind: input, shape index: {}]   ;;  %s1152_s3 = inlined_call_operand.vmem [shape: bf16[16,64], index: 3, kind: input, shape index: {}]   ;;  %s1153_s4 = inlined_call_operand.vmem [shape: f32[1,64], index: 4, kind: input, shape index: {}]   ;;  %s1154_s5 = inlined_call_operand.vmem [shape: bf16[144,64], index: 5, kind: input, shape index: {}]   ;;  %s1155_s6 = inlined_call_operand.vmem [shape: f32[1,64], index: 6, kind: input, shape index: {}]   ;;  %s1156_s7 = inlined_call_operand.vmem [shape: bf16[2,9,128], index: 7, kind: output, shape index: {}]  }
   0x1 LB: > { %s834_s25 = sadd.s32 4294967295, %s944_s24   ;;  %p838_p0 = scmp.ge.s32.totalorder %s944_s24, 1  ;;  %s944_s24 = sphi %s996_s24, %s17_s24  }
   0x2   : > { %p237_p1 = scmp.lt.s32.totalorder %s944_s24, 3 }
   0x4   : > { %p238_p2 = pnand %p838_p0, %p237_p1 }
   0x5   : > { %v923_v0 = vld [vmem:[%s1150_s1] sm:$0xff] (!%p238_p2)   ;;  %v946_v1 = vmov (!%p238_p2), 0.0   ;;  %v924_v2 = vld [vmem:[%s1150_s1 + $0x8] sm:$0xff] (!%p238_p2)   ;;  %vm947_vm0 = vmmov (!%p238_p2), 0   ;;  %p269_p3 = scmp.lt.s32.totalorder (!%p238_p2), %s834_s25, 1  ;;  %v925_v3 = vld [vmem:[%s1150_s1 + $0x10] sm:$0xff] (!%p238_p2)   ;;  %v436_v10 = vlaneseq (!%p238_p2) }
   0x6   : > { %241 = sbr.rel (%p238_p2) target bundleno = 723 (0x2d3), region = 48  ;;  %883 = vmatprep.subr.bf16.mxu0 (!%p238_p2), %v946_v1  ;;  %487 = vst [vmem:[#allocation2 + $0x10] sm:$0xf] (!%p238_p2), %v946_v1  ;;  %490 = vst [vmem:[#allocation2 + $0x10] sm:$0xe0] (!%p238_p2), %v946_v1  ;;  %891 = vmatprep.mubr.msk.bf16.mxu0 (!%p238_p2), %vm947_vm0, %v946_v1  ;;  %v926_v4 = vld [vmem:[%s1150_s1 + $0x18] sm:$0xff] (!%p238_p2)  }
   0x7   : > { %493 = vst [vmem:[#allocation2 + $0x20] sm:$0x1] (!%p238_p2), %v946_v1  ;;  %884 = vmatpush3.bf16.msra.mxu0 (!%p238_p2), %v923_v0  ;;  %vm326_vm1 = vcmask (!%p238_p2), 523264   ;;  %v928_v6 = vld [vmem:[%s1152_s3] sm:$0xff] (!%p238_p2)   ;;  %vm488_vm2 = vcmask (!%p238_p2), 125952   ;;  %vm491_vm3 = vcmask (!%p238_p2), 130053  }
   0x8   : > { %885 = vmatprep.subr.bf16.mxu0 (!%p238_p2), %v946_v1  ;;  %489 = vst.msk [vmem:[#allocation2 + $0x18] sm:$0xf] (!%p238_p2), %vm488_vm2, %v946_v1  ;;  %vm494_vm4 = vcmask (!%p238_p2), 122880   ;;  %v929_v7 = vld [vmem:[%s1154_s5] sm:$0xff] (!%p238_p2)   ;;  %v948_v8 = vmov (!%p238_p2), 0   ;;  %v930_v9 = vld [vmem:[%s1154_s5 + $0x8] sm:$0xff] (!%p238_p2)  }
   0x9   : > { %492 = vst.msk [vmem:[#allocation2 + $0x18] sm:$0xe0] (!%p238_p2), %vm491_vm3, %v946_v1  ;;  %701 = vmatprep.subr.bf16.mxu1 (!%p238_p2), %v948_v8  ;;  %v437_v11 = vshrl.u32 (!%p238_p2), %v436_v10, 7  ;;  %v931_v24 = vld [vmem:[%s1154_s5 + $0x10] sm:$0xff] (!%p238_p2)   ;;  %v843_v26 = vld [vmem:[%s1151_s2] ss:$0 sm:$0xff] (!%p238_p2) }
   0xa   : > { %495 = vst.msk [vmem:[#allocation2 + $0x28] sm:$0x1] (!%p238_p2), %vm494_vm4, %v946_v1  ;;  %702 = vmatpush1.bf16.msra.mxu1 (!%p238_p2), %v929_v7  ;;  %v932_v29 = vld [vmem:[%s1154_s5 + $0x18] sm:$0xff] (!%p238_p2)   ;;  %vm389_vm13 = vcmask (!%p238_p2), 130048   ;;  %vm510_vm14 = vcmask (!%p238_p2), 1042432   ;;  %vm526_vm2 = vcmask (!%p238_p2), 1041408  }
   0xb   : > { %886 = vmatpush3.bf16.msra.mxu0 (!%p238_p2), %v924_v2  ;;  %703 = vmatprep.subr.bf16.mxu1 (!%p238_p2), %v948_v8  ;;  %v438_v12 = vadd.s32 (!%p238_p2), 8, %v437_v11  ;;  %v1038_v13 = vmul.u32.u64.low (!%p238_p2), 2863311531, %v437_v11  ;;  %v1039_v14 = vmul.u32.u64.high 2863311531, %v437_v11, %v1038_v13  ;;  %vm564_vm3 = vcmask (!%p238_p2), 1046528   ;;  %v933_v37 = vld [vmem:[%s1154_s5 + $0x20] sm:$0xff] (!%p238_p2)   ;;  %s949_s8 = smov (!%p238_p2), 64  }
   0xc   : > { %887 = vmatprep.subr.bf16.mxu0 (!%p238_p2), %v946_v1  ;;  %vm506_vm4 = vcmask (!%p238_p2), 126976   ;;  %v934_v49 = vld [vmem:[%s1154_s5 + $0x28] sm:$0xff] (!%p238_p2)   ;;  %s951_s13 = smov (!%p238_p2), 16   ;;  %v935_v2 = vld [vmem:[%s1154_s5 + $0x30] sm:$0xff] (!%p238_p2)   ;;  %s952_s16 = smov (!%p238_p2), 32   ;;  %v937_v10 = vld [vmem:[%s1154_s5 + $0x40] sm:$0xff] (!%p238_p2)  }
   0xd   : > { %s1158_s25 = smov (!%p269_p3, %s834_s25), 1  ;;  %v1041_v15 = vmul.u32.u64.low 2863311531, %v438_v12  ;;  %v1042_v16 = vmul.u32.u64.high 2863311531, %v438_v12, %v1041_v15  ;;  %v445_v17 = vshrl.u32 %v1039_v14, 1  ;;  %s953_s19 = smov 80  }
   0xe   : > { %s870_s9 = sshll.u32 %s1158_s25, 3  ;;  %704 = vmatpush1.bf16.msra.mxu1 %v930_v9  ;;  %s954_s22 = smov 96  }
   0xf   : > { %s273_s12 = scalar_lea.vmem %s1149_s0, %s870_s9  ;;  %888 = vmatpush3.bf16.msra.mxu0 %v925_v3  ;;  %705 = vmatprep.subr.bf16.mxu1 %v948_v8  ;;  %v456_v18 = vshrl.u32 %v1042_v16, 1  ;;  %v446_v19 = vmul.u32 3, %v445_v17  ;;  %s955_s23 = smov 112  }
  0x10   : > { %889 = vmatprep.subr.bf16.mxu0 %v946_v1  ;;  %v927_v5 = vld [vmem:[%s273_s12] sm:$0x1f]   ;;  %s950_s12 = smov 48   ;;  %s1131_s30 = scalar_lea.vmem %s1156_s7, %s870_s9 }
  0x11   : > { %v457_v20 = vmul.u32 3, %v456_v18  ;;  %v447_v21 = vsub.s32 %v437_v11, %v446_v19  ;;  %v616_v7 = vld [vmem:[#allocation2 + $0x28] sm:$0x1] }
  0x12   : > { %706 = vmatpush1.bf16.msra.mxu1 %v931_v24 }
  0x13   : > { %890 = vmatpush3.bf16.msra.mxu0 %v926_v4  ;;  %v458_v22 = vsub.s32 %v438_v12, %v457_v20  ;;  %vm461_vm5 = vcmp.ne.s32.totalorder %v447_v21, 0  ;;  %vm463_vm6 = vcmp.lt.s32.totalorder %v447_v21, 0  ;;  %v467_v23 = vadd.s32 3, %v447_v21  ;;  %707 = vmatprep.subr.bf16.mxu1 %v948_v8 }
  0x14   : > { %895 = vmatprep.subr.bf16.mxu0 %v946_v1  ;;  %vm465_vm9 = vmand %vm463_vm6, %vm461_vm5  ;;  %vm540_vm5 = vcmask 1040384   ;;  %vm578_vm6 = vcmask 1045504  }
  0x15   : > { %vm462_vm7 = vcmp.ne.s32.totalorder %v458_v22, 0  ;;  %vm464_vm8 = vcmp.lt.s32.totalorder %v458_v22, 0  ;;  %v468_v25 = vadd.s32 3, %v458_v22  ;;  %v469_v27 = vsel %vm465_vm9, %v467_v23, %v447_v21 }
  0x16   : > { %892 = vmatmul.mubr.msk.bf16.vlgmr.msra.gmra.mrb[0].mxu0 %vm326_vm1, %v927_v5  ;;  %vm466_vm10 = vmand %vm464_vm8, %vm462_vm7  ;;  %vm471_vm11 = vcmp.eq.s32.totalorder %v469_v27, 2  ;;  %vm479_vm12 = vcmp.eq.s32.totalorder %v469_v27, 0  ;;  %708 = vmatpush1.bf16.msra.mxu1 %v932_v29  ;;  %vm592_vm7 = vcmask 1044480   ;;  %vm504_vm8 = vcmask 130052  }
  0x17   : > { %897 = vmatprep.mubr.msk.bf16.mxu0 %vm947_vm0, %v946_v1  ;;  %896 = vmatpush3.bf16.msra.mxu0 %v928_v6  ;;  %v470_v28 = vsel %vm466_vm10, %v468_v25, %v458_v22  ;;  %vm498_vm0 = vcmask 1043456   ;;  %v936_v6 = vld [vmem:[%s1154_s5 + $0x38] sm:$0xff]   ;;  %vm520_vm9 = vcmask 261251   ;;  %vm522_vm10 = vcmask 257152  }
  0x18   : > { %vm480_vm15 = vcmp.eq.s32.totalorder %v470_v28, 0  ;;  %vm472_vm1 = vcmp.eq.s32.totalorder %v470_v28, 2  ;;  %709 = vmatprep.subr.bf16.mxu1 %v948_v8  ;;  %v850_v28 = vld [vmem:[%s1153_s4] ss:$0 sm:$0xff] }
  0x1a   : > { %710 = vmatpush1.bf16.msra.mxu1 %v933_v37 }
  0x1b   : > { %711 = vmatprep.subr.bf16.mxu1 %v948_v8 }
  0x1e   : > { %712 = vmatpush1.bf16.msra.mxu1 %v934_v49 }
  0x1f   : > { %713 = vmatprep.subr.bf16.mxu1 %v948_v8 }
  0x22   : > { %714 = vmatpush1.bf16.msra.mxu1 %v935_v2 }
  0x23   : > { %715 = vmatprep.subr.bf16.mxu1 %v948_v8 }
  0x26   : > { %716 = vmatpush1.bf16.msra.mxu1 %v936_v6 }
  0x27   : > { %717 = vmatprep.subr.bf16.mxu1 %v948_v8 }
  0x2a   : > { %718 = vmatpush1.bf16.msra.mxu1 %v937_v10 }
  0xe9   : > { %v364_v30 = vpop.f32.mrb[0].mxu0 }
  0xea   : > { %v365_v31 = vadd.f32 %v843_v26, %v364_v30  ;;  %v893_v32 = vpop.f32.mrb[1].mxu0 }
  0xeb   : > { %v367_v33 = vpop.f32.mrb[2].mxu0 }
  0xec   : > { %v1057_v34 = vmax.f32 %v365_v31, 0.0  ;;  %v368_v35 = vadd.f32 %v843_v26, %v367_v33  ;;  %v894_v36 = vpop.f32.mrb[3].mxu0 }
  0xee   : > { %v1062_v38 = vmax.f32 %v368_v35, 0.0  ;;  %554 = vrot.lane.b32.xlu0 %v1057_v34, %s949_s8  ;;  %v1068_v39 = vsel %vm471_vm11, 0.0, %v1057_v34  ;;  %v1072_v40 = vsel %vm479_vm12, 0.0, %v1057_v34  ;;  %v511_v43 = vrot.slane %v1057_v34, 5 }
  0xef   : > { %v541_v41 = vrot.slane %v1068_v39, 7  ;;  %v499_v42 = vrot.slane %v1068_v39, 4  ;;  %v527_v44 = vrot.slane %v1072_v40, 6  ;;  %v606_v47 = vrot.slane %v1072_v40, 4 }
  0xf0   : > { %v373_v45 = vpack.c.bf16 %v1062_v38, %v1057_v34  ;;  %v512_v46 = vrot.slane %v1062_v38, 5  ;;  %v486_v48 = vsel %vm480_vm15, 0.0, %v1062_v38  ;;  %v565_v52 = vrot.slane %v1072_v40, 1 }
  0xf1   : > { %544 = vrot.lane.b32.xlu1 %v541_v41, %s950_s12  ;;  %v528_v50 = vrot.slane %v486_v48, 6  ;;  %v607_v51 = vrot.slane %v486_v48, 4  ;;  %v566_v53 = vrot.slane %v486_v48, 1  ;;  %505 = vst.msk [vmem:[#allocation2 + $0x10] sm:$0xf0] %vm504_vm8, %v499_v42  ;;  %v478_v55 = vsel %vm472_vm1, 0.0, %v1062_v38 }
  0xf2   : > { %514 = vrot.lane.b32.xlu0 %v511_v43, %s951_s13  ;;  %898 = vmatmul.mubr.msk.bf16.vlgmr.msra.gmra.mrb[4].mxu0 %vm389_vm13, %v373_v45  ;;  %v513_v54 = vsel %vm510_vm14, %v511_v43, %v512_v46  ;;  %v593_v56 = vrot.slane %v1057_v34, 3  ;;  %v594_v57 = vrot.slane %v1062_v38, 3  ;;  %v542_v61 = vrot.slane %v478_v55, 7 }
  0xf3   : > { %v529_v58 = vsel %vm526_vm2, %v527_v44, %v528_v50  ;;  %v608_v59 = vsel %vm498_vm0, %v606_v47, %v607_v51  ;;  %v567_v60 = vsel %vm564_vm3, %v565_v52, %v566_v53  ;;  %v579_v62 = vrot.slane %v1068_v39, 2 }
  0xf4   : > { %612 = vst.msk [vmem:[#allocation2 + $0x18] sm:$0x1f] %vm506_vm4, %v608_v59  ;;  %v580_v63 = vrot.slane %v478_v55, 2  ;;  %v595_v0 = vsel %vm592_vm7, %v593_v56, %v594_v57  ;;  %v500_v1 = vrot.slane %v478_v55, 4  ;;  %v543_v3 = vsel %vm540_vm5, %v541_v41, %v542_v61  ;;  %v853_v41 = vld [vmem:[%s1155_s6] ss:$0 sm:$0xff] }
  0xf5   : > { %516 = vrot.lane.b32.xlu1 %v513_v54, %s951_s13  ;;  %vm536_vm11 = vcmask 392450   ;;  %vm550_vm12 = vcmask 523649   ;;  %vm538_vm14 = vcmask 387328   ;;  %vm576_vm15 = vcmask 786048  }
  0xf6   : > { %530 = vrot.lane.b32.xlu0 %v527_v44, %s952_s16  ;;  %v581_v4 = vsel %vm578_vm6, %v579_v62, %v580_v63  ;;  %v501_v5 = vsel %vm498_vm0, %v499_v42, %v500_v1  ;;  %vm552_vm0 = vcmask 517504   ;;  %vm590_vm1 = vcmask 916224  }
  0xf7   : > { %507 = vst.msk [vmem:[#allocation2 + $0x20] sm:$0x1f] %vm506_vm4, %v501_v5  ;;  %vm562_vm2 = vcmask 647680   ;;  %vm604_vm3 = vcmask 1046400   ;;  %vm754_vm4 = vcmask 516096   ;;  %vm752_vm6 = vcmask 519168  }
  0xf8   : > { %vm755_vm5 = vsmask.f32 256  ;;  %vm774_vm8 = vcmask 1040896  }
  0xf9   : > { %532 = vrot.lane.b32.xlu1 %v529_v58, %s952_s16  ;;  %vm756_vm7 = vmand %vm754_vm4, %vm755_vm5 }
  0xfa   : > { %570 = vrot.lane.b32.xlu0 %v567_v60, %s953_s19 }
  0xfb   : > { %v614_v9 = vld [vmem:[#allocation2 + $0x18] sm:$0xff] }
  0xfc   : > { %v618_v11 = vpack.c.bf16 %v616_v7, %v614_v9 }
  0xfd   : > { %546 = vrot.lane.b32.xlu1 %v543_v3, %s950_s12 }
  0xfe   : > { %863 = vmatprep.mubr.msk.bf16.mxu1 %vm389_vm13, %v618_v11  ;;  %584 = vrot.lane.b32.xlu0 %v581_v4, %s954_s22  ;;  %vm560_vm13 = vcmask 654848  }
 0x101   : > { %556 = vrot.lane.b32.xlu1 %v1062_v38, %s949_s8  ;;  %v757_v38 = vld [vmem:[%s1131_s30 + $0x4] sm:$0x1] }
 0x102   : > { %598 = vrot.lane.b32.xlu0 %v595_v0, %s955_s23 }
 0x105   : > { %568 = vrot.lane.b32.xlu1 %v565_v52, %s953_s19 }
 0x106   : > { %582 = vrot.lane.b32.xlu0 %v579_v62, %s954_s22 }
 0x10a   : > { %596 = vrot.lane.b32.xlu0 %v593_v56, %s955_s23 }
 0x160   : > { %v555_v12 = vpop.permute.xlu0 %554 }
 0x163   : > { %v545_v13 = vpop.permute.xlu1 %544 }
 0x164   : > { %v515_v14 = vpop.permute.xlu0 %514 }
 0x165   : > { %521 = vst.msk [vmem:[#allocation2 + $0x10] sm:$0xf8] %vm520_vm9, %v515_v14  ;;  %vm775_vm9 = vmand %vm774_vm8, %vm755_vm5 }
 0x167   : > { %v517_v8 = vpop.permute.xlu1 %516 }
 0x168   : > { %523 = vst.msk [vmem:[#allocation2 + $0x20] sm:$0xf] %vm522_vm10, %v517_v8  ;;  %v531_v15 = vpop.permute.xlu0 %530  ;;  %vm772_vm10 = vcmask 1043968  }
 0x169   : > { %537 = vst.msk [vmem:[#allocation2 + $0x10] sm:$0xfc] %vm536_vm11, %v531_v15 }
 0x16a   : > { %551 = vst.msk [vmem:[#allocation2 + $0x10] sm:$0xfe] %vm550_vm12, %v545_v13 }
 0x16b   : > { %v533_v16 = vpop.permute.xlu1 %532  ;;  %561 = vst.msk [vmem:[#allocation2 + $0x10] sm:$0xff] %vm560_vm13, %v555_v12 }
 0x16c   : > { %539 = vst.msk [vmem:[#allocation2 + $0x20] sm:$0x7] %vm538_vm14, %v533_v16  ;;  %v571_v17 = vpop.permute.xlu0 %570 }
 0x16d   : > { %577 = vst.msk [vmem:[#allocation2 + $0x10] sm:$0xff] %vm576_vm15, %v571_v17 }
 0x16f   : > { %v547_v18 = vpop.permute.xlu1 %546 }
 0x170   : > { %553 = vst.msk [vmem:[#allocation2 + $0x20] sm:$0x3] %vm552_vm0, %v547_v18  ;;  %v585_v19 = vpop.permute.xlu0 %584 }
 0x171   : > { %591 = vst.msk [vmem:[#allocation2 + $0x10] sm:$0x7f] %vm590_vm1, %v585_v19 }
 0x173   : > { %v557_v20 = vpop.permute.xlu1 %556 }
 0x174   : > { %563 = vst.msk [vmem:[#allocation2 + $0x20] sm:$0x1] %vm562_vm2, %v557_v20  ;;  %v599_v21 = vpop.permute.xlu0 %598 }
 0x175   : > { %605 = vst.msk [vmem:[#allocation2 + $0x10] sm:$0x3f] %vm604_vm3, %v599_v21 }
 0x177   : > { %v569_v22 = vpop.permute.xlu1 %568 }
 0x178   : > { %v583_v23 = vpop.permute.xlu0 %582 }
 0x17b   : > { %v615_v24 = vld [vmem:[#allocation2 + $0x20] sm:$0x1] }
 0x17c   : > { %v597_v25 = vpop.permute.xlu0 %596  ;;  %v613_v26 = vld [vmem:[#allocation2 + $0x10] sm:$0xff] }
 0x17d   : > { %v617_v27 = vpack.c.bf16 %v615_v24, %v613_v26 }
 0x17f   : > { %734 = vmatmul.mubr.bf16.vlgmr.msra.gmra.mrb[0].mxu1 %v617_v27 }
 0x1c5   : > { %v427_v29 = vpop.f32.mrb[4].mxu0 }
 0x1c6   : > { %v428_v30 = vadd.f32 %v850_v28, %v427_v29  ;;  %v899_v31 = vpop.f32.mrb[5].mxu0 }
 0x1c7   : > { %v430_v32 = vpop.f32.mrb[6].mxu0 }
 0x1c8   : > { %v434_v33 = vmax.f32 %v428_v30, 0.0  ;;  %v431_v34 = vadd.f32 %v850_v28, %v430_v32  ;;  %v900_v35 = vpop.f32.mrb[7].mxu0 }
 0x1ca   : > { %v872_v36 = vpack.c.bf16 %v434_v33, %v434_v33  ;;  %v435_v37 = vmax.f32 %v431_v34, 0.0 }
 0x1cc   : > { %753 = vst.msk [vmem:[%s1131_s30] sm:$0xf] %vm752_vm6, %v872_v36  ;;  %v873_v39 = vpack.c.bf16 %v435_v37, %v435_v37 }
 0x1ce   : > { %v758_v40 = vsel %vm756_vm7, %v873_v39, %v757_v38 }
 0x1cf   : > { %759 = vst [vmem:[%s1131_s30 + $0x4] sm:$0x1] %v758_v40 }
 0x1d6   : > { %v776_v53 = vld [vmem:[%s1131_s30 + $0x4] sm:$0x1] }
 0x252   : > { %v735_v42 = vpop.f32.mrb[0].mxu1 }
 0x253   : > { %v737_v43 = vpop.f32.mrb[1].mxu1  ;;  %v736_v45 = vadd.f32 %v853_v41, %v735_v42 }
 0x254   : > { %v738_v44 = vpop.f32.mrb[2].mxu1 }
 0x255   : > { %v739_v46 = vadd.f32 %v853_v41, %v738_v44  ;;  %v740_v47 = vpop.f32.mrb[3].mxu1  ;;  %v742_v49 = vmax.f32 %v736_v45, 0.0 }
 0x257   : > { %v743_v48 = vmax.f32 %v739_v46, 0.0  ;;  %v874_v51 = vpack.c.bf16 %v742_v49, %v742_v49 }
 0x259   : > { %v875_v50 = vpack.c.bf16 %v743_v48, %v743_v48 }
 0x25b   : > { %768 = vrot.lane.b32.xlu1 %v875_v50, %s949_s8 }
 0x25f   : > { %766 = vrot.lane.b32.xlu1 %v874_v51, %s949_s8 }
 0x2cd   : > { %v769_v52 = vpop.permute.xlu1 %768 }
 0x2ce   : > { %v777_v54 = vsel %vm775_vm9, %v769_v52, %v776_v53 }
 0x2cf   : > { %778 = vst [vmem:[%s1131_s30 + $0x4] sm:$0x1] %v777_v54 }
 0x2d1   : > { %v767_v55 = vpop.permute.xlu1 %766 }
 0x2d2   : > { %773 = vst.msk [vmem:[%s1131_s30] sm:$0xf] %vm772_vm10, %v767_v55 }
 0x2d3 PF: > { %s17_s24 = sadd.s32 1, %s944_s24  }
 0x2d4   : > { %p14_p4 = scmp.ge.s32.totalorder %s17_s24, 4  }
 0x2d6   :  { %16 = sbr.rel (!%p14_p4) target bundleno = 1 (0x1), region = 78 }

// kernel: condecon_fs_forward.10
= control target key start
LH: loop header
LB: loop body
LE: loop exit
PB: predicated region body
PF: predicated region fallthrough
CT: control target
= control target key end

     0   :  { %s1811_s30 = smov 0   ;;  %s2239_s0 = inlined_call_operand.vmem [shape: bf16[2,49,64], index: 0, kind: input, shape index: {}]   ;;  %s2240_s1 = inlined_call_operand.vmem [shape: bf16[2,49,64], index: 1, kind: input, shape index: {}]   ;;  %s2241_s2 = inlined_call_operand.vmem [shape: bf16[64,8], index: 2, kind: input, shape index: {}]   ;;  %s2242_s3 = inlined_call_operand.vmem [shape: bf16[64,8], index: 3, kind: input, shape index: {}]   ;;  %s2243_s4 = inlined_call_operand.vmem [shape: f32[1,8], index: 4, kind: input, shape index: {}]   ;;  %s2244_s5 = inlined_call_operand.vmem [shape: bf16[8,16], index: 5, kind: input, shape index: {}]   ;;  %s2245_s6 = inlined_call_operand.vmem [shape: f32[1,16], index: 6, kind: input, shape index: {}]   ;;  %s2246_s7 = inlined_call_operand.vmem [shape: bf16[72,16], index: 7, kind: input, shape index: {}]   ;;  %s2247_s8 = inlined_call_operand.vmem [shape: f32[1,16], index: 8, kind: input, shape index: {}]   ;;  %s2248_s9 = inlined_call_operand.vmem [shape: bf16[2,49,32], index: 9, kind: output, shape index: {}]  }
   0x1 LB: > { %s1515_s10 = sadd.s32 4294967295, %s1749_s30   ;;  %p1519_p0 = scmp.ge.s32.totalorder %s1749_s30, 1  ;;  %s1749_s30 = sphi %s1811_s30, %s19_s30  }
   0x2   : > { %p297_p1 = scmp.lt.s32.totalorder %s1749_s30, 3 }
   0x4   : > { %p298_p2 = pnand %p1519_p0, %p297_p1 }
   0x5   : > { %v1722_v0 = vld [vmem:[%s2242_s3] sm:$0xff] (!%p298_p2)   ;;  %p338_p3 = scmp.lt.s32.totalorder (!%p298_p2), %s1515_s10, 1  ;;  %v1723_v1 = vld [vmem:[%s2242_s3 + $0x8] sm:$0xff] (!%p298_p2)   ;;  %v1724_v2 = vld [vmem:[%s2242_s3 + $0x10] sm:$0xff] (!%p298_p2)   ;;  %vm426_vm0 = vcmask (!%p298_p2), 523264   ;;  %vm667_vm1 = vcmask (!%p298_p2), 1043456   ;;  %v742_v19 = vlaneseq (!%p298_p2) }
   0x6   : > { %301 = sbr.rel (%p298_p2) target bundleno = 821 (0x335), region = 56  ;;  %1623 = vmatprep.subr.bf16.mxu0 (!%p298_p2), %v1722_v0  ;;  %v1725_v4 = vld [vmem:[%s2242_s3 + $0x18] sm:$0xff] (!%p298_p2)   ;;  %v1728_v5 = vld [vmem:[%s2241_s2] sm:$0xff] (!%p298_p2)   ;;  %v1729_v7 = vld [vmem:[%s2241_s2 + $0x8] sm:$0xff] (!%p298_p2)   ;;  %vm939_vm2 = vcmask (!%p298_p2), 588800   ;;  %v1751_v18 = vmov (!%p298_p2), 0.0  }
   0x7   : > { %1624 = vmatpush3.bf16.msra.mxu0 (!%p298_p2), %v1722_v0  ;;  %v1732_v9 = vld [vmem:[%s2241_s2 + $0x10] sm:$0xff] (!%p298_p2)   ;;  %v1733_v12 = vld [vmem:[%s2241_s2 + $0x18] sm:$0xff] (!%p298_p2)   ;;  %v646_v16 = vld [vmem:[%s2244_s5] sm:$0xf] (!%p298_p2)  ;;  %941 = vst.msk [vmem:[#allocation2 + $0x31] sm:$0xff] (!%p298_p2), %vm939_vm2, %v1751_v18  ;;  %v743_v20 = vshrl.u32 (!%p298_p2), %v742_v19, 7 }
   0x8   : > { %1625 = vmatprep.subr.bf16.mxu0 (!%p298_p2), %v1723_v1  ;;  %1687 = vmatprep.subr.msk.bf16.mxu1 (!%p298_p2), %vm667_vm1, %v646_v16  ;;  %v669_v17 = vsel (!%p298_p2), %vm667_vm1, %v646_v16, 0  ;;  %940 = vst.msk [vmem:[#allocation2 + $0x8] sm:$0xff] (!%p298_p2), %vm939_vm2, %v1751_v18  ;;  %v1752_v32 = vmov (!%p298_p2), 0   ;;  %v1916_v18 = vld [vmem:[%s2243_s4] ss:$0 sm:$0xff] (!%p298_p2)  ;;  %s1753_s19 = smov (!%p298_p2), 56  }
   0x9   : > { %1656 = vmatpush3.bf16.msra.mxu1 (!%p298_p2), %v669_v17  ;;  %v745_v21 = vadd.s32 (!%p298_p2), 16, %v743_v20  ;;  %v746_v24 = vadd.s32 (!%p298_p2), 24, %v743_v20  ;;  %v1871_v25 = vmul.u32.u64.low (!%p298_p2), 2454267026, %v743_v20  ;;  %v1872_v26 = vmul.u32.u64.high 2454267026, %v743_v20, %v1871_v25  ;;  %s1755_s21 = smov (!%p298_p2), 32   ;;  %s1756_s22 = smov (!%p298_p2), 16  }
   0xa   : > { %v744_v27 = vadd.s32 (!%p298_p2), 8, %v743_v20  ;;  %v1880_v35 = vadd.s32 (!%p298_p2), 48, %v743_v20  ;;  %v1882_v36 = vadd.s32 (!%p298_p2), 32, %v743_v20  ;;  %v1890_v43 = vadd.s32 (!%p298_p2), 40, %v743_v20  ;;  %s1757_s23 = smov (!%p298_p2), 24   ;;  %s1758_s24 = smov (!%p298_p2), 40  }
   0xb   : > { %1626 = vmatpush3.bf16.msra.mxu0 (!%p298_p2), %v1723_v1  ;;  %v1868_v22 = vmul.u32.u64.low (!%p298_p2), 2454267026, %v745_v21  ;;  %v1869_v23 = vmul.u32.u64.high 2454267026, %v745_v21, %v1868_v22  ;;  %v1874_v28 = vmul.u32.u64.low (!%p298_p2), 2454267026, %v746_v24  ;;  %v1875_v29 = vmul.u32.u64.high 2454267026, %v746_v24, %v1874_v28  ;;  %s1760_s26 = smov (!%p298_p2), 64  }
   0xc   : > { %1627 = vmatprep.subr.bf16.mxu0 (!%p298_p2), %v1724_v2  ;;  %vm756_vm4 = vc.u32 (!%p298_p2), %v1871_v25, 2454267026  ;;  %v1877_v30 = vmul.u32.u64.low (!%p298_p2), 2454267026, %v744_v27  ;;  %v1878_v31 = vmul.u32.u64.high 2454267026, %v744_v27, %v1877_v30 }
   0xd   : > { %s2252_s10 = smov (!%p338_p3, %s1515_s10), 1  ;;  %vm784_vm3 = vc.u32 %v1868_v22, 2454267026  ;;  %v757_v34 = vsel %vm756_vm4, 1, %v1752_v32  ;;  %vm798_vm5 = vc.u32 %v1874_v28, 2454267026 }
   0xe   : > { %s1828_s17 = smul.u32 28, %s2252_s10  ;;  %v785_v33 = vsel %vm784_vm3, 1, %v1752_v32  ;;  %vm770_vm6 = vc.u32 %v1877_v30, 2454267026  ;;  %v758_v38 = vadd.s32 %v1872_v26, %v757_v34  ;;  %v799_v39 = vsel %vm798_vm5, 1, %v1752_v32 }
   0xf   : > { %1628 = vmatpush3.bf16.msra.mxu0 %v1724_v2  ;;  %v786_v37 = vadd.s32 %v1869_v23, %v785_v33  ;;  %v771_v40 = vsel %vm770_vm6, 1, %v1752_v32  ;;  %v1887_v41 = vmul.u32.u64.low 2454267026, %v1880_v35  ;;  %v1888_v42 = vmul.u32.u64.high 2454267026, %v1880_v35, %v1887_v41 }
  0x10   : > { %s347_s20 = scalar_lea.vmem %s2240_s1, %s1828_s17  ;;  %s342_s25 = scalar_lea.vmem %s2239_s0, %s1828_s17  ;;  %1629 = vmatprep.subr.bf16.mxu0 %v1725_v4  ;;  %v800_v44 = vadd.s32 %v1875_v29, %v799_v39  ;;  %v1894_v45 = vmul.u32.u64.low 2454267026, %v1882_v36  ;;  %v1895_v46 = vmul.u32.u64.high 2454267026, %v1882_v36, %v1894_v45  ;;  %v772_v48 = vadd.s32 %v1878_v31, %v771_v40 }
  0x11   : > { %v1726_v3 = vld [vmem:[%s347_s20] sm:$0xff]   ;;  %v1727_v6 = vld [vmem:[%s347_s20 + $0x8] sm:$0xff]   ;;  %v1730_v8 = vld [vmem:[%s347_s20 + $0x10] sm:$0xff]   ;;  %v787_v47 = vshrl.u32 %v786_v37, 2  ;;  %v759_v49 = vshrl.u32 %v758_v38, 2 }
  0x12   : > { %1631 = vmatprep.mubr.msk.bf16.mxu0 %vm426_vm0, %v1726_v3  ;;  %v1731_v10 = vld [vmem:[%s347_s20 + $0x18] ss:$0 sps:$4 sm:$0x11]   ;;  %v1734_v11 = vld [vmem:[%s342_s25] sm:$0xff]   ;;  %v1735_v13 = vld [vmem:[%s342_s25 + $0x8] sm:$0xff]   ;;  %v801_v52 = vshrl.u32 %v800_v44, 2 }
  0x13   : > { %1630 = vmatpush3.bf16.msra.mxu0 %v1725_v4  ;;  %v1736_v14 = vld [vmem:[%s342_s25 + $0x10] sm:$0xff]   ;;  %v1737_v15 = vld [vmem:[%s342_s25 + $0x18] ss:$0 sps:$4 sm:$0x11]   ;;  %vm840_vm7 = vc.u32 %v1887_v41, 2454267026 }
  0x14   : > { %1639 = vmatprep.subr.bf16.mxu0 %v1728_v5  ;;  %v1899_v50 = vmul.u32.u64.low 2454267026, %v1890_v43  ;;  %v1900_v51 = vmul.u32.u64.high 2454267026, %v1890_v43, %v1899_v50  ;;  %vm812_vm8 = vc.u32 %v1894_v45, 2454267026  ;;  %v788_v53 = vmul.u32 7, %v787_v47  ;;  %s1754_s20 = smov 8  }
  0x15   : > { %v773_v54 = vshrl.u32 %v772_v48, 2  ;;  %v841_v55 = vsel %vm840_vm7, 1, %v1752_v32  ;;  %v760_v56 = vmul.u32 7, %v759_v49  ;;  %v813_v57 = vsel %vm812_vm8, 1, %v1752_v32  ;;  %s1759_s25 = smov 48  }
  0x16   : > { %1632 = vmatmul.mubr.msk.bf16.vlgmr.msra.gmra.mrb[0].mxu0 %vm426_vm0, %v1727_v6  ;;  %vm826_vm9 = vc.u32 %v1899_v50, 2454267026  ;;  %v802_v58 = vmul.u32 7, %v801_v52  ;;  %v842_v59 = vadd.s32 %v1888_v42, %v841_v55  ;;  %v789_v60 = vsub.s32 %v745_v21, %v788_v53 }
  0x17   : > { %1640 = vmatpush3.bf16.msra.mxu0 %v1728_v5  ;;  %1635 = vmatprep.mubr.msk.bf16.mxu0 %vm426_vm0, %v1730_v8  ;;  %v774_v61 = vmul.u32 7, %v773_v54  ;;  %v827_v62 = vsel %vm826_vm9, 1, %v1752_v32  ;;  %v761_v63 = vsub.s32 %v743_v20, %v760_v56  ;;  %v814_v0 = vadd.s32 %v1895_v46, %v813_v57 }
  0x18   : > { %1641 = vmatprep.subr.bf16.mxu0 %v1729_v7  ;;  %v803_v1 = vsub.s32 %v746_v24, %v802_v58  ;;  %v843_v2 = vshrl.u32 %v842_v59, 2  ;;  %v828_v3 = vadd.s32 %v1900_v51, %v827_v62  ;;  %vm850_vm10 = vcmp.ne.s32.totalorder %v789_v60, 0 }
  0x19   : > { %vm857_vm11 = vcmp.lt.s32.totalorder %v789_v60, 0  ;;  %v775_v4 = vsub.s32 %v744_v27, %v774_v61  ;;  %vm848_vm12 = vcmp.ne.s32.totalorder %v761_v63, 0  ;;  %vm855_vm13 = vcmp.lt.s32.totalorder %v761_v63, 0 }
  0x1a   : > { %v815_v6 = vshrl.u32 %v814_v0, 2  ;;  %v871_v8 = vadd.s32 7, %v789_v60  ;;  %vm864_vm14 = vmand %vm857_vm11, %vm850_vm10  ;;  %vm851_vm15 = vcmp.ne.s32.totalorder %v803_v1, 0  ;;  %vm654_vm9 = vcmask 64512  }
  0x1b   : > { %1642 = vmatpush3.bf16.msra.mxu0 %v1729_v7  ;;  %vm862_vm3 = vmand %vm855_vm13, %vm848_vm12  ;;  %vm849_vm4 = vcmp.ne.s32.totalorder %v775_v4, 0  ;;  %vm856_vm5 = vcmp.lt.s32.totalorder %v775_v4, 0  ;;  %v870_v17 = vadd.s32 7, %v775_v4 }
  0x1c   : > { %1643 = vmatprep.subr.bf16.mxu0 %v1732_v9  ;;  %v1911_v16 = vsel %vm864_vm14, %v871_v8, %v789_v60  ;;  %vm863_vm7 = vmand %vm856_vm5, %vm849_vm4 }
  0x1d   : > { %vm885_vm8 = vcmp.eq.s32.totalorder %v1911_v16, 6  ;;  %v1927_v27 = vsel %vm863_vm7, %v870_v17, %v775_v4  ;;  %vm913_vm7 = vcmp.eq.s32.totalorder %v1911_v16, 0 }
  0x1e   : > { %1636 = vmatmul.mubr.msk.bf16.gmra.mrb[4].mxu0 %vm426_vm0, %v1731_v10 }
  0x1f   : > { %1644 = vmatpush3.bf16.msra.mxu0 %v1732_v9  ;;  %1647 = vmatprep.mubr.msk.bf16.mxu0 %vm426_vm0, %v1734_v11  ;;  %v869_v9 = vadd.s32 7, %v761_v63  ;;  %v844_v11 = vmul.u32 7, %v843_v2 }
  0x20   : > { %1645 = vmatprep.subr.bf16.mxu0 %v1733_v12 }
  0x21   : > { %v1918_v19 = vsel %vm862_vm3, %v869_v9, %v761_v63  ;;  %v845_v20 = vsub.s32 %v1880_v35, %v844_v11  ;;  %v1738_v9 = vld [vmem:[%s2246_s7] sm:$0xff]   ;;  %v1739_v11 = vld [vmem:[%s2246_s7 + $0x8] sm:$0xff]  }
  0x22   : > { %vm883_vm10 = vcmp.eq.s32.totalorder %v1918_v19, 6  ;;  %1665 = vmatprep.subr.bf16.mxu1 %v1738_v9 }
  0x23   : > { %1646 = vmatpush3.bf16.msra.mxu0 %v1733_v12  ;;  %v829_v12 = vshrl.u32 %v828_v3, 2  ;;  %vm854_vm11 = vcmp.ne.s32.totalorder %v845_v20, 0  ;;  %vm861_vm12 = vcmp.lt.s32.totalorder %v845_v20, 0  ;;  %v875_v34 = vadd.s32 7, %v845_v20 }
  0x24   : > { %vm868_vm3 = vmand %vm861_vm12, %vm854_vm11 }
  0x25   : > { %v830_v21 = vmul.u32 7, %v829_v12  ;;  %v1974_v48 = vsel %vm868_vm3, %v875_v34, %v845_v20  ;;  %v1740_v12 = vld [vmem:[%s2246_s7 + $0x10] sm:$0xff]  }
  0x26   : > { %1648 = vmatmul.mubr.msk.bf16.vlgmr.msra.gmra.mrb[0].mxu0 %vm426_vm0, %v1735_v13 }
  0x27   : > { %1651 = vmatprep.mubr.msk.bf16.mxu0 %vm426_vm0, %v1736_v14  ;;  %v872_v14 = vadd.s32 7, %v803_v1  ;;  %v831_v30 = vsub.s32 %v1890_v43, %v830_v21 }
  0x29   : > { %vm853_vm4 = vcmp.ne.s32.totalorder %v831_v30, 0  ;;  %vm860_vm5 = vcmp.lt.s32.totalorder %v831_v30, 0  ;;  %v874_v49 = vadd.s32 7, %v831_v30 }
  0x2e   : > { %1652 = vmatmul.mubr.msk.bf16.gmra.mrb[8].mxu0 %vm426_vm0, %v1737_v15  ;;  %vm858_vm0 = vcmp.lt.s32.totalorder %v803_v1, 0  ;;  %v816_v15 = vmul.u32 7, %v815_v6 }
  0x2f   : > { %vm865_vm6 = vmand %vm858_vm0, %vm851_vm15  ;;  %vm884_vm0 = vcmp.eq.s32.totalorder %v1927_v27, 6 }
  0x30   : > { %v1922_v23 = vsel %vm865_vm6, %v872_v14, %v803_v1  ;;  %v817_v24 = vsub.s32 %v1882_v36, %v816_v15  ;;  %v1742_v15 = vld [vmem:[%s2246_s7 + $0x20] ss:$0 sps:$4 sm:$0xff]  }
  0x31   : > { %vm886_vm13 = vcmp.eq.s32.totalorder %v1922_v23, 6  ;;  %v1278_v16 = vsel %vm667_vm1, %v1742_v15, 0 }
  0x32   : > { %vm852_vm14 = vcmp.ne.s32.totalorder %v817_v24, 0  ;;  %vm859_vm15 = vcmp.lt.s32.totalorder %v817_v24, 0  ;;  %v873_v39 = vadd.s32 7, %v817_v24 }
  0x33   : > { %vm1963_vm6 = vmand %vm859_vm15, %vm852_vm14  ;;  %vm912_vm14 = vcmp.eq.s32.totalorder %v1927_v27, 0 }
  0x34   : > { %v1989_v54 = vsel %vm1963_vm6, %v873_v39, %v817_v24  ;;  %vm1082_vm6 = vcmask 326912  }
  0x35   : > { %vm887_vm11 = vcmp.eq.s32.totalorder %v1989_v54, 6  ;;  %vm915_vm15 = vcmp.eq.s32.totalorder %v1989_v54, 0 }
  0xf1   : > { %v1905_v5 = vpop.f32.mrb[4].mxu0 }
  0xf2   : > { %v1907_v7 = vpop.f32.mrb[5].mxu0 }
  0xf3   : > { %v1638_v10 = vpop.f32.mrb[6].mxu0 }
  0xf4   : > { %v1909_v13 = vpop.f32.mrb[7].mxu0 }
  0xf9   : > { %v1649_v22 = vpop.f32.mrb[0].mxu0 }
  0xfa   : > { %v630_v25 = vadd.f32 %v1649_v22, %v1916_v18  ;;  %v591_v26 = vpop.f32.mrb[1].mxu0 }
  0xfb   : > { %v628_v28 = vadd.f32 %v1916_v18, %v591_v26  ;;  %v1650_v29 = vpop.f32.mrb[2].mxu0 }
  0xfc   : > { %v637_v31 = vmax.f32 %v630_v25, 0.0  ;;  %v631_v32 = vadd.f32 %v1650_v29, %v1916_v18  ;;  %v594_v33 = vpop.f32.mrb[3].mxu0 }
  0xfd   : > { %v1933_v35 = vmax.f32 %v628_v28, 0.0  ;;  %v629_v36 = vadd.f32 %v1916_v18, %v594_v33 }
  0xfe   : > { %v1936_v37 = vmax.f32 %v631_v32, 0.0  ;;  %1155 = vrot.lane.b32.xlu0 %v637_v31, %s1753_s19  ;;  %961 = vrot.lane.b32.xlu1 %v637_v31, %s1754_s20  ;;  %v906_v38 = vsel %vm885_vm8, 0.0, %v637_v31  ;;  %vm867_vm8 = vmand %vm860_vm5, %vm853_vm4  ;;  %v934_v59 = vsel %vm913_vm7, 0.0, %v637_v31  ;;  %vm1015_vm4 = vcmask 195712  }
  0xff   : > { %v1945_v40 = vmax.f32 %v629_v36, 0.0  ;;  %944 = vst.msk [vmem:[#allocation2 + $0x20] sm:$0xff] %vm654_vm9, %v906_v38  ;;  %v1951_v41 = vsel %vm883_vm10, 0.0, %v1933_v35  ;;  %vm889_vm10 = vcmp.eq.s32.totalorder %v1974_v48, 6  ;;  %v1996_v60 = vsel %vm867_vm8, %v874_v49, %v831_v30 }
 0x100   : > { %v643_v42 = vpack.c.bf16 %v1936_v37, %v637_v31  ;;  %942 = vst.msk [vmem:[#allocation2 + $0x10] sm:$0xff] %vm654_vm9, %v1951_v41  ;;  %v1959_v43 = vsel %vm886_vm13, 0.0, %v1936_v37  ;;  %vm888_vm12 = vcmp.eq.s32.totalorder %v1996_v60, 6  ;;  %vm911_vm13 = vcmp.eq.s32.totalorder %v1918_v19, 0 }
 0x101   : > { %v1653_v45 = vpop.f32.mrb[8].mxu0  ;;  %v642_v46 = vpack.c.bf16 %v1945_v40, %v1933_v35  ;;  %945 = vst.msk [vmem:[#allocation2 + $0x28] sm:$0xff] %vm654_vm9, %v1959_v43  ;;  %v1972_v47 = vsel %vm884_vm0, 0.0, %v1945_v40  ;;  %v2035_v6 = vsel %vm911_vm13, 0.0, %v1933_v35  ;;  %v933_v8 = vsel %vm912_vm14, 0.0, %v1945_v40 }
 0x102   : > { %v616_v50 = vadd.f32 %v1653_v45, %v1905_v5  ;;  %1065 = vrot.lane.b32.xlu1 %v637_v31, %s1755_s21  ;;  %957 = vrot.lane.b32.xlu0 %v1933_v35, %s1754_s20  ;;  %v607_v51 = vpop.f32.mrb[9].mxu0  ;;  %943 = vst.msk [vmem:[#allocation2 + $0x18] sm:$0xff] %vm654_vm9, %v1972_v47  ;;  %vm917_vm0 = vcmp.eq.s32.totalorder %v1974_v48, 0  ;;  %vm916_vm3 = vcmp.eq.s32.totalorder %v1996_v60, 0  ;;  %vm1052_vm5 = vcmask 261312  }
 0x103   : > { %v608_v52 = vadd.f32 %v607_v51, %v1907_v7  ;;  %v1654_v53 = vpop.f32.mrb[10].mxu0  ;;  %1657 = vmatprep.mubr.msk.bf16.mxu1 %vm654_vm9, %v642_v46  ;;  %vm1112_vm7 = vcmask 392512   ;;  %vm1142_vm8 = vcmask 458112   ;;  %vm1149_vm13 = vcmask 450944  }
 0x104   : > { %v634_v55 = vadd.f32 %v1916_v18, %v616_v50  ;;  %v610_v56 = vpop.f32.mrb[11].mxu0  ;;  %1658 = vmatmul.mubr.msk.bf16.vlgmr.msra.gmra.mrb[0].mxu1 %vm654_vm9, %v643_v42  ;;  %vm1089_vm14 = vcmask 319744  }
 0x105   : > { %v632_v57 = vadd.f32 %v1916_v18, %v608_v52  ;;  %v611_v58 = vadd.f32 %v610_v56, %v1909_v13  ;;  %1666 = vmatpush3.bf16.msra.mxu1 %v1738_v9  ;;  %v1741_v13 = vld [vmem:[%s2246_s7 + $0x18] sm:$0xff]  }
 0x106   : > { %v1998_v61 = vmax.f32 %v634_v55, 0.0  ;;  %998 = vrot.lane.b32.xlu1 %v934_v59, %s1756_s22  ;;  %1035 = vrot.lane.b32.xlu0 %v906_v38, %s1757_s23 }
 0x107   : > { %v639_v62 = vmax.f32 %v632_v57, 0.0  ;;  %v633_v63 = vadd.f32 %v1916_v18, %v611_v58  ;;  %1667 = vmatprep.subr.bf16.mxu1 %v1739_v11 }
 0x108   : > { %v2005_v0 = vsel %vm889_vm10, 0.0, %v1998_v61  ;;  %v645_v5 = vpack.c.bf16 %v1998_v61, %v1998_v61  ;;  %v938_v14 = vsel %vm917_vm0, 0.0, %v1998_v61  ;;  %vm1172_vm10 = vcmask 523712  }
 0x109   : > { %v2008_v1 = vmax.f32 %v633_v63, 0.0  ;;  %v2010_v2 = vsel %vm887_vm11, 0.0, %v639_v62  ;;  %v936_v10 = vsel %vm915_vm15, 0.0, %v639_v62  ;;  %1668 = vmatpush3.bf16.msra.mxu1 %v1739_v11  ;;  %vm1202_vm11 = vcmask 589312  }
 0x10a   : > { %1061 = vrot.lane.b32.xlu1 %v1933_v35, %s1755_s21  ;;  %1095 = vrot.lane.b32.xlu0 %v934_v59, %s1758_s24  ;;  %946 = vst.msk [vmem:[#allocation2 + $0x30] sm:$0xff] %vm654_vm9, %v2010_v2  ;;  %vm1209_vm15 = vcmask 582144   ;;  %vm1380_vm0 = vcmask 125952  }
 0x10b   : > { %v644_v3 = vpack.c.bf16 %v2008_v1, %v639_v62  ;;  %v2019_v4 = vsel %vm888_vm12, 0.0, %v2008_v1  ;;  %1669 = vmatprep.subr.bf16.mxu1 %v1740_v12  ;;  %v937_v17 = vsel %vm916_vm3, 0.0, %v2008_v1  ;;  %vm1119_vm12 = vcmask 385344  }
 0x10c   : > { %947 = vst.msk [vmem:[#allocation2 + $0x38] sm:$0xff] %vm654_vm9, %v2019_v4  ;;  %vm1387_vm3 = vcmask 122880  }
 0x10d   : > { %1661 = vmatprep.mubr.msk.bf16.mxu1 %vm654_vm9, %v644_v3  ;;  %1670 = vmatpush3.bf16.msra.mxu1 %v1740_v12  ;;  %v1548_v12 = vld [vmem:[%s2245_s6] ss:$0 sm:$0xff] }
 0x10e   : > { %1125 = vrot.lane.b32.xlu1 %v906_v38, %s1759_s25  ;;  %1151 = vrot.lane.b32.xlu0 %v1933_v35, %s1753_s19 }
 0x10f   : > { %1662 = vmatmul.mubr.msk.bf16.gmra.mrb[4].mxu1 %vm654_vm9, %v645_v5  ;;  %vm914_vm9 = vcmp.eq.s32.totalorder %v1922_v23, 0  ;;  %1671 = vmatprep.subr.bf16.mxu1 %v1741_v13 }
 0x110   : > { %v935_v7 = vsel %vm914_vm9, 0.0, %v1936_v37  ;;  %vm1179_vm9 = vcmask 516544  }
 0x111   : > { %1672 = vmatpush3.bf16.msra.mxu1 %v1741_v13 }
 0x112   : > { %1185 = vrot.lane.b32.xlu0 %v934_v59, %s1760_s26  ;;  %963 = vrot.lane.b32.xlu1 %v1936_v37, %s1754_s20 }
 0x113   : > { %1688 = vmatprep.subr.msk.bf16.mxu1 %vm667_vm1, %v1742_v15  ;;  %vm978_vm1 = vcmask 130112  }
 0x115   : > { %1674 = vmatpush3.bf16.msra.mxu1 %v1278_v16 }
 0x116   : > { %1031 = vrot.lane.b32.xlu0 %v1951_v41, %s1757_s23  ;;  %994 = vrot.lane.b32.xlu1 %v2035_v6, %s1756_s22 }
 0x11a   : > { %1067 = vrot.lane.b32.xlu0 %v1936_v37, %s1755_s21  ;;  %1121 = vrot.lane.b32.xlu1 %v1951_v41, %s1759_s25 }
 0x11e   : > { %1091 = vrot.lane.b32.xlu0 %v2035_v6, %s1758_s24  ;;  %1157 = vrot.lane.b32.xlu1 %v1936_v37, %s1753_s19 }
 0x122   : > { %1037 = vrot.lane.b32.xlu1 %v1959_v43, %s1757_s23  ;;  %959 = vrot.lane.b32.xlu0 %v1945_v40, %s1754_s20 }
 0x126   : > { %1097 = vrot.lane.b32.xlu1 %v935_v7, %s1758_s24  ;;  %1000 = vrot.lane.b32.xlu0 %v935_v7, %s1756_s22 }
 0x12a   : > { %1153 = vrot.lane.b32.xlu1 %v1945_v40, %s1753_s19  ;;  %1063 = vrot.lane.b32.xlu0 %v1945_v40, %s1755_s21 }
 0x12e   : > { %1127 = vrot.lane.b32.xlu0 %v1959_v43, %s1759_s25  ;;  %1033 = vrot.lane.b32.xlu1 %v1972_v47, %s1757_s23 }
 0x132   : > { %1187 = vrot.lane.b32.xlu0 %v935_v7, %s1760_s26  ;;  %1093 = vrot.lane.b32.xlu1 %v933_v8, %s1758_s24 }
 0x136   : > { %996 = vrot.lane.b32.xlu0 %v933_v8, %s1756_s22  ;;  %1183 = vrot.lane.b32.xlu1 %v933_v8, %s1760_s26 }
 0x13a   : > { %1123 = vrot.lane.b32.xlu0 %v1972_v47, %s1759_s25  ;;  %1069 = vrot.lane.b32.xlu1 %v639_v62, %s1755_s21 }
 0x13e   : > { %1163 = vrot.lane.b32.xlu0 %v1998_v61, %s1753_s19  ;;  %1133 = vrot.lane.b32.xlu1 %v2005_v0, %s1759_s25 }
 0x142   : > { %965 = vrot.lane.b32.xlu0 %v639_v62, %s1754_s20  ;;  %1002 = vrot.lane.b32.xlu1 %v936_v10, %s1756_s22 }
 0x146   : > { %1159 = vrot.lane.b32.xlu0 %v639_v62, %s1753_s19  ;;  %1129 = vrot.lane.b32.xlu1 %v2010_v2, %s1759_s25 }
 0x14a   : > { %1103 = vrot.lane.b32.xlu0 %v938_v14, %s1758_s24  ;;  %1189 = vrot.lane.b32.xlu1 %v936_v10, %s1760_s26 }
 0x14e   : > { %967 = vrot.lane.b32.xlu1 %v2008_v1, %s1754_s20  ;;  %1039 = vrot.lane.b32.xlu0 %v2010_v2, %s1757_s23 }
 0x152   : > { %1161 = vrot.lane.b32.xlu1 %v2008_v1, %s1753_s19  ;;  %1099 = vrot.lane.b32.xlu0 %v936_v10, %s1758_s24 }
 0x156   : > { %1041 = vrot.lane.b32.xlu1 %v2019_v4, %s1757_s23  ;;  %1071 = vrot.lane.b32.xlu0 %v2008_v1, %s1755_s21 }
 0x15a   : > { %1101 = vrot.lane.b32.xlu1 %v937_v17, %s1758_s24  ;;  %1004 = vrot.lane.b32.xlu0 %v937_v17, %s1756_s22 }
 0x15e   : > { %1191 = vrot.lane.b32.xlu1 %v937_v17, %s1760_s26  ;;  %1131 = vrot.lane.b32.xlu0 %v2019_v4, %s1759_s25 }
 0x162   : > { %1073 = vrot.lane.b32.xlu1 %v1998_v61, %s1755_s21  ;;  %1193 = vrot.lane.b32.xlu0 %v938_v14, %s1760_s26 }
 0x166   : > { %969 = vrot.lane.b32.xlu1 %v1998_v61, %s1754_s20  ;;  %1006 = vrot.lane.b32.xlu0 %v938_v14, %s1756_s22 }
 0x16a   : > { %1043 = vrot.lane.b32.xlu1 %v2005_v0, %s1757_s23  ;;  %1181 = vrot.lane.b32.xlu0 %v2035_v6, %s1760_s26  ;;  %s2192_s23 = scalar_lea.vmem %s2248_s9, %s1828_s17 }
 0x170   : > { %v2133_v18 = vpop.permute.xlu0 %1155  ;;  %v962_v19 = vpop.permute.xlu1 %961 }
 0x171   : > { %981 = vst.msk [vmem:[#allocation2 + $0x1f] sm:$0xff] %vm978_vm1, %v962_v19 }
 0x174   : > { %v1066_v20 = vpop.permute.xlu1 %1065  ;;  %v958_v21 = vpop.permute.xlu0 %957 }
 0x175   : > { %979 = vst.msk [vmem:[#allocation2 + $0xf] sm:$0xff] %vm978_vm1, %v958_v21 }
 0x178   : > { %v999_v22 = vpop.permute.xlu1 %998  ;;  %v1036_v23 = vpop.permute.xlu0 %1035 }
 0x17c   : > { %v1062_v24 = vpop.permute.xlu1 %1061  ;;  %v1096_v25 = vpop.permute.xlu0 %1095 }
 0x180   : > { %v1126_v26 = vpop.permute.xlu1 %1125  ;;  %v1152_v27 = vpop.permute.xlu0 %1151 }
 0x184   : > { %v1186_v28 = vpop.permute.xlu0 %1185  ;;  %v964_v29 = vpop.permute.xlu1 %963 }
 0x185   : > { %982 = vst.msk [vmem:[#allocation2 + $0x27] sm:$0xff] %vm978_vm1, %v964_v29 }
 0x188   : > { %v1032_v30 = vpop.permute.xlu0 %1031  ;;  %v995_v31 = vpop.permute.xlu1 %994 }
 0x189   : > { %1016 = vst.msk [vmem:[#allocation2 + $0xe] sm:$0xff] %vm1015_vm4, %v995_v31 }
 0x18a   : > { %1053 = vst.msk [vmem:[#allocation2 + $0x9] sm:$0xff] %vm1052_vm5, %v1032_v30 }
 0x18b   : > { %1083 = vst.msk [vmem:[#allocation2 + $0x8] sm:$0xff] %vm1082_vm6, %v1062_v24 }
 0x18c   : > { %v1068_v32 = vpop.permute.xlu0 %1067  ;;  %v1122_v33 = vpop.permute.xlu1 %1121 }
 0x190   : > { %v1092_v34 = vpop.permute.xlu0 %1091  ;;  %v1158_v35 = vpop.permute.xlu1 %1157 }
 0x191   : > { %1113 = vst.msk [vmem:[#allocation2 + $0x7] sm:$0xff] %vm1112_vm7, %v1092_v34 }
 0x192   : > { %1143 = vst.msk [vmem:[#allocation2 + $0x2] sm:$0xff] %vm1142_vm8, %v1122_v33 }
 0x193   : > { %1173 = vst.msk [vmem:[#allocation2 + $0x1] sm:$0xff] %vm1172_vm10, %v1152_v27 }
 0x194   : > { %v1038_v36 = vpop.permute.xlu1 %1037  ;;  %v960_v37 = vpop.permute.xlu0 %959 }
 0x195   : > { %980 = vst.msk [vmem:[#allocation2 + $0x17] sm:$0xff] %vm978_vm1, %v960_v37 }
 0x196   : > { %1018 = vst.msk [vmem:[#allocation2 + $0x1e] sm:$0xff] %vm1015_vm4, %v999_v22 }
 0x198   : > { %v1098_v38 = vpop.permute.xlu1 %1097  ;;  %v1001_v39 = vpop.permute.xlu0 %1000 }
 0x199   : > { %1019 = vst.msk [vmem:[#allocation2 + $0x26] sm:$0xff] %vm1015_vm4, %v1001_v39 }
 0x19a   : > { %1056 = vst.msk [vmem:[#allocation2 + $0x21] sm:$0xff] %vm1052_vm5, %v1038_v36 }
 0x19c   : > { %v1154_v40 = vpop.permute.xlu1 %1153  ;;  %v1064_v41 = vpop.permute.xlu0 %1063 }
 0x1a0   : > { %v1128_v42 = vpop.permute.xlu0 %1127  ;;  %v1034_v43 = vpop.permute.xlu1 %1033 }
 0x1a4   : > { %v1188_v44 = vpop.permute.xlu0 %1187  ;;  %v1094_v45 = vpop.permute.xlu1 %1093 }
 0x1a8   : > { %v997_v46 = vpop.permute.xlu0 %996  ;;  %v1184_v47 = vpop.permute.xlu1 %1183 }
 0x1a9   : > { %1017 = vst.msk [vmem:[#allocation2 + $0x16] sm:$0xff] %vm1015_vm4, %v997_v46 }
 0x1aa   : > { %1054 = vst.msk [vmem:[#allocation2 + $0x11] sm:$0xff] %vm1052_vm5, %v1034_v43  ;;  %1055 = vst.msk [vmem:[#allocation2 + $0x19] sm:$0xff] %vm1052_vm5, %v1036_v23 }
 0x1ab   : > { %1085 = vst.msk [vmem:[#allocation2 + $0x18] sm:$0xff] %vm1082_vm6, %v1066_v20  ;;  %1084 = vst.msk [vmem:[#allocation2 + $0x10] sm:$0xff] %vm1082_vm6, %v1064_v41 }
 0x1ac   : > { %1086 = vst.msk [vmem:[#allocation2 + $0x20] sm:$0xff] %vm1082_vm6, %v1068_v32  ;;  %v1124_v48 = vpop.permute.xlu0 %1123  ;;  %v1070_v49 = vpop.permute.xlu1 %1069 }
 0x1ad   : > { %1114 = vst.msk [vmem:[#allocation2 + $0xf] sm:$0xff] %vm1112_vm7, %v1094_v45  ;;  %1115 = vst.msk [vmem:[#allocation2 + $0x17] sm:$0xff] %vm1112_vm7, %v1096_v25 }
 0x1ae   : > { %1116 = vst.msk [vmem:[#allocation2 + $0x1f] sm:$0xff] %vm1112_vm7, %v1098_v38 }
 0x1af   : > { %1144 = vst.msk [vmem:[#allocation2 + $0xa] sm:$0xff] %vm1142_vm8, %v1124_v48  ;;  %1145 = vst.msk [vmem:[#allocation2 + $0x12] sm:$0xff] %vm1142_vm8, %v1126_v26 }
 0x1b0   : > { %1146 = vst.msk [vmem:[#allocation2 + $0x1a] sm:$0xff] %vm1142_vm8, %v1128_v42  ;;  %v1164_v50 = vpop.permute.xlu0 %1163  ;;  %v1134_v51 = vpop.permute.xlu1 %1133 }
 0x1b1   : > { %1174 = vst.msk [vmem:[#allocation2 + $0x9] sm:$0xff] %vm1172_vm10, %v1154_v40  ;;  %1175 = vst.msk [vmem:[#allocation2 + $0x11] sm:$0xff] %vm1172_vm10, %v2133_v18 }
 0x1b2   : > { %1176 = vst.msk [vmem:[#allocation2 + $0x19] sm:$0xff] %vm1172_vm10, %v1158_v35 }
 0x1b3   : > { %1204 = vst.msk [vmem:[#allocation2 + $0x8] sm:$0xff] %vm1202_vm11, %v1184_v47  ;;  %1205 = vst.msk [vmem:[#allocation2 + $0x10] sm:$0xff] %vm1202_vm11, %v1186_v28  ;;  %v1390_v47 = vld [vmem:[%s2192_s23 + $0x18] sm:$0x1] }
 0x1b4   : > { %1206 = vst.msk [vmem:[#allocation2 + $0x18] sm:$0xff] %vm1202_vm11, %v1188_v44  ;;  %v966_v52 = vpop.permute.xlu0 %965  ;;  %v1003_v53 = vpop.permute.xlu1 %1002 }
 0x1b5   : > { %983 = vst.msk [vmem:[#allocation2 + $0x2f] sm:$0xff] %vm978_vm1, %v966_v52 }
 0x1b6   : > { %1020 = vst.msk [vmem:[#allocation2 + $0x2e] sm:$0xff] %vm1015_vm4, %v1003_v53  ;;  %v1553_v53 = vld [vmem:[%s2247_s8] ss:$0 sm:$0xff] }
 0x1b8   : > { %v1160_v57 = vpop.permute.xlu0 %1159  ;;  %v1130_v58 = vpop.permute.xlu1 %1129 }
 0x1ba   : > { %v1211_v54 = vld [vmem:[#allocation2 + $0x8] sm:$0xff]  ;;  %v1212_v55 = vld [vmem:[#allocation2 + $0x10] sm:$0xff] }
 0x1bb   : > { %v1218_v56 = vpack.c.bf16 %v1212_v55, %v1211_v54  ;;  %v1213_v5 = vld [vmem:[#allocation2 + $0x18] sm:$0xff] }
 0x1bc   : > { %v1104_v59 = vpop.permute.xlu0 %1103  ;;  %v1190_v60 = vpop.permute.xlu1 %1189 }
 0x1bd   : > { %1675 = vmatprep.mubr.msk.bf16.mxu1 %vm939_vm2, %v1218_v56 }
 0x1c0   : > { %v968_v61 = vpop.permute.xlu1 %967  ;;  %v1040_v62 = vpop.permute.xlu0 %1039 }
 0x1c1   : > { %984 = vst.msk [vmem:[#allocation2 + $0x37] sm:$0xff] %vm978_vm1, %v968_v61  ;;  %vm1388_vm1 = vsmask.f32 256 }
 0x1c2   : > { %1057 = vst.msk [vmem:[#allocation2 + $0x29] sm:$0xff] %vm1052_vm5, %v1040_v62 }
 0x1c3   : > { %1087 = vst.msk [vmem:[#allocation2 + $0x28] sm:$0xff] %vm1082_vm6, %v1070_v49 }
 0x1c4   : > { %v1162_v63 = vpop.permute.xlu1 %1161  ;;  %v1100_v0 = vpop.permute.xlu0 %1099 }
 0x1c5   : > { %1117 = vst.msk [vmem:[#allocation2 + $0x27] sm:$0xff] %vm1112_vm7, %v1100_v0 }
 0x1c6   : > { %1147 = vst.msk [vmem:[#allocation2 + $0x22] sm:$0xff] %vm1142_vm8, %v1130_v58 }
 0x1c7   : > { %1177 = vst.msk [vmem:[#allocation2 + $0x21] sm:$0xff] %vm1172_vm10, %v1160_v57 }
 0x1c8   : > { %1207 = vst.msk [vmem:[#allocation2 + $0x20] sm:$0xff] %vm1202_vm11, %v1190_v60  ;;  %v1042_v1 = vpop.permute.xlu1 %1041  ;;  %v1072_v2 = vpop.permute.xlu0 %1071 }
 0x1cc   : > { %v1102_v3 = vpop.permute.xlu1 %1101  ;;  %v1005_v4 = vpop.permute.xlu0 %1004 }
 0x1cd   : > { %1021 = vst.msk [vmem:[#allocation2 + $0x36] sm:$0xff] %vm1015_vm4, %v1005_v4  ;;  %vm1389_vm4 = vmand %vm1387_vm3, %vm1388_vm1 }
 0x1ce   : > { %1058 = vst.msk [vmem:[#allocation2 + $0x31] sm:$0xff] %vm1052_vm5, %v1042_v1  ;;  %vm1443_vm5 = vcmask 254080  }
 0x1cf   : > { %1088 = vst.msk [vmem:[#allocation2 + $0x30] sm:$0xff] %vm1082_vm6, %v1072_v2  ;;  %v1214_v6 = vld [vmem:[#allocation2 + $0x20] sm:$0xff]  ;;  %vm1444_vm6 = vmand %vm1443_vm5, %vm1388_vm1 }
 0x1d0   : > { %1118 = vst.msk [vmem:[#allocation2 + $0x2f] sm:$0xff] %vm1112_vm7, %v1102_v3  ;;  %v1192_v7 = vpop.permute.xlu1 %1191  ;;  %v1132_v8 = vpop.permute.xlu0 %1131  ;;  %v1219_v9 = vpack.c.bf16 %v1214_v6, %v1213_v5 }
 0x1d1   : > { %1120 = vst.msk [vmem:[#allocation2 + $0x37] sm:$0x1] %vm1119_vm12, %v1104_v59 }
 0x1d2   : > { %1148 = vst.msk [vmem:[#allocation2 + $0x2a] sm:$0xff] %vm1142_vm8, %v1132_v8  ;;  %1676 = vmatmul.mubr.msk.bf16.vlgmr.msra.gmra.mrb[8].mxu1 %vm939_vm2, %v1219_v9 }
 0x1d3   : > { %1150 = vst.msk [vmem:[#allocation2 + $0x32] sm:$0x1] %vm1149_vm13, %v1134_v51 }
 0x1d4   : > { %1180 = vst.msk [vmem:[#allocation2 + $0x31] sm:$0x1] %vm1179_vm9, %v1164_v50  ;;  %v1074_v10 = vpop.permute.xlu1 %1073  ;;  %v1194_v11 = vpop.permute.xlu0 %1193 }
 0x1d5   : > { %1178 = vst.msk [vmem:[#allocation2 + $0x29] sm:$0xff] %vm1172_vm10, %v1162_v63 }
 0x1d6   : > { %1208 = vst.msk [vmem:[#allocation2 + $0x28] sm:$0xff] %vm1202_vm11, %v1192_v7 }
 0x1d7   : > { %1090 = vst.msk [vmem:[#allocation2 + $0x38] sm:$0x1] %vm1089_vm14, %v1074_v10  ;;  %v1659_v13 = vpop.f32.mrb[0].mxu1 }
 0x1d8   : > { %1210 = vst.msk [vmem:[#allocation2 + $0x30] sm:$0x1] %vm1209_vm15, %v1194_v11  ;;  %v714_v14 = vadd.f32 %v1659_v13, %v1548_v12  ;;  %v705_v15 = vpop.f32.mrb[1].mxu1  ;;  %v970_v16 = vpop.permute.xlu1 %969 }
 0x1d9   : > { %v706_v17 = vadd.f32 %v1548_v12, %v705_v15  ;;  %v1007_v18 = vpop.permute.xlu0 %1006  ;;  %v1660_v19 = vpop.f32.mrb[2].mxu1 }
 0x1da   : > { %v737_v20 = vmax.f32 %v714_v14, 0.0  ;;  %v717_v21 = vadd.f32 %v1660_v19, %v1548_v12  ;;  %v708_v22 = vpop.f32.mrb[3].mxu1 }
 0x1db   : > { %v735_v23 = vmax.f32 %v706_v17, 0.0  ;;  %v709_v24 = vadd.f32 %v1548_v12, %v708_v22 }
 0x1dc   : > { %v1581_v25 = vpack.c.bf16 %v737_v20, %v737_v20  ;;  %v738_v26 = vmax.f32 %v717_v21, 0.0  ;;  %v1044_v27 = vpop.permute.xlu1 %1043 }
 0x1dd   : > { %v1215_v28 = vld [vmem:[#allocation2 + $0x28] sm:$0xff]  ;;  %v1579_v31 = vpack.c.bf16 %v735_v23, %v735_v23  ;;  %v736_v32 = vmax.f32 %v709_v24, 0.0  ;;  %v1182_v33 = vpop.permute.xlu0 %1181 }
 0x1de   : > { %v1217_v30 = vld [vmem:[#allocation2 + $0x38] sm:$0x1]  ;;  %1383 = vst.msk [vmem:[%s2192_s23 + $0x8] sm:$0xf] %vm1380_vm0, %v1581_v25  ;;  %v1582_v36 = vpack.c.bf16 %v738_v26, %v738_v26 }
 0x1df   : > { %v1216_v29 = vld [vmem:[#allocation2 + $0x30] sm:$0xff]  ;;  %v1221_v35 = vpack.c.bf16 %v1217_v30, %v1217_v30  ;;  %1381 = vst.msk [vmem:[%s2192_s23] sm:$0xf] %vm1380_vm0, %v1579_v31  ;;  %v1580_v37 = vpack.c.bf16 %v736_v32, %v736_v32 }
 0x1e0   : > { %v1220_v34 = vpack.c.bf16 %v1216_v29, %v1215_v28  ;;  %1384 = vst.msk [vmem:[%s2192_s23 + $0xc] sm:$0xf] %vm1380_vm0, %v1582_v36 }
 0x1e1   : > { %1382 = vst.msk [vmem:[%s2192_s23 + $0x4] sm:$0xf] %vm1380_vm0, %v1580_v37 }
 0x1e2   : > { %1679 = vmatprep.mubr.msk.bf16.mxu1 %vm939_vm2, %v1220_v34  ;;  %v1663_v38 = vpop.f32.mrb[4].mxu1 }
 0x1e3   : > { %1680 = vmatmul.mubr.msk.bf16.gmra.mrb[12].mxu1 %vm939_vm2, %v1221_v35  ;;  %v730_v39 = vadd.f32 %v1663_v38, %v1548_v12  ;;  %v721_v40 = vpop.f32.mrb[5].mxu1  ;;  %vm1436_vm2 = vcmask 257152  }
 0x1e4   : > { %v722_v41 = vadd.f32 %v1548_v12, %v721_v40  ;;  %v1664_v42 = vpop.f32.mrb[6].mxu1 }
 0x1e5   : > { %v741_v43 = vmax.f32 %v730_v39, 0.0  ;;  %v724_v44 = vpop.f32.mrb[7].mxu1 }
 0x1e6   : > { %v739_v45 = vmax.f32 %v722_v41, 0.0  ;;  %v725_v46 = vadd.f32 %v1548_v12, %v724_v44 }
 0x1e7   : > { %v1585_v48 = vpack.c.bf16 %v741_v43, %v741_v43 }
 0x1e8   : > { %v1583_v49 = vpack.c.bf16 %v739_v45, %v739_v45  ;;  %v740_v50 = vmax.f32 %v725_v46, 0.0 }
 0x1e9   : > { %v1391_v51 = vsel %vm1389_vm4, %v1585_v48, %v1390_v47 }
 0x1ea   : > { %1385 = vst.msk [vmem:[%s2192_s23 + $0x10] sm:$0xf] %vm1380_vm0, %v1583_v49  ;;  %v1584_v52 = vpack.c.bf16 %v740_v50, %v740_v50  ;;  %1392 = vst [vmem:[%s2192_s23 + $0x18] sm:$0x1] %v1391_v51 }
 0x1ec   : > { %1386 = vst.msk [vmem:[%s2192_s23 + $0x14] sm:$0xf] %vm1380_vm0, %v1584_v52 }
 0x1f1   : > { %v1445_v23 = vld [vmem:[%s2192_s23 + $0x18] sm:$0x1] }
 0x2a5   : > { %v1677_v54 = vpop.f32.mrb[8].mxu1 }
 0x2a6   : > { %v1323_v55 = vadd.f32 %v1677_v54, %v1553_v53  ;;  %v1314_v56 = vpop.f32.mrb[9].mxu1 }
 0x2a7   : > { %v1315_v57 = vadd.f32 %v1553_v53, %v1314_v56  ;;  %v1678_v58 = vpop.f32.mrb[10].mxu1 }
 0x2a8   : > { %v1346_v59 = vmax.f32 %v1323_v55, 0.0  ;;  %v1326_v60 = vadd.f32 %v1678_v58, %v1553_v53  ;;  %v1317_v61 = vpop.f32.mrb[11].mxu1 }
 0x2a9   : > { %v1318_v62 = vadd.f32 %v1553_v53, %v1317_v61  ;;  %v1344_v0 = vmax.f32 %v1315_v57, 0.0 }
 0x2aa   : > { %v1588_v63 = vpack.c.bf16 %v1346_v59, %v1346_v59  ;;  %v1347_v1 = vmax.f32 %v1326_v60, 0.0 }
 0x2ab   : > { %v1345_v3 = vmax.f32 %v1318_v62, 0.0  ;;  %v1586_v4 = vpack.c.bf16 %v1344_v0, %v1344_v0 }
 0x2ac   : > { %v1589_v2 = vpack.c.bf16 %v1347_v1, %v1347_v1  ;;  %1419 = vrot.lane.b32.xlu1 %v1588_v63, %s1756_s22 }
 0x2ad   : > { %v1587_v5 = vpack.c.bf16 %v1345_v3, %v1345_v3 }
 0x2ae   : > { %1421 = vrot.lane.b32.xlu0 %v1589_v2, %s1756_s22 }
 0x2b0   : > { %1415 = vrot.lane.b32.xlu1 %v1586_v4, %s1756_s22 }
 0x2b2   : > { %1417 = vrot.lane.b32.xlu0 %v1587_v5, %s1756_s22 }
 0x2b6   : > { %v1681_v6 = vpop.f32.mrb[12].mxu1 }
 0x2b7   : > { %v1339_v7 = vadd.f32 %v1681_v6, %v1553_v53  ;;  %v1330_v8 = vpop.f32.mrb[13].mxu1 }
 0x2b8   : > { %v1331_v9 = vadd.f32 %v1553_v53, %v1330_v8  ;;  %v1682_v10 = vpop.f32.mrb[14].mxu1 }
 0x2b9   : > { %v1350_v11 = vmax.f32 %v1339_v7, 0.0  ;;  %v1333_v12 = vpop.f32.mrb[15].mxu1 }
 0x2ba   : > { %v1348_v13 = vmax.f32 %v1331_v9, 0.0  ;;  %v1334_v14 = vadd.f32 %v1553_v53, %v1333_v12 }
 0x2bb   : > { %v1592_v15 = vpack.c.bf16 %v1350_v11, %v1350_v11 }
 0x2bc   : > { %v1590_v16 = vpack.c.bf16 %v1348_v13, %v1348_v13  ;;  %v1349_v17 = vmax.f32 %v1334_v14, 0.0 }
 0x2bd   : > { %1427 = vrot.lane.b32.xlu0 %v1592_v15, %s1756_s22 }
 0x2be   : > { %v1591_v18 = vpack.c.bf16 %v1349_v17, %v1349_v17  ;;  %1423 = vrot.lane.b32.xlu1 %v1590_v16, %s1756_s22 }
 0x2c1   : > { %1425 = vrot.lane.b32.xlu0 %v1591_v18, %s1756_s22 }
 0x31e   : > { %v1420_v19 = vpop.permute.xlu1 %1419 }
 0x31f   : > { %1439 = vst.msk [vmem:[%s2192_s23 + $0x8] sm:$0xf] %vm1436_vm2, %v1420_v19 }
 0x320   : > { %v1422_v20 = vpop.permute.xlu0 %1421 }
 0x321   : > { %1440 = vst.msk [vmem:[%s2192_s23 + $0xc] sm:$0xf] %vm1436_vm2, %v1422_v20 }
 0x322   : > { %v1416_v21 = vpop.permute.xlu1 %1415 }
 0x323   : > { %1437 = vst.msk [vmem:[%s2192_s23] sm:$0xf] %vm1436_vm2, %v1416_v21 }
 0x324   : > { %v1418_v22 = vpop.permute.xlu0 %1417 }
 0x325   : > { %1438 = vst.msk [vmem:[%s2192_s23 + $0x4] sm:$0xf] %vm1436_vm2, %v1418_v22 }
 0x32f   : > { %v1428_v24 = vpop.permute.xlu0 %1427 }
 0x330   : > { %v1446_v25 = vsel %vm1444_vm6, %v1428_v24, %v1445_v23  ;;  %v1424_v26 = vpop.permute.xlu1 %1423 }
 0x331   : > { %1447 = vst [vmem:[%s2192_s23 + $0x18] sm:$0x1] %v1446_v25  ;;  %1441 = vst.msk [vmem:[%s2192_s23 + $0x10] sm:$0xf] %vm1436_vm2, %v1424_v26 }
 0x333   : > { %v1426_v27 = vpop.permute.xlu0 %1425 }
 0x334   : > { %1442 = vst.msk [vmem:[%s2192_s23 + $0x14] sm:$0xf] %vm1436_vm2, %v1426_v27 }
 0x335 PF: > { %s19_s30 = sadd.s32 1, %s1749_s30  }
 0x336   : > { %p16_p4 = scmp.ge.s32.totalorder %s19_s30, 4  }
 0x338   :  { %18 = sbr.rel (!%p16_p4) target bundleno = 1 (0x1), region = 89 }

// kernel: condecon_fs_forward.11
= control target key start
LH: loop header
LB: loop body
LE: loop exit
PB: predicated region body
PF: predicated region fallthrough
CT: control target
= control target key end

     0   :  { %s4511_s13 = smov 0   ;;  %s6093_s0 = inlined_call_operand.vmem [shape: bf16[2,256,32], index: 0, kind: input, shape index: {}]   ;;  %s6094_s1 = inlined_call_operand.vmem [shape: bf16[32,4], index: 1, kind: input, shape index: {}]   ;;  %s6095_s2 = inlined_call_operand.vmem [shape: f32[1,4], index: 2, kind: input, shape index: {}]   ;;  %s6096_s3 = inlined_call_operand.vmem [shape: bf16[4,8], index: 3, kind: input, shape index: {}]   ;;  %s6097_s4 = inlined_call_operand.vmem [shape: f32[1,8], index: 4, kind: input, shape index: {}]   ;;  %s6098_s5 = inlined_call_operand.vmem [shape: bf16[36,8], index: 5, kind: input, shape index: {}]   ;;  %s6099_s6 = inlined_call_operand.vmem [shape: f32[1,8], index: 6, kind: input, shape index: {}]   ;;  %s6100_s7 = inlined_call_operand.vmem [shape: bf16[8,8], index: 7, kind: input, shape index: {}]   ;;  %s6101_s8 = inlined_call_operand.vmem [shape: bf16[8,8], index: 8, kind: input, shape index: {}]   ;;  %s6102_s9 = inlined_call_operand.vmem [shape: f32[1,8], index: 9, kind: input, shape index: {}]   ;;  %s6103_s10 = inlined_call_operand.vmem [shape: bf16[2,256,8], index: 10, kind: output, shape index: {}]  }
   0x1 LB: > { %s3915_s14 = sadd.s32 4294967295, %s4445_s13   ;;  %p3919_p0 = scmp.ge.s32.totalorder %s4445_s13, 1  ;;  %s4445_s13 = sphi %s4511_s13, %s20_s13  }
   0x2   : > { %p312_p1 = scmp.lt.s32.totalorder %s4445_s13, 3 }
   0x4   : > { %p313_p2 = pnand %p3919_p0, %p312_p1 }
   0x6   : > { %316 = sbr.rel (%p313_p2) target bundleno = 1371 (0x55b), region = 60 }
   0xd   : > { %v4418_v0 = vld [vmem:[%s6094_s1] sm:$0xff]   ;;  %p350_p3 = scmp.lt.s32.totalorder %s3915_s14, 1  ;;  %v4419_v1 = vld [vmem:[%s6094_s1 + $0x8] sm:$0xff]   ;;  %vm496_vm0 = vcmask 261120   ;;  %vm811_vm1 = vcmask 1041408   ;;  %v1008_v20 = vlaneseq  ;;  %vm762_vm2 = vcmask 31744  }
   0xe   : > { %4185 = vmatprep.subr.bf16.mxu0 %v4418_v0  ;;  %4361 = vmatprep.subr.bf16.mxu1 %v4418_v0  ;;  %v754_v18 = vld [vmem:[%s6096_s3] sm:$0x3]  ;;  %s4447_s27 = smov 12   ;;  %s4448_s28 = smov 4   ;;  %vm1684_vm7 = vcmask 286720   ;;  %vm1681_vm8 = vcmask 293888  }
   0xf   : > { %s6119_s14 = smov (!%p350_p3, %s3915_s14), 1  ;;  %4186 = vmatpush3.bf16.msra.mxu0 %v4418_v0  ;;  %4363 = vmatpush3.bf16.msra.mxu1 %v4418_v0  ;;  %v813_v19 = vsel %vm811_vm1, %v754_v18, 0  ;;  %v4572_v21 = vshrl.u32 %v1008_v20, 7  ;;  %v4581_v26 = vld [vmem:[%s6095_s2] ss:$0 sm:$0xff]  ;;  %s4449_s29 = smov 16  }
  0x10   : > { %4187 = vmatprep.subr.bf16.mxu0 %v4419_v1  ;;  %s4063_s19 = sshll.u32 %s6119_s14, 7  ;;  %4362 = vmatprep.subr.bf16.mxu1 %v4419_v1  ;;  %s4450_s30 = smov 8  }
  0x11   : > { %s4533_s22 = scalar_lea.vmem %s6093_s0, %s4063_s19  ;;  %v1011_v22 = vadd.s32 16, %v4572_v21  ;;  %v1012_v23 = vadd.s32 24, %v4572_v21  ;;  %v1010_v24 = vadd.s32 8, %v4572_v21  ;;  %v1026_v25 = vadd.s32 136, %v4572_v21  ;;  %s4452_s11 = smov 24  }
  0x12   : > { %v4420_v2 = vld [vmem:[%s4533_s22] sm:$0xff]   ;;  %v4421_v3 = vld [vmem:[%s4533_s22 + $0x8] sm:$0xff]   ;;  %v4422_v4 = vld [vmem:[%s4533_s22 + $0x10] sm:$0xff]   ;;  %v4586_v36 = vadd.s32 56, %v4572_v21  ;;  %v4589_v37 = vadd.s32 40, %v4572_v21  ;;  %v1028_v53 = vadd.s32 152, %v4572_v21 }
  0x13   : > { %4188 = vmatpush3.bf16.msra.mxu0 %v4419_v1  ;;  %4364 = vmatpush3.bf16.msra.mxu1 %v4419_v1  ;;  %v4424_v5 = vld [vmem:[%s4533_s22 + $0x40] sm:$0xff]   ;;  %v4425_v6 = vld [vmem:[%s4533_s22 + $0x48] sm:$0xff]   ;;  %v4423_v7 = vld [vmem:[%s4533_s22 + $0x18] sm:$0xff]   ;;  %v1059_v27 = vand.u32 15, %v1011_v22  ;;  %v1066_v28 = vand.u32 15, %v1012_v23  ;;  %v1052_v30 = vand.u32 15, %v1010_v24 }
  0x14   : > { %4189 = vmatprep.mubr.msk.bf16.mxu0 %vm496_vm0, %v4420_v2  ;;  %4205 = vmatprep.mubr.msk.bf16.mxu1 %vm496_vm0, %v4424_v5  ;;  %v4426_v8 = vld [vmem:[%s4533_s22 + $0x20] sm:$0xff]   ;;  %v4430_v9 = vld [vmem:[%s4533_s22 + $0x50] sm:$0xff]   ;;  %v4431_v10 = vld [vmem:[%s4533_s22 + $0x58] sm:$0xff]   ;;  %v1164_v33 = vand.u32 15, %v1026_v25  ;;  %v1094_v57 = vand.u32 15, %v4586_v36  ;;  %v1080_v58 = vand.u32 15, %v4589_v37 }
  0x15   : > { %v4432_v11 = vld [vmem:[%s4533_s22 + $0x60] sm:$0xff]   ;;  %v4427_v12 = vld [vmem:[%s4533_s22 + $0x28] sm:$0xff]   ;;  %v4428_v13 = vld [vmem:[%s4533_s22 + $0x30] sm:$0xff]   ;;  %4397 = vmatprep.subr.msk.bf16.mxu1 %vm811_vm1, %v754_v18  ;;  %vm4594_vm3 = vcmp.eq.s32.totalorder %v1059_v27, 0  ;;  %vm4598_vm4 = vcmp.eq.s32.totalorder %v1066_v28, 15  ;;  %vm4606_vm5 = vcmp.eq.s32.totalorder %v1052_v30, 15 }
  0x16   : > { %4190 = vmatmul.mubr.msk.bf16.vlgmr.msra.gmra.mrb[0].mxu0 %vm496_vm0, %v4421_v3  ;;  %4206 = vmatmul.mubr.msk.bf16.vlgmr.msra.gmra.mrb[0].mxu1 %vm496_vm0, %v4425_v6  ;;  %v4433_v14 = vld [vmem:[%s4533_s22 + $0x68] sm:$0xff]   ;;  %v4429_v15 = vld [vmem:[%s4533_s22 + $0x38] sm:$0xff]   ;;  %v4434_v16 = vld [vmem:[%s4533_s22 + $0x70] sm:$0xff]   ;;  %vm4619_vm6 = vcmp.eq.s32.totalorder %v1164_v33, 15  ;;  %vm1432_vm9 = vcmp.eq.s32.totalorder %v1094_v57, 15  ;;  %s4453_s12 = smov 32  }
  0x17   : > { %4193 = vmatprep.mubr.msk.bf16.mxu0 %vm496_vm0, %v4422_v4  ;;  %4209 = vmatprep.mubr.msk.bf16.mxu1 %vm496_vm0, %v4430_v9  ;;  %v4435_v17 = vld [vmem:[%s4533_s22 + $0x78] sm:$0xff]   ;;  %v4451_v9 = vmov 0.0   ;;  %vm1430_vm10 = vcmp.eq.s32.totalorder %v1080_v58, 15  ;;  %v1020_v20 = vadd.s32 88, %v4572_v21  ;;  %v1018_v22 = vadd.s32 72, %v4572_v21  ;;  %s4454_s15 = smov 28  }
  0x18   : > { %4222 = vmatpush3.bf16.msra.mxu1 %v813_v19  ;;  %1685 = vst.msk [vmem:[#allocation2 + $0x28] sm:$0x1] %vm1684_vm7, %v4451_v9  ;;  %1688 = vst.msk [vmem:[#allocation2 + $0x117] sm:$0x1] %vm1684_vm7, %v4451_v9  ;;  %v1045_v33 = vand.u32 15, %v4572_v21  ;;  %v1024_v43 = vadd.s32 120, %v4572_v21 }
  0x19   : > { %1682 = vst.msk [vmem:[#allocation2 + $0x18] sm:$0xff] %vm1681_vm8, %v4451_v9  ;;  %1683 = vst.msk [vmem:[#allocation2 + $0x20] sm:$0xff] %vm1681_vm8, %v4451_v9  ;;  %v1122_v30 = vand.u32 15, %v1020_v20  ;;  %s4455_s16 = smov 20   ;;  %v1022_v23 = vadd.s32 104, %v4572_v21  ;;  %vm2010_vm7 = vcmask 97344  }
  0x1a   : > { %1686 = vst.msk [vmem:[#allocation2 + $0x107] sm:$0xff] %vm1681_vm8, %v4451_v9  ;;  %1687 = vst.msk [vmem:[#allocation2 + $0x10f] sm:$0xff] %vm1681_vm8, %v4451_v9  ;;  %vm1553_vm13 = vcmp.eq.s32.totalorder %v1045_v33, 0 }
  0x1b   : > { %vm1436_vm12 = vcmp.eq.s32.totalorder %v1122_v30, 15  ;;  %v1015_v30 = vadd.s32 48, %v4572_v21 }
  0x1e   : > { %4194 = vmatmul.mubr.msk.bf16.gmra.mrb[4].mxu0 %vm496_vm0, %v4423_v7  ;;  %4210 = vmatmul.mubr.msk.bf16.gmra.mrb[4].mxu1 %vm496_vm0, %v4431_v10  ;;  %v1178_v10 = vand.u32 15, %v1028_v53  ;;  %v1150_v53 = vand.u32 15, %v1024_v43 }
  0x1f   : > { %4197 = vmatprep.mubr.msk.bf16.mxu0 %vm496_vm0, %v4426_v8  ;;  %4213 = vmatprep.mubr.msk.bf16.mxu1 %vm496_vm0, %v4432_v11 }
  0x20   : > { %vm4706_vm11 = vcmp.eq.s32.totalorder %v1178_v10, 15  ;;  %vm1440_vm15 = vcmp.eq.s32.totalorder %v1150_v53, 15 }
  0x26   : > { %4198 = vmatmul.mubr.msk.bf16.gmra.mrb[8].mxu0 %vm496_vm0, %v4427_v12  ;;  %4214 = vmatmul.mubr.msk.bf16.gmra.mrb[8].mxu1 %vm496_vm0, %v4433_v14 }
  0x27   : > { %4201 = vmatprep.mubr.msk.bf16.mxu0 %vm496_vm0, %v4428_v13  ;;  %4217 = vmatprep.mubr.msk.bf16.mxu1 %vm496_vm0, %v4434_v16 }
  0x2e   : > { %4202 = vmatmul.mubr.msk.bf16.gmra.mrb[12].mxu0 %vm496_vm0, %v4429_v15  ;;  %4218 = vmatmul.mubr.msk.bf16.gmra.mrb[12].mxu1 %vm496_vm0, %v4435_v17 }
  0xe9   : > { %v4191_v29 = vpop.f32.mrb[0].mxu0  ;;  %v4207_v42 = vpop.f32.mrb[0].mxu1 }
  0xea   : > { %v588_v31 = vadd.f32 %v4191_v29, %v4581_v26  ;;  %v579_v32 = vpop.f32.mrb[1].mxu0  ;;  %v652_v46 = vadd.f32 %v4207_v42, %v4581_v26  ;;  %v643_v47 = vpop.f32.mrb[1].mxu1 }
  0xeb   : > { %v580_v34 = vadd.f32 %v4581_v26, %v579_v32  ;;  %v4192_v35 = vpop.f32.mrb[2].mxu0  ;;  %v644_v50 = vadd.f32 %v4581_v26, %v643_v47  ;;  %v4208_v51 = vpop.f32.mrb[2].mxu1 }
  0xec   : > { %v4591_v38 = vmax.f32 %v588_v31, 0.0  ;;  %v591_v39 = vadd.f32 %v4192_v35, %v4581_v26  ;;  %v582_v40 = vpop.f32.mrb[3].mxu0  ;;  %v4628_v55 = vmax.f32 %v652_v46, 0.0  ;;  %v646_v56 = vpop.f32.mrb[3].mxu1  ;;  %v655_v5 = vadd.f32 %v4208_v51, %v4581_v26 }
  0xed   : > { %v4602_v44 = vmax.f32 %v580_v34, 0.0  ;;  %v583_v45 = vadd.f32 %v4581_v26, %v582_v40  ;;  %v4634_v60 = vmax.f32 %v644_v50, 0.0  ;;  %v647_v61 = vadd.f32 %v4581_v26, %v646_v56 }
  0xee   : > { %v4610_v49 = vmax.f32 %v591_v39, 0.0  ;;  %2079 = vrot.lane.b32.xlu0 %v4591_v38, %s4447_s27  ;;  %1757 = vrot.lane.b32.xlu1 %v4591_v38, %s4448_s28  ;;  %1691 = vst.msk [vmem:[#allocation2 + $0x39] sm:$0xff] %vm762_vm2, %v4591_v38  ;;  %v4645_v0 = vsel %vm4594_vm3, 0.0, %v4591_v38  ;;  %1707 = vst.msk [vmem:[#allocation2 + $0xb9] sm:$0xff] %vm762_vm2, %v4628_v55  ;;  %v4694_v18 = vmax.f32 %v655_v5, 0.0  ;;  %v1108_v34 = vand.u32 15, %v1018_v22 }
  0xef   : > { %v4624_v54 = vmax.f32 %v583_v45, 0.0  ;;  %1689 = vst.msk [vmem:[#allocation2 + $0x29] sm:$0xff] %vm762_vm2, %v4602_v44  ;;  %1705 = vst.msk [vmem:[#allocation2 + $0xa9] sm:$0xff] %vm762_vm2, %v4634_v60  ;;  %v4666_v6 = vmax.f32 %v647_v61, 0.0  ;;  %v4765_v51 = vsel %vm1553_vm13, 0.0, %v4602_v44  ;;  %vm2429_vm13 = vcmask 195744  }
  0xf0   : > { %v739_v59 = vpack.c.bf16 %v4610_v49, %v4591_v38  ;;  %v4640_v62 = vsel %vm4598_vm4, 0.0, %v4610_v49  ;;  %v4733_v35 = vsel %vm4706_vm11, 0.0, %v4694_v18  ;;  %vm1434_vm14 = vcmp.eq.s32.totalorder %v1108_v34, 15 }
  0xf1   : > { %v4195_v63 = vpop.f32.mrb[4].mxu0  ;;  %v738_v1 = vpack.c.bf16 %v4624_v54, %v4602_v44  ;;  %1692 = vst.msk [vmem:[#allocation2 + $0x41] sm:$0xff] %vm762_vm2, %v4640_v62  ;;  %v4656_v2 = vsel %vm4606_vm5, 0.0, %v4624_v54  ;;  %v4679_v14 = vsel %vm4619_vm6, 0.0, %v4666_v6  ;;  %1708 = vst.msk [vmem:[#allocation2 + $0xc1] sm:$0xff] %vm762_vm2, %v4733_v35  ;;  %v746_v20 = vpack.c.bf16 %v4666_v6, %v4634_v60 }
  0xf2   : > { %v604_v3 = vadd.f32 %v4195_v63, %v4581_v26  ;;  %2208 = vrot.lane.b32.xlu0 %v4591_v38, %s4449_s29  ;;  %1918 = vrot.lane.b32.xlu1 %v4645_v0, %s4450_s30  ;;  %v595_v4 = vpop.f32.mrb[5].mxu0  ;;  %1690 = vst.msk [vmem:[#allocation2 + $0x31] sm:$0xff] %vm762_vm2, %v4656_v2  ;;  %1706 = vst.msk [vmem:[#allocation2 + $0xb1] sm:$0xff] %vm762_vm2, %v4679_v14  ;;  %v747_v22 = vpack.c.bf16 %v4694_v18, %v4628_v55  ;;  %vm1849_vm6 = vcmask 64544  }
  0xf3   : > { %v596_v7 = vadd.f32 %v4581_v26, %v595_v4  ;;  %v4196_v8 = vpop.f32.mrb[6].mxu0  ;;  %4223 = vmatprep.mubr.msk.bf16.mxu1 %vm762_vm2, %v738_v1 }
  0xf4   : > { %v4672_v11 = vmax.f32 %v604_v3, 0.0  ;;  %v607_v12 = vadd.f32 %v4196_v8, %v4581_v26  ;;  %v598_v13 = vpop.f32.mrb[7].mxu0  ;;  %4224 = vmatmul.mubr.msk.bf16.vlgmr.msra.gmra.mrb[16].mxu1 %vm762_vm2, %v739_v59  ;;  %v1025_v8 = vadd.s32 128, %v4572_v21 }
  0xf5   : > { %v4685_v15 = vmax.f32 %v596_v7, 0.0  ;;  %v599_v16 = vadd.f32 %v4581_v26, %v598_v13 }
  0xf6   : > { %v4690_v17 = vmax.f32 %v607_v12, 0.0  ;;  %1695 = vst.msk [vmem:[#allocation2 + $0x59] sm:$0xff] %vm762_vm2, %v4672_v11  ;;  %2466 = vrot.lane.b32.xlu0 %v4591_v38, %s4452_s11  ;;  %2724 = vrot.lane.b32.xlu1 %v4645_v0, %s4453_s12 }
  0xf7   : > { %1693 = vst.msk [vmem:[#allocation2 + $0x49] sm:$0xff] %vm762_vm2, %v4685_v15  ;;  %v4702_v19 = vmax.f32 %v599_v16, 0.0  ;;  %v1157_v16 = vand.u32 15, %v1025_v8 }
  0xf8   : > { %v741_v24 = vpack.c.bf16 %v4690_v17, %v4672_v11  ;;  %v4713_v25 = vsel %vm1432_vm9, 0.0, %v4690_v17  ;;  %vm2300_vm9 = vcmask 162944  }
  0xf9   : > { %v4199_v27 = vpop.f32.mrb[8].mxu0  ;;  %v740_v28 = vpack.c.bf16 %v4702_v19, %v4685_v15  ;;  %1696 = vst.msk [vmem:[#allocation2 + $0x61] sm:$0xff] %vm762_vm2, %v4713_v25  ;;  %v4720_v29 = vsel %vm1430_vm10, 0.0, %v4702_v19  ;;  %vm1569_vm0 = vcmp.eq.s32.totalorder %v1157_v16, 0  ;;  %vm2558_vm10 = vcmask 228544  }
  0xfa   : > { %v620_v31 = vadd.f32 %v4199_v27, %v4581_v26  ;;  %2595 = vrot.lane.b32.xlu0 %v4591_v38, %s4454_s15  ;;  %1785 = vrot.lane.b32.xlu1 %v4634_v60, %s4448_s28  ;;  %v611_v32 = vpop.f32.mrb[9].mxu0  ;;  %1694 = vst.msk [vmem:[#allocation2 + $0x51] sm:$0xff] %vm762_vm2, %v4720_v29 }
  0xfb   : > { %v612_v36 = vadd.f32 %v4581_v26, %v611_v32  ;;  %v4200_v37 = vpop.f32.mrb[10].mxu0  ;;  %4227 = vmatprep.mubr.msk.bf16.mxu1 %vm762_vm2, %v740_v28 }
  0xfc   : > { %v4739_v38 = vmax.f32 %v620_v31, 0.0  ;;  %v623_v39 = vadd.f32 %v4200_v37, %v4581_v26  ;;  %v614_v40 = vpop.f32.mrb[11].mxu0  ;;  %4228 = vmatmul.mubr.msk.bf16.gmra.mrb[20].mxu1 %vm762_vm2, %v741_v24  ;;  %v1136_v24 = vand.u32 15, %v1022_v23 }
  0xfd   : > { %v4743_v41 = vmax.f32 %v612_v36, 0.0  ;;  %v615_v42 = vadd.f32 %v4581_v26, %v614_v40  ;;  %v1087_v40 = vand.u32 15, %v1015_v30 }
  0xfe   : > { %1699 = vst.msk [vmem:[#allocation2 + $0x79] sm:$0xff] %vm762_vm2, %v4739_v38  ;;  %v4749_v45 = vmax.f32 %v623_v39, 0.0  ;;  %1759 = vrot.lane.b32.xlu1 %v4610_v49, %s4448_s28  ;;  %1753 = vrot.lane.b32.xlu0 %v4602_v44, %s4448_s28  ;;  %vm1438_vm3 = vcmp.eq.s32.totalorder %v1136_v24, 15 }
  0xff   : > { %1697 = vst.msk [vmem:[#allocation2 + $0x69] sm:$0xff] %vm762_vm2, %v4743_v41  ;;  %v4757_v46 = vmax.f32 %v615_v42, 0.0  ;;  %vm1559_vm4 = vcmp.eq.s32.totalorder %v1087_v40, 0 }
 0x100   : > { %v743_v47 = vpack.c.bf16 %v4749_v45, %v4739_v38  ;;  %v4762_v48 = vsel %vm1436_vm12, 0.0, %v4749_v45 }
 0x101   : > { %v4203_v50 = vpop.f32.mrb[12].mxu0  ;;  %v742_v52 = vpack.c.bf16 %v4757_v46, %v4743_v41  ;;  %1700 = vst.msk [vmem:[#allocation2 + $0x81] sm:$0xff] %vm762_vm2, %v4762_v48  ;;  %v4772_v56 = vsel %vm1434_vm14, 0.0, %v4757_v46 }
 0x102   : > { %v636_v57 = vadd.f32 %v4203_v50, %v4581_v26  ;;  %v627_v58 = vpop.f32.mrb[13].mxu0  ;;  %2075 = vrot.lane.b32.xlu0 %v4602_v44, %s4447_s27  ;;  %1914 = vrot.lane.b32.xlu1 %v4765_v51, %s4450_s30  ;;  %1698 = vst.msk [vmem:[#allocation2 + $0x71] sm:$0xff] %vm762_vm2, %v4772_v56 }
 0x103   : > { %v628_v59 = vadd.f32 %v4581_v26, %v627_v58  ;;  %v4204_v61 = vpop.f32.mrb[14].mxu0  ;;  %4231 = vmatprep.mubr.msk.bf16.mxu1 %vm762_vm2, %v742_v52  ;;  %v1013_v58 = vadd.s32 32, %v4572_v21 }
 0x104   : > { %v4783_v63 = vmax.f32 %v636_v57, 0.0  ;;  %v639_v1 = vadd.f32 %v4204_v61, %v4581_v26  ;;  %v630_v3 = vpop.f32.mrb[15].mxu0  ;;  %4232 = vmatmul.mubr.msk.bf16.gmra.mrb[24].mxu1 %vm762_vm2, %v743_v47 }
 0x105   : > { %v4787_v4 = vmax.f32 %v628_v59, 0.0  ;;  %v631_v5 = vadd.f32 %v4581_v26, %v630_v3  ;;  %v1073_v16 = vand.u32 15, %v1013_v58 }
 0x106   : > { %1703 = vst.msk [vmem:[#allocation2 + $0x99] sm:$0xff] %vm762_vm2, %v4783_v63  ;;  %v4792_v7 = vmax.f32 %v639_v1, 0.0  ;;  %2204 = vrot.lane.b32.xlu0 %v4602_v44, %s4449_s29  ;;  %2210 = vrot.lane.b32.xlu1 %v4610_v49, %s4449_s29 }
 0x107   : > { %1701 = vst.msk [vmem:[#allocation2 + $0x89] sm:$0xff] %vm762_vm2, %v4787_v4  ;;  %v4801_v9 = vmax.f32 %v631_v5, 0.0  ;;  %vm1557_vm5 = vcmp.eq.s32.totalorder %v1073_v16, 0 }
 0x108   : > { %v745_v10 = vpack.c.bf16 %v4792_v7, %v4783_v63  ;;  %v4806_v12 = vsel %vm1440_vm15, 0.0, %v4792_v7 }
 0x109   : > { %v744_v13 = vpack.c.bf16 %v4801_v9, %v4787_v4  ;;  %1704 = vst.msk [vmem:[#allocation2 + $0xa1] sm:$0xff] %vm762_vm2, %v4806_v12  ;;  %v4874_v33 = vsel %vm1438_vm3, 0.0, %v4801_v9  ;;  %vm2816_vm3 = vcmask 294144  }
 0x10a   : > { %2337 = vrot.lane.b32.xlu0 %v4645_v0, %s4455_s16  ;;  %2339 = vrot.lane.b32.xlu1 %v4610_v49, %s4455_s16  ;;  %v4826_v0 = vsel %vm1569_vm0, 0.0, %v4634_v60  ;;  %1702 = vst.msk [vmem:[#allocation2 + $0x91] sm:$0xff] %vm762_vm2, %v4874_v33  ;;  %vm2687_vm0 = vcmask 261344  }
 0x10b   : > { %4235 = vmatprep.mubr.msk.bf16.mxu1 %vm762_vm2, %v744_v13 }
 0x10c   : > { %4236 = vmatmul.mubr.msk.bf16.gmra.mrb[28].mxu1 %vm762_vm2, %v745_v10  ;;  %v1655_v10 = vsel %vm1559_vm4, 0.0, %v4672_v11 }
 0x10d   : > { %4239 = vmatprep.mubr.msk.bf16.mxu1 %vm762_vm2, %v746_v20 }
 0x10e   : > { %2462 = vrot.lane.b32.xlu0 %v4602_v44, %s4452_s11  ;;  %2597 = vrot.lane.b32.xlu1 %v4610_v49, %s4454_s15 }
 0x112   : > { %2107 = vrot.lane.b32.xlu0 %v4634_v60, %s4447_s27  ;;  %1946 = vrot.lane.b32.xlu1 %v4826_v0, %s4450_s30 }
 0x114   : > { %4240 = vmatmul.mubr.msk.bf16.gmra.mrb[32].mxu1 %vm762_vm2, %v747_v22 }
 0x116   : > { %2236 = vrot.lane.b32.xlu0 %v4634_v60, %s4449_s29  ;;  %2081 = vrot.lane.b32.xlu1 %v4640_v62, %s4447_s27 }
 0x11a   : > { %1920 = vrot.lane.b32.xlu0 %v4610_v49, %s4450_s30  ;;  %2206 = vrot.lane.b32.xlu1 %v4624_v54, %s4449_s29 }
 0x11e   : > { %2333 = vrot.lane.b32.xlu0 %v4765_v51, %s4455_s16  ;;  %2335 = vrot.lane.b32.xlu1 %v4624_v54, %s4455_s16 }
 0x122   : > { %2726 = vrot.lane.b32.xlu0 %v4610_v49, %s4453_s12  ;;  %2468 = vrot.lane.b32.xlu1 %v4640_v62, %s4452_s11  ;;  %v4211_v49 = vpop.f32.mrb[4].mxu1 }
 0x123   : > { %v668_v62 = vadd.f32 %v4211_v49, %v4581_v26  ;;  %v659_v28 = vpop.f32.mrb[5].mxu1 }
 0x124   : > { %v660_v31 = vadd.f32 %v4581_v26, %v659_v28  ;;  %v4212_v32 = vpop.f32.mrb[6].mxu1 }
 0x125   : > { %v4865_v27 = vmax.f32 %v668_v62, 0.0  ;;  %v671_v34 = vadd.f32 %v4212_v32, %v4581_v26  ;;  %v662_v36 = vpop.f32.mrb[7].mxu1 }
 0x126   : > { %1755 = vrot.lane.b32.xlu0 %v4624_v54, %s4448_s28  ;;  %2593 = vrot.lane.b32.xlu1 %v4624_v54, %s4454_s15  ;;  %v4881_v37 = vmax.f32 %v660_v31, 0.0  ;;  %v4215_v43 = vpop.f32.mrb[8].mxu1 }
 0x127   : > { %1711 = vst.msk [vmem:[#allocation2 + $0xd9] sm:$0xff] %vm762_vm2, %v4865_v27  ;;  %v4884_v39 = vmax.f32 %v671_v34, 0.0  ;;  %v684_v47 = vadd.f32 %v4215_v43, %v4581_v26  ;;  %v675_v53 = vpop.f32.mrb[9].mxu1 }
 0x128   : > { %1709 = vst.msk [vmem:[#allocation2 + $0xc9] sm:$0xff] %vm762_vm2, %v4881_v37  ;;  %v676_v59 = vadd.f32 %v4581_v26, %v675_v53  ;;  %v4216_v61 = vpop.f32.mrb[10].mxu1 }
 0x129   : > { %v4897_v52 = vmax.f32 %v684_v47, 0.0  ;;  %v749_v57 = vpack.c.bf16 %v4884_v39, %v4865_v27  ;;  %v687_v1 = vadd.f32 %v4216_v61, %v4581_v26  ;;  %v678_v3 = vpop.f32.mrb[11].mxu1  ;;  %v4438_v61 = vld [vmem:[%s6098_s5 + $0x10] ss:$0 sps:$4 sm:$0x33]  }
 0x12a   : > { %1916 = vrot.lane.b32.xlu0 %v4624_v54, %s4450_s30  ;;  %2238 = vrot.lane.b32.xlu1 %v4666_v6, %s4449_s29  ;;  %v4911_v5 = vmax.f32 %v676_v59, 0.0  ;;  %v679_v8 = vadd.f32 %v4581_v26, %v678_v3  ;;  %v4219_v22 = vpop.f32.mrb[12].mxu1 }
 0x12b   : > { %1715 = vst.msk [vmem:[#allocation2 + $0xf9] sm:$0xff] %vm762_vm2, %v4897_v52  ;;  %v4916_v13 = vmax.f32 %v687_v1, 0.0  ;;  %v700_v23 = vadd.f32 %v4219_v22, %v4581_v26 }
 0x12c   : > { %1713 = vst.msk [vmem:[#allocation2 + $0xe9] sm:$0xff] %vm762_vm2, %v4911_v5  ;;  %v4923_v20 = vmax.f32 %v679_v8, 0.0  ;;  %v2973_v8 = vsel %vm811_vm1, %v4438_v61, 0 }
 0x12d   : > { %v751_v62 = vpack.c.bf16 %v4916_v13, %v4897_v52  ;;  %v4933_v24 = vmax.f32 %v700_v23, 0.0 }
 0x12e   : > { %2474 = vrot.lane.b32.xlu0 %v4672_v11, %s4452_s11  ;;  %2077 = vrot.lane.b32.xlu1 %v4656_v2, %s4447_s27  ;;  %v750_v49 = vpack.c.bf16 %v4923_v20, %v4911_v5 }
 0x132   : > { %2603 = vrot.lane.b32.xlu0 %v4672_v11, %s4454_s15  ;;  %2464 = vrot.lane.b32.xlu1 %v4656_v2, %s4452_s11  ;;  %v663_v2 = vadd.f32 %v4581_v26, %v662_v36 }
 0x134   : > { %v4892_v42 = vmax.f32 %v663_v2, 0.0  ;;  %v1653_v2 = vsel %vm1557_vm5, 0.0, %v4685_v15 }
 0x136   : > { %2087 = vrot.lane.b32.xlu0 %v4672_v11, %s4447_s27  ;;  %2109 = vrot.lane.b32.xlu1 %v4679_v14, %s4447_s27  ;;  %v748_v50 = vpack.c.bf16 %v4892_v42, %v4881_v37 }
 0x138   : > { %4243 = vmatprep.mubr.msk.bf16.mxu1 %vm762_vm2, %v748_v50 }
 0x139   : > { %4244 = vmatmul.mubr.msk.bf16.gmra.mrb[36].mxu1 %vm762_vm2, %v749_v57  ;;  %v4437_v57 = vld [vmem:[%s6098_s5 + $0x8] sm:$0xff]  }
 0x13a   : > { %2216 = vrot.lane.b32.xlu0 %v4672_v11, %s4449_s29  ;;  %1765 = vrot.lane.b32.xlu1 %v4672_v11, %s4448_s28  ;;  %v691_v11 = vpop.f32.mrb[13].mxu1 }
 0x13b   : > { %v692_v28 = vadd.f32 %v4581_v26, %v691_v11  ;;  %v4220_v30 = vpop.f32.mrb[14].mxu1  ;;  %4247 = vmatprep.mubr.msk.bf16.mxu1 %vm762_vm2, %v750_v49  ;;  %v1019_v11 = vadd.s32 80, %v4572_v21 }
 0x13c   : > { %v703_v31 = vadd.f32 %v4220_v30, %v4581_v26  ;;  %v694_v32 = vpop.f32.mrb[15].mxu1 }
 0x13d   : > { %v4938_v34 = vmax.f32 %v692_v28, 0.0  ;;  %v695_v36 = vadd.f32 %v4581_v26, %v694_v32  ;;  %v1115_v28 = vand.u32 15, %v1019_v11  ;;  %v1017_v32 = vadd.s32 64, %v4572_v21 }
 0x13e   : > { %1761 = vrot.lane.b32.xlu0 %v4685_v15, %s4448_s28  ;;  %2732 = vrot.lane.b32.xlu1 %v1655_v10, %s4453_s12  ;;  %v4948_v40 = vmax.f32 %v703_v31, 0.0 }
 0x13f   : > { %1717 = vst.msk [vmem:[#allocation2 + $0x109] sm:$0xff] %vm762_vm2, %v4938_v34  ;;  %v4950_v43 = vmax.f32 %v695_v36, 0.0  ;;  %vm1563_vm11 = vcmp.eq.s32.totalorder %v1115_v28, 0 }
 0x140   : > { %v753_v26 = vpack.c.bf16 %v4948_v40, %v4933_v24 }
 0x141   : > { %4248 = vmatmul.mubr.msk.bf16.gmra.mrb[40].mxu1 %vm762_vm2, %v751_v62  ;;  %v752_v47 = vpack.c.bf16 %v4950_v43, %v4938_v34 }
 0x142   : > { %2083 = vrot.lane.b32.xlu0 %v4685_v15, %s4447_s27  ;;  %1926 = vrot.lane.b32.xlu1 %v1655_v10, %s4450_s30 }
 0x143   : > { %4251 = vmatprep.mubr.msk.bf16.mxu1 %vm762_vm2, %v752_v47  ;;  %v1659_v47 = vsel %vm1563_vm11, 0.0, %v4739_v38 }
 0x146   : > { %2212 = vrot.lane.b32.xlu0 %v4685_v15, %s4449_s29  ;;  %1922 = vrot.lane.b32.xlu1 %v1653_v2, %s4450_s30 }
 0x149   : > { %4252 = vmatmul.mubr.msk.bf16.gmra.mrb[44].mxu1 %vm762_vm2, %v753_v26  ;;  %v1101_v26 = vand.u32 15, %v1017_v32 }
 0x14a   : > { %2470 = vrot.lane.b32.xlu0 %v4685_v15, %s4452_s11  ;;  %2728 = vrot.lane.b32.xlu1 %v1653_v2, %s4453_s12 }
 0x14b   : > { %vm1561_vm12 = vcmp.eq.s32.totalorder %v1101_v26, 0 }
 0x14e   : > { %2599 = vrot.lane.b32.xlu0 %v4685_v15, %s4454_s15  ;;  %2218 = vrot.lane.b32.xlu1 %v4690_v17, %s4449_s29  ;;  %v4436_v15 = vld [vmem:[%s6098_s5] sm:$0xff]  }
 0x14f   : > { %4255 = vmatprep.subr.bf16.mxu1 %v4436_v15 }
 0x150   : > { %4256 = vmatpush3.bf16.msra.mxu1 %v4436_v15 }
 0x151   : > { %4257 = vmatprep.subr.bf16.mxu1 %v4437_v57 }
 0x152   : > { %2345 = vrot.lane.b32.xlu0 %v1655_v10, %s4455_s16  ;;  %2347 = vrot.lane.b32.xlu1 %v4690_v17, %s4455_s16 }
 0x154   : > { %4258 = vmatpush3.bf16.msra.mxu1 %v4437_v57 }
 0x155   : > { %4398 = vmatprep.subr.msk.bf16.mxu1 %vm811_vm1, %v4438_v61  ;;  %vm2171_vm1 = vcmask 130144  }
 0x156   : > { %2341 = vrot.lane.b32.xlu0 %v1653_v2, %s4455_s16  ;;  %2214 = vrot.lane.b32.xlu1 %v4702_v19, %s4449_s29 }
 0x158   : > { %4260 = vmatpush3.bf16.msra.mxu1 %v2973_v8  ;;  %v1030_v8 = vadd.s32 168, %v4572_v21 }
 0x15a   : > { %1767 = vrot.lane.b32.xlu0 %v4690_v17, %s4448_s28  ;;  %2343 = vrot.lane.b32.xlu1 %v4702_v19, %s4455_s16 }
 0x15e   : > { %1928 = vrot.lane.b32.xlu0 %v4690_v17, %s4450_s30  ;;  %2601 = vrot.lane.b32.xlu1 %v4702_v19, %s4454_s15 }
 0x160   : > { %v4982_v50 = vpop.permute.xlu0 %2079  ;;  %v1758_v53 = vpop.permute.xlu1 %1757 }
 0x161   : > { %1852 = vst.msk [vmem:[#allocation2 + $0x38] sm:$0xff] %vm1849_vm6, %v1758_v53 }
 0x162   : > { %2605 = vrot.lane.b32.xlu0 %v4690_v17, %s4454_s15  ;;  %2089 = vrot.lane.b32.xlu1 %v4713_v25, %s4447_s27 }
 0x164   : > { %v4992_v58 = vpop.permute.xlu0 %2208  ;;  %v4994_v59 = vpop.permute.xlu1 %1918 }
 0x166   : > { %2734 = vrot.lane.b32.xlu0 %v4690_v17, %s4453_s12  ;;  %2085 = vrot.lane.b32.xlu1 %v4720_v29, %s4447_s27 }
 0x168   : > { %v5003_v1 = vpop.permute.xlu0 %2466  ;;  %v5005_v3 = vpop.permute.xlu1 %2724 }
 0x16a   : > { %1763 = vrot.lane.b32.xlu0 %v4702_v19, %s4448_s28  ;;  %2472 = vrot.lane.b32.xlu1 %v4720_v29, %s4452_s11 }
 0x16c   : > { %v5013_v17 = vpop.permute.xlu0 %2595  ;;  %v1786_v10 = vpop.permute.xlu1 %1785 }
 0x16d   : > { %1866 = vst.msk [vmem:[#allocation2 + $0xa8] sm:$0xff] %vm1849_vm6, %v1786_v10  ;;  %v1657_v10 = vsel %vm1561_vm12, 0.0, %v4743_v41 }
 0x16e   : > { %2730 = vrot.lane.b32.xlu0 %v4702_v19, %s4453_s12  ;;  %2482 = vrot.lane.b32.xlu1 %v4739_v38, %s4452_s11 }
 0x170   : > { %v1760_v16 = vpop.permute.xlu1 %1759  ;;  %v1754_v22 = vpop.permute.xlu0 %1753 }
 0x171   : > { %1853 = vst.msk [vmem:[#allocation2 + $0x40] sm:$0xff] %vm1849_vm6, %v1760_v16  ;;  %1850 = vst.msk [vmem:[#allocation2 + $0x28] sm:$0xff] %vm1849_vm6, %v1754_v22  ;;  %v1192_v16 = vand.u32 15, %v1030_v8 }
 0x172   : > { %1924 = vrot.lane.b32.xlu0 %v4702_v19, %s4450_s30  ;;  %2611 = vrot.lane.b32.xlu1 %v4739_v38, %s4454_s15 }
 0x173   : > { %vm1446_vm14 = vcmp.eq.s32.totalorder %v1192_v16, 15  ;;  %v1021_v16 = vadd.s32 96, %v4572_v21 }
 0x174   : > { %v2076_v29 = vpop.permute.xlu0 %2075  ;;  %v1915_v23 = vpop.permute.xlu1 %1914 }
 0x175   : > { %2172 = vst.msk [vmem:[#allocation2 + $0x19] sm:$0xff] %vm2171_vm1, %v2076_v29 }
 0x176   : > { %2011 = vst.msk [vmem:[#allocation2 + $0x27] sm:$0xff] %vm2010_vm7, %v1915_v23  ;;  %2476 = vrot.lane.b32.xlu0 %v4713_v25, %s4452_s11  ;;  %1773 = vrot.lane.b32.xlu1 %v4739_v38, %s4448_s28 }
 0x178   : > { %v2205_v49 = vpop.permute.xlu0 %2204  ;;  %v5032_v19 = vpop.permute.xlu1 %2210 }
 0x179   : > { %2301 = vst.msk [vmem:[#allocation2 + $0x18] sm:$0xff] %vm2300_vm9, %v2205_v49  ;;  %v5075_v49 = vsel %vm1446_vm14, 0.0, %v4892_v42 }
 0x17a   : > { %2095 = vrot.lane.b32.xlu0 %v4739_v38, %s4447_s27  ;;  %1769 = vrot.lane.b32.xlu1 %v4743_v41, %s4448_s28  ;;  %1710 = vst.msk [vmem:[#allocation2 + $0xd1] sm:$0xff] %vm762_vm2, %v5075_v49 }
 0x17c   : > { %v5040_v62 = vpop.permute.xlu0 %2337  ;;  %v5042_v25 = vpop.permute.xlu1 %2339 }
 0x17e   : > { %2224 = vrot.lane.b32.xlu0 %v4739_v38, %s4449_s29  ;;  %2478 = vrot.lane.b32.xlu1 %v4743_v41, %s4452_s11  ;;  %v1032_v38 = vadd.s32 184, %v4572_v21 }
 0x180   : > { %v2463_v30 = vpop.permute.xlu0 %2462  ;;  %v5048_v31 = vpop.permute.xlu1 %2597  ;;  %v1206_v22 = vand.u32 15, %v1032_v38 }
 0x182   : > { %2091 = vrot.lane.b32.xlu0 %v4743_v41, %s4447_s27  ;;  %2607 = vrot.lane.b32.xlu1 %v4743_v41, %s4454_s15  ;;  %vm1448_vm15 = vcmp.eq.s32.totalorder %v1206_v22, 15 }
 0x183   : > { %v5078_v11 = vsel %vm1448_vm15, 0.0, %v4884_v39 }
 0x184   : > { %v5055_v36 = vpop.permute.xlu0 %2107  ;;  %v5057_v2 = vpop.permute.xlu1 %1946  ;;  %1712 = vst.msk [vmem:[#allocation2 + $0xe1] sm:$0xff] %vm762_vm2, %v5078_v11 }
 0x186   : > { %2220 = vrot.lane.b32.xlu0 %v4743_v41, %s4449_s29  ;;  %2740 = vrot.lane.b32.xlu1 %v1659_v47, %s4453_s12 }
 0x188   : > { %v5063_v15 = vpop.permute.xlu0 %2236  ;;  %v2082_v53 = vpop.permute.xlu1 %2081 }
 0x18a   : > { %2353 = vrot.lane.b32.xlu0 %v1659_v47, %s4455_s16  ;;  %1934 = vrot.lane.b32.xlu1 %v1659_v47, %s4450_s30 }
 0x18c   : > { %v1921_v57 = vpop.permute.xlu0 %1920  ;;  %v2207_v61 = vpop.permute.xlu1 %2206 }
 0x18d   : > { %2014 = vst.msk [vmem:[#allocation2 + $0x3f] sm:$0xff] %vm2010_vm7, %v1921_v57 }
 0x18e   : > { %2349 = vrot.lane.b32.xlu0 %v1657_v10, %s4455_s16  ;;  %1930 = vrot.lane.b32.xlu1 %v1657_v10, %s4450_s30 }
 0x190   : > { %v2334_v29 = vpop.permute.xlu0 %2333  ;;  %v2336_v23 = vpop.permute.xlu1 %2335 }
 0x191   : > { %2430 = vst.msk [vmem:[#allocation2 + $0x17] sm:$0xff] %vm2429_vm13, %v2334_v29 }
 0x192   : > { %1775 = vrot.lane.b32.xlu0 %v4749_v45, %s4448_s28  ;;  %2736 = vrot.lane.b32.xlu1 %v1657_v10, %s4453_s12 }
 0x194   : > { %v2727_v41 = vpop.permute.xlu0 %2726  ;;  %v2469_v28 = vpop.permute.xlu1 %2468 }
 0x196   : > { %1936 = vrot.lane.b32.xlu0 %v4749_v45, %s4450_s30  ;;  %2226 = vrot.lane.b32.xlu1 %v4749_v45, %s4449_s29 }
 0x198   : > { %v1756_v30 = vpop.permute.xlu0 %1755  ;;  %v2594_v32 = vpop.permute.xlu1 %2593 }
 0x199   : > { %1851 = vst.msk [vmem:[#allocation2 + $0x30] sm:$0xff] %vm1849_vm6, %v1756_v30 }
 0x19a   : > { %2013 = vst.msk [vmem:[#allocation2 + $0x37] sm:$0xff] %vm2010_vm7, %v4994_v59  ;;  %2613 = vrot.lane.b32.xlu0 %v4749_v45, %s4454_s15  ;;  %2355 = vrot.lane.b32.xlu1 %v4749_v45, %s4455_s16 }
 0x19c   : > { %v1917_v47 = vpop.permute.xlu0 %1916  ;;  %v5098_v26 = vpop.permute.xlu1 %2238 }
 0x19d   : > { %2012 = vst.msk [vmem:[#allocation2 + $0x2f] sm:$0xff] %vm2010_vm7, %v1917_v47 }
 0x19e   : > { %2174 = vst.msk [vmem:[#allocation2 + $0x29] sm:$0xff] %vm2171_vm1, %v4982_v50  ;;  %2175 = vst.msk [vmem:[#allocation2 + $0x31] sm:$0xff] %vm2171_vm1, %v2082_v53  ;;  %2742 = vrot.lane.b32.xlu0 %v4749_v45, %s4453_s12  ;;  %2222 = vrot.lane.b32.xlu1 %v4757_v46, %s4449_s29 }
 0x19f   : > { %2304 = vst.msk [vmem:[#allocation2 + $0x30] sm:$0xff] %vm2300_vm9, %v5032_v19 }
 0x1a0   : > { %v5110_v59 = vpop.permute.xlu0 %2474  ;;  %v2078_v57 = vpop.permute.xlu1 %2077 }
 0x1a1   : > { %2173 = vst.msk [vmem:[#allocation2 + $0x21] sm:$0xff] %vm2171_vm1, %v2078_v57 }
 0x1a2   : > { %2302 = vst.msk [vmem:[#allocation2 + $0x20] sm:$0xff] %vm2300_vm9, %v2207_v61  ;;  %2303 = vst.msk [vmem:[#allocation2 + $0x28] sm:$0xff] %vm2300_vm9, %v4992_v58  ;;  %2609 = vrot.lane.b32.xlu0 %v4757_v46, %s4454_s15  ;;  %2351 = vrot.lane.b32.xlu1 %v4757_v46, %s4455_s16 }
 0x1a3   : > { %2431 = vst.msk [vmem:[#allocation2 + $0x1f] sm:$0xff] %vm2429_vm13, %v2336_v23  ;;  %2432 = vst.msk [vmem:[#allocation2 + $0x27] sm:$0xff] %vm2429_vm13, %v5040_v62 }
 0x1a4   : > { %2433 = vst.msk [vmem:[#allocation2 + $0x2f] sm:$0xff] %vm2429_vm13, %v5042_v25  ;;  %v5128_v45 = vpop.permute.xlu0 %2603  ;;  %v2465_v50 = vpop.permute.xlu1 %2464 }
 0x1a5   : > { %2561 = vst.msk [vmem:[#allocation2 + $0x19] sm:$0xff] %vm2558_vm10, %v5003_v1  ;;  %2562 = vst.msk [vmem:[#allocation2 + $0x21] sm:$0xff] %vm2558_vm10, %v2469_v28  ;;  %v1129_v28 = vand.u32 15, %v1021_v16 }
 0x1a6   : > { %2560 = vst.msk [vmem:[#allocation2 + $0x11] sm:$0xff] %vm2558_vm10, %v2465_v50  ;;  %1771 = vrot.lane.b32.xlu0 %v4757_v46, %s4448_s28  ;;  %2097 = vrot.lane.b32.xlu1 %v4762_v48, %s4447_s27 }
 0x1a7   : > { %2691 = vst.msk [vmem:[#allocation2 + $0x20] sm:$0xff] %vm2687_vm0, %v5048_v31  ;;  %2690 = vst.msk [vmem:[#allocation2 + $0x18] sm:$0xff] %vm2687_vm0, %v5013_v17  ;;  %vm1565_vm5 = vcmp.eq.s32.totalorder %v1129_v28, 0 }
 0x1a8   : > { %2819 = vst.msk [vmem:[#allocation2 + $0x17] sm:$0xff] %vm2816_vm3, %v5005_v3  ;;  %2820 = vst.msk [vmem:[#allocation2 + $0x1f] sm:$0xff] %vm2816_vm3, %v2727_v41  ;;  %v5142_v58 = vpop.permute.xlu0 %2087  ;;  %v5144_v1 = vpop.permute.xlu1 %2109  ;;  %v5203_v41 = vld [vmem:[%s6097_s4] ss:$0 sm:$0xff] }
 0x1aa   : > { %2738 = vrot.lane.b32.xlu0 %v4757_v46, %s4453_s12  ;;  %2093 = vrot.lane.b32.xlu1 %v4772_v56, %s4447_s27 }
 0x1ac   : > { %v5150_v17 = vpop.permute.xlu0 %2216  ;;  %v1766_v19 = vpop.permute.xlu1 %1765 }
 0x1ad   : > { %1856 = vst.msk [vmem:[#allocation2 + $0x58] sm:$0xff] %vm1849_vm6, %v1766_v19 }
 0x1ae   : > { %1932 = vrot.lane.b32.xlu0 %v4757_v46, %s4450_s30  ;;  %2490 = vrot.lane.b32.xlu1 %v4783_v63, %s4452_s11 }
 0x1af   : > { %v2849_v50 = vld [vmem:[#allocation2 + $0x18] sm:$0xff] }
 0x1b0   : > { %v1762_v3 = vpop.permute.xlu0 %1761  ;;  %v5157_v62 = vpop.permute.xlu1 %2732 }
 0x1b1   : > { %1854 = vst.msk [vmem:[#allocation2 + $0x48] sm:$0xff] %vm1849_vm6, %v1762_v3 }
 0x1b2   : > { %2484 = vrot.lane.b32.xlu0 %v4762_v48, %s4452_s11  ;;  %2619 = vrot.lane.b32.xlu1 %v4783_v63, %s4454_s15  ;;  %v1023_v48 = vadd.s32 112, %v4572_v21 }
 0x1b4   : > { %v2084_v25 = vpop.permute.xlu0 %2083  ;;  %v5164_v31 = vpop.permute.xlu1 %1926 }
 0x1b5   : > { %2176 = vst.msk [vmem:[#allocation2 + $0x39] sm:$0xff] %vm2171_vm1, %v2084_v25 }
 0x1b6   : > { %2480 = vrot.lane.b32.xlu0 %v4772_v56, %s4452_s11  ;;  %1781 = vrot.lane.b32.xlu1 %v4783_v63, %s4448_s28  ;;  %v1143_v56 = vand.u32 15, %v1023_v48 }
 0x1b8   : > { %v2213_v46 = vpop.permute.xlu0 %2212  ;;  %v1923_v53 = vpop.permute.xlu1 %1922  ;;  %vm1567_vm4 = vcmp.eq.s32.totalorder %v1143_v56, 0 }
 0x1b9   : > { %2305 = vst.msk [vmem:[#allocation2 + $0x38] sm:$0xff] %vm2300_vm9, %v2213_v46  ;;  %v1663_v23 = vsel %vm1567_vm4, 0.0, %v4783_v63 }
 0x1ba   : > { %2015 = vst.msk [vmem:[#allocation2 + $0x47] sm:$0xff] %vm2010_vm7, %v1923_v53  ;;  %2103 = vrot.lane.b32.xlu0 %v4783_v63, %s4447_s27  ;;  %1777 = vrot.lane.b32.xlu1 %v4787_v4, %s4448_s28 }
 0x1bc   : > { %v2471_v61 = vpop.permute.xlu0 %2470  ;;  %v2729_v8 = vpop.permute.xlu1 %2728 }
 0x1bd   : > { %2563 = vst.msk [vmem:[#allocation2 + $0x29] sm:$0xff] %vm2558_vm10, %v2471_v61 }
 0x1be   : > { %2232 = vrot.lane.b32.xlu0 %v4783_v63, %s4449_s29  ;;  %2486 = vrot.lane.b32.xlu1 %v4787_v4, %s4452_s11 }
 0x1c0   : > { %v2600_v38 = vpop.permute.xlu0 %2599  ;;  %v5183_v10 = vpop.permute.xlu1 %2218 }
 0x1c1   : > { %2692 = vst.msk [vmem:[#allocation2 + $0x28] sm:$0xff] %vm2687_vm0, %v2600_v38  ;;  %v1034_v38 = vadd.s32 200, %v4572_v21 }
 0x1c2   : > { %2821 = vst.msk [vmem:[#allocation2 + $0x27] sm:$0xff] %vm2816_vm3, %v2729_v8  ;;  %2099 = vrot.lane.b32.xlu0 %v4787_v4, %s4447_s27  ;;  %2615 = vrot.lane.b32.xlu1 %v4787_v4, %s4454_s15 }
 0x1c4   : > { %v5192_v22 = vpop.permute.xlu0 %2345  ;;  %v5194_v29 = vpop.permute.xlu1 %2347 }
 0x1c6   : > { %2228 = vrot.lane.b32.xlu0 %v4787_v4, %s4449_s29  ;;  %2748 = vrot.lane.b32.xlu1 %v1663_v23, %s4453_s12 }
 0x1c7   : > { %v4225_v30 = vpop.f32.mrb[16].mxu1 }
 0x1c8   : > { %v2342_v32 = vpop.permute.xlu0 %2341  ;;  %v5205_v47 = vpop.permute.xlu1 %2214  ;;  %v858_v57 = vadd.f32 %v4225_v30, %v5203_v41 }
 0x1c9   : > { %2434 = vst.msk [vmem:[#allocation2 + $0x37] sm:$0xff] %vm2429_vm13, %v2342_v32  ;;  %v849_v63 = vpop.f32.mrb[17].mxu1  ;;  %v2850_v19 = vld [vmem:[#allocation2 + $0x20] sm:$0xff]  ;;  %v1661_v32 = vsel %vm1565_vm5, 0.0, %v4787_v4 }
 0x1ca   : > { %v850_v3 = vadd.f32 %v5203_v41, %v849_v63  ;;  %v4226_v25 = vpop.f32.mrb[18].mxu1  ;;  %2361 = vrot.lane.b32.xlu0 %v1663_v23, %s4455_s16  ;;  %1942 = vrot.lane.b32.xlu1 %v1663_v23, %s4450_s30  ;;  %v2881_v46 = vpack.c.bf16 %v2850_v19, %v2849_v50  ;;  %v978_v16 = vmax.f32 %v858_v57, 0.0  ;;  %v1036_v23 = vadd.s32 216, %v4572_v21 }
 0x1cb   : > { %v861_v53 = vadd.f32 %v4226_v25, %v5203_v41  ;;  %v852_v48 = vpop.f32.mrb[19].mxu1  ;;  %v1220_v50 = vand.u32 15, %v1034_v38 }
 0x1cc   : > { %v853_v61 = vadd.f32 %v5203_v41, %v852_v48  ;;  %v1768_v8 = vpop.permute.xlu0 %1767  ;;  %v2344_v56 = vpop.permute.xlu1 %2343  ;;  %4261 = vmatprep.mubr.msk.bf16.mxu1 %vm1681_vm8, %v2881_v46  ;;  %v976_v28 = vmax.f32 %v850_v3, 0.0  ;;  %v1234_v46 = vand.u32 15, %v1036_v23 }
 0x1cd   : > { %v979_v30 = vmax.f32 %v861_v53, 0.0  ;;  %1857 = vst.msk [vmem:[#allocation2 + $0x60] sm:$0xff] %vm1849_vm6, %v1768_v8  ;;  %vm1450_vm11 = vcmp.eq.s32.totalorder %v1220_v50, 15 }
 0x1ce   : > { %v977_v63 = vmax.f32 %v853_v61, 0.0  ;;  %2357 = vrot.lane.b32.xlu0 %v1661_v32, %s4455_s16  ;;  %1938 = vrot.lane.b32.xlu1 %v1661_v32, %s4450_s30  ;;  %v5228_v3 = vsel %vm1450_vm11, 0.0, %v4923_v20  ;;  %vm1452_vm12 = vcmp.eq.s32.totalorder %v1234_v46, 15 }
 0x1cf   : > { %v5221_v19 = vpack.c.bf16 %v979_v30, %v978_v16  ;;  %v4229_v25 = vpop.f32.mrb[20].mxu1  ;;  %1714 = vst.msk [vmem:[#allocation2 + $0xf1] sm:$0xff] %vm762_vm2, %v5228_v3  ;;  %v5237_v16 = vsel %vm1452_vm12, 0.0, %v4916_v13 }
 0x1d0   : > { %v5223_v48 = vpack.c.bf16 %v977_v63, %v976_v28  ;;  %v1929_v57 = vpop.permute.xlu0 %1928  ;;  %v2602_v53 = vpop.permute.xlu1 %2601  ;;  %v874_v8 = vadd.f32 %v4229_v25, %v5203_v41  ;;  %1716 = vst.msk [vmem:[#allocation2 + $0x101] sm:$0xff] %vm762_vm2, %v5237_v16 }
 0x1d1   : > { %6114 = vst [vmem:[#allocation3_spill] sm:$0xff] %v5221_v19  ;;  %2018 = vst.msk [vmem:[#allocation2 + $0x5f] sm:$0xff] %vm2010_vm7, %v1929_v57  ;;  %v865_v4 = vpop.f32.mrb[21].mxu1 }
 0x1d2   : > { %6115 = vst [vmem:[#allocation4_spill] sm:$0xff] %v5223_v48  ;;  %1783 = vrot.lane.b32.xlu0 %v4792_v7, %s4448_s28  ;;  %2744 = vrot.lane.b32.xlu1 %v1661_v32, %s4453_s12  ;;  %v866_v61 = vadd.f32 %v5203_v41, %v865_v4  ;;  %v4230_v38 = vpop.f32.mrb[22].mxu1  ;;  %v982_v30 = vmax.f32 %v874_v8, 0.0 }
 0x1d3   : > { %v877_v23 = vadd.f32 %v4230_v38, %v5203_v41  ;;  %v868_v28 = vpop.f32.mrb[23].mxu1 }
 0x1d4   : > { %v5242_v63 = vpop.permute.xlu0 %2605  ;;  %v2090_v50 = vpop.permute.xlu1 %2089  ;;  %v980_v32 = vmax.f32 %v866_v61, 0.0  ;;  %v869_v25 = vadd.f32 %v5203_v41, %v868_v28 }
 0x1d5   : > { %v983_v46 = vmax.f32 %v877_v23, 0.0 }
 0x1d6   : > { %1944 = vrot.lane.b32.xlu0 %v4792_v7, %s4450_s30  ;;  %2234 = vrot.lane.b32.xlu1 %v4792_v7, %s4449_s29  ;;  %v981_v57 = vmax.f32 %v869_v25, 0.0 }
 0x1d7   : > { %v5249_v8 = vpack.c.bf16 %v983_v46, %v982_v30  ;;  %v4233_v4 = vpop.f32.mrb[24].mxu1 }
 0x1d8   : > { %v5251_v38 = vpop.permute.xlu0 %2734  ;;  %v2086_v19 = vpop.permute.xlu1 %2085  ;;  %v5253_v48 = vpack.c.bf16 %v981_v57, %v980_v32  ;;  %v890_v61 = vadd.f32 %v4233_v4, %v5203_v41 }
 0x1d9   : > { %2177 = vst.msk [vmem:[#allocation2 + $0x41] sm:$0xff] %vm2171_vm1, %v2086_v19  ;;  %v881_v23 = vpop.f32.mrb[25].mxu1 }
 0x1da   : > { %2306 = vst.msk [vmem:[#allocation2 + $0x40] sm:$0xff] %vm2300_vm9, %v5205_v47  ;;  %2617 = vrot.lane.b32.xlu0 %v4801_v9, %s4454_s15  ;;  %2363 = vrot.lane.b32.xlu1 %v4792_v7, %s4455_s16  ;;  %v882_v30 = vadd.f32 %v5203_v41, %v881_v23  ;;  %v4234_v28 = vpop.f32.mrb[26].mxu1  ;;  %v986_v32 = vmax.f32 %v890_v61, 0.0 }
 0x1db   : > { %2435 = vst.msk [vmem:[#allocation2 + $0x3f] sm:$0xff] %vm2429_vm13, %v2344_v56  ;;  %v893_v25 = vadd.f32 %v4234_v28, %v5203_v41  ;;  %v884_v46 = vpop.f32.mrb[27].mxu1 }
 0x1dc   : > { %2565 = vst.msk [vmem:[#allocation2 + $0x39] sm:$0xff] %vm2558_vm10, %v5110_v59  ;;  %v1764_v19 = vpop.permute.xlu0 %1763  ;;  %v2473_v47 = vpop.permute.xlu1 %2472  ;;  %v984_v57 = vmax.f32 %v882_v30, 0.0  ;;  %v885_v4 = vadd.f32 %v5203_v41, %v884_v46 }
 0x1dd   : > { %1855 = vst.msk [vmem:[#allocation2 + $0x50] sm:$0xff] %vm1849_vm6, %v1764_v19  ;;  %v987_v23 = vmax.f32 %v893_v25, 0.0 }
 0x1de   : > { %2564 = vst.msk [vmem:[#allocation2 + $0x31] sm:$0xff] %vm2558_vm10, %v2473_v47  ;;  %1779 = vrot.lane.b32.xlu0 %v4801_v9, %s4448_s28  ;;  %2230 = vrot.lane.b32.xlu1 %v4801_v9, %s4449_s29  ;;  %v985_v59 = vmax.f32 %v885_v4, 0.0 }
 0x1df   : > { %2017 = vst.msk [vmem:[#allocation2 + $0x57] sm:$0xff] %vm2010_vm7, %v5164_v31  ;;  %v5282_v56 = vpack.c.bf16 %v987_v23, %v986_v32  ;;  %v4237_v61 = vpop.f32.mrb[28].mxu1 }
 0x1e0   : > { %2694 = vst.msk [vmem:[#allocation2 + $0x38] sm:$0xff] %vm2687_vm0, %v5128_v45  ;;  %2693 = vst.msk [vmem:[#allocation2 + $0x30] sm:$0xff] %vm2687_vm0, %v2602_v53  ;;  %v2731_v30 = vpop.permute.xlu0 %2730  ;;  %v5284_v31 = vpop.permute.xlu1 %2482  ;;  %v5286_v28 = vpack.c.bf16 %v985_v59, %v984_v57  ;;  %v906_v45 = vadd.f32 %v4237_v61, %v5203_v41 }
 0x1e1   : > { %2823 = vst.msk [vmem:[#allocation2 + $0x37] sm:$0xff] %vm2816_vm3, %v5157_v62  ;;  %2822 = vst.msk [vmem:[#allocation2 + $0x2f] sm:$0xff] %vm2816_vm3, %v2731_v30  ;;  %v897_v53 = vpop.f32.mrb[29].mxu1 }
 0x1e2   : > { %2746 = vrot.lane.b32.xlu0 %v4801_v9, %s4453_s12  ;;  %2359 = vrot.lane.b32.xlu1 %v4801_v9, %s4455_s16  ;;  %v898_v62 = vadd.f32 %v5203_v41, %v897_v53  ;;  %v4238_v32 = vpop.f32.mrb[30].mxu1  ;;  %v990_v25 = vmax.f32 %v906_v45, 0.0 }
 0x1e3   : > { %v909_v46 = vadd.f32 %v4238_v32, %v5203_v41  ;;  %v900_v19 = vpop.f32.mrb[31].mxu1 }
 0x1e4   : > { %v1925_v47 = vpop.permute.xlu0 %1924  ;;  %v5296_v57 = vpop.permute.xlu1 %2611  ;;  %v988_v4 = vmax.f32 %v898_v62, 0.0  ;;  %v901_v23 = vadd.f32 %v5203_v41, %v900_v19 }
 0x1e5   : > { %2016 = vst.msk [vmem:[#allocation2 + $0x4f] sm:$0xff] %vm2010_vm7, %v1925_v47  ;;  %v991_v59 = vmax.f32 %v909_v46, 0.0 }
 0x1e6   : > { %2178 = vst.msk [vmem:[#allocation2 + $0x49] sm:$0xff] %vm2171_vm1, %v5142_v58  ;;  %2179 = vst.msk [vmem:[#allocation2 + $0x51] sm:$0xff] %vm2171_vm1, %v2090_v50  ;;  %1940 = vrot.lane.b32.xlu0 %v4801_v9, %s4450_s30  ;;  %2105 = vrot.lane.b32.xlu1 %v4806_v12, %s4447_s27  ;;  %v989_v61 = vmax.f32 %v901_v23, 0.0 }
 0x1e7   : > { %2307 = vst.msk [vmem:[#allocation2 + $0x48] sm:$0xff] %vm2300_vm9, %v5150_v17  ;;  %2308 = vst.msk [vmem:[#allocation2 + $0x50] sm:$0xff] %vm2300_vm9, %v5183_v10  ;;  %v5311_v30 = vpack.c.bf16 %v991_v59, %v990_v25  ;;  %v4241_v45 = vpop.f32.mrb[32].mxu1 }
 0x1e8   : > { %2436 = vst.msk [vmem:[#allocation2 + $0x47] sm:$0xff] %vm2429_vm13, %v5192_v22  ;;  %2437 = vst.msk [vmem:[#allocation2 + $0x4f] sm:$0xff] %vm2429_vm13, %v5194_v29  ;;  %v5317_v9 = vpack.c.bf16 %v989_v61, %v988_v4  ;;  %v2477_v58 = vpop.permute.xlu0 %2476  ;;  %v1774_v50 = vpop.permute.xlu1 %1773  ;;  %v2851_v53 = vld [vmem:[#allocation2 + $0x28] sm:$0xff]  ;;  %v2852_v62 = vld [vmem:[#allocation2 + $0x30] sm:$0xff]  ;;  %v922_v17 = vadd.f32 %v4241_v45, %v5203_v41 }
 0x1e9   : > { %2566 = vst.msk [vmem:[#allocation2 + $0x41] sm:$0xff] %vm2558_vm10, %v2477_v58  ;;  %v913_v10 = vpop.f32.mrb[33].mxu1  ;;  %v2882_v32 = vpack.c.bf16 %v2852_v62, %v2851_v53 }
 0x1ea   : > { %1860 = vst.msk [vmem:[#allocation2 + $0x78] sm:$0xff] %vm1849_vm6, %v1774_v50  ;;  %v914_v22 = vadd.f32 %v5203_v41, %v913_v10  ;;  %v4242_v29 = vpop.f32.mrb[34].mxu1  ;;  %2488 = vrot.lane.b32.xlu0 %v4874_v33, %s4452_s11  ;;  %2101 = vrot.lane.b32.xlu1 %v4874_v33, %s4447_s27  ;;  %v994_v4 = vmax.f32 %v922_v17, 0.0 }
 0x1eb   : > { %2695 = vst.msk [vmem:[#allocation2 + $0x40] sm:$0xff] %vm2687_vm0, %v5242_v63  ;;  %v925_v25 = vadd.f32 %v4242_v29, %v5203_v41  ;;  %v916_v46 = vpop.f32.mrb[35].mxu1  ;;  %4262 = vmatmul.mubr.msk.bf16.vlgmr.msra.gmra.mrb[48].mxu1 %vm1681_vm8, %v2882_v32 }
 0x1ec   : > { %2824 = vst.msk [vmem:[#allocation2 + $0x3f] sm:$0xff] %vm2816_vm3, %v5251_v38  ;;  %v917_v19 = vadd.f32 %v5203_v41, %v916_v46  ;;  %v5334_v63 = vpop.permute.xlu0 %2095  ;;  %v1770_v47 = vpop.permute.xlu1 %1769  ;;  %v992_v59 = vmax.f32 %v914_v22, 0.0 }
 0x1ed   : > { %v995_v23 = vmax.f32 %v925_v25, 0.0  ;;  %1858 = vst.msk [vmem:[#allocation2 + $0x68] sm:$0xff] %vm1849_vm6, %v1770_v47 }
 0x1ee   : > { %v993_v61 = vmax.f32 %v917_v19, 0.0  ;;  %2365 = vrot.lane.b32.xlu0 %v4826_v0, %s4455_s16  ;;  %2367 = vrot.lane.b32.xlu1 %v4666_v6, %s4455_s16 }
 0x1ef   : > { %v5341_v33 = vpack.c.bf16 %v995_v23, %v994_v4 }
 0x1f0   : > { %v5343_v38 = vpack.c.bf16 %v993_v61, %v992_v59  ;;  %v5345_v45 = vpop.permute.xlu0 %2224  ;;  %v2479_v58 = vpop.permute.xlu1 %2478  ;;  %v1038_v61 = vadd.s32 232, %v4572_v21 }
 0x1f1   : > { %2567 = vst.msk [vmem:[#allocation2 + $0x49] sm:$0xff] %vm2558_vm10, %v2479_v58  ;;  %v1040_v58 = vadd.s32 248, %v4572_v21 }
 0x1f2   : > { %2492 = vrot.lane.b32.xlu0 %v4806_v12, %s4452_s11  ;;  %2494 = vrot.lane.b32.xlu1 %v4634_v60, %s4452_s11 }
 0x1f3   : > { %v2853_v23 = vld [vmem:[#allocation2 + $0x38] sm:$0xff] }
 0x1f4   : > { %v2092_v50 = vpop.permute.xlu0 %2091  ;;  %v2608_v53 = vpop.permute.xlu1 %2607 }
 0x1f5   : > { %2180 = vst.msk [vmem:[#allocation2 + $0x59] sm:$0xff] %vm2171_vm1, %v2092_v50 }
 0x1f6   : > { %2696 = vst.msk [vmem:[#allocation2 + $0x48] sm:$0xff] %vm2687_vm0, %v2608_v53  ;;  %2496 = vrot.lane.b32.xlu0 %v4679_v14, %s4452_s11  ;;  %2498 = vrot.lane.b32.xlu1 %v4628_v55, %s4452_s11  ;;  %v1027_v14 = vadd.s32 144, %v4572_v21 }
 0x1f8   : > { %v2221_v62 = vpop.permute.xlu0 %2220  ;;  %v5358_v17 = vpop.permute.xlu1 %2740 }
 0x1f9   : > { %2309 = vst.msk [vmem:[#allocation2 + $0x58] sm:$0xff] %vm2300_vm9, %v2221_v62  ;;  %v1248_v62 = vand.u32 15, %v1038_v61 }
 0x1fa   : > { %2621 = vrot.lane.b32.xlu0 %v4792_v7, %s4454_s15  ;;  %2623 = vrot.lane.b32.xlu1 %v4634_v60, %s4454_s15  ;;  %v1171_v60 = vand.u32 15, %v1027_v14  ;;  %v1262_v14 = vand.u32 15, %v1040_v58 }
 0x1fb   : > { %vm1454_vm15 = vcmp.eq.s32.totalorder %v1248_v62, 15 }
 0x1fc   : > { %v5365_v12 = vpop.permute.xlu0 %2353  ;;  %v1935_v10 = vpop.permute.xlu1 %1934  ;;  %vm1571_vm14 = vcmp.eq.s32.totalorder %v1171_v60, 0  ;;  %vm1456_vm4 = vcmp.eq.s32.totalorder %v1262_v14, 15  ;;  %v5401_v60 = vsel %vm1454_vm15, 0.0, %v4950_v43 }
 0x1fd   : > { %1718 = vst.msk [vmem:[#allocation2 + $0x111] sm:$0xff] %vm762_vm2, %v5401_v60  ;;  %vm3251_vm2 = vcmask 1043456  }
 0x1fe   : > { %2625 = vrot.lane.b32.xlu0 %v4666_v6, %s4454_s15  ;;  %2627 = vrot.lane.b32.xlu1 %v4628_v55, %s4454_s15 }
 0x200   : > { %v2350_v32 = vpop.permute.xlu0 %2349  ;;  %v1931_v22 = vpop.permute.xlu1 %1930 }
 0x201   : > { %2438 = vst.msk [vmem:[#allocation2 + $0x57] sm:$0xff] %vm2429_vm13, %v2350_v32 }
 0x202   : > { %2019 = vst.msk [vmem:[#allocation2 + $0x67] sm:$0xff] %vm2010_vm7, %v1931_v22  ;;  %2750 = vrot.lane.b32.xlu0 %v4792_v7, %s4453_s12  ;;  %2752 = vrot.lane.b32.xlu1 %v4826_v0, %s4453_s12  ;;  %v5386_v7 = vsel %vm1571_vm14, 0.0, %v4628_v55  ;;  %v1029_v0 = vadd.s32 160, %v4572_v21 }
 0x204   : > { %v1776_v29 = vpop.permute.xlu0 %1775  ;;  %v2737_v25 = vpop.permute.xlu1 %2736  ;;  %v1185_v53 = vand.u32 15, %v1029_v0 }
 0x205   : > { %1861 = vst.msk [vmem:[#allocation2 + $0x80] sm:$0xff] %vm1849_vm6, %v1776_v29  ;;  %v5404_v29 = vsel %vm1456_vm4, 0.0, %v4948_v40  ;;  %vm3202_vm4 = vcmask 64512  }
 0x206   : > { %2825 = vst.msk [vmem:[#allocation2 + $0x47] sm:$0xff] %vm2816_vm3, %v2737_v25  ;;  %1787 = vrot.lane.b32.xlu0 %v4666_v6, %s4448_s28  ;;  %1789 = vrot.lane.b32.xlu1 %v4628_v55, %s4448_s28  ;;  %vm1573_vm5 = vcmp.eq.s32.totalorder %v1185_v53, 0 }
 0x207   : > { %v5413_v0 = vsel %vm1573_vm5, 0.0, %v4881_v37 }
 0x208   : > { %v1937_v46 = vpop.permute.xlu0 %1936  ;;  %v2227_v19 = vpop.permute.xlu1 %2226 }
 0x209   : > { %2022 = vst.msk [vmem:[#allocation2 + $0x7f] sm:$0xff] %vm2010_vm7, %v1937_v46 }
 0x20a   : > { %2754 = vrot.lane.b32.xlu0 %v4666_v6, %s4453_s12  ;;  %2756 = vrot.lane.b32.xlu1 %v5386_v7, %s4453_s12 }
 0x20c   : > { %v2614_v47 = vpop.permute.xlu0 %2613  ;;  %v2356_v4 = vpop.permute.xlu1 %2355 }
 0x20d   : > { %v2854_v59 = vld [vmem:[#allocation2 + $0x40] sm:$0xff] }
 0x20e   : > { %v2883_v50 = vpack.c.bf16 %v2854_v59, %v2853_v23  ;;  %1791 = vrot.lane.b32.xlu0 %v4694_v18, %s4448_s28  ;;  %1793 = vrot.lane.b32.xlu1 %v4881_v37, %s4448_s28 }
 0x210   : > { %4265 = vmatprep.mubr.msk.bf16.mxu1 %vm1681_vm8, %v2883_v50  ;;  %v2743_v32 = vpop.permute.xlu0 %2742  ;;  %v2223_v22 = vpop.permute.xlu1 %2222 }
 0x212   : > { %1948 = vrot.lane.b32.xlu0 %v4666_v6, %s4450_s30  ;;  %1950 = vrot.lane.b32.xlu1 %v5386_v7, %s4450_s30 }
 0x214   : > { %v2610_v25 = vpop.permute.xlu0 %2609  ;;  %v2352_v46 = vpop.permute.xlu1 %2351 }
 0x216   : > { %1952 = vrot.lane.b32.xlu0 %v4694_v18, %s4450_s30  ;;  %1954 = vrot.lane.b32.xlu1 %v5413_v0, %s4450_s30 }
 0x218   : > { %v1772_v23 = vpop.permute.xlu0 %1771  ;;  %v2098_v6 = vpop.permute.xlu1 %2097 }
 0x219   : > { %1859 = vst.msk [vmem:[#allocation2 + $0x70] sm:$0xff] %vm1849_vm6, %v1772_v23 }
 0x21a   : > { %2021 = vst.msk [vmem:[#allocation2 + $0x77] sm:$0xff] %vm2010_vm7, %v1935_v10  ;;  %2111 = vrot.lane.b32.xlu0 %v4628_v55, %s4447_s27  ;;  %2113 = vrot.lane.b32.xlu1 %v4733_v35, %s4447_s27 }
 0x21c   : > { %v2739_v59 = vpop.permute.xlu0 %2738  ;;  %v2094_v61 = vpop.permute.xlu1 %2093 }
 0x21d   : > { %2181 = vst.msk [vmem:[#allocation2 + $0x61] sm:$0xff] %vm2171_vm1, %v2094_v61 }
 0x21e   : > { %2310 = vst.msk [vmem:[#allocation2 + $0x60] sm:$0xff] %vm2300_vm9, %v2223_v22  ;;  %2115 = vrot.lane.b32.xlu0 %v4881_v37, %s4447_s27  ;;  %2117 = vrot.lane.b32.xlu1 %v5075_v49, %s4447_s27 }
 0x21f   : > { %2439 = vst.msk [vmem:[#allocation2 + $0x5f] sm:$0xff] %vm2429_vm13, %v2352_v46 }
 0x220   : > { %2569 = vst.msk [vmem:[#allocation2 + $0x59] sm:$0xff] %vm2558_vm10, %v5284_v31  ;;  %v1933_v10 = vpop.permute.xlu0 %1932  ;;  %v5434_v58 = vpop.permute.xlu1 %2490 }
 0x221   : > { %2020 = vst.msk [vmem:[#allocation2 + $0x6f] sm:$0xff] %vm2010_vm7, %v1933_v10 }
 0x222   : > { %2182 = vst.msk [vmem:[#allocation2 + $0x69] sm:$0xff] %vm2171_vm1, %v5334_v63  ;;  %2183 = vst.msk [vmem:[#allocation2 + $0x71] sm:$0xff] %vm2171_vm1, %v2098_v6  ;;  %2240 = vrot.lane.b32.xlu0 %v4628_v55, %s4449_s29  ;;  %2242 = vrot.lane.b32.xlu1 %v4694_v18, %s4449_s29 }
 0x223   : > { %2311 = vst.msk [vmem:[#allocation2 + $0x68] sm:$0xff] %vm2300_vm9, %v5345_v45  ;;  %2312 = vst.msk [vmem:[#allocation2 + $0x70] sm:$0xff] %vm2300_vm9, %v2227_v19 }
 0x224   : > { %2440 = vst.msk [vmem:[#allocation2 + $0x67] sm:$0xff] %vm2429_vm13, %v5365_v12  ;;  %2441 = vst.msk [vmem:[#allocation2 + $0x6f] sm:$0xff] %vm2429_vm13, %v2356_v4  ;;  %v2485_v31 = vpop.permute.xlu0 %2484  ;;  %v5450_v63 = vpop.permute.xlu1 %2619 }
 0x225   : > { %2570 = vst.msk [vmem:[#allocation2 + $0x61] sm:$0xff] %vm2558_vm10, %v2485_v31  ;;  %v4245_v4 = vpop.f32.mrb[36].mxu1 }
 0x226   : > { %2699 = vst.msk [vmem:[#allocation2 + $0x60] sm:$0xff] %vm2687_vm0, %v2614_v47  ;;  %2244 = vrot.lane.b32.xlu0 %v4881_v37, %s4449_s29  ;;  %2246 = vrot.lane.b32.xlu1 %v4892_v42, %s4449_s29  ;;  %v938_v53 = vadd.f32 %v4245_v4, %v5203_v41  ;;  %v929_v62 = vpop.f32.mrb[37].mxu1 }
 0x227   : > { %v930_v22 = vadd.f32 %v5203_v41, %v929_v62 }
 0x228   : > { %v2481_v55 = vpop.permute.xlu0 %2480  ;;  %v1782_v45 = vpop.permute.xlu1 %1781 }
 0x229   : > { %2568 = vst.msk [vmem:[#allocation2 + $0x51] sm:$0xff] %vm2558_vm10, %v2481_v55  ;;  %v996_v6 = vmax.f32 %v930_v22, 0.0 }
 0x22a   : > { %1864 = vst.msk [vmem:[#allocation2 + $0x98] sm:$0xff] %vm1849_vm6, %v1782_v45  ;;  %2369 = vrot.lane.b32.xlu0 %v5386_v7, %s4455_s16  ;;  %2371 = vrot.lane.b32.xlu1 %v4694_v18, %s4455_s16 }
 0x22b   : > { %2697 = vst.msk [vmem:[#allocation2 + $0x50] sm:$0xff] %vm2687_vm0, %v2610_v25  ;;  %2698 = vst.msk [vmem:[#allocation2 + $0x58] sm:$0xff] %vm2687_vm0, %v5296_v57  ;;  %v998_v25 = vmax.f32 %v938_v53, 0.0 }
 0x22c   : > { %2826 = vst.msk [vmem:[#allocation2 + $0x4f] sm:$0xff] %vm2816_vm3, %v2739_v59  ;;  %2827 = vst.msk [vmem:[#allocation2 + $0x57] sm:$0xff] %vm2816_vm3, %v5358_v17  ;;  %v5471_v12 = vpop.permute.xlu0 %2103  ;;  %v1778_v19 = vpop.permute.xlu1 %1777 }
 0x22d   : > { %2828 = vst.msk [vmem:[#allocation2 + $0x5f] sm:$0xff] %vm2816_vm3, %v2743_v32 }
 0x22e   : > { %1862 = vst.msk [vmem:[#allocation2 + $0x88] sm:$0xff] %vm1849_vm6, %v1778_v19  ;;  %2373 = vrot.lane.b32.xlu0 %v5413_v0, %s4455_s16  ;;  %2375 = vrot.lane.b32.xlu1 %v4892_v42, %s4455_s16 }
 0x230   : > { %v5478_v57 = vpop.permute.xlu0 %2232  ;;  %v2487_v7 = vpop.permute.xlu1 %2486 }
 0x231   : > { %2571 = vst.msk [vmem:[#allocation2 + $0x69] sm:$0xff] %vm2558_vm10, %v2487_v7 }
 0x232   : > { %2500 = vrot.lane.b32.xlu0 %v4733_v35, %s4452_s11  ;;  %2502 = vrot.lane.b32.xlu1 %v4881_v37, %s4452_s11  ;;  %v4246_v35 = vpop.f32.mrb[38].mxu1 }
 0x233   : > { %v2855_v17 = vld [vmem:[#allocation2 + $0x48] sm:$0xff]  ;;  %v2856_v47 = vld [vmem:[#allocation2 + $0x50] sm:$0xff]  ;;  %v941_v46 = vadd.f32 %v4246_v35, %v5203_v41  ;;  %v932_v23 = vpop.f32.mrb[39].mxu1 }
 0x234   : > { %v2884_v50 = vpack.c.bf16 %v2856_v47, %v2855_v17  ;;  %v2100_v14 = vpop.permute.xlu0 %2099  ;;  %v2616_v32 = vpop.permute.xlu1 %2615  ;;  %v933_v59 = vadd.f32 %v5203_v41, %v932_v23 }
 0x235   : > { %2184 = vst.msk [vmem:[#allocation2 + $0x79] sm:$0xff] %vm2171_vm1, %v2100_v14  ;;  %v4249_v61 = vpop.f32.mrb[40].mxu1  ;;  %v999_v55 = vmax.f32 %v941_v46, 0.0 }
 0x236   : > { %2700 = vst.msk [vmem:[#allocation2 + $0x68] sm:$0xff] %vm2687_vm0, %v2616_v32  ;;  %4266 = vmatmul.mubr.msk.bf16.gmra.mrb[52].mxu1 %vm1681_vm8, %v2884_v50  ;;  %2504 = vrot.lane.b32.xlu0 %v5075_v49, %s4452_s11  ;;  %v954_v45 = vadd.f32 %v4249_v61, %v5203_v41  ;;  %v997_v49 = vmax.f32 %v933_v59, 0.0  ;;  %v945_v19 = vpop.f32.mrb[41].mxu1 }
 0x237   : > { %2506 = vrot.lane.b32.xlu1 %v4865_v27, %s4452_s11  ;;  %v5504_v7 = vpack.c.bf16 %v999_v55, %v998_v25  ;;  %v946_v17 = vadd.f32 %v5203_v41, %v945_v19  ;;  %v4250_v47 = vpop.f32.mrb[42].mxu1  ;;  %v1031_v25 = vadd.s32 176, %v4572_v21 }
 0x238   : > { %v2229_v10 = vpop.permute.xlu0 %2228  ;;  %v5496_v31 = vpop.permute.xlu1 %2748  ;;  %v5507_v4 = vpack.c.bf16 %v997_v49, %v996_v6  ;;  %v1002_v50 = vmax.f32 %v954_v45, 0.0  ;;  %v957_v53 = vadd.f32 %v4250_v47, %v5203_v41 }
 0x239   : > { %2313 = vst.msk [vmem:[#allocation2 + $0x78] sm:$0xff] %vm2300_vm9, %v2229_v10  ;;  %v948_v62 = vpop.f32.mrb[43].mxu1  ;;  %v1000_v22 = vmax.f32 %v946_v17, 0.0 }
 0x23a   : > { %2629 = vrot.lane.b32.xlu0 %v4694_v18, %s4454_s15  ;;  %v949_v35 = vadd.f32 %v5203_v41, %v948_v62  ;;  %v1003_v46 = vmax.f32 %v957_v53, 0.0 }
 0x23b   : > { %2631 = vrot.lane.b32.xlu1 %v4881_v37, %s4454_s15  ;;  %v4253_v37 = vpop.f32.mrb[44].mxu1 }
 0x23c   : > { %v5510_v14 = vpop.permute.xlu0 %2361  ;;  %v5512_v32 = vpop.permute.xlu1 %1942  ;;  %v1001_v23 = vmax.f32 %v949_v35, 0.0  ;;  %v970_v6 = vadd.f32 %v4253_v37, %v5203_v41  ;;  %v5521_v61 = vpack.c.bf16 %v1003_v46, %v1002_v50  ;;  %v1199_v50 = vand.u32 15, %v1031_v25 }
 0x23d   : > { %v961_v59 = vpop.f32.mrb[45].mxu1 }
 0x23e   : > { %2633 = vrot.lane.b32.xlu0 %v4892_v42, %s4454_s15  ;;  %v962_v10 = vadd.f32 %v5203_v41, %v961_v59  ;;  %v4254_v55 = vpop.f32.mrb[46].mxu1  ;;  %v5524_v19 = vpack.c.bf16 %v1001_v23, %v1000_v22  ;;  %v1006_v17 = vmax.f32 %v970_v6, 0.0  ;;  %vm1575_vm11 = vcmp.eq.s32.totalorder %v1199_v50, 0 }
 0x23f   : > { %2635 = vrot.lane.b32.xlu1 %v4865_v27, %s4454_s15  ;;  %v973_v47 = vadd.f32 %v4254_v55, %v5203_v41  ;;  %v964_v53 = vpop.f32.mrb[47].mxu1 }
 0x240   : > { %v2358_v45 = vpop.permute.xlu0 %2357  ;;  %v1939_v49 = vpop.permute.xlu1 %1938  ;;  %v1004_v62 = vmax.f32 %v962_v10, 0.0  ;;  %v965_v22 = vadd.f32 %v5203_v41, %v964_v53  ;;  %v1033_v10 = vadd.s32 192, %v4572_v21 }
 0x241   : > { %2442 = vst.msk [vmem:[#allocation2 + $0x77] sm:$0xff] %vm2429_vm13, %v2358_v45  ;;  %v1007_v35 = vmax.f32 %v973_v47, 0.0 }
 0x242   : > { %2023 = vst.msk [vmem:[#allocation2 + $0x87] sm:$0xff] %vm2010_vm7, %v1939_v49  ;;  %2758 = vrot.lane.b32.xlu0 %v4694_v18, %s4453_s12  ;;  %v1005_v6 = vmax.f32 %v965_v22, 0.0  ;;  %v3201_v18 = vld [vmem:[%s6101_s8] sm:$0xf]  ;;  %v2857_v49 = vld [vmem:[#allocation2 + $0x58] sm:$0xff] }
 0x243   : > { %2760 = vrot.lane.b32.xlu1 %v5413_v0, %s4453_s12  ;;  %v5534_v23 = vpack.c.bf16 %v1007_v35, %v1006_v17  ;;  %v3253_v0 = vsel %vm3251_vm2, %v3201_v18, 0  ;;  %4399 = vmatprep.subr.msk.bf16.mxu0 %vm3251_vm2, %v3201_v18 }
 0x244   : > { %v1784_v46 = vpop.permute.xlu0 %1783  ;;  %v2745_v37 = vpop.permute.xlu1 %2744  ;;  %v5547_v41 = vpack.c.bf16 %v1005_v6, %v1004_v62  ;;  %4294 = vmatpush3.bf16.msra.mxu0 %v3253_v0 }
 0x245   : > { %1865 = vst.msk [vmem:[#allocation2 + $0xa0] sm:$0xff] %vm1849_vm6, %v1784_v46 }
 0x246   : > { %2829 = vst.msk [vmem:[#allocation2 + $0x67] sm:$0xff] %vm2816_vm3, %v2745_v37  ;;  %1795 = vrot.lane.b32.xlu0 %v4892_v42, %s4448_s28 }
 0x247   : > { %2027 = vst.msk [vmem:[#allocation2 + $0xa7] sm:$0xff] %vm2010_vm7, %v5057_v2  ;;  %1797 = vrot.lane.b32.xlu1 %v4865_v27, %s4448_s28  ;;  %v5553_v2 = vsel %vm1575_vm11, 0.0, %v4865_v27 }
 0x248   : > { %v1945_v25 = vpop.permute.xlu0 %1944  ;;  %v2235_v59 = vpop.permute.xlu1 %2234 }
 0x249   : > { %2026 = vst.msk [vmem:[#allocation2 + $0x9f] sm:$0xff] %vm2010_vm7, %v1945_v25 }
 0x24a   : > { %2189 = vst.msk [vmem:[#allocation2 + $0xa1] sm:$0xff] %vm2171_vm1, %v5144_v1  ;;  %2762 = vrot.lane.b32.xlu0 %v4892_v42, %s4453_s12  ;;  %v1213_v1 = vand.u32 15, %v1033_v10 }
 0x24b   : > { %2764 = vrot.lane.b32.xlu1 %v5553_v2, %s4453_s12 }
 0x24c   : > { %v2618_v55 = vpop.permute.xlu0 %2617  ;;  %v2364_v45 = vpop.permute.xlu1 %2363  ;;  %vm1577_vm12 = vcmp.eq.s32.totalorder %v1213_v1, 0 }
 0x24d   : > { %v2858_v17 = vld [vmem:[#allocation2 + $0x60] sm:$0xff]  ;;  %v5579_v22 = vsel %vm1577_vm12, 0.0, %v4911_v5 }
 0x24e   : > { %v2885_v47 = vpack.c.bf16 %v2858_v17, %v2857_v49  ;;  %1799 = vrot.lane.b32.xlu0 %v4884_v39, %s4448_s28  ;;  %v1035_v17 = vadd.s32 208, %v4572_v21 }
 0x24f   : > { %1801 = vrot.lane.b32.xlu1 %v4911_v5, %s4448_s28 }
 0x250   : > { %4269 = vmatprep.mubr.msk.bf16.mxu1 %vm1681_vm8, %v2885_v47  ;;  %v1780_v53 = vpop.permute.xlu0 %1779  ;;  %v2231_v50 = vpop.permute.xlu1 %2230  ;;  %v1227_v1 = vand.u32 15, %v1035_v17 }
 0x251   : > { %1863 = vst.msk [vmem:[#allocation2 + $0x90] sm:$0xff] %vm1849_vm6, %v1780_v53 }
 0x252   : > { %2025 = vst.msk [vmem:[#allocation2 + $0x97] sm:$0xff] %vm2010_vm7, %v5512_v32  ;;  %1956 = vrot.lane.b32.xlu0 %v4892_v42, %s4450_s30  ;;  %vm1579_vm14 = vcmp.eq.s32.totalorder %v1227_v1, 0 }
 0x253   : > { %1958 = vrot.lane.b32.xlu1 %v5553_v2, %s4450_s30  ;;  %2188 = vst.msk [vmem:[#allocation2 + $0x99] sm:$0xff] %vm2171_vm1, %v5055_v36 }
 0x254   : > { %2318 = vst.msk [vmem:[#allocation2 + $0xa0] sm:$0xff] %vm2300_vm9, %v5098_v26  ;;  %v2747_v62 = vpop.permute.xlu0 %2746  ;;  %v2360_v35 = vpop.permute.xlu1 %2359 }
 0x256   : > { %1960 = vrot.lane.b32.xlu0 %v4884_v39, %s4450_s30 }
 0x257   : > { %1962 = vrot.lane.b32.xlu1 %v5579_v22, %s4450_s30 }
 0x258   : > { %v1941_v42 = vpop.permute.xlu0 %1940  ;;  %v2106_v32 = vpop.permute.xlu1 %2105 }
 0x259   : > { %2024 = vst.msk [vmem:[#allocation2 + $0x8f] sm:$0xff] %vm2010_vm7, %v1941_v42 }
 0x25a   : > { %2186 = vst.msk [vmem:[#allocation2 + $0x89] sm:$0xff] %vm2171_vm1, %v5471_v12  ;;  %2187 = vst.msk [vmem:[#allocation2 + $0x91] sm:$0xff] %vm2171_vm1, %v2106_v32  ;;  %2119 = vrot.lane.b32.xlu0 %v4865_v27, %s4447_s27  ;;  %v1675_v32 = vsel %vm1579_vm14, 0.0, %v4897_v52 }
 0x25b   : > { %2121 = vrot.lane.b32.xlu1 %v5078_v11, %s4447_s27  ;;  %2316 = vst.msk [vmem:[#allocation2 + $0x90] sm:$0xff] %vm2300_vm9, %v2235_v59  ;;  %2317 = vst.msk [vmem:[#allocation2 + $0x98] sm:$0xff] %vm2300_vm9, %v5063_v15 }
 0x25c   : > { %v2489_v36 = vpop.permute.xlu0 %2488  ;;  %v2102_v26 = vpop.permute.xlu1 %2101 }
 0x25d   : > { %2572 = vst.msk [vmem:[#allocation2 + $0x71] sm:$0xff] %vm2558_vm10, %v2489_v36  ;;  %v1037_v36 = vadd.s32 224, %v4572_v21 }
 0x25e   : > { %2185 = vst.msk [vmem:[#allocation2 + $0x81] sm:$0xff] %vm2171_vm1, %v2102_v26  ;;  %2123 = vrot.lane.b32.xlu0 %v4911_v5, %s4447_s27 }
 0x25f   : > { %2701 = vst.msk [vmem:[#allocation2 + $0x70] sm:$0xff] %vm2687_vm0, %v2618_v55  ;;  %2125 = vrot.lane.b32.xlu1 %v5228_v3, %s4447_s27 }
 0x260   : > { %2314 = vst.msk [vmem:[#allocation2 + $0x80] sm:$0xff] %vm2300_vm9, %v2231_v50  ;;  %2315 = vst.msk [vmem:[#allocation2 + $0x88] sm:$0xff] %vm2300_vm9, %v5478_v57  ;;  %v2366_v15 = vpop.permute.xlu0 %2365  ;;  %v2368_v12 = vpop.permute.xlu1 %2367 }
 0x261   : > { %2830 = vst.msk [vmem:[#allocation2 + $0x6f] sm:$0xff] %vm2816_vm3, %v2747_v62 }
 0x262   : > { %2443 = vst.msk [vmem:[#allocation2 + $0x7f] sm:$0xff] %vm2429_vm13, %v2360_v35  ;;  %2444 = vst.msk [vmem:[#allocation2 + $0x87] sm:$0xff] %vm2429_vm13, %v5510_v14  ;;  %2248 = vrot.lane.b32.xlu0 %v4865_v27, %s4449_s29 }
 0x263   : > { %2445 = vst.msk [vmem:[#allocation2 + $0x8f] sm:$0xff] %vm2429_vm13, %v2364_v45  ;;  %2446 = vst.msk [vmem:[#allocation2 + $0x97] sm:$0xff] %vm2429_vm13, %v2366_v15  ;;  %2250 = vrot.lane.b32.xlu1 %v4884_v39, %s4449_s29 }
 0x264   : > { %2573 = vst.msk [vmem:[#allocation2 + $0x79] sm:$0xff] %vm2558_vm10, %v5434_v58  ;;  %v2493_v57 = vpop.permute.xlu0 %2492  ;;  %v2495_v58 = vpop.permute.xlu1 %2494 }
 0x265   : > { %2702 = vst.msk [vmem:[#allocation2 + $0x78] sm:$0xff] %vm2687_vm0, %v5450_v63 }
 0x266   : > { %2447 = vst.msk [vmem:[#allocation2 + $0x9f] sm:$0xff] %vm2429_vm13, %v2368_v12  ;;  %2252 = vrot.lane.b32.xlu0 %v4911_v5, %s4449_s29  ;;  %v1241_v12 = vand.u32 15, %v1037_v36 }
 0x267   : > { %2831 = vst.msk [vmem:[#allocation2 + $0x77] sm:$0xff] %vm2816_vm3, %v5496_v31  ;;  %2254 = vrot.lane.b32.xlu1 %v4923_v20, %s4449_s29 }
 0x268   : > { %2574 = vst.msk [vmem:[#allocation2 + $0x81] sm:$0xff] %vm2558_vm10, %v2493_v57  ;;  %2575 = vst.msk [vmem:[#allocation2 + $0x89] sm:$0xff] %vm2558_vm10, %v2495_v58  ;;  %v2497_v63 = vpop.permute.xlu0 %2496  ;;  %v2499_v31 = vpop.permute.xlu1 %2498  ;;  %v2859_v27 = vld [vmem:[#allocation2 + $0x68] sm:$0xff]  ;;  %vm1581_vm15 = vcmp.eq.s32.totalorder %v1241_v12, 0 }
 0x269   : > { %2576 = vst.msk [vmem:[#allocation2 + $0x91] sm:$0xff] %vm2558_vm10, %v2497_v63  ;;  %2577 = vst.msk [vmem:[#allocation2 + $0x99] sm:$0xff] %vm2558_vm10, %v2499_v31 }
 0x26a   : > { %2377 = vrot.lane.b32.xlu0 %v5553_v2, %s4455_s16 }
 0x26b   : > { %2379 = vrot.lane.b32.xlu1 %v4884_v39, %s4455_s16 }
 0x26c   : > { %v2622_v37 = vpop.permute.xlu0 %2621  ;;  %v2624_v6 = vpop.permute.xlu1 %2623 }
 0x26d   : > { %2703 = vst.msk [vmem:[#allocation2 + $0x80] sm:$0xff] %vm2687_vm0, %v2622_v37  ;;  %2704 = vst.msk [vmem:[#allocation2 + $0x88] sm:$0xff] %vm2687_vm0, %v2624_v6 }
 0x26e   : > { %v2860_v14 = vld [vmem:[#allocation2 + $0x70] sm:$0xff]  ;;  %2381 = vrot.lane.b32.xlu0 %v5579_v22, %s4455_s16 }
 0x26f   : > { %v2886_v46 = vpack.c.bf16 %v2860_v14, %v2859_v27  ;;  %2383 = vrot.lane.b32.xlu1 %v4923_v20, %s4455_s16  ;;  %v5702_v27 = vsel %vm1581_vm15, 0.0, %v4938_v34 }
 0x270   : > { %v2626_v18 = vpop.permute.xlu0 %2625  ;;  %v2628_v0 = vpop.permute.xlu1 %2627 }
 0x271   : > { %4270 = vmatmul.mubr.msk.bf16.gmra.mrb[56].mxu1 %vm1681_vm8, %v2886_v46  ;;  %2705 = vst.msk [vmem:[#allocation2 + $0x90] sm:$0xff] %vm2687_vm0, %v2626_v18  ;;  %2706 = vst.msk [vmem:[#allocation2 + $0x98] sm:$0xff] %vm2687_vm0, %v2628_v0 }
 0x272   : > { %2508 = vrot.lane.b32.xlu0 %v5078_v11, %s4452_s11 }
 0x273   : > { %2510 = vrot.lane.b32.xlu1 %v4911_v5, %s4452_s11 }
 0x274   : > { %v2751_v25 = vpop.permute.xlu0 %2750  ;;  %v2753_v59 = vpop.permute.xlu1 %2752 }
 0x275   : > { %2832 = vst.msk [vmem:[#allocation2 + $0x7f] sm:$0xff] %vm2816_vm3, %v2751_v25  ;;  %2833 = vst.msk [vmem:[#allocation2 + $0x87] sm:$0xff] %vm2816_vm3, %v2753_v59 }
 0x276   : > { %2512 = vrot.lane.b32.xlu0 %v5228_v3, %s4452_s11 }
 0x277   : > { %2514 = vrot.lane.b32.xlu1 %v4897_v52, %s4452_s11 }
 0x278   : > { %v1788_v2 = vpop.permute.xlu0 %1787  ;;  %v1790_v10 = vpop.permute.xlu1 %1789 }
 0x279   : > { %1867 = vst.msk [vmem:[#allocation2 + $0xb0] sm:$0xff] %vm1849_vm6, %v1788_v2  ;;  %1868 = vst.msk [vmem:[#allocation2 + $0xb8] sm:$0xff] %vm1849_vm6, %v1790_v10 }
 0x27a   : > { %2637 = vrot.lane.b32.xlu0 %v4884_v39, %s4454_s15 }
 0x27b   : > { %2639 = vrot.lane.b32.xlu1 %v4911_v5, %s4454_s15 }
 0x27c   : > { %v2755_v11 = vpop.permute.xlu0 %2754  ;;  %v2757_v55 = vpop.permute.xlu1 %2756  ;;  %v2861_v45 = vld [vmem:[#allocation2 + $0x78] sm:$0xff]  ;;  %v2862_v49 = vld [vmem:[#allocation2 + $0x80] sm:$0xff] }
 0x27d   : > { %2834 = vst.msk [vmem:[#allocation2 + $0x8f] sm:$0xff] %vm2816_vm3, %v2755_v11  ;;  %2835 = vst.msk [vmem:[#allocation2 + $0x97] sm:$0xff] %vm2816_vm3, %v2757_v55  ;;  %v2887_v3 = vpack.c.bf16 %v2862_v49, %v2861_v45 }
 0x27e   : > { %2641 = vrot.lane.b32.xlu0 %v4923_v20, %s4454_s15 }
 0x27f   : > { %2643 = vrot.lane.b32.xlu1 %v4897_v52, %s4454_s15  ;;  %4273 = vmatprep.mubr.msk.bf16.mxu1 %vm1681_vm8, %v2887_v3 }
 0x280   : > { %v1792_v5 = vpop.permute.xlu0 %1791  ;;  %v1794_v47 = vpop.permute.xlu1 %1793 }
 0x281   : > { %1869 = vst.msk [vmem:[#allocation2 + $0xc0] sm:$0xff] %vm1849_vm6, %v1792_v5  ;;  %1870 = vst.msk [vmem:[#allocation2 + $0xc8] sm:$0xff] %vm1849_vm6, %v1794_v47 }
 0x282   : > { %2766 = vrot.lane.b32.xlu0 %v4884_v39, %s4453_s12 }
 0x283   : > { %2768 = vrot.lane.b32.xlu1 %v5579_v22, %s4453_s12 }
 0x284   : > { %v1949_v53 = vpop.permute.xlu0 %1948  ;;  %v1951_v50 = vpop.permute.xlu1 %1950  ;;  %v2863_v62 = vld [vmem:[#allocation2 + $0x88] sm:$0xff]  ;;  %v2864_v35 = vld [vmem:[#allocation2 + $0x90] sm:$0xff] }
 0x285   : > { %2028 = vst.msk [vmem:[#allocation2 + $0xaf] sm:$0xff] %vm2010_vm7, %v1949_v53  ;;  %2029 = vst.msk [vmem:[#allocation2 + $0xb7] sm:$0xff] %vm2010_vm7, %v1951_v50  ;;  %v2888_v42 = vpack.c.bf16 %v2864_v35, %v2863_v62  ;;  %v1039_v50 = vadd.s32 240, %v4572_v21 }
 0x286   : > { %1803 = vrot.lane.b32.xlu0 %v4923_v20, %s4448_s28 }
 0x287   : > { %1805 = vrot.lane.b32.xlu1 %v4897_v52, %s4448_s28  ;;  %4274 = vmatmul.mubr.msk.bf16.gmra.mrb[60].mxu1 %vm1681_vm8, %v2888_v42  ;;  %v1255_v21 = vand.u32 15, %v1039_v50 }
 0x288   : > { %v1953_v39 = vpop.permute.xlu0 %1952  ;;  %v1955_v22 = vpop.permute.xlu1 %1954 }
 0x289   : > { %2030 = vst.msk [vmem:[#allocation2 + $0xbf] sm:$0xff] %vm2010_vm7, %v1953_v39  ;;  %2031 = vst.msk [vmem:[#allocation2 + $0xc7] sm:$0xff] %vm2010_vm7, %v1955_v22  ;;  %vm1583_vm5 = vcmp.eq.s32.totalorder %v1255_v21, 0 }
 0x28a   : > { %2770 = vrot.lane.b32.xlu0 %v4923_v20, %s4453_s12 }
 0x28b   : > { %2772 = vrot.lane.b32.xlu1 %v1675_v32, %s4453_s12 }
 0x28c   : > { %v2112_v26 = vpop.permute.xlu0 %2111  ;;  %v2114_v15 = vpop.permute.xlu1 %2113 }
 0x28d   : > { %2190 = vst.msk [vmem:[#allocation2 + $0xa9] sm:$0xff] %vm2171_vm1, %v2112_v26  ;;  %2191 = vst.msk [vmem:[#allocation2 + $0xb1] sm:$0xff] %vm2171_vm1, %v2114_v15 }
 0x28e   : > { %1807 = vrot.lane.b32.xlu0 %v4916_v13, %s4448_s28 }
 0x28f   : > { %1809 = vrot.lane.b32.xlu1 %v4938_v34, %s4448_s28 }
 0x290   : > { %v2116_v57 = vpop.permute.xlu0 %2115  ;;  %v2118_v58 = vpop.permute.xlu1 %2117 }
 0x291   : > { %2192 = vst.msk [vmem:[#allocation2 + $0xb9] sm:$0xff] %vm2171_vm1, %v2116_v57  ;;  %2193 = vst.msk [vmem:[#allocation2 + $0xc1] sm:$0xff] %vm2171_vm1, %v2118_v58 }
 0x292   : > { %1964 = vrot.lane.b32.xlu0 %v4923_v20, %s4450_s30 }
 0x293   : > { %1966 = vrot.lane.b32.xlu1 %v1675_v32, %s4450_s30 }
 0x294   : > { %v2241_v63 = vpop.permute.xlu0 %2240  ;;  %v2243_v31 = vpop.permute.xlu1 %2242 }
 0x295   : > { %2319 = vst.msk [vmem:[#allocation2 + $0xa8] sm:$0xff] %vm2300_vm9, %v2241_v63  ;;  %2320 = vst.msk [vmem:[#allocation2 + $0xb0] sm:$0xff] %vm2300_vm9, %v2243_v31 }
 0x296   : > { %1968 = vrot.lane.b32.xlu0 %v4916_v13, %s4450_s30 }
 0x297   : > { %1970 = vrot.lane.b32.xlu1 %v5702_v27, %s4450_s30 }
 0x298   : > { %v2245_v14 = vpop.permute.xlu0 %2244  ;;  %v2247_v20 = vpop.permute.xlu1 %2246 }
 0x299   : > { %2321 = vst.msk [vmem:[#allocation2 + $0xb8] sm:$0xff] %vm2300_vm9, %v2245_v14  ;;  %2322 = vst.msk [vmem:[#allocation2 + $0xc0] sm:$0xff] %vm2300_vm9, %v2247_v20 }
 0x29a   : > { %2127 = vrot.lane.b32.xlu0 %v4897_v52, %s4447_s27 }
 0x29b   : > { %2129 = vrot.lane.b32.xlu1 %v5237_v16, %s4447_s27 }
 0x29c   : > { %v2370_v46 = vpop.permute.xlu0 %2369  ;;  %v2372_v37 = vpop.permute.xlu1 %2371 }
 0x29d   : > { %2448 = vst.msk [vmem:[#allocation2 + $0xa7] sm:$0xff] %vm2429_vm13, %v2370_v46  ;;  %2449 = vst.msk [vmem:[#allocation2 + $0xaf] sm:$0xff] %vm2429_vm13, %v2372_v37 }
 0x29e   : > { %2131 = vrot.lane.b32.xlu0 %v4938_v34, %s4447_s27 }
 0x29f   : > { %2133 = vrot.lane.b32.xlu1 %v5401_v60, %s4447_s27 }
 0x2a0   : > { %v2374_v6 = vpop.permute.xlu0 %2373  ;;  %v2376_v18 = vpop.permute.xlu1 %2375 }
 0x2a1   : > { %2450 = vst.msk [vmem:[#allocation2 + $0xb7] sm:$0xff] %vm2429_vm13, %v2374_v6  ;;  %2451 = vst.msk [vmem:[#allocation2 + $0xbf] sm:$0xff] %vm2429_vm13, %v2376_v18 }
 0x2a2   : > { %2256 = vrot.lane.b32.xlu0 %v4897_v52, %s4449_s29 }
 0x2a3   : > { %2258 = vrot.lane.b32.xlu1 %v4916_v13, %s4449_s29 }
 0x2a4   : > { %v2501_v0 = vpop.permute.xlu0 %2500  ;;  %v2503_v25 = vpop.permute.xlu1 %2502 }
 0x2a5   : > { %2578 = vst.msk [vmem:[#allocation2 + $0xa1] sm:$0xff] %vm2558_vm10, %v2501_v0  ;;  %2579 = vst.msk [vmem:[#allocation2 + $0xa9] sm:$0xff] %vm2558_vm10, %v2503_v25  ;;  %v1679_v0 = vsel %vm1583_vm5, 0.0, %v4933_v24 }
 0x2a6   : > { %2260 = vrot.lane.b32.xlu0 %v4938_v34, %s4449_s29 }
 0x2a7   : > { %2262 = vrot.lane.b32.xlu1 %v4950_v43, %s4449_s29 }
 0x2a8   : > { %v2505_v59 = vpop.permute.xlu0 %2504 }
 0x2a9   : > { %v2507_v2 = vpop.permute.xlu1 %2506  ;;  %2580 = vst.msk [vmem:[#allocation2 + $0xb1] sm:$0xff] %vm2558_vm10, %v2505_v59 }
 0x2aa   : > { %2581 = vst.msk [vmem:[#allocation2 + $0xb9] sm:$0xff] %vm2558_vm10, %v2507_v2  ;;  %2385 = vrot.lane.b32.xlu0 %v1675_v32, %s4455_s16 }
 0x2ab   : > { %2387 = vrot.lane.b32.xlu1 %v4916_v13, %s4455_s16 }
 0x2ac   : > { %v2630_v52 = vpop.permute.xlu0 %2629 }
 0x2ad   : > { %v2632_v10 = vpop.permute.xlu1 %2631  ;;  %2707 = vst.msk [vmem:[#allocation2 + $0xa0] sm:$0xff] %vm2687_vm0, %v2630_v52 }
 0x2ae   : > { %2708 = vst.msk [vmem:[#allocation2 + $0xa8] sm:$0xff] %vm2687_vm0, %v2632_v10  ;;  %2389 = vrot.lane.b32.xlu0 %v5702_v27, %s4455_s16 }
 0x2af   : > { %2391 = vrot.lane.b32.xlu1 %v4950_v43, %s4455_s16 }
 0x2b0   : > { %v2634_v11 = vpop.permute.xlu0 %2633 }
 0x2b1   : > { %v2636_v55 = vpop.permute.xlu1 %2635  ;;  %2709 = vst.msk [vmem:[#allocation2 + $0xb0] sm:$0xff] %vm2687_vm0, %v2634_v11 }
 0x2b2   : > { %2710 = vst.msk [vmem:[#allocation2 + $0xb8] sm:$0xff] %vm2687_vm0, %v2636_v55  ;;  %2516 = vrot.lane.b32.xlu0 %v5237_v16, %s4452_s11 }
 0x2b3   : > { %2518 = vrot.lane.b32.xlu1 %v4938_v34, %s4452_s11 }
 0x2b4   : > { %v2759_v45 = vpop.permute.xlu0 %2758 }
 0x2b5   : > { %v2761_v49 = vpop.permute.xlu1 %2760  ;;  %2836 = vst.msk [vmem:[#allocation2 + $0x9f] sm:$0xff] %vm2816_vm3, %v2759_v45 }
 0x2b6   : > { %2837 = vst.msk [vmem:[#allocation2 + $0xa7] sm:$0xff] %vm2816_vm3, %v2761_v49  ;;  %2520 = vrot.lane.b32.xlu0 %v5401_v60, %s4452_s11  ;;  %v5766_v60 = vld [vmem:[%s6099_s6] ss:$0 sm:$0xff] }
 0x2b7   : > { %2522 = vrot.lane.b32.xlu1 %v4933_v24, %s4452_s11 }
 0x2b8   : > { %v1796_v3 = vpop.permute.xlu0 %1795 }
 0x2b9   : > { %v1798_v17 = vpop.permute.xlu1 %1797  ;;  %1871 = vst.msk [vmem:[#allocation2 + $0xd0] sm:$0xff] %vm1849_vm6, %v1796_v3 }
 0x2ba   : > { %1872 = vst.msk [vmem:[#allocation2 + $0xd8] sm:$0xff] %vm1849_vm6, %v1798_v17  ;;  %2645 = vrot.lane.b32.xlu0 %v4916_v13, %s4454_s15 }
 0x2bb   : > { %2647 = vrot.lane.b32.xlu1 %v4938_v34, %s4454_s15 }
 0x2bc   : > { %v2763_v16 = vpop.permute.xlu0 %2762  ;;  %v2865_v47 = vld [vmem:[#allocation2 + $0x98] sm:$0xff] }
 0x2bd   : > { %v2765_v5 = vpop.permute.xlu1 %2764  ;;  %v2866_v1 = vld [vmem:[#allocation2 + $0xa0] sm:$0xff]  ;;  %2838 = vst.msk [vmem:[#allocation2 + $0xaf] sm:$0xff] %vm2816_vm3, %v2763_v16 }
 0x2be   : > { %2839 = vst.msk [vmem:[#allocation2 + $0xb7] sm:$0xff] %vm2816_vm3, %v2765_v5  ;;  %v2889_v53 = vpack.c.bf16 %v2866_v1, %v2865_v47  ;;  %2649 = vrot.lane.b32.xlu0 %v4950_v43, %s4454_s15  ;;  %v4263_v34 = vpop.f32.mrb[48].mxu1 }
 0x2bf   : > { %2651 = vrot.lane.b32.xlu1 %v4933_v24, %s4454_s15  ;;  %v3009_v62 = vpop.f32.mrb[49].mxu1  ;;  %v3018_v35 = vadd.f32 %v4263_v34, %v5766_v60 }
 0x2c0   : > { %4277 = vmatprep.mubr.msk.bf16.mxu1 %vm1681_vm8, %v2889_v53  ;;  %v1800_v42 = vpop.permute.xlu0 %1799  ;;  %v3010_v22 = vadd.f32 %v5766_v60, %v3009_v62  ;;  %v4264_v32 = vpop.f32.mrb[50].mxu1 }
 0x2c1   : > { %v1802_v39 = vpop.permute.xlu1 %1801  ;;  %1873 = vst.msk [vmem:[#allocation2 + $0xe0] sm:$0xff] %vm1849_vm6, %v1800_v42  ;;  %v3021_v36 = vadd.f32 %v4264_v32, %v5766_v60  ;;  %v3012_v26 = vpop.f32.mrb[51].mxu1  ;;  %v3138_v12 = vmax.f32 %v3018_v35, 0.0 }
 0x2c2   : > { %1874 = vst.msk [vmem:[#allocation2 + $0xe8] sm:$0xff] %vm1849_vm6, %v1802_v39  ;;  %2774 = vrot.lane.b32.xlu0 %v4916_v13, %s4453_s12  ;;  %v3013_v15 = vadd.f32 %v5766_v60, %v3012_v26  ;;  %v3136_v20 = vmax.f32 %v3010_v22, 0.0 }
 0x2c3   : > { %2776 = vrot.lane.b32.xlu1 %v5702_v27, %s4453_s12  ;;  %v3139_v57 = vmax.f32 %v3021_v36, 0.0 }
 0x2c4   : > { %v1957_v58 = vpop.permute.xlu0 %1956  ;;  %v2867_v31 = vld [vmem:[#allocation2 + $0xa8] sm:$0xff]  ;;  %v3137_v46 = vmax.f32 %v3013_v15, 0.0 }
 0x2c5   : > { %v1959_v63 = vpop.permute.xlu1 %1958  ;;  %v2868_v14 = vld [vmem:[#allocation2 + $0xb0] sm:$0xff]  ;;  %2032 = vst.msk [vmem:[#allocation2 + $0xcf] sm:$0xff] %vm2010_vm7, %v1957_v58  ;;  %v3186_v13 = vpack.c.bf16 %v3139_v57, %v3138_v12 }
 0x2c6   : > { %2033 = vst.msk [vmem:[#allocation2 + $0xd7] sm:$0xff] %vm2010_vm7, %v1959_v63  ;;  %v2890_v37 = vpack.c.bf16 %v2868_v14, %v2867_v31  ;;  %1811 = vrot.lane.b32.xlu0 %v4950_v43, %s4448_s28  ;;  %v3185_v27 = vpack.c.bf16 %v3137_v46, %v3136_v20 }
 0x2c7   : > { %2778 = vrot.lane.b32.xlu1 %v4950_v43, %s4453_s12 }
 0x2c8   : > { %4278 = vmatmul.mubr.msk.bf16.gmra.mrb[64].mxu1 %vm1681_vm8, %v2890_v37  ;;  %v1961_v6 = vpop.permute.xlu0 %1960  ;;  %4295 = vmatprep.mubr.msk.bf16.mxu0 %vm3202_vm4, %v3185_v27 }
 0x2c9   : > { %v1963_v18 = vpop.permute.xlu1 %1962  ;;  %2034 = vst.msk [vmem:[#allocation2 + $0xdf] sm:$0xff] %vm2010_vm7, %v1961_v6  ;;  %4296 = vmatmul.mubr.msk.bf16.vlgmr.msra.gmra.mrb[16].mxu0 %vm3202_vm4, %v3186_v13 }
 0x2ca   : > { %2035 = vst.msk [vmem:[#allocation2 + $0xe7] sm:$0xff] %vm2010_vm7, %v1963_v18  ;;  %2780 = vrot.lane.b32.xlu0 %v1679_v0, %s4453_s12 }
 0x2cb   : > { %1972 = vrot.lane.b32.xlu1 %v4950_v43, %s4450_s30 }
 0x2cc   : > { %v2120_v25 = vpop.permute.xlu0 %2119 }
 0x2cd   : > { %v2122_v59 = vpop.permute.xlu1 %2121  ;;  %2194 = vst.msk [vmem:[#allocation2 + $0xc9] sm:$0xff] %vm2171_vm1, %v2120_v25 }
 0x2ce   : > { %2195 = vst.msk [vmem:[#allocation2 + $0xd1] sm:$0xff] %vm2171_vm1, %v2122_v59  ;;  %2135 = vrot.lane.b32.xlu0 %v4933_v24, %s4447_s27 }
 0x2cf   : > { %2264 = vrot.lane.b32.xlu1 %v4933_v24, %s4449_s29 }
 0x2d0   : > { %v2124_v2 = vpop.permute.xlu0 %2123 }
 0x2d1   : > { %v2126_v52 = vpop.permute.xlu1 %2125  ;;  %2196 = vst.msk [vmem:[#allocation2 + $0xd9] sm:$0xff] %vm2171_vm1, %v2124_v2 }
 0x2d2   : > { %2197 = vst.msk [vmem:[#allocation2 + $0xe1] sm:$0xff] %vm2171_vm1, %v2126_v52  ;;  %1813 = vrot.lane.b32.xlu0 %v4933_v24, %s4448_s28 }
 0x2d3   : > { %2393 = vrot.lane.b32.xlu1 %v1679_v0, %s4455_s16 }
 0x2d4   : > { %v2249_v43 = vpop.permute.xlu0 %2248 }
 0x2d5   : > { %v2251_v10 = vpop.permute.xlu1 %2250  ;;  %2323 = vst.msk [vmem:[#allocation2 + $0xc8] sm:$0xff] %vm2300_vm9, %v2249_v43 }
 0x2d6   : > { %2324 = vst.msk [vmem:[#allocation2 + $0xd0] sm:$0xff] %vm2300_vm9, %v2251_v10  ;;  %1974 = vrot.lane.b32.xlu0 %v1679_v0, %s4450_s30 }
 0x2d7   : > { %2524 = vrot.lane.b32.xlu1 %v5404_v29, %s4452_s11 }
 0x2d8   : > { %v2253_v11 = vpop.permute.xlu0 %2252 }
 0x2d9   : > { %v2255_v55 = vpop.permute.xlu1 %2254  ;;  %2325 = vst.msk [vmem:[#allocation2 + $0xd8] sm:$0xff] %vm2300_vm9, %v2253_v11 }
 0x2da   : > { %2326 = vst.msk [vmem:[#allocation2 + $0xe0] sm:$0xff] %vm2300_vm9, %v2255_v55  ;;  %2137 = vrot.lane.b32.xlu0 %v5404_v29, %s4447_s27 }
 0x2db   : > { %2653 = vrot.lane.b32.xlu1 %v4948_v40, %s4454_s15 }
 0x2dc   : > { %v2378_v24 = vpop.permute.xlu0 %2377 }
 0x2dd   : > { %v2380_v45 = vpop.permute.xlu1 %2379  ;;  %2452 = vst.msk [vmem:[#allocation2 + $0xc7] sm:$0xff] %vm2429_vm13, %v2378_v24 }
 0x2de   : > { %2453 = vst.msk [vmem:[#allocation2 + $0xcf] sm:$0xff] %vm2429_vm13, %v2380_v45  ;;  %2266 = vrot.lane.b32.xlu0 %v4948_v40, %s4449_s29 }
 0x2df   : > { %2782 = vrot.lane.b32.xlu1 %v4948_v40, %s4453_s12 }
 0x2e0   : > { %v2382_v49 = vpop.permute.xlu0 %2381 }
 0x2e1   : > { %v2384_v3 = vpop.permute.xlu1 %2383  ;;  %2454 = vst.msk [vmem:[#allocation2 + $0xd7] sm:$0xff] %vm2429_vm13, %v2382_v49 }
 0x2e2   : > { %2455 = vst.msk [vmem:[#allocation2 + $0xdf] sm:$0xff] %vm2429_vm13, %v2384_v3  ;;  %2395 = vrot.lane.b32.xlu0 %v4948_v40, %s4455_s16 }
 0x2e3   : > { %1815 = vrot.lane.b32.xlu1 %v4948_v40, %s4448_s28 }
 0x2e4   : > { %v2509_v29 = vpop.permute.xlu0 %2508 }
 0x2e5   : > { %v2511_v17 = vpop.permute.xlu1 %2510  ;;  %2582 = vst.msk [vmem:[#allocation2 + $0xc1] sm:$0xff] %vm2558_vm10, %v2509_v29 }
 0x2e6   : > { %2583 = vst.msk [vmem:[#allocation2 + $0xc9] sm:$0xff] %vm2558_vm10, %v2511_v17  ;;  %2591 = vrot.lane.b32.xlu0 %v4602_v44, %s4454_s15  ;;  %s5995_s15 = scalar_lea.vmem %s6103_s10, %s4063_s19 }
 0x2e7   : > { %1976 = vrot.lane.b32.xlu1 %v4948_v40, %s4450_s30 }
 0x2e8   : > { %v2513_v16 = vpop.permute.xlu0 %2512 }
 0x2e9   : > { %v2515_v5 = vpop.permute.xlu1 %2514  ;;  %2584 = vst.msk [vmem:[#allocation2 + $0xd1] sm:$0xff] %vm2558_vm10, %v2513_v16 }
 0x2ea   : > { %2585 = vst.msk [vmem:[#allocation2 + $0xd9] sm:$0xff] %vm2558_vm10, %v2515_v5  ;;  %2720 = vrot.lane.b32.xlu0 %v4765_v51, %s4453_s12 }
 0x2eb   : > { %2722 = vrot.lane.b32.xlu1 %v4624_v54, %s4453_s12 }
 0x2ec   : > { %v2638_v47 = vpop.permute.xlu0 %2637 }
 0x2ed   : > { %v2640_v1 = vpop.permute.xlu1 %2639  ;;  %2711 = vst.msk [vmem:[#allocation2 + $0xc0] sm:$0xff] %vm2687_vm0, %v2638_v47 }
 0x2ee   : > { %2712 = vst.msk [vmem:[#allocation2 + $0xc8] sm:$0xff] %vm2687_vm0, %v2640_v1 }
 0x2f0   : > { %v2642_v44 = vpop.permute.xlu0 %2641 }
 0x2f1   : > { %v2644_v40 = vpop.permute.xlu1 %2643  ;;  %2713 = vst.msk [vmem:[#allocation2 + $0xd0] sm:$0xff] %vm2687_vm0, %v2642_v44 }
 0x2f2   : > { %2714 = vst.msk [vmem:[#allocation2 + $0xd8] sm:$0xff] %vm2687_vm0, %v2644_v40 }
 0x2f4   : > { %v2767_v53 = vpop.permute.xlu0 %2766 }
 0x2f5   : > { %v2769_v34 = vpop.permute.xlu1 %2768  ;;  %2840 = vst.msk [vmem:[#allocation2 + $0xbf] sm:$0xff] %vm2816_vm3, %v2767_v53 }
 0x2f6   : > { %2841 = vst.msk [vmem:[#allocation2 + $0xc7] sm:$0xff] %vm2816_vm3, %v2769_v34 }
 0x2f8   : > { %v1804_v51 = vpop.permute.xlu0 %1803 }
 0x2f9   : > { %v1806_v54 = vpop.permute.xlu1 %1805  ;;  %1875 = vst.msk [vmem:[#allocation2 + $0xf0] sm:$0xff] %vm1849_vm6, %v1804_v51 }
 0x2fa   : > { %1876 = vst.msk [vmem:[#allocation2 + $0xf8] sm:$0xff] %vm1849_vm6, %v1806_v54 }
 0x2fc   : > { %v2771_v50 = vpop.permute.xlu0 %2770  ;;  %v2869_v35 = vld [vmem:[#allocation2 + $0xb8] sm:$0xff] }
 0x2fd   : > { %v2773_v62 = vpop.permute.xlu1 %2772  ;;  %v2870_v42 = vld [vmem:[#allocation2 + $0xc0] sm:$0xff]  ;;  %2842 = vst.msk [vmem:[#allocation2 + $0xcf] sm:$0xff] %vm2816_vm3, %v2771_v50 }
 0x2fe   : > { %2843 = vst.msk [vmem:[#allocation2 + $0xd7] sm:$0xff] %vm2816_vm3, %v2773_v62  ;;  %v2891_v39 = vpack.c.bf16 %v2870_v42, %v2869_v35 }
 0x300   : > { %4281 = vmatprep.mubr.msk.bf16.mxu1 %vm1681_vm8, %v2891_v39  ;;  %v1808_v22 = vpop.permute.xlu0 %1807 }
 0x301   : > { %v1810_v32 = vpop.permute.xlu1 %1809  ;;  %1877 = vst.msk [vmem:[#allocation2 + $0x100] sm:$0xff] %vm1849_vm6, %v1808_v22 }
 0x302   : > { %1878 = vst.msk [vmem:[#allocation2 + $0x108] sm:$0xff] %vm1849_vm6, %v1810_v32 }
 0x304   : > { %v1965_v36 = vpop.permute.xlu0 %1964  ;;  %v2871_v21 = vld [vmem:[#allocation2 + $0xc8] sm:$0xff] }
 0x305   : > { %v1967_v26 = vpop.permute.xlu1 %1966  ;;  %v2872_v15 = vld [vmem:[#allocation2 + $0xd0] sm:$0xff]  ;;  %2036 = vst.msk [vmem:[#allocation2 + $0xef] sm:$0xff] %vm2010_vm7, %v1965_v36 }
 0x306   : > { %2037 = vst.msk [vmem:[#allocation2 + $0xf7] sm:$0xff] %vm2010_vm7, %v1967_v26  ;;  %v2892_v12 = vpack.c.bf16 %v2872_v15, %v2871_v21 }
 0x308   : > { %4282 = vmatmul.mubr.msk.bf16.gmra.mrb[68].mxu1 %vm1681_vm8, %v2892_v12  ;;  %v1969_v57 = vpop.permute.xlu0 %1968 }
 0x309   : > { %v1971_v58 = vpop.permute.xlu1 %1970  ;;  %2038 = vst.msk [vmem:[#allocation2 + $0xff] sm:$0xff] %vm2010_vm7, %v1969_v57  ;;  %v4267_v63 = vpop.f32.mrb[52].mxu1 }
 0x30a   : > { %2039 = vst.msk [vmem:[#allocation2 + $0x107] sm:$0xff] %vm2010_vm7, %v1971_v58  ;;  %v3034_v31 = vadd.f32 %v4267_v63, %v5766_v60  ;;  %v3025_v14 = vpop.f32.mrb[53].mxu1 }
 0x30b   : > { %v3026_v20 = vadd.f32 %v5766_v60, %v3025_v14  ;;  %v4268_v46 = vpop.f32.mrb[54].mxu1 }
 0x30c   : > { %v3037_v37 = vadd.f32 %v4268_v46, %v5766_v60  ;;  %v3028_v13 = vpop.f32.mrb[55].mxu1  ;;  %v2128_v27 = vpop.permute.xlu0 %2127  ;;  %v3142_v0 = vmax.f32 %v3034_v31, 0.0 }
 0x30d   : > { %v3029_v6 = vadd.f32 %v5766_v60, %v3028_v13  ;;  %2198 = vst.msk [vmem:[#allocation2 + $0xe9] sm:$0xff] %vm2171_vm1, %v2128_v27  ;;  %v2130_v18 = vpop.permute.xlu1 %2129  ;;  %v3140_v59 = vmax.f32 %v3026_v20, 0.0 }
 0x30e   : > { %v3143_v25 = vmax.f32 %v3037_v37, 0.0  ;;  %2199 = vst.msk [vmem:[#allocation2 + $0xf1] sm:$0xff] %vm2171_vm1, %v2130_v18 }
 0x30f   : > { %v3141_v2 = vmax.f32 %v3029_v6, 0.0 }
 0x310   : > { %v3188_v52 = vpack.c.bf16 %v3143_v25, %v3142_v0  ;;  %v2132_v43 = vpop.permute.xlu0 %2131 }
 0x311   : > { %v3187_v10 = vpack.c.bf16 %v3141_v2, %v3140_v59  ;;  %2200 = vst.msk [vmem:[#allocation2 + $0xf9] sm:$0xff] %vm2171_vm1, %v2132_v43  ;;  %v2134_v11 = vpop.permute.xlu1 %2133 }
 0x312   : > { %2201 = vst.msk [vmem:[#allocation2 + $0x101] sm:$0xff] %vm2171_vm1, %v2134_v11 }
 0x313   : > { %4299 = vmatprep.mubr.msk.bf16.mxu0 %vm3202_vm4, %v3187_v10 }
 0x314   : > { %4300 = vmatmul.mubr.msk.bf16.gmra.mrb[20].mxu0 %vm3202_vm4, %v3188_v52  ;;  %v2257_v55 = vpop.permute.xlu0 %2256 }
 0x315   : > { %2327 = vst.msk [vmem:[#allocation2 + $0xe8] sm:$0xff] %vm2300_vm9, %v2257_v55  ;;  %v2259_v24 = vpop.permute.xlu1 %2258 }
 0x316   : > { %2328 = vst.msk [vmem:[#allocation2 + $0xf0] sm:$0xff] %vm2300_vm9, %v2259_v24 }
 0x318   : > { %v2261_v45 = vpop.permute.xlu0 %2260 }
 0x319   : > { %2329 = vst.msk [vmem:[#allocation2 + $0xf8] sm:$0xff] %vm2300_vm9, %v2261_v45  ;;  %v2263_v49 = vpop.permute.xlu1 %2262 }
 0x31a   : > { %2330 = vst.msk [vmem:[#allocation2 + $0x100] sm:$0xff] %vm2300_vm9, %v2263_v49 }
 0x31c   : > { %v2386_v3 = vpop.permute.xlu0 %2385 }
 0x31d   : > { %2456 = vst.msk [vmem:[#allocation2 + $0xe7] sm:$0xff] %vm2429_vm13, %v2386_v3  ;;  %v2388_v29 = vpop.permute.xlu1 %2387 }
 0x31e   : > { %2457 = vst.msk [vmem:[#allocation2 + $0xef] sm:$0xff] %vm2429_vm13, %v2388_v29 }
 0x320   : > { %v2390_v17 = vpop.permute.xlu0 %2389 }
 0x321   : > { %2458 = vst.msk [vmem:[#allocation2 + $0xf7] sm:$0xff] %vm2429_vm13, %v2390_v17  ;;  %v2392_v16 = vpop.permute.xlu1 %2391 }
 0x322   : > { %2459 = vst.msk [vmem:[#allocation2 + $0xff] sm:$0xff] %vm2429_vm13, %v2392_v16 }
 0x324   : > { %v2517_v5 = vpop.permute.xlu0 %2516 }
 0x325   : > { %2586 = vst.msk [vmem:[#allocation2 + $0xe1] sm:$0xff] %vm2558_vm10, %v2517_v5  ;;  %v2519_v47 = vpop.permute.xlu1 %2518 }
 0x326   : > { %2587 = vst.msk [vmem:[#allocation2 + $0xe9] sm:$0xff] %vm2558_vm10, %v2519_v47 }
 0x328   : > { %v2521_v1 = vpop.permute.xlu0 %2520 }
 0x329   : > { %2588 = vst.msk [vmem:[#allocation2 + $0xf1] sm:$0xff] %vm2558_vm10, %v2521_v1  ;;  %v2523_v44 = vpop.permute.xlu1 %2522 }
 0x32a   : > { %2589 = vst.msk [vmem:[#allocation2 + $0xf9] sm:$0xff] %vm2558_vm10, %v2523_v44 }
 0x32c   : > { %v2646_v40 = vpop.permute.xlu0 %2645 }
 0x32d   : > { %2715 = vst.msk [vmem:[#allocation2 + $0xe0] sm:$0xff] %vm2687_vm0, %v2646_v40  ;;  %v2648_v53 = vpop.permute.xlu1 %2647 }
 0x32e   : > { %2716 = vst.msk [vmem:[#allocation2 + $0xe8] sm:$0xff] %vm2687_vm0, %v2648_v53 }
 0x330   : > { %v2650_v34 = vpop.permute.xlu0 %2649 }
 0x331   : > { %2717 = vst.msk [vmem:[#allocation2 + $0xf0] sm:$0xff] %vm2687_vm0, %v2650_v34  ;;  %v2652_v51 = vpop.permute.xlu1 %2651 }
 0x332   : > { %2718 = vst.msk [vmem:[#allocation2 + $0xf8] sm:$0xff] %vm2687_vm0, %v2652_v51 }
 0x334   : > { %v2775_v54 = vpop.permute.xlu0 %2774 }
 0x335   : > { %2844 = vst.msk [vmem:[#allocation2 + $0xdf] sm:$0xff] %vm2816_vm3, %v2775_v54  ;;  %v2777_v50 = vpop.permute.xlu1 %2776 }
 0x336   : > { %2845 = vst.msk [vmem:[#allocation2 + $0xe7] sm:$0xff] %vm2816_vm3, %v2777_v50 }
 0x338   : > { %v1812_v62 = vpop.permute.xlu0 %1811 }
 0x339   : > { %1879 = vst.msk [vmem:[#allocation2 + $0x110] sm:$0xff] %vm1849_vm6, %v1812_v62  ;;  %v2779_v35 = vpop.permute.xlu1 %2778 }
 0x33a   : > { %2846 = vst.msk [vmem:[#allocation2 + $0xef] sm:$0xff] %vm2816_vm3, %v2779_v35 }
 0x33c   : > { %v2781_v42 = vpop.permute.xlu0 %2780  ;;  %v2873_v39 = vld [vmem:[#allocation2 + $0xd8] sm:$0xff] }
 0x33d   : > { %2847 = vst.msk [vmem:[#allocation2 + $0xf7] sm:$0xff] %vm2816_vm3, %v2781_v42  ;;  %v1973_v22 = vpop.permute.xlu1 %1972  ;;  %v2874_v32 = vld [vmem:[#allocation2 + $0xe0] sm:$0xff] }
 0x33e   : > { %2040 = vst.msk [vmem:[#allocation2 + $0x10f] sm:$0xff] %vm2010_vm7, %v1973_v22  ;;  %v2893_v36 = vpack.c.bf16 %v2874_v32, %v2873_v39 }
 0x340   : > { %4285 = vmatprep.mubr.msk.bf16.mxu1 %vm1681_vm8, %v2893_v36  ;;  %v2136_v15 = vpop.permute.xlu0 %2135 }
 0x341   : > { %2202 = vst.msk [vmem:[#allocation2 + $0x109] sm:$0xff] %vm2171_vm1, %v2136_v15  ;;  %v2265_v57 = vpop.permute.xlu1 %2264  ;;  %v2875_v27 = vld [vmem:[#allocation2 + $0xe8] sm:$0xff] }
 0x342   : > { %2331 = vst.msk [vmem:[#allocation2 + $0x108] sm:$0xff] %vm2300_vm9, %v2265_v57  ;;  %v3184_v57 = vld [vmem:[%s6100_s7] sm:$0xf] }
 0x343   : > { %4400 = vmatprep.subr.msk.bf16.mxu0 %vm3251_vm2, %v3184_v57 }
 0x344   : > { %v4271_v26 = vpop.f32.mrb[56].mxu1  ;;  %v1814_v13 = vpop.permute.xlu0 %1813  ;;  %v2876_v6 = vld [vmem:[#allocation2 + $0xf0] sm:$0xff] }
 0x345   : > { %v3050_v21 = vadd.f32 %v4271_v26, %v5766_v60  ;;  %v3041_v12 = vpop.f32.mrb[57].mxu1  ;;  %v2394_v25 = vpop.permute.xlu1 %2393  ;;  %v2894_v59 = vpack.c.bf16 %v2876_v6, %v2875_v27 }
 0x346   : > { %v3042_v58 = vadd.f32 %v5766_v60, %v3041_v12  ;;  %v4272_v63 = vpop.f32.mrb[58].mxu1  ;;  %2460 = vst.msk [vmem:[#allocation2 + $0x107] sm:$0xff] %vm2429_vm13, %v2394_v25 }
 0x347   : > { %v3053_v31 = vadd.f32 %v4272_v63, %v5766_v60  ;;  %v3044_v14 = vpop.f32.mrb[59].mxu1  ;;  %v3146_v46 = vmax.f32 %v3050_v21, 0.0  ;;  %4286 = vmatmul.mubr.msk.bf16.gmra.mrb[72].mxu1 %vm1681_vm8, %v2894_v59 }
 0x348   : > { %v3045_v20 = vadd.f32 %v5766_v60, %v3044_v14  ;;  %v3144_v18 = vmax.f32 %v3042_v58, 0.0  ;;  %v1975_v43 = vpop.permute.xlu0 %1974  ;;  %v3465_v58 = vsel %vm3251_vm2, %v3184_v57, 0 }
 0x349   : > { %v3147_v37 = vmax.f32 %v3053_v31, 0.0  ;;  %2041 = vst.msk [vmem:[#allocation2 + $0x117] sm:$0xff] %vm2010_vm7, %v1975_v43  ;;  %v2525_v10 = vpop.permute.xlu1 %2524  ;;  %4328 = vmatpush3.bf16.msra.mxu0 %v3465_v58 }
 0x34a   : > { %v3145_v0 = vmax.f32 %v3045_v20, 0.0  ;;  %2590 = vst.msk [vmem:[#allocation2 + $0x101] sm:$0xff] %vm2558_vm10, %v2525_v10 }
 0x34b   : > { %v3190_v2 = vpack.c.bf16 %v3147_v37, %v3146_v46 }
 0x34c   : > { %v3189_v52 = vpack.c.bf16 %v3145_v0, %v3144_v18  ;;  %v2138_v11 = vpop.permute.xlu0 %2137 }
 0x34d   : > { %2203 = vst.msk [vmem:[#allocation2 + $0x111] sm:$0xff] %vm2171_vm1, %v2138_v11  ;;  %v2654_v55 = vpop.permute.xlu1 %2653 }
 0x34e   : > { %4303 = vmatprep.mubr.msk.bf16.mxu0 %vm3202_vm4, %v3189_v52  ;;  %2719 = vst.msk [vmem:[#allocation2 + $0x100] sm:$0xff] %vm2687_vm0, %v2654_v55 }
 0x34f   : > { %4304 = vmatmul.mubr.msk.bf16.gmra.mrb[24].mxu0 %vm3202_vm4, %v3190_v2 }
 0x350   : > { %v2267_v24 = vpop.permute.xlu0 %2266 }
 0x351   : > { %2332 = vst.msk [vmem:[#allocation2 + $0x110] sm:$0xff] %vm2300_vm9, %v2267_v24  ;;  %v2783_v45 = vpop.permute.xlu1 %2782 }
 0x352   : > { %2848 = vst.msk [vmem:[#allocation2 + $0xff] sm:$0xff] %vm2816_vm3, %v2783_v45 }
 0x354   : > { %v2396_v49 = vpop.permute.xlu0 %2395 }
 0x355   : > { %2461 = vst.msk [vmem:[#allocation2 + $0x10f] sm:$0xff] %vm2429_vm13, %v2396_v49  ;;  %v1816_v3 = vpop.permute.xlu1 %1815 }
 0x358   : > { %v2592_v29 = vpop.permute.xlu0 %2591 }
 0x359   : > { %v1977_v17 = vpop.permute.xlu1 %1976  ;;  %v2877_v16 = vld [vmem:[#allocation2 + $0xf8] sm:$0xff]  ;;  %v2878_v5 = vld [vmem:[#allocation2 + $0x100] sm:$0xff] }
 0x35a   : > { %v4275_v47 = vpop.f32.mrb[60].mxu1  ;;  %v2895_v1 = vpack.c.bf16 %v2878_v5, %v2877_v16 }
 0x35b   : > { %v3066_v44 = vadd.f32 %v4275_v47, %v5766_v60  ;;  %v3057_v40 = vpop.f32.mrb[61].mxu1 }
 0x35c   : > { %v3058_v53 = vadd.f32 %v5766_v60, %v3057_v40  ;;  %4289 = vmatprep.mubr.msk.bf16.mxu1 %vm1681_vm8, %v2895_v1  ;;  %v2721_v34 = vpop.permute.xlu0 %2720  ;;  %v4276_v51 = vpop.f32.mrb[62].mxu1  ;;  %v2879_v54 = vld [vmem:[#allocation2 + $0x108] sm:$0xff]  ;;  %v2880_v50 = vld [vmem:[#allocation2 + $0x110] sm:$0xff] }
 0x35d   : > { %v2723_v62 = vpop.permute.xlu1 %2722  ;;  %v3069_v35 = vadd.f32 %v4276_v51, %v5766_v60  ;;  %v3060_v42 = vpop.f32.mrb[63].mxu1  ;;  %v2896_v39 = vpack.c.bf16 %v2880_v50, %v2879_v54  ;;  %v3150_v32 = vmax.f32 %v3066_v44, 0.0 }
 0x35e   : > { %v3061_v22 = vadd.f32 %v5766_v60, %v3060_v42  ;;  %v3148_v26 = vmax.f32 %v3058_v53, 0.0 }
 0x35f   : > { %v3151_v36 = vmax.f32 %v3069_v35, 0.0  ;;  %4290 = vmatmul.mubr.msk.bf16.gmra.mrb[76].mxu1 %vm1681_vm8, %v2896_v39  ;;  %vm3827_vm8 = vcmask 60416  }
 0x360   : > { %v3149_v21 = vmax.f32 %v3061_v22, 0.0 }
 0x361   : > { %v3192_v15 = vpack.c.bf16 %v3151_v36, %v3150_v32 }
 0x362   : > { %v3191_v12 = vpack.c.bf16 %v3149_v21, %v3148_v26 }
 0x364   : > { %4307 = vmatprep.mubr.msk.bf16.mxu0 %vm3202_vm4, %v3191_v12 }
 0x365   : > { %4308 = vmatmul.mubr.msk.bf16.gmra.mrb[28].mxu0 %vm3202_vm4, %v3192_v15 }
 0x39b   : > { %v4279_v63 = vpop.f32.mrb[64].mxu1 }
 0x39c   : > { %v3082_v31 = vadd.f32 %v4279_v63, %v5766_v60  ;;  %v3073_v14 = vpop.f32.mrb[65].mxu1 }
 0x39d   : > { %v3074_v20 = vadd.f32 %v5766_v60, %v3073_v14  ;;  %v4280_v46 = vpop.f32.mrb[66].mxu1 }
 0x39e   : > { %v3085_v37 = vadd.f32 %v4280_v46, %v5766_v60  ;;  %v3076_v13 = vpop.f32.mrb[67].mxu1  ;;  %v3154_v6 = vmax.f32 %v3082_v31, 0.0 }
 0x39f   : > { %v3077_v27 = vadd.f32 %v5766_v60, %v3076_v13  ;;  %v3152_v0 = vmax.f32 %v3074_v20, 0.0 }
 0x3a0   : > { %v3155_v18 = vmax.f32 %v3085_v37, 0.0 }
 0x3a1   : > { %v3153_v25 = vmax.f32 %v3077_v27, 0.0  ;;  %v6116_v27 = vld [vmem:[#allocation4_spill] sm:$0xff] }
 0x3a2   : > { %v3194_v59 = vpack.c.bf16 %v3155_v18, %v3154_v6  ;;  %v6117_v6 = vld [vmem:[#allocation3_spill] sm:$0xff] }
 0x3a3   : > { %v3193_v2 = vpack.c.bf16 %v3153_v25, %v3152_v0 }
 0x3a5   : > { %4311 = vmatprep.mubr.msk.bf16.mxu0 %vm3202_vm4, %v3193_v2 }
 0x3a6   : > { %4312 = vmatmul.mubr.msk.bf16.gmra.mrb[32].mxu0 %vm3202_vm4, %v3194_v59 }
 0x3db   : > { %v4283_v52 = vpop.f32.mrb[68].mxu1 }
 0x3dc   : > { %v3098_v43 = vadd.f32 %v4283_v52, %v5766_v60  ;;  %v3089_v10 = vpop.f32.mrb[69].mxu1 }
 0x3dd   : > { %v3090_v11 = vadd.f32 %v5766_v60, %v3089_v10  ;;  %v4284_v55 = vpop.f32.mrb[70].mxu1 }
 0x3de   : > { %v3101_v24 = vadd.f32 %v4284_v55, %v5766_v60  ;;  %v3092_v45 = vpop.f32.mrb[71].mxu1  ;;  %v3158_v3 = vmax.f32 %v3098_v43, 0.0 }
 0x3df   : > { %v3093_v49 = vadd.f32 %v5766_v60, %v3092_v45  ;;  %v3156_v17 = vmax.f32 %v3090_v11, 0.0 }
 0x3e0   : > { %v3159_v29 = vmax.f32 %v3101_v24, 0.0 }
 0x3e1   : > { %v3157_v16 = vmax.f32 %v3093_v49, 0.0 }
 0x3e2   : > { %v3196_v5 = vpack.c.bf16 %v3159_v29, %v3158_v3 }
 0x3e3   : > { %v3195_v47 = vpack.c.bf16 %v3157_v16, %v3156_v17 }
 0x3e5   : > { %4315 = vmatprep.mubr.msk.bf16.mxu0 %vm3202_vm4, %v3195_v47 }
 0x3e6   : > { %4316 = vmatmul.mubr.msk.bf16.gmra.mrb[36].mxu0 %vm3202_vm4, %v3196_v5 }
 0x41a   : > { %v4287_v1 = vpop.f32.mrb[72].mxu1 }
 0x41b   : > { %v3114_v44 = vadd.f32 %v4287_v1, %v5766_v60  ;;  %v3105_v40 = vpop.f32.mrb[73].mxu1 }
 0x41c   : > { %v3106_v53 = vadd.f32 %v5766_v60, %v3105_v40  ;;  %v4288_v34 = vpop.f32.mrb[74].mxu1 }
 0x41d   : > { %v3117_v51 = vadd.f32 %v4288_v34, %v5766_v60  ;;  %v3108_v54 = vpop.f32.mrb[75].mxu1  ;;  %v3162_v62 = vmax.f32 %v3114_v44, 0.0 }
 0x41e   : > { %v3109_v50 = vadd.f32 %v5766_v60, %v3108_v54  ;;  %v3160_v42 = vmax.f32 %v3106_v53, 0.0 }
 0x41f   : > { %v3163_v35 = vmax.f32 %v3117_v51, 0.0 }
 0x420   : > { %v3161_v39 = vmax.f32 %v3109_v50, 0.0 }
 0x421   : > { %v3198_v22 = vpack.c.bf16 %v3163_v35, %v3162_v62 }
 0x422   : > { %v3197_v32 = vpack.c.bf16 %v3161_v39, %v3160_v42 }
 0x424   : > { %4319 = vmatprep.mubr.msk.bf16.mxu0 %vm3202_vm4, %v3197_v32 }
 0x425   : > { %4320 = vmatmul.mubr.msk.bf16.gmra.mrb[40].mxu0 %vm3202_vm4, %v3198_v22 }
 0x432   : > { %v4291_v36 = vpop.f32.mrb[76].mxu1 }
 0x433   : > { %v3130_v26 = vadd.f32 %v4291_v36, %v5766_v60  ;;  %v3121_v21 = vpop.f32.mrb[77].mxu1 }
 0x434   : > { %v3122_v15 = vadd.f32 %v5766_v60, %v3121_v21  ;;  %v4292_v12 = vpop.f32.mrb[78].mxu1 }
 0x435   : > { %v3133_v57 = vadd.f32 %v4292_v12, %v5766_v60  ;;  %v3124_v58 = vpop.f32.mrb[79].mxu1  ;;  %v3166_v31 = vmax.f32 %v3130_v26, 0.0 }
 0x436   : > { %v3125_v63 = vadd.f32 %v5766_v60, %v3124_v58  ;;  %v3164_v20 = vmax.f32 %v3122_v15, 0.0 }
 0x437   : > { %v3167_v14 = vmax.f32 %v3133_v57, 0.0 }
 0x438   : > { %v3165_v46 = vmax.f32 %v3125_v63, 0.0 }
 0x439   : > { %v3200_v37 = vpack.c.bf16 %v3167_v14, %v3166_v31 }
 0x43a   : > { %v3199_v13 = vpack.c.bf16 %v3165_v46, %v3164_v20 }
 0x43c   : > { %4323 = vmatprep.mubr.msk.bf16.mxu0 %vm3202_vm4, %v3199_v13 }
 0x43d   : > { %4324 = vmatmul.mubr.msk.bf16.gmra.mrb[44].mxu0 %vm3202_vm4, %v3200_v37 }
 0x43e   : > { %4329 = vmatprep.mubr.msk.bf16.mxu0 %vm3202_vm4, %v6116_v27 }
 0x445   : > { %4330 = vmatmul.mubr.msk.bf16.vlgmr.msra.gmra.mrb[16].mxu0 %vm3202_vm4, %v6117_v6 }
 0x446   : > { %4333 = vmatprep.mubr.msk.bf16.mxu0 %vm3202_vm4, %v5253_v48  ;;  %v5985_v48 = vld [vmem:[%s6102_s9] ss:$0 sm:$0xff] }
 0x44d   : > { %4334 = vmatmul.mubr.msk.bf16.gmra.mrb[20].mxu0 %vm3202_vm4, %v5249_v8 }
 0x44e   : > { %4337 = vmatprep.mubr.msk.bf16.mxu0 %vm3202_vm4, %v5286_v28 }
 0x455   : > { %4338 = vmatmul.mubr.msk.bf16.gmra.mrb[24].mxu0 %vm3202_vm4, %v5282_v56 }
 0x456   : > { %4341 = vmatprep.mubr.msk.bf16.mxu0 %vm3202_vm4, %v5317_v9 }
 0x45d   : > { %4342 = vmatmul.mubr.msk.bf16.gmra.mrb[28].mxu0 %vm3202_vm4, %v5311_v30 }
 0x45e   : > { %4345 = vmatprep.mubr.msk.bf16.mxu0 %vm3202_vm4, %v5343_v38 }
 0x465   : > { %4346 = vmatmul.mubr.msk.bf16.gmra.mrb[32].mxu0 %vm3202_vm4, %v5341_v33 }
 0x466   : > { %4349 = vmatprep.mubr.msk.bf16.mxu0 %vm3202_vm4, %v5507_v4 }
 0x46d   : > { %4350 = vmatmul.mubr.msk.bf16.gmra.mrb[36].mxu0 %vm3202_vm4, %v5504_v7 }
 0x46e   : > { %4353 = vmatprep.mubr.msk.bf16.mxu0 %vm3202_vm4, %v5524_v19 }
 0x475   : > { %4354 = vmatmul.mubr.msk.bf16.gmra.mrb[40].mxu0 %vm3202_vm4, %v5521_v61 }
 0x476   : > { %4357 = vmatprep.mubr.msk.bf16.mxu0 %vm3202_vm4, %v5547_v41 }
 0x47d   : > { %4358 = vmatmul.mubr.msk.bf16.gmra.mrb[44].mxu0 %vm3202_vm4, %v5534_v23 }
 0x518   : > { %v4331_v8 = vpop.f32.mrb[16].mxu0 }
 0x519   : > { %v3637_v56 = vadd.f32 %v4331_v8, %v5985_v48  ;;  %v3501_v28 = vpop.f32.mrb[17].mxu0 }
 0x51a   : > { %v3635_v30 = vadd.f32 %v5985_v48, %v3501_v28  ;;  %v4332_v9 = vpop.f32.mrb[18].mxu0 }
 0x51b   : > { %v3669_v33 = vmax.f32 %v3637_v56, 0.0  ;;  %v3638_v38 = vadd.f32 %v4332_v9, %v5985_v48  ;;  %v3504_v7 = vpop.f32.mrb[19].mxu0 }
 0x51c   : > { %v3667_v4 = vmax.f32 %v3635_v30, 0.0  ;;  %v3636_v61 = vadd.f32 %v5985_v48, %v3504_v7 }
 0x51d   : > { %v4067_v19 = vpack.c.bf16 %v3669_v33, %v3669_v33  ;;  %v3670_v23 = vmax.f32 %v3638_v38, 0.0 }
 0x51e   : > { %v4065_v41 = vpack.c.bf16 %v3667_v4, %v3667_v4  ;;  %v3668_v60 = vmax.f32 %v3636_v61, 0.0 }
 0x51f   : > { %3830 = vst.msk [vmem:[%s5995_s15 + $0x8] sm:$0xf] %vm3827_vm8, %v4067_v19  ;;  %v4068_v18 = vpack.c.bf16 %v3670_v23, %v3670_v23 }
 0x520   : > { %3828 = vst.msk [vmem:[%s5995_s15] sm:$0xf] %vm3827_vm8, %v4065_v41  ;;  %v4066_v0 = vpack.c.bf16 %v3668_v60, %v3668_v60  ;;  %v4335_v25 = vpop.f32.mrb[20].mxu0 }
 0x521   : > { %3831 = vst.msk [vmem:[%s5995_s15 + $0xc] sm:$0xf] %vm3827_vm8, %v4068_v18  ;;  %v3641_v59 = vadd.f32 %v4335_v25, %v5985_v48  ;;  %v3517_v2 = vpop.f32.mrb[21].mxu0 }
 0x522   : > { %3829 = vst.msk [vmem:[%s5995_s15 + $0x4] sm:$0xf] %vm3827_vm8, %v4066_v0  ;;  %v3639_v52 = vadd.f32 %v5985_v48, %v3517_v2  ;;  %v4336_v43 = vpop.f32.mrb[22].mxu0 }
 0x523   : > { %v3673_v10 = vmax.f32 %v3641_v59, 0.0  ;;  %v3642_v11 = vadd.f32 %v4336_v43, %v5985_v48  ;;  %v3520_v55 = vpop.f32.mrb[23].mxu0 }
 0x524   : > { %v3671_v24 = vmax.f32 %v3639_v52, 0.0  ;;  %v3640_v45 = vadd.f32 %v5985_v48, %v3520_v55 }
 0x525   : > { %v4071_v49 = vpack.c.bf16 %v3673_v10, %v3673_v10  ;;  %v3674_v3 = vmax.f32 %v3642_v11, 0.0 }
 0x526   : > { %v4069_v29 = vpack.c.bf16 %v3671_v24, %v3671_v24  ;;  %v3672_v17 = vmax.f32 %v3640_v45, 0.0 }
 0x527   : > { %3834 = vst.msk [vmem:[%s5995_s15 + $0x18] sm:$0xf] %vm3827_vm8, %v4071_v49  ;;  %v4072_v16 = vpack.c.bf16 %v3674_v3, %v3674_v3 }
 0x528   : > { %3832 = vst.msk [vmem:[%s5995_s15 + $0x10] sm:$0xf] %vm3827_vm8, %v4069_v29  ;;  %v4070_v5 = vpack.c.bf16 %v3672_v17, %v3672_v17  ;;  %v4339_v47 = vpop.f32.mrb[24].mxu0 }
 0x529   : > { %3835 = vst.msk [vmem:[%s5995_s15 + $0x1c] sm:$0xf] %vm3827_vm8, %v4072_v16  ;;  %v3645_v1 = vadd.f32 %v4339_v47, %v5985_v48  ;;  %v3533_v44 = vpop.f32.mrb[25].mxu0 }
 0x52a   : > { %3833 = vst.msk [vmem:[%s5995_s15 + $0x14] sm:$0xf] %vm3827_vm8, %v4070_v5  ;;  %v3643_v40 = vadd.f32 %v5985_v48, %v3533_v44  ;;  %v4340_v53 = vpop.f32.mrb[26].mxu0 }
 0x52b   : > { %v3677_v34 = vmax.f32 %v3645_v1, 0.0  ;;  %v3646_v51 = vadd.f32 %v4340_v53, %v5985_v48  ;;  %v3536_v54 = vpop.f32.mrb[27].mxu0 }
 0x52c   : > { %v3675_v50 = vmax.f32 %v3643_v40, 0.0  ;;  %v3644_v62 = vadd.f32 %v5985_v48, %v3536_v54 }
 0x52d   : > { %v4075_v35 = vpack.c.bf16 %v3677_v34, %v3677_v34  ;;  %v3678_v42 = vmax.f32 %v3646_v51, 0.0 }
 0x52e   : > { %v4073_v39 = vpack.c.bf16 %v3675_v50, %v3675_v50  ;;  %v3676_v22 = vmax.f32 %v3644_v62, 0.0 }
 0x52f   : > { %3838 = vst.msk [vmem:[%s5995_s15 + $0x28] sm:$0xf] %vm3827_vm8, %v4075_v35  ;;  %v4076_v32 = vpack.c.bf16 %v3678_v42, %v3678_v42 }
 0x530   : > { %3836 = vst.msk [vmem:[%s5995_s15 + $0x20] sm:$0xf] %vm3827_vm8, %v4073_v39  ;;  %v4074_v36 = vpack.c.bf16 %v3676_v22, %v3676_v22  ;;  %v4343_v26 = vpop.f32.mrb[28].mxu0 }
 0x531   : > { %3839 = vst.msk [vmem:[%s5995_s15 + $0x2c] sm:$0xf] %vm3827_vm8, %v4076_v32  ;;  %v3649_v21 = vadd.f32 %v4343_v26, %v5985_v48  ;;  %v3549_v15 = vpop.f32.mrb[29].mxu0 }
 0x532   : > { %3837 = vst.msk [vmem:[%s5995_s15 + $0x24] sm:$0xf] %vm3827_vm8, %v4074_v36  ;;  %v3647_v12 = vadd.f32 %v5985_v48, %v3549_v15  ;;  %v4344_v57 = vpop.f32.mrb[30].mxu0 }
 0x533   : > { %v3681_v58 = vmax.f32 %v3649_v21, 0.0  ;;  %v3650_v63 = vadd.f32 %v4344_v57, %v5985_v48  ;;  %v3552_v31 = vpop.f32.mrb[31].mxu0 }
 0x534   : > { %v3679_v14 = vmax.f32 %v3647_v12, 0.0  ;;  %v3648_v20 = vadd.f32 %v5985_v48, %v3552_v31 }
 0x535   : > { %v4079_v46 = vpack.c.bf16 %v3681_v58, %v3681_v58  ;;  %v3682_v37 = vmax.f32 %v3650_v63, 0.0 }
 0x536   : > { %v4077_v13 = vpack.c.bf16 %v3679_v14, %v3679_v14  ;;  %v3680_v27 = vmax.f32 %v3648_v20, 0.0 }
 0x537   : > { %3842 = vst.msk [vmem:[%s5995_s15 + $0x38] sm:$0xf] %vm3827_vm8, %v4079_v46  ;;  %v4080_v6 = vpack.c.bf16 %v3682_v37, %v3682_v37 }
 0x538   : > { %3840 = vst.msk [vmem:[%s5995_s15 + $0x30] sm:$0xf] %vm3827_vm8, %v4077_v13  ;;  %v4078_v8 = vpack.c.bf16 %v3680_v27, %v3680_v27  ;;  %v4347_v56 = vpop.f32.mrb[32].mxu0 }
 0x539   : > { %3843 = vst.msk [vmem:[%s5995_s15 + $0x3c] sm:$0xf] %vm3827_vm8, %v4080_v6  ;;  %v3653_v28 = vadd.f32 %v4347_v56, %v5985_v48  ;;  %v3565_v30 = vpop.f32.mrb[33].mxu0 }
 0x53a   : > { %3841 = vst.msk [vmem:[%s5995_s15 + $0x34] sm:$0xf] %vm3827_vm8, %v4078_v8  ;;  %v3651_v9 = vadd.f32 %v5985_v48, %v3565_v30  ;;  %v4348_v33 = vpop.f32.mrb[34].mxu0 }
 0x53b   : > { %v3685_v38 = vmax.f32 %v3653_v28, 0.0  ;;  %v3654_v7 = vadd.f32 %v4348_v33, %v5985_v48  ;;  %v3568_v4 = vpop.f32.mrb[35].mxu0 }
 0x53c   : > { %v3683_v61 = vmax.f32 %v3651_v9, 0.0  ;;  %v3652_v19 = vadd.f32 %v5985_v48, %v3568_v4 }
 0x53d   : > { %v4083_v23 = vpack.c.bf16 %v3685_v38, %v3685_v38  ;;  %v3686_v41 = vmax.f32 %v3654_v7, 0.0 }
 0x53e   : > { %v4081_v60 = vpack.c.bf16 %v3683_v61, %v3683_v61  ;;  %v3684_v18 = vmax.f32 %v3652_v19, 0.0 }
 0x53f   : > { %3846 = vst.msk [vmem:[%s5995_s15 + $0x48] sm:$0xf] %vm3827_vm8, %v4083_v23  ;;  %v4084_v0 = vpack.c.bf16 %v3686_v41, %v3686_v41 }
 0x540   : > { %3844 = vst.msk [vmem:[%s5995_s15 + $0x40] sm:$0xf] %vm3827_vm8, %v4081_v60  ;;  %v4082_v25 = vpack.c.bf16 %v3684_v18, %v3684_v18  ;;  %v4351_v59 = vpop.f32.mrb[36].mxu0 }
 0x541   : > { %3847 = vst.msk [vmem:[%s5995_s15 + $0x4c] sm:$0xf] %vm3827_vm8, %v4084_v0  ;;  %v3657_v2 = vadd.f32 %v4351_v59, %v5985_v48  ;;  %v3581_v52 = vpop.f32.mrb[37].mxu0 }
 0x542   : > { %3845 = vst.msk [vmem:[%s5995_s15 + $0x44] sm:$0xf] %vm3827_vm8, %v4082_v25  ;;  %v3655_v43 = vadd.f32 %v5985_v48, %v3581_v52  ;;  %v4352_v10 = vpop.f32.mrb[38].mxu0 }
 0x543   : > { %v3689_v11 = vmax.f32 %v3657_v2, 0.0  ;;  %v3658_v55 = vadd.f32 %v4352_v10, %v5985_v48  ;;  %v3584_v24 = vpop.f32.mrb[39].mxu0 }
 0x544   : > { %v3687_v45 = vmax.f32 %v3655_v43, 0.0  ;;  %v3656_v49 = vadd.f32 %v5985_v48, %v3584_v24 }
 0x545   : > { %v4087_v3 = vpack.c.bf16 %v3689_v11, %v3689_v11  ;;  %v3690_v29 = vmax.f32 %v3658_v55, 0.0 }
 0x546   : > { %v4085_v17 = vpack.c.bf16 %v3687_v45, %v3687_v45  ;;  %v3688_v16 = vmax.f32 %v3656_v49, 0.0 }
 0x547   : > { %3850 = vst.msk [vmem:[%s5995_s15 + $0x58] sm:$0xf] %vm3827_vm8, %v4087_v3  ;;  %v4088_v5 = vpack.c.bf16 %v3690_v29, %v3690_v29 }
 0x548   : > { %3848 = vst.msk [vmem:[%s5995_s15 + $0x50] sm:$0xf] %vm3827_vm8, %v4085_v17  ;;  %v4086_v47 = vpack.c.bf16 %v3688_v16, %v3688_v16  ;;  %v4355_v1 = vpop.f32.mrb[40].mxu0 }
 0x549   : > { %3851 = vst.msk [vmem:[%s5995_s15 + $0x5c] sm:$0xf] %vm3827_vm8, %v4088_v5  ;;  %v3661_v44 = vadd.f32 %v4355_v1, %v5985_v48  ;;  %v3597_v40 = vpop.f32.mrb[41].mxu0 }
 0x54a   : > { %3849 = vst.msk [vmem:[%s5995_s15 + $0x54] sm:$0xf] %vm3827_vm8, %v4086_v47  ;;  %v3659_v53 = vadd.f32 %v5985_v48, %v3597_v40  ;;  %v4356_v34 = vpop.f32.mrb[42].mxu0 }
 0x54b   : > { %v3693_v51 = vmax.f32 %v3661_v44, 0.0  ;;  %v3662_v54 = vadd.f32 %v4356_v34, %v5985_v48  ;;  %v3600_v50 = vpop.f32.mrb[43].mxu0 }
 0x54c   : > { %v3691_v62 = vmax.f32 %v3659_v53, 0.0  ;;  %v3660_v35 = vadd.f32 %v5985_v48, %v3600_v50 }
 0x54d   : > { %v4091_v42 = vpack.c.bf16 %v3693_v51, %v3693_v51  ;;  %v3694_v39 = vmax.f32 %v3662_v54, 0.0 }
 0x54e   : > { %v4089_v22 = vpack.c.bf16 %v3691_v62, %v3691_v62  ;;  %v3692_v32 = vmax.f32 %v3660_v35, 0.0 }
 0x54f   : > { %3854 = vst.msk [vmem:[%s5995_s15 + $0x68] sm:$0xf] %vm3827_vm8, %v4091_v42  ;;  %v4092_v36 = vpack.c.bf16 %v3694_v39, %v3694_v39 }
 0x550   : > { %3852 = vst.msk [vmem:[%s5995_s15 + $0x60] sm:$0xf] %vm3827_vm8, %v4089_v22  ;;  %v4090_v26 = vpack.c.bf16 %v3692_v32, %v3692_v32  ;;  %v4359_v21 = vpop.f32.mrb[44].mxu0 }
 0x551   : > { %3855 = vst.msk [vmem:[%s5995_s15 + $0x6c] sm:$0xf] %vm3827_vm8, %v4092_v36  ;;  %v3665_v15 = vadd.f32 %v4359_v21, %v5985_v48  ;;  %v3613_v12 = vpop.f32.mrb[45].mxu0 }
 0x552   : > { %3853 = vst.msk [vmem:[%s5995_s15 + $0x64] sm:$0xf] %vm3827_vm8, %v4090_v26  ;;  %v3663_v57 = vadd.f32 %v5985_v48, %v3613_v12  ;;  %v4360_v58 = vpop.f32.mrb[46].mxu0 }
 0x553   : > { %v3697_v63 = vmax.f32 %v3665_v15, 0.0  ;;  %v3666_v31 = vadd.f32 %v4360_v58, %v5985_v48  ;;  %v3616_v14 = vpop.f32.mrb[47].mxu0 }
 0x554   : > { %v3695_v20 = vmax.f32 %v3663_v57, 0.0  ;;  %v3664_v46 = vadd.f32 %v5985_v48, %v3616_v14 }
 0x555   : > { %v4095_v37 = vpack.c.bf16 %v3697_v63, %v3697_v63  ;;  %v3698_v13 = vmax.f32 %v3666_v31, 0.0 }
 0x556   : > { %v4093_v27 = vpack.c.bf16 %v3695_v20, %v3695_v20  ;;  %v3696_v6 = vmax.f32 %v3664_v46, 0.0 }
 0x557   : > { %3858 = vst.msk [vmem:[%s5995_s15 + $0x78] sm:$0xf] %vm3827_vm8, %v4095_v37  ;;  %v4096_v8 = vpack.c.bf16 %v3698_v13, %v3698_v13 }
 0x558   : > { %3856 = vst.msk [vmem:[%s5995_s15 + $0x70] sm:$0xf] %vm3827_vm8, %v4093_v27  ;;  %v4094_v56 = vpack.c.bf16 %v3696_v6, %v3696_v6 }
 0x559   : > { %3859 = vst.msk [vmem:[%s5995_s15 + $0x7c] sm:$0xf] %vm3827_vm8, %v4096_v8 }
 0x55a   : > { %3857 = vst.msk [vmem:[%s5995_s15 + $0x74] sm:$0xf] %vm3827_vm8, %v4094_v56 }
 0x55b PF: > { %s20_s13 = sadd.s32 1, %s4445_s13  }
 0x55c   : > { %p17_p4 = scmp.ge.s32.totalorder %s20_s13, 4  }
 0x55e   :  { %19 = sbr.rel (!%p17_p4) target bundleno = 1 (0x1), region = 90 }

</bundles_post_ra>
